<compile_context>
chip_gen: v7x
topology: tpu7x:2x2x1
jax: 0.10.0
libtpu: 0.0.40
codegen_flags: <defaults>
</compile_context>

<pallas_src>
import functools
import math

import numpy as np
import jax
import jax.numpy as jnp
from jax.experimental import pallas as pl
from jax.experimental.pallas import tpu as pltpu


# ----------------------------------------------------------------------------
# Pallas kernels
# ----------------------------------------------------------------------------
def resize_kernel(x_ref, ah_ref, awt_ref, o_ref):
    """Separable bilinear resize for one image: out[c] = Ah @ x[c] @ Aw^T."""
    ah = ah_ref[...]
    awt = awt_ref[...]
    for c in range(x_ref.shape[1]):
        t = jnp.dot(ah, x_ref[0, c].astype(jnp.float32),
                    preferred_element_type=jnp.float32)
        o_ref[0, c] = jnp.dot(t, awt,
                              preferred_element_type=jnp.float32).astype(o_ref.dtype)


def matmul_bias_kernel(x_ref, w_ref, b_ref, o_ref):
    """(R,K) @ (K,D) + b with bf16 operands and f32 accumulation."""
    o_ref[...] = (jnp.dot(x_ref[...], w_ref[...],
                          preferred_element_type=jnp.float32)
                  + b_ref[...]).astype(o_ref.dtype)


def _layernorm(x, w, b, eps=1e-5):
    mu = jnp.mean(x, axis=-1, keepdims=True)
    xc = x - mu
    var = jnp.mean(xc * xc, axis=-1, keepdims=True)
    return xc * jax.lax.rsqrt(var + eps) * w + b


def _gelu(x):
    # tanh-approximate GELU (see TODO at top of file).
    c = math.sqrt(2.0 / math.pi)
    return 0.5 * x * (1.0 + jnp.tanh(c * (x + 0.044715 * x * x * x)))


def vit_layer_kernel(x_ref, ln1w_ref, ln1b_ref, wqkv_ref, wo_ref, bo_ref,
                     ln2w_ref, ln2b_ref, w1_ref, b1_ref, w2_ref, b2_ref,
                     o_ref, *, heads, dim_head):
    """One pre-LN transformer layer.  Grid axis 0 = layer index; the residual
    stream is carried in o_ref (resident in VMEM across the grid)."""
    layer = pl.program_id(0)

    @pl.when(layer == 0)
    def _():
        o_ref[...] = x_ref[...]

    inner = heads * dim_head
    scale = float(dim_head) ** -0.5
    wqkv = wqkv_ref[0]   # (D, 3*inner) bf16
    wo = wo_ref[0]       # (inner, D)   bf16
    w1 = w1_ref[0]       # (D, mlp)     bf16
    w2 = w2_ref[0]       # (mlp, D)     bf16

    for b in range(o_ref.shape[0]):
        x = o_ref[b].astype(jnp.float32)                       # (S, D)

        # ---- pre-LN multi-head self-attention ----
        xn = _layernorm(x, ln1w_ref[0], ln1b_ref[0])
        qkv = jnp.dot(xn.astype(jnp.bfloat16), wqkv,
                      preferred_element_type=jnp.float32)       # (S, 3*inner)
        proj = jnp.zeros_like(x)                                # (S, D)
        for h in range(heads):
            lo = h * dim_head
            q = qkv[:, lo:lo + dim_head].astype(jnp.bfloat16)
            k = qkv[:, inner + lo:inner + lo + dim_head].astype(jnp.bfloat16)
            v = qkv[:, 2 * inner + lo:2 * inner + lo + dim_head].astype(jnp.bfloat16)
            dots = jax.lax.dot_general(
                q, k, (((1,), (1,)), ((), ())),
                preferred_element_type=jnp.float32) * scale     # (S, S)
            dots = dots - jnp.max(dots, axis=-1, keepdims=True)
            p = jnp.exp(dots)
            p = p / jnp.sum(p, axis=-1, keepdims=True)
            out_h = jnp.dot(p.astype(jnp.bfloat16), v,
                            preferred_element_type=jnp.float32)  # (S, dh)
            # accumulate this head's slice of the output projection
            proj = proj + jnp.dot(out_h.astype(jnp.bfloat16),
                                  wo[lo:lo + dim_head, :],
                                  preferred_element_type=jnp.float32)
        x = x + proj + bo_ref[0]

        # ---- pre-LN MLP ----
        xn2 = _layernorm(x, ln2w_ref[0], ln2b_ref[0])
        h1 = jnp.dot(xn2.astype(jnp.bfloat16), w1,
                     preferred_element_type=jnp.float32) + b1_ref[0]
        h1 = _gelu(h1)
        x = x + jnp.dot(h1.astype(jnp.bfloat16), w2,
                        preferred_element_type=jnp.float32) + b2_ref[0]

        o_ref[b] = x.astype(o_ref.dtype)


def conv3x3_kernel(xp_ref, w_ref, b_ref, o_ref, *, H, W, cin, cout):
    """Direct 3x3 'same' conv as a VPU stencil (NCHW, W on the lane axis).

    xp_ref: (1, cin, H+2, W+2) zero-padded input
    w_ref : SMEM (cout*cin*9,) flattened weights, idx ((co*cin+ci)*3+dh)*3+dw
    b_ref : SMEM (cout,)
    o_ref : (1, cout, H, W)
    """
    for co in range(cout):
        acc = jnp.full((H, W), b_ref[co], dtype=jnp.float32)
        for ci in range(cin):
            plane = xp_ref[0, ci].astype(jnp.float32)          # (H+2, W+2)
            for dh in range(3):
                for dw in range(3):
                    w = w_ref[((co * cin + ci) * 3 + dh) * 3 + dw]
                    acc = acc + w * plane[dh:dh + H, dw:dw + W]
        o_ref[0, co] = acc.astype(o_ref.dtype)


# ----------------------------------------------------------------------------
# Wrappers around pallas_call
# ----------------------------------------------------------------------------
def _bilinear_matrix(n_in, n_out):
    """Bilinear interpolation matrix, half-pixel centers (align_corners=False)."""
    m = np.zeros((n_out, n_in), dtype=np.float32)
    if n_in == 1:
        m[:, 0] = 1.0
        return m
    scale = n_in / n_out
    for i in range(n_out):
        s = max((i + 0.5) * scale - 0.5, 0.0)
        f = min(int(np.floor(s)), n_in - 1)
        c = min(f + 1, n_in - 1)
        w = s - f
        m[i, f] += 1.0 - w
        m[i, c] += w
    return m


def resize_bilinear(x, out_hw):
    """x: (N, C, Hi, Wi) -> (N, C, Ho, Wo) separable bilinear resize."""
    N, C, Hi, Wi = x.shape
    Ho, Wo = out_hw
    ah = jnp.asarray(_bilinear_matrix(Hi, Ho))          # (Ho, Hi)
    awt = jnp.asarray(_bilinear_matrix(Wi, Wo).T)       # (Wi, Wo)
    return pl.pallas_call(
        resize_kernel,
        out_shape=jax.ShapeDtypeStruct((N, C, Ho, Wo), jnp.float32),
        grid_spec=pltpu.PrefetchScalarGridSpec(
            num_scalar_prefetch=0,
            grid=(N,),
            in_specs=[
                pl.BlockSpec((1, C, Hi, Wi), lambda n: (n, 0, 0, 0)),
                pl.BlockSpec((Ho, Hi), lambda n: (0, 0)),
                pl.BlockSpec((Wi, Wo), lambda n: (0, 0)),
            ],
            out_specs=pl.BlockSpec((1, C, Ho, Wo), lambda n: (n, 0, 0, 0)),
        ),
        compiler_params=pltpu.CompilerParams(dimension_semantics=("parallel",)),
    )(x, ah, awt)


def dense_bias(x2d, w_bf16, b_f32):
    """(R,K) @ (K,D) + b.  Batch is pre-folded into R by the caller."""
    R, K = x2d.shape
    D = w_bf16.shape[1]
    return pl.pallas_call(
        matmul_bias_kernel,
        out_shape=jax.ShapeDtypeStruct((R, D), jnp.float32),
        grid_spec=pltpu.PrefetchScalarGridSpec(
            num_scalar_prefetch=0,
            grid=(1,),
            in_specs=[
                pl.BlockSpec((R, K), lambda i: (0, 0)),
                pl.BlockSpec((K, D), lambda i: (0, 0)),
                pl.BlockSpec((1, D), lambda i: (0, 0)),
            ],
            out_specs=pl.BlockSpec((R, D), lambda i: (0, 0)),
        ),
        compiler_params=pltpu.CompilerParams(dimension_semantics=("arbitrary",)),
    )(x2d.astype(jnp.bfloat16), w_bf16, b_f32)


def vit_transformer(z, p, *, heads, dim_head):
    """All transformer layers in ONE pallas_call (grid over depth)."""
    N, S, D = z.shape
    depth = p['wqkv'].shape[0]
    inner = heads * dim_head
    mlp = p['w1'].shape[-1]
    kernel = functools.partial(vit_layer_kernel, heads=heads, dim_head=dim_head)
    vec = lambda: pl.BlockSpec((1, 1, D), lambda l: (l, 0, 0))
    return pl.pallas_call(
        kernel,
        out_shape=jax.ShapeDtypeStruct((N, S, D), jnp.float32),
        grid_spec=pltpu.PrefetchScalarGridSpec(
            num_scalar_prefetch=0,
            grid=(depth,),
            in_specs=[
                pl.BlockSpec((N, S, D), lambda l: (0, 0, 0)),           # x (init)
                vec(), vec(),                                           # ln1 w,b
                pl.BlockSpec((1, D, 3 * inner), lambda l: (l, 0, 0)),   # wqkv
                pl.BlockSpec((1, inner, D), lambda l: (l, 0, 0)),       # wo
                vec(),                                                  # bo
                vec(), vec(),                                           # ln2 w,b
                pl.BlockSpec((1, D, mlp), lambda l: (l, 0, 0)),         # w1
                pl.BlockSpec((1, 1, mlp), lambda l: (l, 0, 0)),         # b1
                pl.BlockSpec((1, mlp, D), lambda l: (l, 0, 0)),         # w2
                vec(),                                                  # b2
            ],
            out_specs=pl.BlockSpec((N, S, D), lambda l: (0, 0, 0)),
        ),
        compiler_params=pltpu.CompilerParams(dimension_semantics=("arbitrary",)),
    )(z, p['ln1w'], p['ln1b'], p['wqkv'], p['wo'], p['bo'],
      p['ln2w'], p['ln2b'], p['w1'], p['b1'], p['w2'], p['b2'])


def conv3x3(x, w_flat, b_flat, cout):
    """3x3 'same' conv in NCHW layout; weights/bias live in SMEM."""
    N, cin, H, W = x.shape
    xp = jnp.pad(x, ((0, 0), (0, 0), (1, 1), (1, 1)))
    kernel = functools.partial(conv3x3_kernel, H=H, W=W, cin=cin, cout=cout)
    return pl.pallas_call(
        kernel,
        out_shape=jax.ShapeDtypeStruct((N, cout, H, W), jnp.float32),
        grid_spec=pltpu.PrefetchScalarGridSpec(
            num_scalar_prefetch=0,
            grid=(N,),
            in_specs=[
                pl.BlockSpec((1, cin, H + 2, W + 2), lambda n: (n, 0, 0, 0)),
                pl.BlockSpec(memory_space=pltpu.MemorySpace.SMEM),
                pl.BlockSpec(memory_space=pltpu.MemorySpace.SMEM),
            ],
            out_specs=pl.BlockSpec((1, cout, H, W), lambda n: (n, 0, 0, 0)),
        ),
        compiler_params=pltpu.CompilerParams(dimension_semantics=("parallel",)),
    )(xp, w_flat, b_flat)


# ----------------------------------------------------------------------------
# JAX glue (pure data movement)
# ----------------------------------------------------------------------------
def patchify(x, p):
    """(N, C, H, W) -> (N, L, C*p*p), matching Conv2d(k=p, s=p) weight layout."""
    N, C, H, W = x.shape
    h, w = H // p, W // p
    x = x.reshape(N, C, h, p, w, p)
    x = jnp.transpose(x, (0, 2, 4, 1, 3, 5))        # (N, h, w, C, p, p)
    return x.reshape(N, h * w, C * p * p)


def unpatchify(x, p):
    """(N, L, p*p*3) -> (N, 3, h*p, w*p), exactly as the PyTorch reference."""
    N, L, D = x.shape
    h = w = int(round(math.sqrt(L)))
    c = D // (p * p)
    x = x.reshape(N, h, w, p, p, c)
    x = jnp.einsum('nhwpqc->nchpwq', x)
    return x.reshape(N, c, h * p, w * p)


# ----------------------------------------------------------------------------
# Parameters (deterministic, synthetic)
# ----------------------------------------------------------------------------
def init_params(key, *, image_size, patch_size, in_channels, dim, depth,
                heads, dim_head, mlp_dim):
    p = patch_size
    L = (image_size // p) ** 2
    inner = heads * dim_head
    ks = jax.random.split(key, 8)

    def dense_w(k, fan_in, shape):
        return jax.random.normal(k, shape, jnp.float32) / math.sqrt(fan_in)

    params = {
        'patch_w': dense_w(ks[0], in_channels * p * p,
                           (in_channels * p * p, dim)).astype(jnp.bfloat16),
        'patch_b': 0.02 * jax.random.normal(ks[1], (1, dim), jnp.float32),
        'cls': jax.random.normal(ks[2], (1, 1, dim), jnp.float32),
        'pos': jax.random.normal(ks[3], (1, L + 1, dim), jnp.float32),
    }

    ln1w, ln1b, wqkv, wo, bo = [], [], [], [], []
    ln2w, ln2b, w1, b1, w2, b2 = [], [], [], [], [], []
    kk = ks[4]
    for _ in range(depth):
        kk, ka, kb, kc, kd = jax.random.split(kk, 5)
        ln1w.append(jnp.ones((1, dim), jnp.float32))
        ln1b.append(jnp.zeros((1, dim), jnp.float32))
        wqkv.append(dense_w(ka, dim, (dim, 3 * inner)))
        wo.append(dense_w(kb, inner, (inner, dim)))
        bo.append(jnp.zeros((1, dim), jnp.float32))
        ln2w.append(jnp.ones((1, dim), jnp.float32))
        ln2b.append(jnp.zeros((1, dim), jnp.float32))
        w1.append(dense_w(kc, dim, (dim, mlp_dim)))
        b1.append(jnp.zeros((1, mlp_dim), jnp.float32))
        w2.append(dense_w(kd, mlp_dim, (mlp_dim, dim)))
        b2.append(jnp.zeros((1, dim), jnp.float32))

    params.update(
        ln1w=jnp.stack(ln1w), ln1b=jnp.stack(ln1b),
        wqkv=jnp.stack(wqkv).astype(jnp.bfloat16),
        wo=jnp.stack(wo).astype(jnp.bfloat16), bo=jnp.stack(bo),
        ln2w=jnp.stack(ln2w), ln2b=jnp.stack(ln2b),
        w1=jnp.stack(w1).astype(jnp.bfloat16), b1=jnp.stack(b1),
        w2=jnp.stack(w2).astype(jnp.bfloat16), b2=jnp.stack(b2),
    )

    kc1, kc2, kb1, kb2 = jax.random.split(ks[5], 4)
    params['conv1_w'] = dense_w(kc1, 9 * in_channels,
                                (in_channels, in_channels, 3, 3)).reshape(-1)
    params['conv1_b'] = 0.02 * jax.random.normal(kb1, (in_channels,), jnp.float32)
    params['conv2_w'] = dense_w(kc2, 9 * in_channels,
                                (1, in_channels, 3, 3)).reshape(-1)
    params['conv2_b'] = 0.02 * jax.random.normal(kb2, (1,), jnp.float32)
    return params


# ----------------------------------------------------------------------------
# Forward pass (matches ViTReconstruction.forward; all dropouts are p=0)
# ----------------------------------------------------------------------------
def vit_reconstruction_forward(params, x, *, image_size, patch_size, heads,
                               dim_head):
    N = x.shape[0]
    # 1. Resize to (image_size, image_size) -- bilinear.
    x = resize_bilinear(x, (image_size, image_size))
    # 2. PatchEmbedding: stride-p conv == patchify + dense (batch folded in rows).
    patches = patchify(x, patch_size)                           # (N, L, C*p*p)
    L = patches.shape[1]
    emb = dense_bias(patches.reshape(N * L, -1),
                     params['patch_w'], params['patch_b']).reshape(N, L, -1)
    # 3. ViT: prepend cls token, add positional embedding, transformer stack.
    cls = jnp.broadcast_to(params['cls'], (N, 1, emb.shape[-1]))
    z = jnp.concatenate([cls, emb], axis=1) + params['pos'][:, :L + 1]
    z = vit_transformer(z, params, heads=heads, dim_head=dim_head)
    # 4. Drop cls token, unpatchify to an image.
    img = unpatchify(z[:, 1:, :], patch_size)                   # (N, 3, IMG, IMG)
    # 5. conv2(conv1(img)).
    y = conv3x3(img, params['conv1_w'], params['conv1_b'], cout=3)
    y = conv3x3(y, params['conv2_w'], params['conv2_b'], cout=1)
    return y


# ----------------------------------------------------------------------------
if __name__ == "__main__":
    # Small config consistent with the module: dim must equal 3*patch_size**2
    # (required by unpatchify) and in_channels must be 3.
    cfg = dict(image_size=32, patch_size=8, in_channels=3, dim=192,
               depth=2, heads=3, dim_head=64, mlp_dim=4 * 192)

    key = jax.random.PRNGKey(0)
    kx, kp = jax.random.split(key)

    # NCHW input batch (resized to image_size x image_size inside the forward).
    x = jax.random.normal(kx, (2, 3, 24, 24), jnp.float32)
    params = init_params(kp, **cfg)

    fwd = jax.jit(functools.partial(
        vit_reconstruction_forward,
        image_size=cfg['image_size'], patch_size=cfg['patch_size'],
        heads=cfg['heads'], dim_head=cfg['dim_head']))

    out = fwd(params, x)
    out = jax.block_until_ready(out)

    assert out.shape == (2, 1, cfg['image_size'], cfg['image_size']), out.shape
    assert bool(jnp.all(jnp.isfinite(out)))
    print("KERNEL_OK")
</pallas_src>

<mosaic_0001>
module attributes {stable_mosaic.version = 11 : i64} {
  func.func @resize_kernel(%arg0: i32, %arg1: memref<1x3x24x24xf32, #tpu.memory_space<vmem>>, %arg2: memref<32x24xf32, #tpu.memory_space<vmem>>, %arg3: memref<24x32xf32, #tpu.memory_space<vmem>>, %arg4: memref<1x3x32x32xf32, #tpu.memory_space<vmem>>) attributes {dimension_semantics = [#tpu.dimension_semantics<parallel>], iteration_bounds = array<i64: 2>, scalar_prefetch = 0 : i64, scratch_operands = 0 : i64, tpu.core_type = #tpu.core_type<tc>, window_params = [{transform_indices = @transform_0, window_bounds = array<i64: 1, 3, 24, 24>}, {pipeline_mode = #tpu.pipeline_mode<synchronous>, transform_indices = @transform_1, window_bounds = array<i64: 32, 24>}, {pipeline_mode = #tpu.pipeline_mode<synchronous>, transform_indices = @transform_2, window_bounds = array<i64: 24, 32>}, {transform_indices = @transform_3, window_bounds = array<i64: 1, 3, 32, 32>}]} {
    %c0 = arith.constant 0 : index
    %c0_0 = arith.constant 0 : index
    %0 = vector.load %arg2[%c0, %c0_0] : memref<32x24xf32, #tpu.memory_space<vmem>>, vector<32x24xf32>
    %c0_1 = arith.constant 0 : index
    %c0_2 = arith.constant 0 : index
    %1 = vector.load %arg3[%c0_1, %c0_2] : memref<24x32xf32, #tpu.memory_space<vmem>>, vector<24x32xf32>
    %c0_3 = arith.constant 0 : index
    %c0_4 = arith.constant 0 : index
    %c0_5 = arith.constant 0 : index
    %c0_6 = arith.constant 0 : index
    %2 = vector.load %arg1[%c0_3, %c0_4, %c0_5, %c0_6] : memref<1x3x24x24xf32, #tpu.memory_space<vmem>>, vector<1x1x24x24xf32>
    %3 = vector.shape_cast %2 : vector<1x1x24x24xf32> to vector<24x24xf32>
    %cst = arith.constant dense<0.000000e+00> : vector<32x24xf32>
    %4 = tpu.matmul %0, %3, %cst {dimension_numbers = #tpu.dot_dimension_numbers<[1], [0], [0], [1], [0, 0, 1, 1], [], []>} : vector<32x24xf32>, vector<24x24xf32>, vector<32x24xf32> -> vector<32x24xf32>
    %cst_7 = arith.constant dense<0.000000e+00> : vector<32x32xf32>
    %5 = tpu.matmul %4, %1, %cst_7 {dimension_numbers = #tpu.dot_dimension_numbers<[1], [0], [0], [1], [0, 0, 1, 1], [], []>} : vector<32x24xf32>, vector<24x32xf32>, vector<32x32xf32> -> vector<32x32xf32>
    %c0_8 = arith.constant 0 : index
    %c0_9 = arith.constant 0 : index
    %c0_10 = arith.constant 0 : index
    %c0_11 = arith.constant 0 : index
    %6 = vector.load %arg4[%c0_8, %c0_9, %c0_10, %c0_11] : memref<1x3x32x32xf32, #tpu.memory_space<vmem>>, vector<1x1x32x32xf32>
    %7 = vector.shape_cast %6 : vector<1x1x32x32xf32> to vector<32x32xf32>
    %8 = vector.shape_cast %5 : vector<32x32xf32> to vector<1x1x32x32xf32>
    tpu.vector_store %arg4[%c0_8, %c0_9, %c0_10, %c0_11], %8 {strides = array<i32>} : memref<1x3x32x32xf32, #tpu.memory_space<vmem>>, vector<1x1x32x32xf32>,
    %c0_12 = arith.constant 0 : index
    %c1 = arith.constant 1 : index
    %c0_13 = arith.constant 0 : index
    %c0_14 = arith.constant 0 : index
    %9 = vector.load %arg1[%c0_12, %c1, %c0_13, %c0_14] : memref<1x3x24x24xf32, #tpu.memory_space<vmem>>, vector<1x1x24x24xf32>
    %10 = vector.shape_cast %9 : vector<1x1x24x24xf32> to vector<24x24xf32>
    %cst_15 = arith.constant dense<0.000000e+00> : vector<32x24xf32>
    %11 = tpu.matmul %0, %10, %cst_15 {dimension_numbers = #tpu.dot_dimension_numbers<[1], [0], [0], [1], [0, 0, 1, 1], [], []>} : vector<32x24xf32>, vector<24x24xf32>, vector<32x24xf32> -> vector<32x24xf32>
    %cst_16 = arith.constant dense<0.000000e+00> : vector<32x32xf32>
    %12 = tpu.matmul %11, %1, %cst_16 {dimension_numbers = #tpu.dot_dimension_numbers<[1], [0], [0], [1], [0, 0, 1, 1], [], []>} : vector<32x24xf32>, vector<24x32xf32>, vector<32x32xf32> -> vector<32x32xf32>
    %c0_17 = arith.constant 0 : index
    %c1_18 = arith.constant 1 : index
    %c0_19 = arith.constant 0 : index
    %c0_20 = arith.constant 0 : index
    %13 = vector.load %arg4[%c0_17, %c1_18, %c0_19, %c0_20] : memref<1x3x32x32xf32, #tpu.memory_space<vmem>>, vector<1x1x32x32xf32>
    %14 = vector.shape_cast %13 : vector<1x1x32x32xf32> to vector<32x32xf32>
    %15 = vector.shape_cast %12 : vector<32x32xf32> to vector<1x1x32x32xf32>
    tpu.vector_store %arg4[%c0_17, %c1_18, %c0_19, %c0_20], %15 {strides = array<i32>} : memref<1x3x32x32xf32, #tpu.memory_space<vmem>>, vector<1x1x32x32xf32>,
    %c0_21 = arith.constant 0 : index
    %c2 = arith.constant 2 : index
    %c0_22 = arith.constant 0 : index
    %c0_23 = arith.constant 0 : index
    %16 = vector.load %arg1[%c0_21, %c2, %c0_22, %c0_23] : memref<1x3x24x24xf32, #tpu.memory_space<vmem>>, vector<1x1x24x24xf32>
    %17 = vector.shape_cast %16 : vector<1x1x24x24xf32> to vector<24x24xf32>
    %cst_24 = arith.constant dense<0.000000e+00> : vector<32x24xf32>
    %18 = tpu.matmul %0, %17, %cst_24 {dimension_numbers = #tpu.dot_dimension_numbers<[1], [0], [0], [1], [0, 0, 1, 1], [], []>} : vector<32x24xf32>, vector<24x24xf32>, vector<32x24xf32> -> vector<32x24xf32>
    %cst_25 = arith.constant dense<0.000000e+00> : vector<32x32xf32>
    %19 = tpu.matmul %18, %1, %cst_25 {dimension_numbers = #tpu.dot_dimension_numbers<[1], [0], [0], [1], [0, 0, 1, 1], [], []>} : vector<32x24xf32>, vector<24x32xf32>, vector<32x32xf32> -> vector<32x32xf32>
    %c0_26 = arith.constant 0 : index
    %c2_27 = arith.constant 2 : index
    %c0_28 = arith.constant 0 : index
    %c0_29 = arith.constant 0 : index
    %20 = vector.load %arg4[%c0_26, %c2_27, %c0_28, %c0_29] : memref<1x3x32x32xf32, #tpu.memory_space<vmem>>, vector<1x1x32x32xf32>
    %21 = vector.shape_cast %20 : vector<1x1x32x32xf32> to vector<32x32xf32>
    %22 = vector.shape_cast %19 : vector<32x32xf32> to vector<1x1x32x32xf32>
    tpu.vector_store %arg4[%c0_26, %c2_27, %c0_28, %c0_29], %22 {strides = array<i32>} : memref<1x3x32x32xf32, #tpu.memory_space<vmem>>, vector<1x1x32x32xf32>,
    return
  }
  func.func @transform_0(%arg0: i32) -> (i32, i32, i32, i32) {
    %c0_i32 = arith.constant 0 : i32
    %c0_i32_0 = arith.constant 0 : i32
    %c0_i32_1 = arith.constant 0 : i32
    %c0_i32_2 = arith.constant 0 : i32
    return %arg0, %c0_i32, %c0_i32_0, %c0_i32_1 : i32, i32, i32, i32
  }
  func.func @transform_1(%arg0: i32) -> (i32, i32) {
    %c0_i32 = arith.constant 0 : i32
    %c0_i32_0 = arith.constant 0 : i32
    %c0_i32_1 = arith.constant 0 : i32
    return %c0_i32, %c0_i32_0 : i32, i32
  }
  func.func @transform_2(%arg0: i32) -> (i32, i32) {
    %c0_i32 = arith.constant 0 : i32
    %c0_i32_0 = arith.constant 0 : i32
    %c0_i32_1 = arith.constant 0 : i32
    return %c0_i32, %c0_i32_0 : i32, i32
  }
  func.func @transform_3(%arg0: i32) -> (i32, i32, i32, i32) {
    %c0_i32 = arith.constant 0 : i32
    %c0_i32_0 = arith.constant 0 : i32
    %c0_i32_1 = arith.constant 0 : i32
    %c0_i32_2 = arith.constant 0 : i32
    return %arg0, %c0_i32, %c0_i32_0, %c0_i32_1 : i32, i32, i32, i32
  }
}

module attributes {stable_mosaic.version = 11 : i64} {
  func.func @matmul_bias_kernel(%arg0: i32, %arg1: memref<32x192xbf16, #tpu.memory_space<vmem>>, %arg2: memref<192x192xbf16, #tpu.memory_space<vmem>>, %arg3: memref<1x192xf32, #tpu.memory_space<vmem>>, %arg4: memref<32x192xf32, #tpu.memory_space<vmem>>) attributes {dimension_semantics = [#tpu.dimension_semantics<arbitrary>], iteration_bounds = array<i64: 1>, scalar_prefetch = 0 : i64, scratch_operands = 0 : i64, tpu.core_type = #tpu.core_type<tc>, window_params = [{pipeline_mode = #tpu.pipeline_mode<synchronous>, transform_indices = @transform_0, window_bounds = array<i64: 32, 192>}, {pipeline_mode = #tpu.pipeline_mode<synchronous>, transform_indices = @transform_1, window_bounds = array<i64: 192, 192>}, {pipeline_mode = #tpu.pipeline_mode<synchronous>, transform_indices = @transform_2, window_bounds = array<i64: 1, 192>}, {pipeline_mode = #tpu.pipeline_mode<synchronous>, transform_indices = @transform_3, window_bounds = array<i64: 32, 192>}]} {
    %c0 = arith.constant 0 : index
    %c0_0 = arith.constant 0 : index
    %0 = vector.load %arg1[%c0, %c0_0] : memref<32x192xbf16, #tpu.memory_space<vmem>>, vector<32x192xbf16>
    %c0_1 = arith.constant 0 : index
    %c0_2 = arith.constant 0 : index
    %1 = vector.load %arg2[%c0_1, %c0_2] : memref<192x192xbf16, #tpu.memory_space<vmem>>, vector<192x192xbf16>
    %cst = arith.constant dense<0.000000e+00> : vector<32x192xf32>
    %2 = tpu.matmul %0, %1, %cst {dimension_numbers = #tpu.dot_dimension_numbers<[1], [0], [0], [1], [0, 0, 1, 1], [], []>} : vector<32x192xbf16>, vector<192x192xbf16>, vector<32x192xf32> -> vector<32x192xf32>
    %c0_3 = arith.constant 0 : index
    %c0_4 = arith.constant 0 : index
    %3 = vector.load %arg3[%c0_3, %c0_4] : memref<1x192xf32, #tpu.memory_space<vmem>>, vector<1x192xf32>
    %4 = vector.broadcast %3 : vector<1x192xf32> to vector<32x192xf32>
    %5 = arith.addf %2, %4 : vector<32x192xf32>
    %c0_5 = arith.constant 0 : index
    %c0_6 = arith.constant 0 : index
    %6 = vector.load %arg4[%c0_5, %c0_6] : memref<32x192xf32, #tpu.memory_space<vmem>>, vector<32x192xf32>
    tpu.vector_store %arg4[%c0_5, %c0_6], %5 {strides = array<i32>} : memref<32x192xf32, #tpu.memory_space<vmem>>, vector<32x192xf32>,
    return
  }
  func.func @transform_0(%arg0: i32) -> (i32, i32) {
    %c0_i32 = arith.constant 0 : i32
    %c0_i32_0 = arith.constant 0 : i32
    %c0_i32_1 = arith.constant 0 : i32
    return %c0_i32, %c0_i32_0 : i32, i32
  }
  func.func @transform_1(%arg0: i32) -> (i32, i32) {
    %c0_i32 = arith.constant 0 : i32
    %c0_i32_0 = arith.constant 0 : i32
    %c0_i32_1 = arith.constant 0 : i32
    return %c0_i32, %c0_i32_0 : i32, i32
  }
  func.func @transform_2(%arg0: i32) -> (i32, i32) {
    %c0_i32 = arith.constant 0 : i32
    %c0_i32_0 = arith.constant 0 : i32
    %c0_i32_1 = arith.constant 0 : i32
    return %c0_i32, %c0_i32_0 : i32, i32
  }
  func.func @transform_3(%arg0: i32) -> (i32, i32) {
    %c0_i32 = arith.constant 0 : i32
    %c0_i32_0 = arith.constant 0 : i32
    %c0_i32_1 = arith.constant 0 : i32
    return %c0_i32, %c0_i32_0 : i32, i32
  }
}

module attributes {stable_mosaic.version = 11 : i64} {
  func.func @vit_layer_kernel(%arg0: i32, %arg1: memref<2x17x192xf32, #tpu.memory_space<vmem>>, %arg2: memref<1x1x192xf32, #tpu.memory_space<vmem>>, %arg3: memref<1x1x192xf32, #tpu.memory_space<vmem>>, %arg4: memref<1x192x576xbf16, #tpu.memory_space<vmem>>, %arg5: memref<1x192x192xbf16, #tpu.memory_space<vmem>>, %arg6: memref<1x1x192xf32, #tpu.memory_space<vmem>>, %arg7: memref<1x1x192xf32, #tpu.memory_space<vmem>>, %arg8: memref<1x1x192xf32, #tpu.memory_space<vmem>>, %arg9: memref<1x192x768xbf16, #tpu.memory_space<vmem>>, %arg10: memref<1x1x768xf32, #tpu.memory_space<vmem>>, %arg11: memref<1x768x192xbf16, #tpu.memory_space<vmem>>, %arg12: memref<1x1x192xf32, #tpu.memory_space<vmem>>, %arg13: memref<2x17x192xf32, #tpu.memory_space<vmem>>) attributes {dimension_semantics = [#tpu.dimension_semantics<arbitrary>], iteration_bounds = array<i64: 2>, scalar_prefetch = 0 : i64, scratch_operands = 0 : i64, tpu.core_type = #tpu.core_type<tc>, window_params = [{pipeline_mode = #tpu.pipeline_mode<synchronous>, transform_indices = @transform_0, window_bounds = array<i64: 2, 17, 192>}, {transform_indices = @transform_1, window_bounds = array<i64: 1, 1, 192>}, {transform_indices = @transform_2, window_bounds = array<i64: 1, 1, 192>}, {transform_indices = @transform_3, window_bounds = array<i64: 1, 192, 576>}, {transform_indices = @transform_4, window_bounds = array<i64: 1, 192, 192>}, {transform_indices = @transform_5, window_bounds = array<i64: 1, 1, 192>}, {transform_indices = @transform_6, window_bounds = array<i64: 1, 1, 192>}, {transform_indices = @transform_7, window_bounds = array<i64: 1, 1, 192>}, {transform_indices = @transform_8, window_bounds = array<i64: 1, 192, 768>}, {transform_indices = @transform_9, window_bounds = array<i64: 1, 1, 768>}, {transform_indices = @transform_10, window_bounds = array<i64: 1, 768, 192>}, {transform_indices = @transform_11, window_bounds = array<i64: 1, 1, 192>}, {pipeline_mode = #tpu.pipeline_mode<synchronous>, transform_indices = @transform_12, window_bounds = array<i64: 2, 17, 192>}]} {
    %c0_i32 = arith.constant 0 : i32
    %0 = arith.cmpi eq, %arg0, %c0_i32 : i32
    %1 = arith.extui %0 : i1 to i32
    %c0_i32_0 = arith.constant 0 : i32
    %2 = arith.cmpi ne, %1, %c0_i32_0 : i32
    scf.if %2 {
      %c0_136 = arith.constant 0 : index
      %c0_137 = arith.constant 0 : index
      %c0_138 = arith.constant 0 : index
      %329 = vector.load %arg1[%c0_136, %c0_137, %c0_138] : memref<2x17x192xf32, #tpu.memory_space<vmem>>, vector<2x17x192xf32>
      %c0_139 = arith.constant 0 : index
      %c0_140 = arith.constant 0 : index
      %c0_141 = arith.constant 0 : index
      %330 = vector.load %arg13[%c0_139, %c0_140, %c0_141] : memref<2x17x192xf32, #tpu.memory_space<vmem>>, vector<2x17x192xf32>
      tpu.vector_store %arg13[%c0_139, %c0_140, %c0_141], %329 {strides = array<i32>} : memref<2x17x192xf32, #tpu.memory_space<vmem>>, vector<2x17x192xf32>,
    } else {
    }
    %c0 = arith.constant 0 : index
    %c0_1 = arith.constant 0 : index
    %c0_2 = arith.constant 0 : index
    %3 = vector.load %arg4[%c0, %c0_1, %c0_2] : memref<1x192x576xbf16, #tpu.memory_space<vmem>>, vector<1x192x576xbf16>
    %4 = vector.shape_cast %3 : vector<1x192x576xbf16> to vector<192x576xbf16>
    %c0_3 = arith.constant 0 : index
    %c0_4 = arith.constant 0 : index
    %c0_5 = arith.constant 0 : index
    %5 = vector.load %arg5[%c0_3, %c0_4, %c0_5] : memref<1x192x192xbf16, #tpu.memory_space<vmem>>, vector<1x192x192xbf16>
    %6 = vector.shape_cast %5 : vector<1x192x192xbf16> to vector<192x192xbf16>
    %c0_6 = arith.constant 0 : index
    %c0_7 = arith.constant 0 : index
    %c0_8 = arith.constant 0 : index
    %7 = vector.load %arg9[%c0_6, %c0_7, %c0_8] : memref<1x192x768xbf16, #tpu.memory_space<vmem>>, vector<1x192x768xbf16>
    %8 = vector.shape_cast %7 : vector<1x192x768xbf16> to vector<192x768xbf16>
    %c0_9 = arith.constant 0 : index
    %c0_10 = arith.constant 0 : index
    %c0_11 = arith.constant 0 : index
    %9 = vector.load %arg11[%c0_9, %c0_10, %c0_11] : memref<1x768x192xbf16, #tpu.memory_space<vmem>>, vector<1x768x192xbf16>
    %10 = vector.shape_cast %9 : vector<1x768x192xbf16> to vector<768x192xbf16>
    %c0_12 = arith.constant 0 : index
    %c0_13 = arith.constant 0 : index
    %c0_14 = arith.constant 0 : index
    %11 = vector.load %arg13[%c0_12, %c0_13, %c0_14] : memref<2x17x192xf32, #tpu.memory_space<vmem>>, vector<1x17x192xf32>
    %12 = vector.shape_cast %11 : vector<1x17x192xf32> to vector<17x192xf32>
    %c0_15 = arith.constant 0 : index
    %c0_16 = arith.constant 0 : index
    %c0_17 = arith.constant 0 : index
    %13 = vector.load %arg2[%c0_15, %c0_16, %c0_17] : memref<1x1x192xf32, #tpu.memory_space<vmem>>, vector<1x1x192xf32>
    %14 = vector.shape_cast %13 : vector<1x1x192xf32> to vector<1x192xf32>
    %c0_18 = arith.constant 0 : index
    %c0_19 = arith.constant 0 : index
    %c0_20 = arith.constant 0 : index
    %15 = vector.load %arg3[%c0_18, %c0_19, %c0_20] : memref<1x1x192xf32, #tpu.memory_space<vmem>>, vector<1x1x192xf32>
    %16 = vector.shape_cast %15 : vector<1x1x192xf32> to vector<1x192xf32>
    %cst = arith.constant dense<0.000000e+00> : vector<17xf32>
    %17 = vector.multi_reduction <add>, %12, %cst [1] : vector<17x192xf32> to vector<17xf32>
    %18 = vector.shape_cast %17 : vector<17xf32> to vector<17x1xf32>
    %cst_21 = arith.constant 1.920000e+02 : f32
    %19 = vector.broadcast %cst_21 : f32 to vector<17x1xf32>
    %20 = arith.divf %18, %19 : vector<17x1xf32>
    %21 = vector.broadcast %20 : vector<17x1xf32> to vector<17x192xf32>
    %22 = arith.subf %12, %21 : vector<17x192xf32>
    %23 = arith.mulf %22, %22 : vector<17x192xf32>
    %cst_22 = arith.constant dense<0.000000e+00> : vector<17xf32>
    %24 = vector.multi_reduction <add>, %23, %cst_22 [1] : vector<17x192xf32> to vector<17xf32>
    %25 = vector.shape_cast %24 : vector<17xf32> to vector<17x1xf32>
    %cst_23 = arith.constant 1.920000e+02 : f32
    %26 = vector.broadcast %cst_23 : f32 to vector<17x1xf32>
    %27 = arith.divf %25, %26 : vector<17x1xf32>
    %cst_24 = arith.constant 9.99999974E-6 : f32
    %28 = vector.broadcast %cst_24 : f32 to vector<17x1xf32>
    %29 = arith.addf %27, %28 : vector<17x1xf32>
    %30 = math.rsqrt %29 : vector<17x1xf32>
    %31 = vector.broadcast %30 : vector<17x1xf32> to vector<17x192xf32>
    %32 = arith.mulf %22, %31 : vector<17x192xf32>
    %33 = vector.broadcast %14 : vector<1x192xf32> to vector<17x192xf32>
    %34 = arith.mulf %32, %33 : vector<17x192xf32>
    %35 = vector.broadcast %16 : vector<1x192xf32> to vector<17x192xf32>
    %36 = arith.addf %34, %35 : vector<17x192xf32>
    %37 = arith.truncf %36 : vector<17x192xf32> to vector<17x192xbf16>
    %cst_25 = arith.constant dense<0.000000e+00> : vector<17x576xf32>
    %38 = tpu.matmul %37, %4, %cst_25 {dimension_numbers = #tpu.dot_dimension_numbers<[1], [0], [0], [1], [0, 0, 1, 1], [], []>} : vector<17x192xbf16>, vector<192x576xbf16>, vector<17x576xf32> -> vector<17x576xf32>
    %cst_26 = arith.constant 0.000000e+00 : f32
    %39 = vector.broadcast %cst_26 : f32 to vector<17x192xf32>
    %40 = vector.extract_strided_slice %38 {offsets = [0, 0], sizes = [17, 64], strides = [1, 1]} : vector<17x576xf32> to vector<17x64xf32>
    %41 = arith.truncf %40 : vector<17x64xf32> to vector<17x64xbf16>
    %42 = vector.extract_strided_slice %38 {offsets = [0, 192], sizes = [17, 64], strides = [1, 1]} : vector<17x576xf32> to vector<17x64xf32>
    %43 = arith.truncf %42 : vector<17x64xf32> to vector<17x64xbf16>
    %44 = vector.extract_strided_slice %38 {offsets = [0, 384], sizes = [17, 64], strides = [1, 1]} : vector<17x576xf32> to vector<17x64xf32>
    %45 = arith.truncf %44 : vector<17x64xf32> to vector<17x64xbf16>
    %cst_27 = arith.constant dense<0.000000e+00> : vector<17x17xf32>
    %46 = tpu.matmul %41, %43, %cst_27 {dimension_numbers = #tpu.dot_dimension_numbers<[1], [1], [0], [0], [0, 0, 1, 0], [], []>} : vector<17x64xbf16>, vector<17x64xbf16>, vector<17x17xf32> -> vector<17x17xf32>
    %cst_28 = arith.constant 1.250000e-01 : f32
    %47 = vector.broadcast %cst_28 : f32 to vector<17x17xf32>
    %48 = arith.mulf %46, %47 : vector<17x17xf32>
    %cst_29 = arith.constant dense<0xFF800000> : vector<17xf32>
    %49 = vector.multi_reduction <maximumf>, %48, %cst_29 [1] : vector<17x17xf32> to vector<17xf32>
    %50 = vector.shape_cast %49 : vector<17xf32> to vector<17x1xf32>
    %51 = vector.broadcast %50 : vector<17x1xf32> to vector<17x17xf32>
    %52 = arith.subf %48, %51 : vector<17x17xf32>
    %53 = math.exp %52 : vector<17x17xf32>
    %cst_30 = arith.constant dense<0.000000e+00> : vector<17xf32>
    %54 = vector.multi_reduction <add>, %53, %cst_30 [1] : vector<17x17xf32> to vector<17xf32>
    %55 = vector.shape_cast %54 : vector<17xf32> to vector<17x1xf32>
    %56 = vector.broadcast %55 : vector<17x1xf32> to vector<17x17xf32>
    %57 = arith.divf %53, %56 : vector<17x17xf32>
    %58 = arith.truncf %57 : vector<17x17xf32> to vector<17x17xbf16>
    %cst_31 = arith.constant dense<0.000000e+00> : vector<17x64xf32>
    %59 = tpu.matmul %58, %45, %cst_31 {dimension_numbers = #tpu.dot_dimension_numbers<[1], [0], [0], [1], [0, 0, 1, 1], [], []>} : vector<17x17xbf16>, vector<17x64xbf16>, vector<17x64xf32> -> vector<17x64xf32>
    %60 = arith.truncf %59 : vector<17x64xf32> to vector<17x64xbf16>
    %61 = vector.extract_strided_slice %6 {offsets = [0, 0], sizes = [64, 192], strides = [1, 1]} : vector<192x192xbf16> to vector<64x192xbf16>
    %cst_32 = arith.constant dense<0.000000e+00> : vector<17x192xf32>
    %62 = tpu.matmul %60, %61, %cst_32 {dimension_numbers = #tpu.dot_dimension_numbers<[1], [0], [0], [1], [0, 0, 1, 1], [], []>} : vector<17x64xbf16>, vector<64x192xbf16>, vector<17x192xf32> -> vector<17x192xf32>
    %63 = arith.addf %39, %62 : vector<17x192xf32>
    %64 = vector.extract_strided_slice %38 {offsets = [0, 64], sizes = [17, 64], strides = [1, 1]} : vector<17x576xf32> to vector<17x64xf32>
    %65 = arith.truncf %64 : vector<17x64xf32> to vector<17x64xbf16>
    %66 = vector.extract_strided_slice %38 {offsets = [0, 256], sizes = [17, 64], strides = [1, 1]} : vector<17x576xf32> to vector<17x64xf32>
    %67 = arith.truncf %66 : vector<17x64xf32> to vector<17x64xbf16>
    %68 = vector.extract_strided_slice %38 {offsets = [0, 448], sizes = [17, 64], strides = [1, 1]} : vector<17x576xf32> to vector<17x64xf32>
    %69 = arith.truncf %68 : vector<17x64xf32> to vector<17x64xbf16>
    %cst_33 = arith.constant dense<0.000000e+00> : vector<17x17xf32>
    %70 = tpu.matmul %65, %67, %cst_33 {dimension_numbers = #tpu.dot_dimension_numbers<[1], [1], [0], [0], [0, 0, 1, 0], [], []>} : vector<17x64xbf16>, vector<17x64xbf16>, vector<17x17xf32> -> vector<17x17xf32>
    %cst_34 = arith.constant 1.250000e-01 : f32
    %71 = vector.broadcast %cst_34 : f32 to vector<17x17xf32>
    %72 = arith.mulf %70, %71 : vector<17x17xf32>
    %cst_35 = arith.constant dense<0xFF800000> : vector<17xf32>
    %73 = vector.multi_reduction <maximumf>, %72, %cst_35 [1] : vector<17x17xf32> to vector<17xf32>
    %74 = vector.shape_cast %73 : vector<17xf32> to vector<17x1xf32>
    %75 = vector.broadcast %74 : vector<17x1xf32> to vector<17x17xf32>
    %76 = arith.subf %72, %75 : vector<17x17xf32>
    %77 = math.exp %76 : vector<17x17xf32>
    %cst_36 = arith.constant dense<0.000000e+00> : vector<17xf32>
    %78 = vector.multi_reduction <add>, %77, %cst_36 [1] : vector<17x17xf32> to vector<17xf32>
    %79 = vector.shape_cast %78 : vector<17xf32> to vector<17x1xf32>
    %80 = vector.broadcast %79 : vector<17x1xf32> to vector<17x17xf32>
    %81 = arith.divf %77, %80 : vector<17x17xf32>
    %82 = arith.truncf %81 : vector<17x17xf32> to vector<17x17xbf16>
    %cst_37 = arith.constant dense<0.000000e+00> : vector<17x64xf32>
    %83 = tpu.matmul %82, %69, %cst_37 {dimension_numbers = #tpu.dot_dimension_numbers<[1], [0], [0], [1], [0, 0, 1, 1], [], []>} : vector<17x17xbf16>, vector<17x64xbf16>, vector<17x64xf32> -> vector<17x64xf32>
    %84 = arith.truncf %83 : vector<17x64xf32> to vector<17x64xbf16>
    %85 = vector.extract_strided_slice %6 {offsets = [64, 0], sizes = [64, 192], strides = [1, 1]} : vector<192x192xbf16> to vector<64x192xbf16>
    %cst_38 = arith.constant dense<0.000000e+00> : vector<17x192xf32>
    %86 = tpu.matmul %84, %85, %cst_38 {dimension_numbers = #tpu.dot_dimension_numbers<[1], [0], [0], [1], [0, 0, 1, 1], [], []>} : vector<17x64xbf16>, vector<64x192xbf16>, vector<17x192xf32> -> vector<17x192xf32>
    %87 = arith.addf %63, %86 : vector<17x192xf32>
    %88 = vector.extract_strided_slice %38 {offsets = [0, 128], sizes = [17, 64], strides = [1, 1]} : vector<17x576xf32> to vector<17x64xf32>
    %89 = arith.truncf %88 : vector<17x64xf32> to vector<17x64xbf16>
    %90 = vector.extract_strided_slice %38 {offsets = [0, 320], sizes = [17, 64], strides = [1, 1]} : vector<17x576xf32> to vector<17x64xf32>
    %91 = arith.truncf %90 : vector<17x64xf32> to vector<17x64xbf16>
    %92 = vector.extract_strided_slice %38 {offsets = [0, 512], sizes = [17, 64], strides = [1, 1]} : vector<17x576xf32> to vector<17x64xf32>
    %93 = arith.truncf %92 : vector<17x64xf32> to vector<17x64xbf16>
    %cst_39 = arith.constant dense<0.000000e+00> : vector<17x17xf32>
    %94 = tpu.matmul %89, %91, %cst_39 {dimension_numbers = #tpu.dot_dimension_numbers<[1], [1], [0], [0], [0, 0, 1, 0], [], []>} : vector<17x64xbf16>, vector<17x64xbf16>, vector<17x17xf32> -> vector<17x17xf32>
    %cst_40 = arith.constant 1.250000e-01 : f32
    %95 = vector.broadcast %cst_40 : f32 to vector<17x17xf32>
    %96 = arith.mulf %94, %95 : vector<17x17xf32>
    %cst_41 = arith.constant dense<0xFF800000> : vector<17xf32>
    %97 = vector.multi_reduction <maximumf>, %96, %cst_41 [1] : vector<17x17xf32> to vector<17xf32>
    %98 = vector.shape_cast %97 : vector<17xf32> to vector<17x1xf32>
    %99 = vector.broadcast %98 : vector<17x1xf32> to vector<17x17xf32>
    %100 = arith.subf %96, %99 : vector<17x17xf32>
    %101 = math.exp %100 : vector<17x17xf32>
    %cst_42 = arith.constant dense<0.000000e+00> : vector<17xf32>
    %102 = vector.multi_reduction <add>, %101, %cst_42 [1] : vector<17x17xf32> to vector<17xf32>
    %103 = vector.shape_cast %102 : vector<17xf32> to vector<17x1xf32>
    %104 = vector.broadcast %103 : vector<17x1xf32> to vector<17x17xf32>
    %105 = arith.divf %101, %104 : vector<17x17xf32>
    %106 = arith.truncf %105 : vector<17x17xf32> to vector<17x17xbf16>
    %cst_43 = arith.constant dense<0.000000e+00> : vector<17x64xf32>
    %107 = tpu.matmul %106, %93, %cst_43 {dimension_numbers = #tpu.dot_dimension_numbers<[1], [0], [0], [1], [0, 0, 1, 1], [], []>} : vector<17x17xbf16>, vector<17x64xbf16>, vector<17x64xf32> -> vector<17x64xf32>
    %108 = arith.truncf %107 : vector<17x64xf32> to vector<17x64xbf16>
    %109 = vector.extract_strided_slice %6 {offsets = [128, 0], sizes = [64, 192], strides = [1, 1]} : vector<192x192xbf16> to vector<64x192xbf16>
    %cst_44 = arith.constant dense<0.000000e+00> : vector<17x192xf32>
    %110 = tpu.matmul %108, %109, %cst_44 {dimension_numbers = #tpu.dot_dimension_numbers<[1], [0], [0], [1], [0, 0, 1, 1], [], []>} : vector<17x64xbf16>, vector<64x192xbf16>, vector<17x192xf32> -> vector<17x192xf32>
    %111 = arith.addf %87, %110 : vector<17x192xf32>
    %112 = arith.addf %12, %111 : vector<17x192xf32>
    %c0_45 = arith.constant 0 : index
    %c0_46 = arith.constant 0 : index
    %c0_47 = arith.constant 0 : index
    %113 = vector.load %arg6[%c0_45, %c0_46, %c0_47] : memref<1x1x192xf32, #tpu.memory_space<vmem>>, vector<1x1x192xf32>
    %114 = vector.shape_cast %113 : vector<1x1x192xf32> to vector<1x192xf32>
    %115 = vector.broadcast %114 : vector<1x192xf32> to vector<17x192xf32>
    %116 = arith.addf %112, %115 : vector<17x192xf32>
    %c0_48 = arith.constant 0 : index
    %c0_49 = arith.constant 0 : index
    %c0_50 = arith.constant 0 : index
    %117 = vector.load %arg7[%c0_48, %c0_49, %c0_50] : memref<1x1x192xf32, #tpu.memory_space<vmem>>, vector<1x1x192xf32>
    %118 = vector.shape_cast %117 : vector<1x1x192xf32> to vector<1x192xf32>
    %c0_51 = arith.constant 0 : index
    %c0_52 = arith.constant 0 : index
    %c0_53 = arith.constant 0 : index
    %119 = vector.load %arg8[%c0_51, %c0_52, %c0_53] : memref<1x1x192xf32, #tpu.memory_space<vmem>>, vector<1x1x192xf32>
    %120 = vector.shape_cast %119 : vector<1x1x192xf32> to vector<1x192xf32>
    %cst_54 = arith.constant dense<0.000000e+00> : vector<17xf32>
    %121 = vector.multi_reduction <add>, %116, %cst_54 [1] : vector<17x192xf32> to vector<17xf32>
    %122 = vector.shape_cast %121 : vector<17xf32> to vector<17x1xf32>
    %cst_55 = arith.constant 1.920000e+02 : f32
    %123 = vector.broadcast %cst_55 : f32 to vector<17x1xf32>
    %124 = arith.divf %122, %123 : vector<17x1xf32>
    %125 = vector.broadcast %124 : vector<17x1xf32> to vector<17x192xf32>
    %126 = arith.subf %116, %125 : vector<17x192xf32>
    %127 = arith.mulf %126, %126 : vector<17x192xf32>
    %cst_56 = arith.constant dense<0.000000e+00> : vector<17xf32>
    %128 = vector.multi_reduction <add>, %127, %cst_56 [1] : vector<17x192xf32> to vector<17xf32>
    %129 = vector.shape_cast %128 : vector<17xf32> to vector<17x1xf32>
    %cst_57 = arith.constant 1.920000e+02 : f32
    %130 = vector.broadcast %cst_57 : f32 to vector<17x1xf32>
    %131 = arith.divf %129, %130 : vector<17x1xf32>
    %cst_58 = arith.constant 9.99999974E-6 : f32
    %132 = vector.broadcast %cst_58 : f32 to vector<17x1xf32>
    %133 = arith.addf %131, %132 : vector<17x1xf32>
    %134 = math.rsqrt %133 : vector<17x1xf32>
    %135 = vector.broadcast %134 : vector<17x1xf32> to vector<17x192xf32>
    %136 = arith.mulf %126, %135 : vector<17x192xf32>
    %137 = vector.broadcast %118 : vector<1x192xf32> to vector<17x192xf32>
    %138 = arith.mulf %136, %137 : vector<17x192xf32>
    %139 = vector.broadcast %120 : vector<1x192xf32> to vector<17x192xf32>
    %140 = arith.addf %138, %139 : vector<17x192xf32>
    %141 = arith.truncf %140 : vector<17x192xf32> to vector<17x192xbf16>
    %cst_59 = arith.constant dense<0.000000e+00> : vector<17x768xf32>
    %142 = tpu.matmul %141, %8, %cst_59 {dimension_numbers = #tpu.dot_dimension_numbers<[1], [0], [0], [1], [0, 0, 1, 1], [], []>} : vector<17x192xbf16>, vector<192x768xbf16>, vector<17x768xf32> -> vector<17x768xf32>
    %c0_60 = arith.constant 0 : index
    %c0_61 = arith.constant 0 : index
    %c0_62 = arith.constant 0 : index
    %143 = vector.load %arg10[%c0_60, %c0_61, %c0_62] : memref<1x1x768xf32, #tpu.memory_space<vmem>>, vector<1x1x768xf32>
    %144 = vector.shape_cast %143 : vector<1x1x768xf32> to vector<1x768xf32>
    %145 = vector.broadcast %144 : vector<1x768xf32> to vector<17x768xf32>
    %146 = arith.addf %142, %145 : vector<17x768xf32>
    %cst_63 = arith.constant 5.000000e-01 : f32
    %147 = vector.broadcast %cst_63 : f32 to vector<17x768xf32>
    %148 = arith.mulf %147, %146 : vector<17x768xf32>
    %cst_64 = arith.constant 4.471500e-02 : f32
    %149 = vector.broadcast %cst_64 : f32 to vector<17x768xf32>
    %150 = arith.mulf %149, %146 : vector<17x768xf32>
    %151 = arith.mulf %150, %146 : vector<17x768xf32>
    %152 = arith.mulf %151, %146 : vector<17x768xf32>
    %153 = arith.addf %146, %152 : vector<17x768xf32>
    %cst_65 = arith.constant 0.797884583 : f32
    %154 = vector.broadcast %cst_65 : f32 to vector<17x768xf32>
    %155 = arith.mulf %154, %153 : vector<17x768xf32>
    %156 = math.tanh %155 : vector<17x768xf32>
    %cst_66 = arith.constant 1.000000e+00 : f32
    %157 = vector.broadcast %cst_66 : f32 to vector<17x768xf32>
    %158 = arith.addf %157, %156 : vector<17x768xf32>
    %159 = arith.mulf %148, %158 : vector<17x768xf32>
    %160 = arith.truncf %159 : vector<17x768xf32> to vector<17x768xbf16>
    %cst_67 = arith.constant dense<0.000000e+00> : vector<17x192xf32>
    %161 = tpu.matmul %160, %10, %cst_67 {dimension_numbers = #tpu.dot_dimension_numbers<[1], [0], [0], [1], [0, 0, 1, 1], [], []>} : vector<17x768xbf16>, vector<768x192xbf16>, vector<17x192xf32> -> vector<17x192xf32>
    %162 = arith.addf %116, %161 : vector<17x192xf32>
    %c0_68 = arith.constant 0 : index
    %c0_69 = arith.constant 0 : index
    %c0_70 = arith.constant 0 : index
    %163 = vector.load %arg12[%c0_68, %c0_69, %c0_70] : memref<1x1x192xf32, #tpu.memory_space<vmem>>, vector<1x1x192xf32>
    %164 = vector.shape_cast %163 : vector<1x1x192xf32> to vector<1x192xf32>
    %165 = vector.broadcast %164 : vector<1x192xf32> to vector<17x192xf32>
    %166 = arith.addf %162, %165 : vector<17x192xf32>
    %c0_71 = arith.constant 0 : index
    %c0_72 = arith.constant 0 : index
    %c0_73 = arith.constant 0 : index
    %167 = vector.load %arg13[%c0_71, %c0_72, %c0_73] : memref<2x17x192xf32, #tpu.memory_space<vmem>>, vector<1x17x192xf32>
    %168 = vector.shape_cast %167 : vector<1x17x192xf32> to vector<17x192xf32>
    %169 = vector.shape_cast %166 : vector<17x192xf32> to vector<1x17x192xf32>
    tpu.vector_store %arg13[%c0_71, %c0_72, %c0_73], %169 {strides = array<i32>} : memref<2x17x192xf32, #tpu.memory_space<vmem>>, vector<1x17x192xf32>,
    %c1 = arith.constant 1 : index
    %c0_74 = arith.constant 0 : index
    %c0_75 = arith.constant 0 : index
    %170 = vector.load %arg13[%c1, %c0_74, %c0_75] : memref<2x17x192xf32, #tpu.memory_space<vmem>>, vector<1x17x192xf32>
    %171 = vector.shape_cast %170 : vector<1x17x192xf32> to vector<17x192xf32>
    %c0_76 = arith.constant 0 : index
    %c0_77 = arith.constant 0 : index
    %c0_78 = arith.constant 0 : index
    %172 = vector.load %arg2[%c0_76, %c0_77, %c0_78] : memref<1x1x192xf32, #tpu.memory_space<vmem>>, vector<1x1x192xf32>
    %173 = vector.shape_cast %172 : vector<1x1x192xf32> to vector<1x192xf32>
    %c0_79 = arith.constant 0 : index
    %c0_80 = arith.constant 0 : index
    %c0_81 = arith.constant 0 : index
    %174 = vector.load %arg3[%c0_79, %c0_80, %c0_81] : memref<1x1x192xf32, #tpu.memory_space<vmem>>, vector<1x1x192xf32>
    %175 = vector.shape_cast %174 : vector<1x1x192xf32> to vector<1x192xf32>
    %cst_82 = arith.constant dense<0.000000e+00> : vector<17xf32>
    %176 = vector.multi_reduction <add>, %171, %cst_82 [1] : vector<17x192xf32> to vector<17xf32>
    %177 = vector.shape_cast %176 : vector<17xf32> to vector<17x1xf32>
    %cst_83 = arith.constant 1.920000e+02 : f32
    %178 = vector.broadcast %cst_83 : f32 to vector<17x1xf32>
    %179 = arith.divf %177, %178 : vector<17x1xf32>
    %180 = vector.broadcast %179 : vector<17x1xf32> to vector<17x192xf32>
    %181 = arith.subf %171, %180 : vector<17x192xf32>
    %182 = arith.mulf %181, %181 : vector<17x192xf32>
    %cst_84 = arith.constant dense<0.000000e+00> : vector<17xf32>
    %183 = vector.multi_reduction <add>, %182, %cst_84 [1] : vector<17x192xf32> to vector<17xf32>
    %184 = vector.shape_cast %183 : vector<17xf32> to vector<17x1xf32>
    %cst_85 = arith.constant 1.920000e+02 : f32
    %185 = vector.broadcast %cst_85 : f32 to vector<17x1xf32>
    %186 = arith.divf %184, %185 : vector<17x1xf32>
    %cst_86 = arith.constant 9.99999974E-6 : f32
    %187 = vector.broadcast %cst_86 : f32 to vector<17x1xf32>
    %188 = arith.addf %186, %187 : vector<17x1xf32>
    %189 = math.rsqrt %188 : vector<17x1xf32>
    %190 = vector.broadcast %189 : vector<17x1xf32> to vector<17x192xf32>
    %191 = arith.mulf %181, %190 : vector<17x192xf32>
    %192 = vector.broadcast %173 : vector<1x192xf32> to vector<17x192xf32>
    %193 = arith.mulf %191, %192 : vector<17x192xf32>
    %194 = vector.broadcast %175 : vector<1x192xf32> to vector<17x192xf32>
    %195 = arith.addf %193, %194 : vector<17x192xf32>
    %196 = arith.truncf %195 : vector<17x192xf32> to vector<17x192xbf16>
    %cst_87 = arith.constant dense<0.000000e+00> : vector<17x576xf32>
    %197 = tpu.matmul %196, %4, %cst_87 {dimension_numbers = #tpu.dot_dimension_numbers<[1], [0], [0], [1], [0, 0, 1, 1], [], []>} : vector<17x192xbf16>, vector<192x576xbf16>, vector<17x576xf32> -> vector<17x576xf32>
    %cst_88 = arith.constant 0.000000e+00 : f32
    %198 = vector.broadcast %cst_88 : f32 to vector<17x192xf32>
    %199 = vector.extract_strided_slice %197 {offsets = [0, 0], sizes = [17, 64], strides = [1, 1]} : vector<17x576xf32> to vector<17x64xf32>
    %200 = arith.truncf %199 : vector<17x64xf32> to vector<17x64xbf16>
    %201 = vector.extract_strided_slice %197 {offsets = [0, 192], sizes = [17, 64], strides = [1, 1]} : vector<17x576xf32> to vector<17x64xf32>
    %202 = arith.truncf %201 : vector<17x64xf32> to vector<17x64xbf16>
    %203 = vector.extract_strided_slice %197 {offsets = [0, 384], sizes = [17, 64], strides = [1, 1]} : vector<17x576xf32> to vector<17x64xf32>
    %204 = arith.truncf %203 : vector<17x64xf32> to vector<17x64xbf16>
    %cst_89 = arith.constant dense<0.000000e+00> : vector<17x17xf32>
    %205 = tpu.matmul %200, %202, %cst_89 {dimension_numbers = #tpu.dot_dimension_numbers<[1], [1], [0], [0], [0, 0, 1, 0], [], []>} : vector<17x64xbf16>, vector<17x64xbf16>, vector<17x17xf32> -> vector<17x17xf32>
    %cst_90 = arith.constant 1.250000e-01 : f32
    %206 = vector.broadcast %cst_90 : f32 to vector<17x17xf32>
    %207 = arith.mulf %205, %206 : vector<17x17xf32>
    %cst_91 = arith.constant dense<0xFF800000> : vector<17xf32>
    %208 = vector.multi_reduction <maximumf>, %207, %cst_91 [1] : vector<17x17xf32> to vector<17xf32>
    %209 = vector.shape_cast %208 : vector<17xf32> to vector<17x1xf32>
    %210 = vector.broadcast %209 : vector<17x1xf32> to vector<17x17xf32>
    %211 = arith.subf %207, %210 : vector<17x17xf32>
    %212 = math.exp %211 : vector<17x17xf32>
    %cst_92 = arith.constant dense<0.000000e+00> : vector<17xf32>
    %213 = vector.multi_reduction <add>, %212, %cst_92 [1] : vector<17x17xf32> to vector<17xf32>
    %214 = vector.shape_cast %213 : vector<17xf32> to vector<17x1xf32>
    %215 = vector.broadcast %214 : vector<17x1xf32> to vector<17x17xf32>
    %216 = arith.divf %212, %215 : vector<17x17xf32>
    %217 = arith.truncf %216 : vector<17x17xf32> to vector<17x17xbf16>
    %cst_93 = arith.constant dense<0.000000e+00> : vector<17x64xf32>
    %218 = tpu.matmul %217, %204, %cst_93 {dimension_numbers = #tpu.dot_dimension_numbers<[1], [0], [0], [1], [0, 0, 1, 1], [], []>} : vector<17x17xbf16>, vector<17x64xbf16>, vector<17x64xf32> -> vector<17x64xf32>
    %219 = arith.truncf %218 : vector<17x64xf32> to vector<17x64xbf16>
    %220 = vector.extract_strided_slice %6 {offsets = [0, 0], sizes = [64, 192], strides = [1, 1]} : vector<192x192xbf16> to vector<64x192xbf16>
    %cst_94 = arith.constant dense<0.000000e+00> : vector<17x192xf32>
    %221 = tpu.matmul %219, %220, %cst_94 {dimension_numbers = #tpu.dot_dimension_numbers<[1], [0], [0], [1], [0, 0, 1, 1], [], []>} : vector<17x64xbf16>, vector<64x192xbf16>, vector<17x192xf32> -> vector<17x192xf32>
    %222 = arith.addf %198, %221 : vector<17x192xf32>
    %223 = vector.extract_strided_slice %197 {offsets = [0, 64], sizes = [17, 64], strides = [1, 1]} : vector<17x576xf32> to vector<17x64xf32>
    %224 = arith.truncf %223 : vector<17x64xf32> to vector<17x64xbf16>
    %225 = vector.extract_strided_slice %197 {offsets = [0, 256], sizes = [17, 64], strides = [1, 1]} : vector<17x576xf32> to vector<17x64xf32>
    %226 = arith.truncf %225 : vector<17x64xf32> to vector<17x64xbf16>
    %227 = vector.extract_strided_slice %197 {offsets = [0, 448], sizes = [17, 64], strides = [1, 1]} : vector<17x576xf32> to vector<17x64xf32>
    %228 = arith.truncf %227 : vector<17x64xf32> to vector<17x64xbf16>
    %cst_95 = arith.constant dense<0.000000e+00> : vector<17x17xf32>
    %229 = tpu.matmul %224, %226, %cst_95 {dimension_numbers = #tpu.dot_dimension_numbers<[1], [1], [0], [0], [0, 0, 1, 0], [], []>} : vector<17x64xbf16>, vector<17x64xbf16>, vector<17x17xf32> -> vector<17x17xf32>
    %cst_96 = arith.constant 1.250000e-01 : f32
    %230 = vector.broadcast %cst_96 : f32 to vector<17x17xf32>
    %231 = arith.mulf %229, %230 : vector<17x17xf32>
    %cst_97 = arith.constant dense<0xFF800000> : vector<17xf32>
    %232 = vector.multi_reduction <maximumf>, %231, %cst_97 [1] : vector<17x17xf32> to vector<17xf32>
    %233 = vector.shape_cast %232 : vector<17xf32> to vector<17x1xf32>
    %234 = vector.broadcast %233 : vector<17x1xf32> to vector<17x17xf32>
    %235 = arith.subf %231, %234 : vector<17x17xf32>
    %236 = math.exp %235 : vector<17x17xf32>
    %cst_98 = arith.constant dense<0.000000e+00> : vector<17xf32>
    %237 = vector.multi_reduction <add>, %236, %cst_98 [1] : vector<17x17xf32> to vector<17xf32>
    %238 = vector.shape_cast %237 : vector<17xf32> to vector<17x1xf32>
    %239 = vector.broadcast %238 : vector<17x1xf32> to vector<17x17xf32>
    %240 = arith.divf %236, %239 : vector<17x17xf32>
    %241 = arith.truncf %240 : vector<17x17xf32> to vector<17x17xbf16>
    %cst_99 = arith.constant dense<0.000000e+00> : vector<17x64xf32>
    %242 = tpu.matmul %241, %228, %cst_99 {dimension_numbers = #tpu.dot_dimension_numbers<[1], [0], [0], [1], [0, 0, 1, 1], [], []>} : vector<17x17xbf16>, vector<17x64xbf16>, vector<17x64xf32> -> vector<17x64xf32>
    %243 = arith.truncf %242 : vector<17x64xf32> to vector<17x64xbf16>
    %244 = vector.extract_strided_slice %6 {offsets = [64, 0], sizes = [64, 192], strides = [1, 1]} : vector<192x192xbf16> to vector<64x192xbf16>
    %cst_100 = arith.constant dense<0.000000e+00> : vector<17x192xf32>
    %245 = tpu.matmul %243, %244, %cst_100 {dimension_numbers = #tpu.dot_dimension_numbers<[1], [0], [0], [1], [0, 0, 1, 1], [], []>} : vector<17x64xbf16>, vector<64x192xbf16>, vector<17x192xf32> -> vector<17x192xf32>
    %246 = arith.addf %222, %245 : vector<17x192xf32>
    %247 = vector.extract_strided_slice %197 {offsets = [0, 128], sizes = [17, 64], strides = [1, 1]} : vector<17x576xf32> to vector<17x64xf32>
    %248 = arith.truncf %247 : vector<17x64xf32> to vector<17x64xbf16>
    %249 = vector.extract_strided_slice %197 {offsets = [0, 320], sizes = [17, 64], strides = [1, 1]} : vector<17x576xf32> to vector<17x64xf32>
    %250 = arith.truncf %249 : vector<17x64xf32> to vector<17x64xbf16>
    %251 = vector.extract_strided_slice %197 {offsets = [0, 512], sizes = [17, 64], strides = [1, 1]} : vector<17x576xf32> to vector<17x64xf32>
    %252 = arith.truncf %251 : vector<17x64xf32> to vector<17x64xbf16>
    %cst_101 = arith.constant dense<0.000000e+00> : vector<17x17xf32>
    %253 = tpu.matmul %248, %250, %cst_101 {dimension_numbers = #tpu.dot_dimension_numbers<[1], [1], [0], [0], [0, 0, 1, 0], [], []>} : vector<17x64xbf16>, vector<17x64xbf16>, vector<17x17xf32> -> vector<17x17xf32>
    %cst_102 = arith.constant 1.250000e-01 : f32
    %254 = vector.broadcast %cst_102 : f32 to vector<17x17xf32>
    %255 = arith.mulf %253, %254 : vector<17x17xf32>
    %cst_103 = arith.constant dense<0xFF800000> : vector<17xf32>
    %256 = vector.multi_reduction <maximumf>, %255, %cst_103 [1] : vector<17x17xf32> to vector<17xf32>
    %257 = vector.shape_cast %256 : vector<17xf32> to vector<17x1xf32>
    %258 = vector.broadcast %257 : vector<17x1xf32> to vector<17x17xf32>
    %259 = arith.subf %255, %258 : vector<17x17xf32>
    %260 = math.exp %259 : vector<17x17xf32>
    %cst_104 = arith.constant dense<0.000000e+00> : vector<17xf32>
    %261 = vector.multi_reduction <add>, %260, %cst_104 [1] : vector<17x17xf32> to vector<17xf32>
    %262 = vector.shape_cast %261 : vector<17xf32> to vector<17x1xf32>
    %263 = vector.broadcast %262 : vector<17x1xf32> to vector<17x17xf32>
    %264 = arith.divf %260, %263 : vector<17x17xf32>
    %265 = arith.truncf %264 : vector<17x17xf32> to vector<17x17xbf16>
    %cst_105 = arith.constant dense<0.000000e+00> : vector<17x64xf32>
    %266 = tpu.matmul %265, %252, %cst_105 {dimension_numbers = #tpu.dot_dimension_numbers<[1], [0], [0], [1], [0, 0, 1, 1], [], []>} : vector<17x17xbf16>, vector<17x64xbf16>, vector<17x64xf32> -> vector<17x64xf32>
    %267 = arith.truncf %266 : vector<17x64xf32> to vector<17x64xbf16>
    %268 = vector.extract_strided_slice %6 {offsets = [128, 0], sizes = [64, 192], strides = [1, 1]} : vector<192x192xbf16> to vector<64x192xbf16>
    %cst_106 = arith.constant dense<0.000000e+00> : vector<17x192xf32>
    %269 = tpu.matmul %267, %268, %cst_106 {dimension_numbers = #tpu.dot_dimension_numbers<[1], [0], [0], [1], [0, 0, 1, 1], [], []>} : vector<17x64xbf16>, vector<64x192xbf16>, vector<17x192xf32> -> vector<17x192xf32>
    %270 = arith.addf %246, %269 : vector<17x192xf32>
    %271 = arith.addf %171, %270 : vector<17x192xf32>
    %c0_107 = arith.constant 0 : index
    %c0_108 = arith.constant 0 : index
    %c0_109 = arith.constant 0 : index
    %272 = vector.load %arg6[%c0_107, %c0_108, %c0_109] : memref<1x1x192xf32, #tpu.memory_space<vmem>>, vector<1x1x192xf32>
    %273 = vector.shape_cast %272 : vector<1x1x192xf32> to vector<1x192xf32>
    %274 = vector.broadcast %273 : vector<1x192xf32> to vector<17x192xf32>
    %275 = arith.addf %271, %274 : vector<17x192xf32>
    %c0_110 = arith.constant 0 : index
    %c0_111 = arith.constant 0 : index
    %c0_112 = arith.constant 0 : index
    %276 = vector.load %arg7[%c0_110, %c0_111, %c0_112] : memref<1x1x192xf32, #tpu.memory_space<vmem>>, vector<1x1x192xf32>
    %277 = vector.shape_cast %276 : vector<1x1x192xf32> to vector<1x192xf32>
    %c0_113 = arith.constant 0 : index
    %c0_114 = arith.constant 0 : index
    %c0_115 = arith.constant 0 : index
    %278 = vector.load %arg8[%c0_113, %c0_114, %c0_115] : memref<1x1x192xf32, #tpu.memory_space<vmem>>, vector<1x1x192xf32>
    %279 = vector.shape_cast %278 : vector<1x1x192xf32> to vector<1x192xf32>
    %cst_116 = arith.constant dense<0.000000e+00> : vector<17xf32>
    %280 = vector.multi_reduction <add>, %275, %cst_116 [1] : vector<17x192xf32> to vector<17xf32>
    %281 = vector.shape_cast %280 : vector<17xf32> to vector<17x1xf32>
    %cst_117 = arith.constant 1.920000e+02 : f32
    %282 = vector.broadcast %cst_117 : f32 to vector<17x1xf32>
    %283 = arith.divf %281, %282 : vector<17x1xf32>
    %284 = vector.broadcast %283 : vector<17x1xf32> to vector<17x192xf32>
    %285 = arith.subf %275, %284 : vector<17x192xf32>
    %286 = arith.mulf %285, %285 : vector<17x192xf32>
    %cst_118 = arith.constant dense<0.000000e+00> : vector<17xf32>
    %287 = vector.multi_reduction <add>, %286, %cst_118 [1] : vector<17x192xf32> to vector<17xf32>
    %288 = vector.shape_cast %287 : vector<17xf32> to vector<17x1xf32>
    %cst_119 = arith.constant 1.920000e+02 : f32
    %289 = vector.broadcast %cst_119 : f32 to vector<17x1xf32>
    %290 = arith.divf %288, %289 : vector<17x1xf32>
    %cst_120 = arith.constant 9.99999974E-6 : f32
    %291 = vector.broadcast %cst_120 : f32 to vector<17x1xf32>
    %292 = arith.addf %290, %291 : vector<17x1xf32>
    %293 = math.rsqrt %292 : vector<17x1xf32>
    %294 = vector.broadcast %293 : vector<17x1xf32> to vector<17x192xf32>
    %295 = arith.mulf %285, %294 : vector<17x192xf32>
    %296 = vector.broadcast %277 : vector<1x192xf32> to vector<17x192xf32>
    %297 = arith.mulf %295, %296 : vector<17x192xf32>
    %298 = vector.broadcast %279 : vector<1x192xf32> to vector<17x192xf32>
    %299 = arith.addf %297, %298 : vector<17x192xf32>
    %300 = arith.truncf %299 : vector<17x192xf32> to vector<17x192xbf16>
    %cst_121 = arith.constant dense<0.000000e+00> : vector<17x768xf32>
    %301 = tpu.matmul %300, %8, %cst_121 {dimension_numbers = #tpu.dot_dimension_numbers<[1], [0], [0], [1], [0, 0, 1, 1], [], []>} : vector<17x192xbf16>, vector<192x768xbf16>, vector<17x768xf32> -> vector<17x768xf32>
    %c0_122 = arith.constant 0 : index
    %c0_123 = arith.constant 0 : index
    %c0_124 = arith.constant 0 : index
    %302 = vector.load %arg10[%c0_122, %c0_123, %c0_124] : memref<1x1x768xf32, #tpu.memory_space<vmem>>, vector<1x1x768xf32>
    %303 = vector.shape_cast %302 : vector<1x1x768xf32> to vector<1x768xf32>
    %304 = vector.broadcast %303 : vector<1x768xf32> to vector<17x768xf32>
    %305 = arith.addf %301, %304 : vector<17x768xf32>
    %cst_125 = arith.constant 5.000000e-01 : f32
    %306 = vector.broadcast %cst_125 : f32 to vector<17x768xf32>
    %307 = arith.mulf %306, %305 : vector<17x768xf32>
    %cst_126 = arith.constant 4.471500e-02 : f32
    %308 = vector.broadcast %cst_126 : f32 to vector<17x768xf32>
    %309 = arith.mulf %308, %305 : vector<17x768xf32>
    %310 = arith.mulf %309, %305 : vector<17x768xf32>
    %311 = arith.mulf %310, %305 : vector<17x768xf32>
    %312 = arith.addf %305, %311 : vector<17x768xf32>
    %cst_127 = arith.constant 0.797884583 : f32
    %313 = vector.broadcast %cst_127 : f32 to vector<17x768xf32>
    %314 = arith.mulf %313, %312 : vector<17x768xf32>
    %315 = math.tanh %314 : vector<17x768xf32>
    %cst_128 = arith.constant 1.000000e+00 : f32
    %316 = vector.broadcast %cst_128 : f32 to vector<17x768xf32>
    %317 = arith.addf %316, %315 : vector<17x768xf32>
    %318 = arith.mulf %307, %317 : vector<17x768xf32>
    %319 = arith.truncf %318 : vector<17x768xf32> to vector<17x768xbf16>
    %cst_129 = arith.constant dense<0.000000e+00> : vector<17x192xf32>
    %320 = tpu.matmul %319, %10, %cst_129 {dimension_numbers = #tpu.dot_dimension_numbers<[1], [0], [0], [1], [0, 0, 1, 1], [], []>} : vector<17x768xbf16>, vector<768x192xbf16>, vector<17x192xf32> -> vector<17x192xf32>
    %321 = arith.addf %275, %320 : vector<17x192xf32>
    %c0_130 = arith.constant 0 : index
    %c0_131 = arith.constant 0 : index
    %c0_132 = arith.constant 0 : index
    %322 = vector.load %arg12[%c0_130, %c0_131, %c0_132] : memref<1x1x192xf32, #tpu.memory_space<vmem>>, vector<1x1x192xf32>
    %323 = vector.shape_cast %322 : vector<1x1x192xf32> to vector<1x192xf32>
    %324 = vector.broadcast %323 : vector<1x192xf32> to vector<17x192xf32>
    %325 = arith.addf %321, %324 : vector<17x192xf32>
    %c1_133 = arith.constant 1 : index
    %c0_134 = arith.constant 0 : index
    %c0_135 = arith.constant 0 : index
    %326 = vector.load %arg13[%c1_133, %c0_134, %c0_135] : memref<2x17x192xf32, #tpu.memory_space<vmem>>, vector<1x17x192xf32>
    %327 = vector.shape_cast %326 : vector<1x17x192xf32> to vector<17x192xf32>
    %328 = vector.shape_cast %325 : vector<17x192xf32> to vector<1x17x192xf32>
    tpu.vector_store %arg13[%c1_133, %c0_134, %c0_135], %328 {strides = array<i32>} : memref<2x17x192xf32, #tpu.memory_space<vmem>>, vector<1x17x192xf32>,
    return
  }
  func.func @transform_0(%arg0: i32) -> (i32, i32, i32) {
    %c0_i32 = arith.constant 0 : i32
    %c0_i32_0 = arith.constant 0 : i32
    %c0_i32_1 = arith.constant 0 : i32
    %c0_i32_2 = arith.constant 0 : i32
    return %c0_i32, %c0_i32_0, %c0_i32_1 : i32, i32, i32
  }
  func.func @transform_1(%arg0: i32) -> (i32, i32, i32) {
    %c0_i32 = arith.constant 0 : i32
    %c0_i32_0 = arith.constant 0 : i32
    %c0_i32_1 = arith.constant 0 : i32
    return %arg0, %c0_i32, %c0_i32_0 : i32, i32, i32
  }
  func.func @transform_2(%arg0: i32) -> (i32, i32, i32) {
    %c0_i32 = arith.constant 0 : i32
    %c0_i32_0 = arith.constant 0 : i32
    %c0_i32_1 = arith.constant 0 : i32
    return %arg0, %c0_i32, %c0_i32_0 : i32, i32, i32
  }
  func.func @transform_3(%arg0: i32) -> (i32, i32, i32) {
    %c0_i32 = arith.constant 0 : i32
    %c0_i32_0 = arith.constant 0 : i32
    %c0_i32_1 = arith.constant 0 : i32
    return %arg0, %c0_i32, %c0_i32_0 : i32, i32, i32
  }
  func.func @transform_4(%arg0: i32) -> (i32, i32, i32) {
    %c0_i32 = arith.constant 0 : i32
    %c0_i32_0 = arith.constant 0 : i32
    %c0_i32_1 = arith.constant 0 : i32
    return %arg0, %c0_i32, %c0_i32_0 : i32, i32, i32
  }
  func.func @transform_5(%arg0: i32) -> (i32, i32, i32) {
    %c0_i32 = arith.constant 0 : i32
    %c0_i32_0 = arith.constant 0 : i32
    %c0_i32_1 = arith.constant 0 : i32
    return %arg0, %c0_i32, %c0_i32_0 : i32, i32, i32
  }
  func.func @transform_6(%arg0: i32) -> (i32, i32, i32) {
    %c0_i32 = arith.constant 0 : i32
    %c0_i32_0 = arith.constant 0 : i32
    %c0_i32_1 = arith.constant 0 : i32
    return %arg0, %c0_i32, %c0_i32_0 : i32, i32, i32
  }
  func.func @transform_7(%arg0: i32) -> (i32, i32, i32) {
    %c0_i32 = arith.constant 0 : i32
    %c0_i32_0 = arith.constant 0 : i32
    %c0_i32_1 = arith.constant 0 : i32
    return %arg0, %c0_i32, %c0_i32_0 : i32, i32, i32
  }
  func.func @transform_8(%arg0: i32) -> (i32, i32, i32) {
    %c0_i32 = arith.constant 0 : i32
    %c0_i32_0 = arith.constant 0 : i32
    %c0_i32_1 = arith.constant 0 : i32
    return %arg0, %c0_i32, %c0_i32_0 : i32, i32, i32
  }
  func.func @transform_9(%arg0: i32) -> (i32, i32, i32) {
    %c0_i32 = arith.constant 0 : i32
    %c0_i32_0 = arith.constant 0 : i32
    %c0_i32_1 = arith.constant 0 : i32
    return %arg0, %c0_i32, %c0_i32_0 : i32, i32, i32
  }
  func.func @transform_10(%arg0: i32) -> (i32, i32, i32) {
    %c0_i32 = arith.constant 0 : i32
    %c0_i32_0 = arith.constant 0 : i32
    %c0_i32_1 = arith.constant 0 : i32
    return %arg0, %c0_i32, %c0_i32_0 : i32, i32, i32
  }
  func.func @transform_11(%arg0: i32) -> (i32, i32, i32) {
    %c0_i32 = arith.constant 0 : i32
    %c0_i32_0 = arith.constant 0 : i32
    %c0_i32_1 = arith.constant 0 : i32
    return %arg0, %c0_i32, %c0_i32_0 : i32, i32, i32
  }
  func.func @transform_12(%arg0: i32) -> (i32, i32, i32) {
    %c0_i32 = arith.constant 0 : i32
    %c0_i32_0 = arith.constant 0 : i32
    %c0_i32_1 = arith.constant 0 : i32
    %c0_i32_2 = arith.constant 0 : i32
    return %c0_i32, %c0_i32_0, %c0_i32_1 : i32, i32, i32
  }
}

module attributes {stable_mosaic.version = 11 : i64} {
  func.func @conv3x3_kernel(%arg0: i32, %arg1: memref<1x3x34x34xf32, #tpu.memory_space<vmem>>, %arg2: memref<81xf32, #tpu.memory_space<smem>>, %arg3: memref<3xf32, #tpu.memory_space<smem>>, %arg4: memref<1x3x32x32xf32, #tpu.memory_space<vmem>>) attributes {dimension_semantics = [#tpu.dimension_semantics<parallel>], iteration_bounds = array<i64: 2>, scalar_prefetch = 0 : i64, scratch_operands = 0 : i64, tpu.core_type = #tpu.core_type<tc>, window_params = [{transform_indices = @transform_0, window_bounds = array<i64: 1, 3, 34, 34>}, {transform_indices = @transform_1, window_bounds = array<i64: 81>}, {transform_indices = @transform_2, window_bounds = array<i64: 3>}, {transform_indices = @transform_3, window_bounds = array<i64: 1, 3, 32, 32>}]} {
    %c0 = arith.constant 0 : index
    %0 = memref.load %arg3[%c0] : memref<3xf32, #tpu.memory_space<smem>>
    %1 = vector.broadcast %0 : f32 to vector<32x32xf32>
    %c0_0 = arith.constant 0 : index
    %c0_1 = arith.constant 0 : index
    %c0_2 = arith.constant 0 : index
    %c0_3 = arith.constant 0 : index
    %2 = vector.load %arg1[%c0_0, %c0_1, %c0_2, %c0_3] : memref<1x3x34x34xf32, #tpu.memory_space<vmem>>, vector<1x1x34x34xf32>
    %3 = vector.shape_cast %2 : vector<1x1x34x34xf32> to vector<34x34xf32>
    %c0_4 = arith.constant 0 : index
    %4 = memref.load %arg2[%c0_4] : memref<81xf32, #tpu.memory_space<smem>>
    %5 = vector.extract_strided_slice %3 {offsets = [0, 0], sizes = [32, 32], strides = [1, 1]} : vector<34x34xf32> to vector<32x32xf32>
    %6 = vector.broadcast %4 : f32 to vector<32x32xf32>
    %7 = arith.mulf %6, %5 : vector<32x32xf32>
    %8 = arith.addf %1, %7 : vector<32x32xf32>
    %c1 = arith.constant 1 : index
    %9 = memref.load %arg2[%c1] : memref<81xf32, #tpu.memory_space<smem>>
    %10 = vector.extract_strided_slice %3 {offsets = [0, 1], sizes = [32, 32], strides = [1, 1]} : vector<34x34xf32> to vector<32x32xf32>
    %11 = vector.broadcast %9 : f32 to vector<32x32xf32>
    %12 = arith.mulf %11, %10 : vector<32x32xf32>
    %13 = arith.addf %8, %12 : vector<32x32xf32>
    %c2 = arith.constant 2 : index
    %14 = memref.load %arg2[%c2] : memref<81xf32, #tpu.memory_space<smem>>
    %15 = vector.extract_strided_slice %3 {offsets = [0, 2], sizes = [32, 32], strides = [1, 1]} : vector<34x34xf32> to vector<32x32xf32>
    %16 = vector.broadcast %14 : f32 to vector<32x32xf32>
    %17 = arith.mulf %16, %15 : vector<32x32xf32>
    %18 = arith.addf %13, %17 : vector<32x32xf32>
    %c3 = arith.constant 3 : index
    %19 = memref.load %arg2[%c3] : memref<81xf32, #tpu.memory_space<smem>>
    %20 = vector.extract_strided_slice %3 {offsets = [1, 0], sizes = [32, 32], strides = [1, 1]} : vector<34x34xf32> to vector<32x32xf32>
    %21 = vector.broadcast %19 : f32 to vector<32x32xf32>
    %22 = arith.mulf %21, %20 : vector<32x32xf32>
    %23 = arith.addf %18, %22 : vector<32x32xf32>
    %c4 = arith.constant 4 : index
    %24 = memref.load %arg2[%c4] : memref<81xf32, #tpu.memory_space<smem>>
    %25 = vector.extract_strided_slice %3 {offsets = [1, 1], sizes = [32, 32], strides = [1, 1]} : vector<34x34xf32> to vector<32x32xf32>
    %26 = vector.broadcast %24 : f32 to vector<32x32xf32>
    %27 = arith.mulf %26, %25 : vector<32x32xf32>
    %28 = arith.addf %23, %27 : vector<32x32xf32>
    %c5 = arith.constant 5 : index
    %29 = memref.load %arg2[%c5] : memref<81xf32, #tpu.memory_space<smem>>
    %30 = vector.extract_strided_slice %3 {offsets = [1, 2], sizes = [32, 32], strides = [1, 1]} : vector<34x34xf32> to vector<32x32xf32>
    %31 = vector.broadcast %29 : f32 to vector<32x32xf32>
    %32 = arith.mulf %31, %30 : vector<32x32xf32>
    %33 = arith.addf %28, %32 : vector<32x32xf32>
    %c6 = arith.constant 6 : index
    %34 = memref.load %arg2[%c6] : memref<81xf32, #tpu.memory_space<smem>>
    %35 = vector.extract_strided_slice %3 {offsets = [2, 0], sizes = [32, 32], strides = [1, 1]} : vector<34x34xf32> to vector<32x32xf32>
    %36 = vector.broadcast %34 : f32 to vector<32x32xf32>
    %37 = arith.mulf %36, %35 : vector<32x32xf32>
    %38 = arith.addf %33, %37 : vector<32x32xf32>
    %c7 = arith.constant 7 : index
    %39 = memref.load %arg2[%c7] : memref<81xf32, #tpu.memory_space<smem>>
    %40 = vector.extract_strided_slice %3 {offsets = [2, 1], sizes = [32, 32], strides = [1, 1]} : vector<34x34xf32> to vector<32x32xf32>
    %41 = vector.broadcast %39 : f32 to vector<32x32xf32>
    %42 = arith.mulf %41, %40 : vector<32x32xf32>
    %43 = arith.addf %38, %42 : vector<32x32xf32>
    %c8 = arith.constant 8 : index
    %44 = memref.load %arg2[%c8] : memref<81xf32, #tpu.memory_space<smem>>
    %45 = vector.extract_strided_slice %3 {offsets = [2, 2], sizes = [32, 32], strides = [1, 1]} : vector<34x34xf32> to vector<32x32xf32>
    %46 = vector.broadcast %44 : f32 to vector<32x32xf32>
    %47 = arith.mulf %46, %45 : vector<32x32xf32>
    %48 = arith.addf %43, %47 : vector<32x32xf32>
    %c0_5 = arith.constant 0 : index
    %c1_6 = arith.constant 1 : index
    %c0_7 = arith.constant 0 : index
    %c0_8 = arith.constant 0 : index
    %49 = vector.load %arg1[%c0_5, %c1_6, %c0_7, %c0_8] : memref<1x3x34x34xf32, #tpu.memory_space<vmem>>, vector<1x1x34x34xf32>
    %50 = vector.shape_cast %49 : vector<1x1x34x34xf32> to vector<34x34xf32>
    %c9 = arith.constant 9 : index
    %51 = memref.load %arg2[%c9] : memref<81xf32, #tpu.memory_space<smem>>
    %52 = vector.extract_strided_slice %50 {offsets = [0, 0], sizes = [32, 32], strides = [1, 1]} : vector<34x34xf32> to vector<32x32xf32>
    %53 = vector.broadcast %51 : f32 to vector<32x32xf32>
    %54 = arith.mulf %53, %52 : vector<32x32xf32>
    %55 = arith.addf %48, %54 : vector<32x32xf32>
    %c10 = arith.constant 10 : index
    %56 = memref.load %arg2[%c10] : memref<81xf32, #tpu.memory_space<smem>>
    %57 = vector.extract_strided_slice %50 {offsets = [0, 1], sizes = [32, 32], strides = [1, 1]} : vector<34x34xf32> to vector<32x32xf32>
    %58 = vector.broadcast %56 : f32 to vector<32x32xf32>
    %59 = arith.mulf %58, %57 : vector<32x32xf32>
    %60 = arith.addf %55, %59 : vector<32x32xf32>
    %c11 = arith.constant 11 : index
    %61 = memref.load %arg2[%c11] : memref<81xf32, #tpu.memory_space<smem>>
    %62 = vector.extract_strided_slice %50 {offsets = [0, 2], sizes = [32, 32], strides = [1, 1]} : vector<34x34xf32> to vector<32x32xf32>
    %63 = vector.broadcast %61 : f32 to vector<32x32xf32>
    %64 = arith.mulf %63, %62 : vector<32x32xf32>
    %65 = arith.addf %60, %64 : vector<32x32xf32>
    %c12 = arith.constant 12 : index
    %66 = memref.load %arg2[%c12] : memref<81xf32, #tpu.memory_space<smem>>
    %67 = vector.extract_strided_slice %50 {offsets = [1, 0], sizes = [32, 32], strides = [1, 1]} : vector<34x34xf32> to vector<32x32xf32>
    %68 = vector.broadcast %66 : f32 to vector<32x32xf32>
    %69 = arith.mulf %68, %67 : vector<32x32xf32>
    %70 = arith.addf %65, %69 : vector<32x32xf32>
    %c13 = arith.constant 13 : index
    %71 = memref.load %arg2[%c13] : memref<81xf32, #tpu.memory_space<smem>>
    %72 = vector.extract_strided_slice %50 {offsets = [1, 1], sizes = [32, 32], strides = [1, 1]} : vector<34x34xf32> to vector<32x32xf32>
    %73 = vector.broadcast %71 : f32 to vector<32x32xf32>
    %74 = arith.mulf %73, %72 : vector<32x32xf32>
    %75 = arith.addf %70, %74 : vector<32x32xf32>
    %c14 = arith.constant 14 : index
    %76 = memref.load %arg2[%c14] : memref<81xf32, #tpu.memory_space<smem>>
    %77 = vector.extract_strided_slice %50 {offsets = [1, 2], sizes = [32, 32], strides = [1, 1]} : vector<34x34xf32> to vector<32x32xf32>
    %78 = vector.broadcast %76 : f32 to vector<32x32xf32>
    %79 = arith.mulf %78, %77 : vector<32x32xf32>
    %80 = arith.addf %75, %79 : vector<32x32xf32>
    %c15 = arith.constant 15 : index
    %81 = memref.load %arg2[%c15] : memref<81xf32, #tpu.memory_space<smem>>
    %82 = vector.extract_strided_slice %50 {offsets = [2, 0], sizes = [32, 32], strides = [1, 1]} : vector<34x34xf32> to vector<32x32xf32>
    %83 = vector.broadcast %81 : f32 to vector<32x32xf32>
    %84 = arith.mulf %83, %82 : vector<32x32xf32>
    %85 = arith.addf %80, %84 : vector<32x32xf32>
    %c16 = arith.constant 16 : index
    %86 = memref.load %arg2[%c16] : memref<81xf32, #tpu.memory_space<smem>>
    %87 = vector.extract_strided_slice %50 {offsets = [2, 1], sizes = [32, 32], strides = [1, 1]} : vector<34x34xf32> to vector<32x32xf32>
    %88 = vector.broadcast %86 : f32 to vector<32x32xf32>
    %89 = arith.mulf %88, %87 : vector<32x32xf32>
    %90 = arith.addf %85, %89 : vector<32x32xf32>
    %c17 = arith.constant 17 : index
    %91 = memref.load %arg2[%c17] : memref<81xf32, #tpu.memory_space<smem>>
    %92 = vector.extract_strided_slice %50 {offsets = [2, 2], sizes = [32, 32], strides = [1, 1]} : vector<34x34xf32> to vector<32x32xf32>
    %93 = vector.broadcast %91 : f32 to vector<32x32xf32>
    %94 = arith.mulf %93, %92 : vector<32x32xf32>
    %95 = arith.addf %90, %94 : vector<32x32xf32>
    %c0_9 = arith.constant 0 : index
    %c2_10 = arith.constant 2 : index
    %c0_11 = arith.constant 0 : index
    %c0_12 = arith.constant 0 : index
    %96 = vector.load %arg1[%c0_9, %c2_10, %c0_11, %c0_12] : memref<1x3x34x34xf32, #tpu.memory_space<vmem>>, vector<1x1x34x34xf32>
    %97 = vector.shape_cast %96 : vector<1x1x34x34xf32> to vector<34x34xf32>
    %c18 = arith.constant 18 : index
    %98 = memref.load %arg2[%c18] : memref<81xf32, #tpu.memory_space<smem>>
    %99 = vector.extract_strided_slice %97 {offsets = [0, 0], sizes = [32, 32], strides = [1, 1]} : vector<34x34xf32> to vector<32x32xf32>
    %100 = vector.broadcast %98 : f32 to vector<32x32xf32>
    %101 = arith.mulf %100, %99 : vector<32x32xf32>
    %102 = arith.addf %95, %101 : vector<32x32xf32>
    %c19 = arith.constant 19 : index
    %103 = memref.load %arg2[%c19] : memref<81xf32, #tpu.memory_space<smem>>
    %104 = vector.extract_strided_slice %97 {offsets = [0, 1], sizes = [32, 32], strides = [1, 1]} : vector<34x34xf32> to vector<32x32xf32>
    %105 = vector.broadcast %103 : f32 to vector<32x32xf32>
    %106 = arith.mulf %105, %104 : vector<32x32xf32>
    %107 = arith.addf %102, %106 : vector<32x32xf32>
    %c20 = arith.constant 20 : index
    %108 = memref.load %arg2[%c20] : memref<81xf32, #tpu.memory_space<smem>>
    %109 = vector.extract_strided_slice %97 {offsets = [0, 2], sizes = [32, 32], strides = [1, 1]} : vector<34x34xf32> to vector<32x32xf32>
    %110 = vector.broadcast %108 : f32 to vector<32x32xf32>
    %111 = arith.mulf %110, %109 : vector<32x32xf32>
    %112 = arith.addf %107, %111 : vector<32x32xf32>
    %c21 = arith.constant 21 : index
    %113 = memref.load %arg2[%c21] : memref<81xf32, #tpu.memory_space<smem>>
    %114 = vector.extract_strided_slice %97 {offsets = [1, 0], sizes = [32, 32], strides = [1, 1]} : vector<34x34xf32> to vector<32x32xf32>
    %115 = vector.broadcast %113 : f32 to vector<32x32xf32>
    %116 = arith.mulf %115, %114 : vector<32x32xf32>
    %117 = arith.addf %112, %116 : vector<32x32xf32>
    %c22 = arith.constant 22 : index
    %118 = memref.load %arg2[%c22] : memref<81xf32, #tpu.memory_space<smem>>
    %119 = vector.extract_strided_slice %97 {offsets = [1, 1], sizes = [32, 32], strides = [1, 1]} : vector<34x34xf32> to vector<32x32xf32>
    %120 = vector.broadcast %118 : f32 to vector<32x32xf32>
    %121 = arith.mulf %120, %119 : vector<32x32xf32>
    %122 = arith.addf %117, %121 : vector<32x32xf32>
    %c23 = arith.constant 23 : index
    %123 = memref.load %arg2[%c23] : memref<81xf32, #tpu.memory_space<smem>>
    %124 = vector.extract_strided_slice %97 {offsets = [1, 2], sizes = [32, 32], strides = [1, 1]} : vector<34x34xf32> to vector<32x32xf32>
    %125 = vector.broadcast %123 : f32 to vector<32x32xf32>
    %126 = arith.mulf %125, %124 : vector<32x32xf32>
    %127 = arith.addf %122, %126 : vector<32x32xf32>
    %c24 = arith.constant 24 : index
    %128 = memref.load %arg2[%c24] : memref<81xf32, #tpu.memory_space<smem>>
    %129 = vector.extract_strided_slice %97 {offsets = [2, 0], sizes = [32, 32], strides = [1, 1]} : vector<34x34xf32> to vector<32x32xf32>
    %130 = vector.broadcast %128 : f32 to vector<32x32xf32>
    %131 = arith.mulf %130, %129 : vector<32x32xf32>
    %132 = arith.addf %127, %131 : vector<32x32xf32>
    %c25 = arith.constant 25 : index
    %133 = memref.load %arg2[%c25] : memref<81xf32, #tpu.memory_space<smem>>
    %134 = vector.extract_strided_slice %97 {offsets = [2, 1], sizes = [32, 32], strides = [1, 1]} : vector<34x34xf32> to vector<32x32xf32>
    %135 = vector.broadcast %133 : f32 to vector<32x32xf32>
    %136 = arith.mulf %135, %134 : vector<32x32xf32>
    %137 = arith.addf %132, %136 : vector<32x32xf32>
    %c26 = arith.constant 26 : index
    %138 = memref.load %arg2[%c26] : memref<81xf32, #tpu.memory_space<smem>>
    %139 = vector.extract_strided_slice %97 {offsets = [2, 2], sizes = [32, 32], strides = [1, 1]} : vector<34x34xf32> to vector<32x32xf32>
    %140 = vector.broadcast %138 : f32 to vector<32x32xf32>
    %141 = arith.mulf %140, %139 : vector<32x32xf32>
    %142 = arith.addf %137, %141 : vector<32x32xf32>
    %c0_13 = arith.constant 0 : index
    %c0_14 = arith.constant 0 : index
    %c0_15 = arith.constant 0 : index
    %c0_16 = arith.constant 0 : index
    %143 = vector.load %arg4[%c0_13, %c0_14, %c0_15, %c0_16] : memref<1x3x32x32xf32, #tpu.memory_space<vmem>>, vector<1x1x32x32xf32>
    %144 = vector.shape_cast %143 : vector<1x1x32x32xf32> to vector<32x32xf32>
    %145 = vector.shape_cast %142 : vector<32x32xf32> to vector<1x1x32x32xf32>
    tpu.vector_store %arg4[%c0_13, %c0_14, %c0_15, %c0_16], %145 {strides = array<i32>} : memref<1x3x32x32xf32, #tpu.memory_space<vmem>>, vector<1x1x32x32xf32>,
    %c1_17 = arith.constant 1 : index
    %146 = memref.load %arg3[%c1_17] : memref<3xf32, #tpu.memory_space<smem>>
    %147 = vector.broadcast %146 : f32 to vector<32x32xf32>
    %c0_18 = arith.constant 0 : index
    %c0_19 = arith.constant 0 : index
    %c0_20 = arith.constant 0 : index
    %c0_21 = arith.constant 0 : index
    %148 = vector.load %arg1[%c0_18, %c0_19, %c0_20, %c0_21] : memref<1x3x34x34xf32, #tpu.memory_space<vmem>>, vector<1x1x34x34xf32>
    %149 = vector.shape_cast %148 : vector<1x1x34x34xf32> to vector<34x34xf32>
    %c27 = arith.constant 27 : index
    %150 = memref.load %arg2[%c27] : memref<81xf32, #tpu.memory_space<smem>>
    %151 = vector.extract_strided_slice %149 {offsets = [0, 0], sizes = [32, 32], strides = [1, 1]} : vector<34x34xf32> to vector<32x32xf32>
    %152 = vector.broadcast %150 : f32 to vector<32x32xf32>
    %153 = arith.mulf %152, %151 : vector<32x32xf32>
    %154 = arith.addf %147, %153 : vector<32x32xf32>
    %c28 = arith.constant 28 : index
    %155 = memref.load %arg2[%c28] : memref<81xf32, #tpu.memory_space<smem>>
    %156 = vector.extract_strided_slice %149 {offsets = [0, 1], sizes = [32, 32], strides = [1, 1]} : vector<34x34xf32> to vector<32x32xf32>
    %157 = vector.broadcast %155 : f32 to vector<32x32xf32>
    %158 = arith.mulf %157, %156 : vector<32x32xf32>
    %159 = arith.addf %154, %158 : vector<32x32xf32>
    %c29 = arith.constant 29 : index
    %160 = memref.load %arg2[%c29] : memref<81xf32, #tpu.memory_space<smem>>
    %161 = vector.extract_strided_slice %149 {offsets = [0, 2], sizes = [32, 32], strides = [1, 1]} : vector<34x34xf32> to vector<32x32xf32>
    %162 = vector.broadcast %160 : f32 to vector<32x32xf32>
    %163 = arith.mulf %162, %161 : vector<32x32xf32>
    %164 = arith.addf %159, %163 : vector<32x32xf32>
    %c30 = arith.constant 30 : index
    %165 = memref.load %arg2[%c30] : memref<81xf32, #tpu.memory_space<smem>>
    %166 = vector.extract_strided_slice %149 {offsets = [1, 0], sizes = [32, 32], strides = [1, 1]} : vector<34x34xf32> to vector<32x32xf32>
    %167 = vector.broadcast %165 : f32 to vector<32x32xf32>
    %168 = arith.mulf %167, %166 : vector<32x32xf32>
    %169 = arith.addf %164, %168 : vector<32x32xf32>
    %c31 = arith.constant 31 : index
    %170 = memref.load %arg2[%c31] : memref<81xf32, #tpu.memory_space<smem>>
    %171 = vector.extract_strided_slice %149 {offsets = [1, 1], sizes = [32, 32], strides = [1, 1]} : vector<34x34xf32> to vector<32x32xf32>
    %172 = vector.broadcast %170 : f32 to vector<32x32xf32>
    %173 = arith.mulf %172, %171 : vector<32x32xf32>
    %174 = arith.addf %169, %173 : vector<32x32xf32>
    %c32 = arith.constant 32 : index
    %175 = memref.load %arg2[%c32] : memref<81xf32, #tpu.memory_space<smem>>
    %176 = vector.extract_strided_slice %149 {offsets = [1, 2], sizes = [32, 32], strides = [1, 1]} : vector<34x34xf32> to vector<32x32xf32>
    %177 = vector.broadcast %175 : f32 to vector<32x32xf32>
    %178 = arith.mulf %177, %176 : vector<32x32xf32>
    %179 = arith.addf %174, %178 : vector<32x32xf32>
    %c33 = arith.constant 33 : index
    %180 = memref.load %arg2[%c33] : memref<81xf32, #tpu.memory_space<smem>>
    %181 = vector.extract_strided_slice %149 {offsets = [2, 0], sizes = [32, 32], strides = [1, 1]} : vector<34x34xf32> to vector<32x32xf32>
    %182 = vector.broadcast %180 : f32 to vector<32x32xf32>
    %183 = arith.mulf %182, %181 : vector<32x32xf32>
    %184 = arith.addf %179, %183 : vector<32x32xf32>
    %c34 = arith.constant 34 : index
    %185 = memref.load %arg2[%c34] : memref<81xf32, #tpu.memory_space<smem>>
    %186 = vector.extract_strided_slice %149 {offsets = [2, 1], sizes = [32, 32], strides = [1, 1]} : vector<34x34xf32> to vector<32x32xf32>
    %187 = vector.broadcast %185 : f32 to vector<32x32xf32>
    %188 = arith.mulf %187, %186 : vector<32x32xf32>
    %189 = arith.addf %184, %188 : vector<32x32xf32>
    %c35 = arith.constant 35 : index
    %190 = memref.load %arg2[%c35] : memref<81xf32, #tpu.memory_space<smem>>
    %191 = vector.extract_strided_slice %149 {offsets = [2, 2], sizes = [32, 32], strides = [1, 1]} : vector<34x34xf32> to vector<32x32xf32>
    %192 = vector.broadcast %190 : f32 to vector<32x32xf32>
    %193 = arith.mulf %192, %191 : vector<32x32xf32>
    %194 = arith.addf %189, %193 : vector<32x32xf32>
    %c0_22 = arith.constant 0 : index
    %c1_23 = arith.constant 1 : index
    %c0_24 = arith.constant 0 : index
    %c0_25 = arith.constant 0 : index
    %195 = vector.load %arg1[%c0_22, %c1_23, %c0_24, %c0_25] : memref<1x3x34x34xf32, #tpu.memory_space<vmem>>, vector<1x1x34x34xf32>
    %196 = vector.shape_cast %195 : vector<1x1x34x34xf32> to vector<34x34xf32>
    %c36 = arith.constant 36 : index
    %197 = memref.load %arg2[%c36] : memref<81xf32, #tpu.memory_space<smem>>
    %198 = vector.extract_strided_slice %196 {offsets = [0, 0], sizes = [32, 32], strides = [1, 1]} : vector<34x34xf32> to vector<32x32xf32>
    %199 = vector.broadcast %197 : f32 to vector<32x32xf32>
    %200 = arith.mulf %199, %198 : vector<32x32xf32>
    %201 = arith.addf %194, %200 : vector<32x32xf32>
    %c37 = arith.constant 37 : index
    %202 = memref.load %arg2[%c37] : memref<81xf32, #tpu.memory_space<smem>>
    %203 = vector.extract_strided_slice %196 {offsets = [0, 1], sizes = [32, 32], strides = [1, 1]} : vector<34x34xf32> to vector<32x32xf32>
    %204 = vector.broadcast %202 : f32 to vector<32x32xf32>
    %205 = arith.mulf %204, %203 : vector<32x32xf32>
    %206 = arith.addf %201, %205 : vector<32x32xf32>
    %c38 = arith.constant 38 : index
    %207 = memref.load %arg2[%c38] : memref<81xf32, #tpu.memory_space<smem>>
    %208 = vector.extract_strided_slice %196 {offsets = [0, 2], sizes = [32, 32], strides = [1, 1]} : vector<34x34xf32> to vector<32x32xf32>
    %209 = vector.broadcast %207 : f32 to vector<32x32xf32>
    %210 = arith.mulf %209, %208 : vector<32x32xf32>
    %211 = arith.addf %206, %210 : vector<32x32xf32>
    %c39 = arith.constant 39 : index
    %212 = memref.load %arg2[%c39] : memref<81xf32, #tpu.memory_space<smem>>
    %213 = vector.extract_strided_slice %196 {offsets = [1, 0], sizes = [32, 32], strides = [1, 1]} : vector<34x34xf32> to vector<32x32xf32>
    %214 = vector.broadcast %212 : f32 to vector<32x32xf32>
    %215 = arith.mulf %214, %213 : vector<32x32xf32>
    %216 = arith.addf %211, %215 : vector<32x32xf32>
    %c40 = arith.constant 40 : index
    %217 = memref.load %arg2[%c40] : memref<81xf32, #tpu.memory_space<smem>>
    %218 = vector.extract_strided_slice %196 {offsets = [1, 1], sizes = [32, 32], strides = [1, 1]} : vector<34x34xf32> to vector<32x32xf32>
    %219 = vector.broadcast %217 : f32 to vector<32x32xf32>
    %220 = arith.mulf %219, %218 : vector<32x32xf32>
    %221 = arith.addf %216, %220 : vector<32x32xf32>
    %c41 = arith.constant 41 : index
    %222 = memref.load %arg2[%c41] : memref<81xf32, #tpu.memory_space<smem>>
    %223 = vector.extract_strided_slice %196 {offsets = [1, 2], sizes = [32, 32], strides = [1, 1]} : vector<34x34xf32> to vector<32x32xf32>
    %224 = vector.broadcast %222 : f32 to vector<32x32xf32>
    %225 = arith.mulf %224, %223 : vector<32x32xf32>
    %226 = arith.addf %221, %225 : vector<32x32xf32>
    %c42 = arith.constant 42 : index
    %227 = memref.load %arg2[%c42] : memref<81xf32, #tpu.memory_space<smem>>
    %228 = vector.extract_strided_slice %196 {offsets = [2, 0], sizes = [32, 32], strides = [1, 1]} : vector<34x34xf32> to vector<32x32xf32>
    %229 = vector.broadcast %227 : f32 to vector<32x32xf32>
    %230 = arith.mulf %229, %228 : vector<32x32xf32>
    %231 = arith.addf %226, %230 : vector<32x32xf32>
    %c43 = arith.constant 43 : index
    %232 = memref.load %arg2[%c43] : memref<81xf32, #tpu.memory_space<smem>>
    %233 = vector.extract_strided_slice %196 {offsets = [2, 1], sizes = [32, 32], strides = [1, 1]} : vector<34x34xf32> to vector<32x32xf32>
    %234 = vector.broadcast %232 : f32 to vector<32x32xf32>
    %235 = arith.mulf %234, %233 : vector<32x32xf32>
    %236 = arith.addf %231, %235 : vector<32x32xf32>
    %c44 = arith.constant 44 : index
    %237 = memref.load %arg2[%c44] : memref<81xf32, #tpu.memory_space<smem>>
    %238 = vector.extract_strided_slice %196 {offsets = [2, 2], sizes = [32, 32], strides = [1, 1]} : vector<34x34xf32> to vector<32x32xf32>
    %239 = vector.broadcast %237 : f32 to vector<32x32xf32>
    %240 = arith.mulf %239, %238 : vector<32x32xf32>
    %241 = arith.addf %236, %240 : vector<32x32xf32>
    %c0_26 = arith.constant 0 : index
    %c2_27 = arith.constant 2 : index
    %c0_28 = arith.constant 0 : index
    %c0_29 = arith.constant 0 : index
    %242 = vector.load %arg1[%c0_26, %c2_27, %c0_28, %c0_29] : memref<1x3x34x34xf32, #tpu.memory_space<vmem>>, vector<1x1x34x34xf32>
    %243 = vector.shape_cast %242 : vector<1x1x34x34xf32> to vector<34x34xf32>
    %c45 = arith.constant 45 : index
    %244 = memref.load %arg2[%c45] : memref<81xf32, #tpu.memory_space<smem>>
    %245 = vector.extract_strided_slice %243 {offsets = [0, 0], sizes = [32, 32], strides = [1, 1]} : vector<34x34xf32> to vector<32x32xf32>
    %246 = vector.broadcast %244 : f32 to vector<32x32xf32>
    %247 = arith.mulf %246, %245 : vector<32x32xf32>
    %248 = arith.addf %241, %247 : vector<32x32xf32>
    %c46 = arith.constant 46 : index
    %249 = memref.load %arg2[%c46] : memref<81xf32, #tpu.memory_space<smem>>
    %250 = vector.extract_strided_slice %243 {offsets = [0, 1], sizes = [32, 32], strides = [1, 1]} : vector<34x34xf32> to vector<32x32xf32>
    %251 = vector.broadcast %249 : f32 to vector<32x32xf32>
    %252 = arith.mulf %251, %250 : vector<32x32xf32>
    %253 = arith.addf %248, %252 : vector<32x32xf32>
    %c47 = arith.constant 47 : index
    %254 = memref.load %arg2[%c47] : memref<81xf32, #tpu.memory_space<smem>>
    %255 = vector.extract_strided_slice %243 {offsets = [0, 2], sizes = [32, 32], strides = [1, 1]} : vector<34x34xf32> to vector<32x32xf32>
    %256 = vector.broadcast %254 : f32 to vector<32x32xf32>
    %257 = arith.mulf %256, %255 : vector<32x32xf32>
    %258 = arith.addf %253, %257 : vector<32x32xf32>
    %c48 = arith.constant 48 : index
    %259 = memref.load %arg2[%c48] : memref<81xf32, #tpu.memory_space<smem>>
    %260 = vector.extract_strided_slice %243 {offsets = [1, 0], sizes = [32, 32], strides = [1, 1]} : vector<34x34xf32> to vector<32x32xf32>
    %261 = vector.broadcast %259 : f32 to vector<32x32xf32>
    %262 = arith.mulf %261, %260 : vector<32x32xf32>
    %263 = arith.addf %258, %262 : vector<32x32xf32>
    %c49 = arith.constant 49 : index
    %264 = memref.load %arg2[%c49] : memref<81xf32, #tpu.memory_space<smem>>
    %265 = vector.extract_strided_slice %243 {offsets = [1, 1], sizes = [32, 32], strides = [1, 1]} : vector<34x34xf32> to vector<32x32xf32>
    %266 = vector.broadcast %264 : f32 to vector<32x32xf32>
    %267 = arith.mulf %266, %265 : vector<32x32xf32>
    %268 = arith.addf %263, %267 : vector<32x32xf32>
    %c50 = arith.constant 50 : index
    %269 = memref.load %arg2[%c50] : memref<81xf32, #tpu.memory_space<smem>>
    %270 = vector.extract_strided_slice %243 {offsets = [1, 2], sizes = [32, 32], strides = [1, 1]} : vector<34x34xf32> to vector<32x32xf32>
    %271 = vector.broadcast %269 : f32 to vector<32x32xf32>
    %272 = arith.mulf %271, %270 : vector<32x32xf32>
    %273 = arith.addf %268, %272 : vector<32x32xf32>
    %c51 = arith.constant 51 : index
    %274 = memref.load %arg2[%c51] : memref<81xf32, #tpu.memory_space<smem>>
    %275 = vector.extract_strided_slice %243 {offsets = [2, 0], sizes = [32, 32], strides = [1, 1]} : vector<34x34xf32> to vector<32x32xf32>
    %276 = vector.broadcast %274 : f32 to vector<32x32xf32>
    %277 = arith.mulf %276, %275 : vector<32x32xf32>
    %278 = arith.addf %273, %277 : vector<32x32xf32>
    %c52 = arith.constant 52 : index
    %279 = memref.load %arg2[%c52] : memref<81xf32, #tpu.memory_space<smem>>
    %280 = vector.extract_strided_slice %243 {offsets = [2, 1], sizes = [32, 32], strides = [1, 1]} : vector<34x34xf32> to vector<32x32xf32>
    %281 = vector.broadcast %279 : f32 to vector<32x32xf32>
    %282 = arith.mulf %281, %280 : vector<32x32xf32>
    %283 = arith.addf %278, %282 : vector<32x32xf32>
    %c53 = arith.constant 53 : index
    %284 = memref.load %arg2[%c53] : memref<81xf32, #tpu.memory_space<smem>>
    %285 = vector.extract_strided_slice %243 {offsets = [2, 2], sizes = [32, 32], strides = [1, 1]} : vector<34x34xf32> to vector<32x32xf32>
    %286 = vector.broadcast %284 : f32 to vector<32x32xf32>
    %287 = arith.mulf %286, %285 : vector<32x32xf32>
    %288 = arith.addf %283, %287 : vector<32x32xf32>
    %c0_30 = arith.constant 0 : index
    %c1_31 = arith.constant 1 : index
    %c0_32 = arith.constant 0 : index
    %c0_33 = arith.constant 0 : index
    %289 = vector.load %arg4[%c0_30, %c1_31, %c0_32, %c0_33] : memref<1x3x32x32xf32, #tpu.memory_space<vmem>>, vector<1x1x32x32xf32>
    %290 = vector.shape_cast %289 : vector<1x1x32x32xf32> to vector<32x32xf32>
    %291 = vector.shape_cast %288 : vector<32x32xf32> to vector<1x1x32x32xf32>
    tpu.vector_store %arg4[%c0_30, %c1_31, %c0_32, %c0_33], %291 {strides = array<i32>} : memref<1x3x32x32xf32, #tpu.memory_space<vmem>>, vector<1x1x32x32xf32>,
    %c2_34 = arith.constant 2 : index
    %292 = memref.load %arg3[%c2_34] : memref<3xf32, #tpu.memory_space<smem>>
    %293 = vector.broadcast %292 : f32 to vector<32x32xf32>
    %c0_35 = arith.constant 0 : index
    %c0_36 = arith.constant 0 : index
    %c0_37 = arith.constant 0 : index
    %c0_38 = arith.constant 0 : index
    %294 = vector.load %arg1[%c0_35, %c0_36, %c0_37, %c0_38] : memref<1x3x34x34xf32, #tpu.memory_space<vmem>>, vector<1x1x34x34xf32>
    %295 = vector.shape_cast %294 : vector<1x1x34x34xf32> to vector<34x34xf32>
    %c54 = arith.constant 54 : index
    %296 = memref.load %arg2[%c54] : memref<81xf32, #tpu.memory_space<smem>>
    %297 = vector.extract_strided_slice %295 {offsets = [0, 0], sizes = [32, 32], strides = [1, 1]} : vector<34x34xf32> to vector<32x32xf32>
    %298 = vector.broadcast %296 : f32 to vector<32x32xf32>
    %299 = arith.mulf %298, %297 : vector<32x32xf32>
    %300 = arith.addf %293, %299 : vector<32x32xf32>
    %c55 = arith.constant 55 : index
    %301 = memref.load %arg2[%c55] : memref<81xf32, #tpu.memory_space<smem>>
    %302 = vector.extract_strided_slice %295 {offsets = [0, 1], sizes = [32, 32], strides = [1, 1]} : vector<34x34xf32> to vector<32x32xf32>
    %303 = vector.broadcast %301 : f32 to vector<32x32xf32>
    %304 = arith.mulf %303, %302 : vector<32x32xf32>
    %305 = arith.addf %300, %304 : vector<32x32xf32>
    %c56 = arith.constant 56 : index
    %306 = memref.load %arg2[%c56] : memref<81xf32, #tpu.memory_space<smem>>
    %307 = vector.extract_strided_slice %295 {offsets = [0, 2], sizes = [32, 32], strides = [1, 1]} : vector<34x34xf32> to vector<32x32xf32>
    %308 = vector.broadcast %306 : f32 to vector<32x32xf32>
    %309 = arith.mulf %308, %307 : vector<32x32xf32>
    %310 = arith.addf %305, %309 : vector<32x32xf32>
    %c57 = arith.constant 57 : index
    %311 = memref.load %arg2[%c57] : memref<81xf32, #tpu.memory_space<smem>>
    %312 = vector.extract_strided_slice %295 {offsets = [1, 0], sizes = [32, 32], strides = [1, 1]} : vector<34x34xf32> to vector<32x32xf32>
    %313 = vector.broadcast %311 : f32 to vector<32x32xf32>
    %314 = arith.mulf %313, %312 : vector<32x32xf32>
    %315 = arith.addf %310, %314 : vector<32x32xf32>
    %c58 = arith.constant 58 : index
    %316 = memref.load %arg2[%c58] : memref<81xf32, #tpu.memory_space<smem>>
    %317 = vector.extract_strided_slice %295 {offsets = [1, 1], sizes = [32, 32], strides = [1, 1]} : vector<34x34xf32> to vector<32x32xf32>
    %318 = vector.broadcast %316 : f32 to vector<32x32xf32>
    %319 = arith.mulf %318, %317 : vector<32x32xf32>
    %320 = arith.addf %315, %319 : vector<32x32xf32>
    %c59 = arith.constant 59 : index
    %321 = memref.load %arg2[%c59] : memref<81xf32, #tpu.memory_space<smem>>
    %322 = vector.extract_strided_slice %295 {offsets = [1, 2], sizes = [32, 32], strides = [1, 1]} : vector<34x34xf32> to vector<32x32xf32>
    %323 = vector.broadcast %321 : f32 to vector<32x32xf32>
    %324 = arith.mulf %323, %322 : vector<32x32xf32>
    %325 = arith.addf %320, %324 : vector<32x32xf32>
    %c60 = arith.constant 60 : index
    %326 = memref.load %arg2[%c60] : memref<81xf32, #tpu.memory_space<smem>>
    %327 = vector.extract_strided_slice %295 {offsets = [2, 0], sizes = [32, 32], strides = [1, 1]} : vector<34x34xf32> to vector<32x32xf32>
    %328 = vector.broadcast %326 : f32 to vector<32x32xf32>
    %329 = arith.mulf %328, %327 : vector<32x32xf32>
    %330 = arith.addf %325, %329 : vector<32x32xf32>
    %c61 = arith.constant 61 : index
    %331 = memref.load %arg2[%c61] : memref<81xf32, #tpu.memory_space<smem>>
    %332 = vector.extract_strided_slice %295 {offsets = [2, 1], sizes = [32, 32], strides = [1, 1]} : vector<34x34xf32> to vector<32x32xf32>
    %333 = vector.broadcast %331 : f32 to vector<32x32xf32>
    %334 = arith.mulf %333, %332 : vector<32x32xf32>
    %335 = arith.addf %330, %334 : vector<32x32xf32>
    %c62 = arith.constant 62 : index
    %336 = memref.load %arg2[%c62] : memref<81xf32, #tpu.memory_space<smem>>
    %337 = vector.extract_strided_slice %295 {offsets = [2, 2], sizes = [32, 32], strides = [1, 1]} : vector<34x34xf32> to vector<32x32xf32>
    %338 = vector.broadcast %336 : f32 to vector<32x32xf32>
    %339 = arith.mulf %338, %337 : vector<32x32xf32>
    %340 = arith.addf %335, %339 : vector<32x32xf32>
    %c0_39 = arith.constant 0 : index
    %c1_40 = arith.constant 1 : index
    %c0_41 = arith.constant 0 : index
    %c0_42 = arith.constant 0 : index
    %341 = vector.load %arg1[%c0_39, %c1_40, %c0_41, %c0_42] : memref<1x3x34x34xf32, #tpu.memory_space<vmem>>, vector<1x1x34x34xf32>
    %342 = vector.shape_cast %341 : vector<1x1x34x34xf32> to vector<34x34xf32>
    %c63 = arith.constant 63 : index
    %343 = memref.load %arg2[%c63] : memref<81xf32, #tpu.memory_space<smem>>
    %344 = vector.extract_strided_slice %342 {offsets = [0, 0], sizes = [32, 32], strides = [1, 1]} : vector<34x34xf32> to vector<32x32xf32>
    %345 = vector.broadcast %343 : f32 to vector<32x32xf32>
    %346 = arith.mulf %345, %344 : vector<32x32xf32>
    %347 = arith.addf %340, %346 : vector<32x32xf32>
    %c64 = arith.constant 64 : index
    %348 = memref.load %arg2[%c64] : memref<81xf32, #tpu.memory_space<smem>>
    %349 = vector.extract_strided_slice %342 {offsets = [0, 1], sizes = [32, 32], strides = [1, 1]} : vector<34x34xf32> to vector<32x32xf32>
    %350 = vector.broadcast %348 : f32 to vector<32x32xf32>
    %351 = arith.mulf %350, %349 : vector<32x32xf32>
    %352 = arith.addf %347, %351 : vector<32x32xf32>
    %c65 = arith.constant 65 : index
    %353 = memref.load %arg2[%c65] : memref<81xf32, #tpu.memory_space<smem>>
    %354 = vector.extract_strided_slice %342 {offsets = [0, 2], sizes = [32, 32], strides = [1, 1]} : vector<34x34xf32> to vector<32x32xf32>
    %355 = vector.broadcast %353 : f32 to vector<32x32xf32>
    %356 = arith.mulf %355, %354 : vector<32x32xf32>
    %357 = arith.addf %352, %356 : vector<32x32xf32>
    %c66 = arith.constant 66 : index
    %358 = memref.load %arg2[%c66] : memref<81xf32, #tpu.memory_space<smem>>
    %359 = vector.extract_strided_slice %342 {offsets = [1, 0], sizes = [32, 32], strides = [1, 1]} : vector<34x34xf32> to vector<32x32xf32>
    %360 = vector.broadcast %358 : f32 to vector<32x32xf32>
    %361 = arith.mulf %360, %359 : vector<32x32xf32>
    %362 = arith.addf %357, %361 : vector<32x32xf32>
    %c67 = arith.constant 67 : index
    %363 = memref.load %arg2[%c67] : memref<81xf32, #tpu.memory_space<smem>>
    %364 = vector.extract_strided_slice %342 {offsets = [1, 1], sizes = [32, 32], strides = [1, 1]} : vector<34x34xf32> to vector<32x32xf32>
    %365 = vector.broadcast %363 : f32 to vector<32x32xf32>
    %366 = arith.mulf %365, %364 : vector<32x32xf32>
    %367 = arith.addf %362, %366 : vector<32x32xf32>
    %c68 = arith.constant 68 : index
    %368 = memref.load %arg2[%c68] : memref<81xf32, #tpu.memory_space<smem>>
    %369 = vector.extract_strided_slice %342 {offsets = [1, 2], sizes = [32, 32], strides = [1, 1]} : vector<34x34xf32> to vector<32x32xf32>
    %370 = vector.broadcast %368 : f32 to vector<32x32xf32>
    %371 = arith.mulf %370, %369 : vector<32x32xf32>
    %372 = arith.addf %367, %371 : vector<32x32xf32>
    %c69 = arith.constant 69 : index
    %373 = memref.load %arg2[%c69] : memref<81xf32, #tpu.memory_space<smem>>
    %374 = vector.extract_strided_slice %342 {offsets = [2, 0], sizes = [32, 32], strides = [1, 1]} : vector<34x34xf32> to vector<32x32xf32>
    %375 = vector.broadcast %373 : f32 to vector<32x32xf32>
    %376 = arith.mulf %375, %374 : vector<32x32xf32>
    %377 = arith.addf %372, %376 : vector<32x32xf32>
    %c70 = arith.constant 70 : index
    %378 = memref.load %arg2[%c70] : memref<81xf32, #tpu.memory_space<smem>>
    %379 = vector.extract_strided_slice %342 {offsets = [2, 1], sizes = [32, 32], strides = [1, 1]} : vector<34x34xf32> to vector<32x32xf32>
    %380 = vector.broadcast %378 : f32 to vector<32x32xf32>
    %381 = arith.mulf %380, %379 : vector<32x32xf32>
    %382 = arith.addf %377, %381 : vector<32x32xf32>
    %c71 = arith.constant 71 : index
    %383 = memref.load %arg2[%c71] : memref<81xf32, #tpu.memory_space<smem>>
    %384 = vector.extract_strided_slice %342 {offsets = [2, 2], sizes = [32, 32], strides = [1, 1]} : vector<34x34xf32> to vector<32x32xf32>
    %385 = vector.broadcast %383 : f32 to vector<32x32xf32>
    %386 = arith.mulf %385, %384 : vector<32x32xf32>
    %387 = arith.addf %382, %386 : vector<32x32xf32>
    %c0_43 = arith.constant 0 : index
    %c2_44 = arith.constant 2 : index
    %c0_45 = arith.constant 0 : index
    %c0_46 = arith.constant 0 : index
    %388 = vector.load %arg1[%c0_43, %c2_44, %c0_45, %c0_46] : memref<1x3x34x34xf32, #tpu.memory_space<vmem>>, vector<1x1x34x34xf32>
    %389 = vector.shape_cast %388 : vector<1x1x34x34xf32> to vector<34x34xf32>
    %c72 = arith.constant 72 : index
    %390 = memref.load %arg2[%c72] : memref<81xf32, #tpu.memory_space<smem>>
    %391 = vector.extract_strided_slice %389 {offsets = [0, 0], sizes = [32, 32], strides = [1, 1]} : vector<34x34xf32> to vector<32x32xf32>
    %392 = vector.broadcast %390 : f32 to vector<32x32xf32>
    %393 = arith.mulf %392, %391 : vector<32x32xf32>
    %394 = arith.addf %387, %393 : vector<32x32xf32>
    %c73 = arith.constant 73 : index
    %395 = memref.load %arg2[%c73] : memref<81xf32, #tpu.memory_space<smem>>
    %396 = vector.extract_strided_slice %389 {offsets = [0, 1], sizes = [32, 32], strides = [1, 1]} : vector<34x34xf32> to vector<32x32xf32>
    %397 = vector.broadcast %395 : f32 to vector<32x32xf32>
    %398 = arith.mulf %397, %396 : vector<32x32xf32>
    %399 = arith.addf %394, %398 : vector<32x32xf32>
    %c74 = arith.constant 74 : index
    %400 = memref.load %arg2[%c74] : memref<81xf32, #tpu.memory_space<smem>>
    %401 = vector.extract_strided_slice %389 {offsets = [0, 2], sizes = [32, 32], strides = [1, 1]} : vector<34x34xf32> to vector<32x32xf32>
    %402 = vector.broadcast %400 : f32 to vector<32x32xf32>
    %403 = arith.mulf %402, %401 : vector<32x32xf32>
    %404 = arith.addf %399, %403 : vector<32x32xf32>
    %c75 = arith.constant 75 : index
    %405 = memref.load %arg2[%c75] : memref<81xf32, #tpu.memory_space<smem>>
    %406 = vector.extract_strided_slice %389 {offsets = [1, 0], sizes = [32, 32], strides = [1, 1]} : vector<34x34xf32> to vector<32x32xf32>
    %407 = vector.broadcast %405 : f32 to vector<32x32xf32>
    %408 = arith.mulf %407, %406 : vector<32x32xf32>
    %409 = arith.addf %404, %408 : vector<32x32xf32>
    %c76 = arith.constant 76 : index
    %410 = memref.load %arg2[%c76] : memref<81xf32, #tpu.memory_space<smem>>
    %411 = vector.extract_strided_slice %389 {offsets = [1, 1], sizes = [32, 32], strides = [1, 1]} : vector<34x34xf32> to vector<32x32xf32>
    %412 = vector.broadcast %410 : f32 to vector<32x32xf32>
    %413 = arith.mulf %412, %411 : vector<32x32xf32>
    %414 = arith.addf %409, %413 : vector<32x32xf32>
    %c77 = arith.constant 77 : index
    %415 = memref.load %arg2[%c77] : memref<81xf32, #tpu.memory_space<smem>>
    %416 = vector.extract_strided_slice %389 {offsets = [1, 2], sizes = [32, 32], strides = [1, 1]} : vector<34x34xf32> to vector<32x32xf32>
    %417 = vector.broadcast %415 : f32 to vector<32x32xf32>
    %418 = arith.mulf %417, %416 : vector<32x32xf32>
    %419 = arith.addf %414, %418 : vector<32x32xf32>
    %c78 = arith.constant 78 : index
    %420 = memref.load %arg2[%c78] : memref<81xf32, #tpu.memory_space<smem>>
    %421 = vector.extract_strided_slice %389 {offsets = [2, 0], sizes = [32, 32], strides = [1, 1]} : vector<34x34xf32> to vector<32x32xf32>
    %422 = vector.broadcast %420 : f32 to vector<32x32xf32>
    %423 = arith.mulf %422, %421 : vector<32x32xf32>
    %424 = arith.addf %419, %423 : vector<32x32xf32>
    %c79 = arith.constant 79 : index
    %425 = memref.load %arg2[%c79] : memref<81xf32, #tpu.memory_space<smem>>
    %426 = vector.extract_strided_slice %389 {offsets = [2, 1], sizes = [32, 32], strides = [1, 1]} : vector<34x34xf32> to vector<32x32xf32>
    %427 = vector.broadcast %425 : f32 to vector<32x32xf32>
    %428 = arith.mulf %427, %426 : vector<32x32xf32>
    %429 = arith.addf %424, %428 : vector<32x32xf32>
    %c80 = arith.constant 80 : index
    %430 = memref.load %arg2[%c80] : memref<81xf32, #tpu.memory_space<smem>>
    %431 = vector.extract_strided_slice %389 {offsets = [2, 2], sizes = [32, 32], strides = [1, 1]} : vector<34x34xf32> to vector<32x32xf32>
    %432 = vector.broadcast %430 : f32 to vector<32x32xf32>
    %433 = arith.mulf %432, %431 : vector<32x32xf32>
    %434 = arith.addf %429, %433 : vector<32x32xf32>
    %c0_47 = arith.constant 0 : index
    %c2_48 = arith.constant 2 : index
    %c0_49 = arith.constant 0 : index
    %c0_50 = arith.constant 0 : index
    %435 = vector.load %arg4[%c0_47, %c2_48, %c0_49, %c0_50] : memref<1x3x32x32xf32, #tpu.memory_space<vmem>>, vector<1x1x32x32xf32>
    %436 = vector.shape_cast %435 : vector<1x1x32x32xf32> to vector<32x32xf32>
    %437 = vector.shape_cast %434 : vector<32x32xf32> to vector<1x1x32x32xf32>
    tpu.vector_store %arg4[%c0_47, %c2_48, %c0_49, %c0_50], %437 {strides = array<i32>} : memref<1x3x32x32xf32, #tpu.memory_space<vmem>>, vector<1x1x32x32xf32>,
    return
  }
  func.func @transform_0(%arg0: i32) -> (i32, i32, i32, i32) {
    %c0_i32 = arith.constant 0 : i32
    %c0_i32_0 = arith.constant 0 : i32
    %c0_i32_1 = arith.constant 0 : i32
    %c0_i32_2 = arith.constant 0 : i32
    return %arg0, %c0_i32, %c0_i32_0, %c0_i32_1 : i32, i32, i32, i32
  }
  func.func @transform_1(%arg0: i32) -> i32 {
    %c0_i32 = arith.constant 0 : i32
    %c0_i32_0 = arith.constant 0 : i32
    return %c0_i32 : i32
  }
  func.func @transform_2(%arg0: i32) -> i32 {
    %c0_i32 = arith.constant 0 : i32
    %c0_i32_0 = arith.constant 0 : i32
    return %c0_i32 : i32
  }
  func.func @transform_3(%arg0: i32) -> (i32, i32, i32, i32) {
    %c0_i32 = arith.constant 0 : i32
    %c0_i32_0 = arith.constant 0 : i32
    %c0_i32_1 = arith.constant 0 : i32
    %c0_i32_2 = arith.constant 0 : i32
    return %arg0, %c0_i32, %c0_i32_0, %c0_i32_1 : i32, i32, i32, i32
  }
}

module attributes {stable_mosaic.version = 11 : i64} {
  func.func @conv3x3_kernel(%arg0: i32, %arg1: memref<1x3x34x34xf32, #tpu.memory_space<vmem>>, %arg2: memref<27xf32, #tpu.memory_space<smem>>, %arg3: memref<1xf32, #tpu.memory_space<smem>>, %arg4: memref<1x1x32x32xf32, #tpu.memory_space<vmem>>) attributes {dimension_semantics = [#tpu.dimension_semantics<parallel>], iteration_bounds = array<i64: 2>, scalar_prefetch = 0 : i64, scratch_operands = 0 : i64, tpu.core_type = #tpu.core_type<tc>, window_params = [{transform_indices = @transform_0, window_bounds = array<i64: 1, 3, 34, 34>}, {transform_indices = @transform_1, window_bounds = array<i64: 27>}, {transform_indices = @transform_2, window_bounds = array<i64: 1>}, {transform_indices = @transform_3, window_bounds = array<i64: 1, 1, 32, 32>}]} {
    %c0 = arith.constant 0 : index
    %0 = memref.load %arg3[%c0] : memref<1xf32, #tpu.memory_space<smem>>
    %1 = vector.broadcast %0 : f32 to vector<32x32xf32>
    %c0_0 = arith.constant 0 : index
    %c0_1 = arith.constant 0 : index
    %c0_2 = arith.constant 0 : index
    %c0_3 = arith.constant 0 : index
    %2 = vector.load %arg1[%c0_0, %c0_1, %c0_2, %c0_3] : memref<1x3x34x34xf32, #tpu.memory_space<vmem>>, vector<1x1x34x34xf32>
    %3 = vector.shape_cast %2 : vector<1x1x34x34xf32> to vector<34x34xf32>
    %c0_4 = arith.constant 0 : index
    %4 = memref.load %arg2[%c0_4] : memref<27xf32, #tpu.memory_space<smem>>
    %5 = vector.extract_strided_slice %3 {offsets = [0, 0], sizes = [32, 32], strides = [1, 1]} : vector<34x34xf32> to vector<32x32xf32>
    %6 = vector.broadcast %4 : f32 to vector<32x32xf32>
    %7 = arith.mulf %6, %5 : vector<32x32xf32>
    %8 = arith.addf %1, %7 : vector<32x32xf32>
    %c1 = arith.constant 1 : index
    %9 = memref.load %arg2[%c1] : memref<27xf32, #tpu.memory_space<smem>>
    %10 = vector.extract_strided_slice %3 {offsets = [0, 1], sizes = [32, 32], strides = [1, 1]} : vector<34x34xf32> to vector<32x32xf32>
    %11 = vector.broadcast %9 : f32 to vector<32x32xf32>
    %12 = arith.mulf %11, %10 : vector<32x32xf32>
    %13 = arith.addf %8, %12 : vector<32x32xf32>
    %c2 = arith.constant 2 : index
    %14 = memref.load %arg2[%c2] : memref<27xf32, #tpu.memory_space<smem>>
    %15 = vector.extract_strided_slice %3 {offsets = [0, 2], sizes = [32, 32], strides = [1, 1]} : vector<34x34xf32> to vector<32x32xf32>
    %16 = vector.broadcast %14 : f32 to vector<32x32xf32>
    %17 = arith.mulf %16, %15 : vector<32x32xf32>
    %18 = arith.addf %13, %17 : vector<32x32xf32>
    %c3 = arith.constant 3 : index
    %19 = memref.load %arg2[%c3] : memref<27xf32, #tpu.memory_space<smem>>
    %20 = vector.extract_strided_slice %3 {offsets = [1, 0], sizes = [32, 32], strides = [1, 1]} : vector<34x34xf32> to vector<32x32xf32>
    %21 = vector.broadcast %19 : f32 to vector<32x32xf32>
    %22 = arith.mulf %21, %20 : vector<32x32xf32>
    %23 = arith.addf %18, %22 : vector<32x32xf32>
    %c4 = arith.constant 4 : index
    %24 = memref.load %arg2[%c4] : memref<27xf32, #tpu.memory_space<smem>>
    %25 = vector.extract_strided_slice %3 {offsets = [1, 1], sizes = [32, 32], strides = [1, 1]} : vector<34x34xf32> to vector<32x32xf32>
    %26 = vector.broadcast %24 : f32 to vector<32x32xf32>
    %27 = arith.mulf %26, %25 : vector<32x32xf32>
    %28 = arith.addf %23, %27 : vector<32x32xf32>
    %c5 = arith.constant 5 : index
    %29 = memref.load %arg2[%c5] : memref<27xf32, #tpu.memory_space<smem>>
    %30 = vector.extract_strided_slice %3 {offsets = [1, 2], sizes = [32, 32], strides = [1, 1]} : vector<34x34xf32> to vector<32x32xf32>
    %31 = vector.broadcast %29 : f32 to vector<32x32xf32>
    %32 = arith.mulf %31, %30 : vector<32x32xf32>
    %33 = arith.addf %28, %32 : vector<32x32xf32>
    %c6 = arith.constant 6 : index
    %34 = memref.load %arg2[%c6] : memref<27xf32, #tpu.memory_space<smem>>
    %35 = vector.extract_strided_slice %3 {offsets = [2, 0], sizes = [32, 32], strides = [1, 1]} : vector<34x34xf32> to vector<32x32xf32>
    %36 = vector.broadcast %34 : f32 to vector<32x32xf32>
    %37 = arith.mulf %36, %35 : vector<32x32xf32>
    %38 = arith.addf %33, %37 : vector<32x32xf32>
    %c7 = arith.constant 7 : index
    %39 = memref.load %arg2[%c7] : memref<27xf32, #tpu.memory_space<smem>>
    %40 = vector.extract_strided_slice %3 {offsets = [2, 1], sizes = [32, 32], strides = [1, 1]} : vector<34x34xf32> to vector<32x32xf32>
    %41 = vector.broadcast %39 : f32 to vector<32x32xf32>
    %42 = arith.mulf %41, %40 : vector<32x32xf32>
    %43 = arith.addf %38, %42 : vector<32x32xf32>
    %c8 = arith.constant 8 : index
    %44 = memref.load %arg2[%c8] : memref<27xf32, #tpu.memory_space<smem>>
    %45 = vector.extract_strided_slice %3 {offsets = [2, 2], sizes = [32, 32], strides = [1, 1]} : vector<34x34xf32> to vector<32x32xf32>
    %46 = vector.broadcast %44 : f32 to vector<32x32xf32>
    %47 = arith.mulf %46, %45 : vector<32x32xf32>
    %48 = arith.addf %43, %47 : vector<32x32xf32>
    %c0_5 = arith.constant 0 : index
    %c1_6 = arith.constant 1 : index
    %c0_7 = arith.constant 0 : index
    %c0_8 = arith.constant 0 : index
    %49 = vector.load %arg1[%c0_5, %c1_6, %c0_7, %c0_8] : memref<1x3x34x34xf32, #tpu.memory_space<vmem>>, vector<1x1x34x34xf32>
    %50 = vector.shape_cast %49 : vector<1x1x34x34xf32> to vector<34x34xf32>
    %c9 = arith.constant 9 : index
    %51 = memref.load %arg2[%c9] : memref<27xf32, #tpu.memory_space<smem>>
    %52 = vector.extract_strided_slice %50 {offsets = [0, 0], sizes = [32, 32], strides = [1, 1]} : vector<34x34xf32> to vector<32x32xf32>
    %53 = vector.broadcast %51 : f32 to vector<32x32xf32>
    %54 = arith.mulf %53, %52 : vector<32x32xf32>
    %55 = arith.addf %48, %54 : vector<32x32xf32>
    %c10 = arith.constant 10 : index
    %56 = memref.load %arg2[%c10] : memref<27xf32, #tpu.memory_space<smem>>
    %57 = vector.extract_strided_slice %50 {offsets = [0, 1], sizes = [32, 32], strides = [1, 1]} : vector<34x34xf32> to vector<32x32xf32>
    %58 = vector.broadcast %56 : f32 to vector<32x32xf32>
    %59 = arith.mulf %58, %57 : vector<32x32xf32>
    %60 = arith.addf %55, %59 : vector<32x32xf32>
    %c11 = arith.constant 11 : index
    %61 = memref.load %arg2[%c11] : memref<27xf32, #tpu.memory_space<smem>>
    %62 = vector.extract_strided_slice %50 {offsets = [0, 2], sizes = [32, 32], strides = [1, 1]} : vector<34x34xf32> to vector<32x32xf32>
    %63 = vector.broadcast %61 : f32 to vector<32x32xf32>
    %64 = arith.mulf %63, %62 : vector<32x32xf32>
    %65 = arith.addf %60, %64 : vector<32x32xf32>
    %c12 = arith.constant 12 : index
    %66 = memref.load %arg2[%c12] : memref<27xf32, #tpu.memory_space<smem>>
    %67 = vector.extract_strided_slice %50 {offsets = [1, 0], sizes = [32, 32], strides = [1, 1]} : vector<34x34xf32> to vector<32x32xf32>
    %68 = vector.broadcast %66 : f32 to vector<32x32xf32>
    %69 = arith.mulf %68, %67 : vector<32x32xf32>
    %70 = arith.addf %65, %69 : vector<32x32xf32>
    %c13 = arith.constant 13 : index
    %71 = memref.load %arg2[%c13] : memref<27xf32, #tpu.memory_space<smem>>
    %72 = vector.extract_strided_slice %50 {offsets = [1, 1], sizes = [32, 32], strides = [1, 1]} : vector<34x34xf32> to vector<32x32xf32>
    %73 = vector.broadcast %71 : f32 to vector<32x32xf32>
    %74 = arith.mulf %73, %72 : vector<32x32xf32>
    %75 = arith.addf %70, %74 : vector<32x32xf32>
    %c14 = arith.constant 14 : index
    %76 = memref.load %arg2[%c14] : memref<27xf32, #tpu.memory_space<smem>>
    %77 = vector.extract_strided_slice %50 {offsets = [1, 2], sizes = [32, 32], strides = [1, 1]} : vector<34x34xf32> to vector<32x32xf32>
    %78 = vector.broadcast %76 : f32 to vector<32x32xf32>
    %79 = arith.mulf %78, %77 : vector<32x32xf32>
    %80 = arith.addf %75, %79 : vector<32x32xf32>
    %c15 = arith.constant 15 : index
    %81 = memref.load %arg2[%c15] : memref<27xf32, #tpu.memory_space<smem>>
    %82 = vector.extract_strided_slice %50 {offsets = [2, 0], sizes = [32, 32], strides = [1, 1]} : vector<34x34xf32> to vector<32x32xf32>
    %83 = vector.broadcast %81 : f32 to vector<32x32xf32>
    %84 = arith.mulf %83, %82 : vector<32x32xf32>
    %85 = arith.addf %80, %84 : vector<32x32xf32>
    %c16 = arith.constant 16 : index
    %86 = memref.load %arg2[%c16] : memref<27xf32, #tpu.memory_space<smem>>
    %87 = vector.extract_strided_slice %50 {offsets = [2, 1], sizes = [32, 32], strides = [1, 1]} : vector<34x34xf32> to vector<32x32xf32>
    %88 = vector.broadcast %86 : f32 to vector<32x32xf32>
    %89 = arith.mulf %88, %87 : vector<32x32xf32>
    %90 = arith.addf %85, %89 : vector<32x32xf32>
    %c17 = arith.constant 17 : index
    %91 = memref.load %arg2[%c17] : memref<27xf32, #tpu.memory_space<smem>>
    %92 = vector.extract_strided_slice %50 {offsets = [2, 2], sizes = [32, 32], strides = [1, 1]} : vector<34x34xf32> to vector<32x32xf32>
    %93 = vector.broadcast %91 : f32 to vector<32x32xf32>
    %94 = arith.mulf %93, %92 : vector<32x32xf32>
    %95 = arith.addf %90, %94 : vector<32x32xf32>
    %c0_9 = arith.constant 0 : index
    %c2_10 = arith.constant 2 : index
    %c0_11 = arith.constant 0 : index
    %c0_12 = arith.constant 0 : index
    %96 = vector.load %arg1[%c0_9, %c2_10, %c0_11, %c0_12] : memref<1x3x34x34xf32, #tpu.memory_space<vmem>>, vector<1x1x34x34xf32>
    %97 = vector.shape_cast %96 : vector<1x1x34x34xf32> to vector<34x34xf32>
    %c18 = arith.constant 18 : index
    %98 = memref.load %arg2[%c18] : memref<27xf32, #tpu.memory_space<smem>>
    %99 = vector.extract_strided_slice %97 {offsets = [0, 0], sizes = [32, 32], strides = [1, 1]} : vector<34x34xf32> to vector<32x32xf32>
    %100 = vector.broadcast %98 : f32 to vector<32x32xf32>
    %101 = arith.mulf %100, %99 : vector<32x32xf32>
    %102 = arith.addf %95, %101 : vector<32x32xf32>
    %c19 = arith.constant 19 : index
    %103 = memref.load %arg2[%c19] : memref<27xf32, #tpu.memory_space<smem>>
    %104 = vector.extract_strided_slice %97 {offsets = [0, 1], sizes = [32, 32], strides = [1, 1]} : vector<34x34xf32> to vector<32x32xf32>
    %105 = vector.broadcast %103 : f32 to vector<32x32xf32>
    %106 = arith.mulf %105, %104 : vector<32x32xf32>
    %107 = arith.addf %102, %106 : vector<32x32xf32>
    %c20 = arith.constant 20 : index
    %108 = memref.load %arg2[%c20] : memref<27xf32, #tpu.memory_space<smem>>
    %109 = vector.extract_strided_slice %97 {offsets = [0, 2], sizes = [32, 32], strides = [1, 1]} : vector<34x34xf32> to vector<32x32xf32>
    %110 = vector.broadcast %108 : f32 to vector<32x32xf32>
    %111 = arith.mulf %110, %109 : vector<32x32xf32>
    %112 = arith.addf %107, %111 : vector<32x32xf32>
    %c21 = arith.constant 21 : index
    %113 = memref.load %arg2[%c21] : memref<27xf32, #tpu.memory_space<smem>>
    %114 = vector.extract_strided_slice %97 {offsets = [1, 0], sizes = [32, 32], strides = [1, 1]} : vector<34x34xf32> to vector<32x32xf32>
    %115 = vector.broadcast %113 : f32 to vector<32x32xf32>
    %116 = arith.mulf %115, %114 : vector<32x32xf32>
    %117 = arith.addf %112, %116 : vector<32x32xf32>
    %c22 = arith.constant 22 : index
    %118 = memref.load %arg2[%c22] : memref<27xf32, #tpu.memory_space<smem>>
    %119 = vector.extract_strided_slice %97 {offsets = [1, 1], sizes = [32, 32], strides = [1, 1]} : vector<34x34xf32> to vector<32x32xf32>
    %120 = vector.broadcast %118 : f32 to vector<32x32xf32>
    %121 = arith.mulf %120, %119 : vector<32x32xf32>
    %122 = arith.addf %117, %121 : vector<32x32xf32>
    %c23 = arith.constant 23 : index
    %123 = memref.load %arg2[%c23] : memref<27xf32, #tpu.memory_space<smem>>
    %124 = vector.extract_strided_slice %97 {offsets = [1, 2], sizes = [32, 32], strides = [1, 1]} : vector<34x34xf32> to vector<32x32xf32>
    %125 = vector.broadcast %123 : f32 to vector<32x32xf32>
    %126 = arith.mulf %125, %124 : vector<32x32xf32>
    %127 = arith.addf %122, %126 : vector<32x32xf32>
    %c24 = arith.constant 24 : index
    %128 = memref.load %arg2[%c24] : memref<27xf32, #tpu.memory_space<smem>>
    %129 = vector.extract_strided_slice %97 {offsets = [2, 0], sizes = [32, 32], strides = [1, 1]} : vector<34x34xf32> to vector<32x32xf32>
    %130 = vector.broadcast %128 : f32 to vector<32x32xf32>
    %131 = arith.mulf %130, %129 : vector<32x32xf32>
    %132 = arith.addf %127, %131 : vector<32x32xf32>
    %c25 = arith.constant 25 : index
    %133 = memref.load %arg2[%c25] : memref<27xf32, #tpu.memory_space<smem>>
    %134 = vector.extract_strided_slice %97 {offsets = [2, 1], sizes = [32, 32], strides = [1, 1]} : vector<34x34xf32> to vector<32x32xf32>
    %135 = vector.broadcast %133 : f32 to vector<32x32xf32>
    %136 = arith.mulf %135, %134 : vector<32x32xf32>
    %137 = arith.addf %132, %136 : vector<32x32xf32>
    %c26 = arith.constant 26 : index
    %138 = memref.load %arg2[%c26] : memref<27xf32, #tpu.memory_space<smem>>
    %139 = vector.extract_strided_slice %97 {offsets = [2, 2], sizes = [32, 32], strides = [1, 1]} : vector<34x34xf32> to vector<32x32xf32>
    %140 = vector.broadcast %138 : f32 to vector<32x32xf32>
    %141 = arith.mulf %140, %139 : vector<32x32xf32>
    %142 = arith.addf %137, %141 : vector<32x32xf32>
    %c0_13 = arith.constant 0 : index
    %c0_14 = arith.constant 0 : index
    %c0_15 = arith.constant 0 : index
    %c0_16 = arith.constant 0 : index
    %143 = vector.load %arg4[%c0_13, %c0_14, %c0_15, %c0_16] : memref<1x1x32x32xf32, #tpu.memory_space<vmem>>, vector<1x1x32x32xf32>
    %144 = vector.shape_cast %143 : vector<1x1x32x32xf32> to vector<32x32xf32>
    %145 = vector.shape_cast %142 : vector<32x32xf32> to vector<1x1x32x32xf32>
    tpu.vector_store %arg4[%c0_13, %c0_14, %c0_15, %c0_16], %145 {strides = array<i32>} : memref<1x1x32x32xf32, #tpu.memory_space<vmem>>, vector<1x1x32x32xf32>,
    return
  }
  func.func @transform_0(%arg0: i32) -> (i32, i32, i32, i32) {
    %c0_i32 = arith.constant 0 : i32
    %c0_i32_0 = arith.constant 0 : i32
    %c0_i32_1 = arith.constant 0 : i32
    %c0_i32_2 = arith.constant 0 : i32
    return %arg0, %c0_i32, %c0_i32_0, %c0_i32_1 : i32, i32, i32, i32
  }
  func.func @transform_1(%arg0: i32) -> i32 {
    %c0_i32 = arith.constant 0 : i32
    %c0_i32_0 = arith.constant 0 : i32
    return %c0_i32 : i32
  }
  func.func @transform_2(%arg0: i32) -> i32 {
    %c0_i32 = arith.constant 0 : i32
    %c0_i32_0 = arith.constant 0 : i32
    return %c0_i32 : i32
  }
  func.func @transform_3(%arg0: i32) -> (i32, i32, i32, i32) {
    %c0_i32 = arith.constant 0 : i32
    %c0_i32_0 = arith.constant 0 : i32
    %c0_i32_1 = arith.constant 0 : i32
    %c0_i32_2 = arith.constant 0 : i32
    return %arg0, %c0_i32, %c0_i32_0, %c0_i32_1 : i32, i32, i32, i32
  }
}

</mosaic_0001>

<bundles_post_ra>
// kernel: vit_reconstruction_forward.5
= control target key start
LH: loop header
LB: loop body
LE: loop exit
PB: predicated region body
PF: predicated region fallthrough
CT: control target
= control target key end

     0   :  { %s1041_s12 = smov 0   ;;  %s1127_s0 = inlined_call_operand.vmem [shape: f32[2,3,24,24], index: 0, kind: input, shape index: {}]   ;;  %s1128_s1 = inlined_call_operand.vmem [shape: f32[32,24], index: 1, kind: input, shape index: {}]   ;;  %s1129_s2 = inlined_call_operand.vmem [shape: f32[24,32], index: 2, kind: input, shape index: {}]   ;;  %s1130_s3 = inlined_call_operand.vmem [shape: f32[2,3,32,32], index: 3, kind: output, shape index: {}]  }
   0x1 LB: > { %s818_s13 = sadd.s32 4294967295, %s1019_s12   ;;  %p822_p0 = scmp.ge.s32.totalorder %s1019_s12, 1  ;;  %s1019_s12 = sphi %s1041_s12, %s13_s12  }
   0x2   : > { %p137_p1 = scmp.lt.s32.totalorder %s1019_s12, 3 }
   0x4   : > { %p138_p2 = pnand %p822_p0, %p137_p1 }
   0x5   : > { %p161_p3 = scmp.lt.s32.totalorder (!%p138_p2), %s818_s13, 1  ;;  %v171_v0 = vld [vmem:[%s1128_s1] sm:$0xff] (!%p138_p2)  ;;  %vm181_vm0 = vcmask (!%p138_p2), 195584   ;;  %v176_v2 = vld [vmem:[%s1129_s2 + $0x8] sm:$0xff] (!%p138_p2)  ;;  %v173_v12 = vld [vmem:[%s1128_s1 + $0x10] sm:$0xff] (!%p138_p2)  ;;  %vm376_vm1 = vcmask (!%p138_p2), 261120  }
   0x6   : > { %141 = sbr.rel (%p138_p2) target bundleno = 474 (0x1da), region = 32  ;;  %913 = vmatprep.mubr.msk.f32.mxu0 (!%p138_p2), %vm181_vm0, %v171_v0  ;;  %v175_v1 = vld [vmem:[%s1129_s2] sm:$0xff] (!%p138_p2)  ;;  %v172_v11 = vld [vmem:[%s1128_s1 + $0x8] sm:$0xff] (!%p138_p2)  ;;  %v174_v16 = vld [vmem:[%s1128_s1 + $0x18] sm:$0xff] (!%p138_p2) }
   0x7   : > { %v1061_v3 = vpack.c.bf16 (!%p138_p2), %v176_v2, %v175_v1  ;;  %v177_v19 = vld [vmem:[%s1129_s2 + $0x10] sm:$0xff] (!%p138_p2) }
   0x9   : > { %984 = vmatprep.subr.bf16.mxu1 (!%p138_p2), %v1061_v3 }
   0xa   : > { %986 = vmatpush3.bf16.msra.mxu1 (!%p138_p2), %v1061_v3 }
   0xb   : > { %923 = vmatprep.subr.mxu1 (!%p138_p2), %v177_v19 }
   0xd   : > { %s1132_s13 = smov (!%p161_p3, %s818_s13), 1 }
   0xe   : > { %s1003_s20 = smul.u32 72, %s1132_s13  ;;  %924 = vmatpush3.msra.mxu1 %v177_v19 }
   0xf   : > { %992 = vmatprep.subr.bf16.mxu1 %v1061_v3  ;;  %s1004_s5 = smul.u32 96, %s1132_s13 }
  0x10   : > { %s165_s23 = scalar_lea.vmem %s1127_s0, %s1003_s20 }
  0x11   : > { %v178_v4 = vld [vmem:[%s165_s23] sm:$0xff]  ;;  %v179_v5 = vld [vmem:[%s165_s23 + $0x8] sm:$0xff]  ;;  %v180_v7 = vld [vmem:[%s165_s23 + $0x10] sm:$0xff]  ;;  %s170_s8 = scalar_lea.vmem %s1130_s3, %s1004_s5 }
  0x12   : > { %v979_v6 = vpack.c.bf16 %v179_v5, %v178_v4  ;;  %v833_v8 = vld [vmem:[%s165_s23 + $0x18] sm:$0xff]  ;;  %v834_v9 = vld [vmem:[%s165_s23 + $0x20] sm:$0xff]  ;;  %v835_v13 = vld [vmem:[%s165_s23 + $0x28] sm:$0xff] }
  0x13   : > { %v987_v10 = vpack.c.bf16 %v834_v9, %v833_v8  ;;  %v848_v14 = vld [vmem:[%s165_s23 + $0x30] sm:$0xff]  ;;  %v849_v15 = vld [vmem:[%s165_s23 + $0x38] sm:$0xff]  ;;  %v850_v18 = vld [vmem:[%s165_s23 + $0x40] sm:$0xff] }
  0x14   : > { %980 = vmatprep.subr.bf16.mxu0 %v979_v6  ;;  %v995_v17 = vpack.c.bf16 %v849_v15, %v848_v14 }
  0x15   : > { %982 = vmatpush3.bf16.msra.mxu0 %v979_v6 }
  0x16   : > { %911 = vmatprep.subr.mxu0 %v180_v7 }
  0x19   : > { %912 = vmatpush3.msra.mxu0 %v180_v7 }
  0x1a   : > { %914 = vmatmul.mubr.msk.f32.vlgmr.msra.gmra.mrb[0].mxu0 %vm181_vm0, %v172_v11  ;;  %988 = vmatprep.subr.bf16.mxu0 %v987_v10 }
  0x1b   : > { %990 = vmatpush3.bf16.msra.mxu0 %v987_v10  ;;  %916 = vmatprep.mubr.msk.f32.mxu0 %vm181_vm0, %v173_v12 }
  0x1c   : > { %935 = vmatprep.subr.mxu0 %v835_v13 }
  0x1e   : > { %917 = vmatmul.mubr.msk.f32.gmra.mrb[2].mxu0 %vm181_vm0, %v174_v16 }
  0x1f   : > { %936 = vmatpush3.msra.mxu0 %v835_v13  ;;  %937 = vmatprep.mubr.msk.f32.mxu0 %vm181_vm0, %v171_v0 }
  0x20   : > { %996 = vmatprep.subr.bf16.mxu0 %v995_v17 }
  0x22   : > { %938 = vmatmul.mubr.msk.f32.vlgmr.msra.gmra.mrb[4].mxu0 %vm181_vm0, %v172_v11 }
  0x23   : > { %998 = vmatpush3.bf16.msra.mxu0 %v995_v17  ;;  %940 = vmatprep.mubr.msk.f32.mxu0 %vm181_vm0, %v173_v12 }
  0x24   : > { %959 = vmatprep.subr.mxu0 %v850_v18 }
  0x26   : > { %941 = vmatmul.mubr.msk.f32.gmra.mrb[6].mxu0 %vm181_vm0, %v174_v16 }
  0x27   : > { %960 = vmatpush3.msra.mxu0 %v850_v18  ;;  %961 = vmatprep.mubr.msk.f32.mxu0 %vm181_vm0, %v171_v0 }
  0x2a   : > { %962 = vmatmul.mubr.msk.f32.vlgmr.msra.gmra.mrb[8].mxu0 %vm181_vm0, %v172_v11 }
  0x2b   : > { %964 = vmatprep.mubr.msk.f32.mxu0 %vm181_vm0, %v173_v12 }
  0x2e   : > { %965 = vmatmul.mubr.msk.f32.gmra.mrb[10].mxu0 %vm181_vm0, %v174_v16 }
  0xed   : > { %v915_v20 = vpop.f32.mrb[0].mxu0 }
  0xee   : > { %v260_v21 = vpop.f32.mrb[1].mxu0 }
  0xef   : > { %925 = vmatprep.mubr.msk.f32.mxu1 %vm181_vm0, %v260_v21 }
  0xf0   : > { %926 = vmatmul.mubr.msk.f32.vlgmr.msra.gmra.mrb[0].mxu1 %vm181_vm0, %v915_v20 }
  0xf1   : > { %v918_v22 = vpop.f32.mrb[2].mxu0  ;;  %994 = vmatpush3.bf16.msra.mxu1 %v1061_v3 }
  0xf2   : > { %v270_v23 = vpop.f32.mrb[3].mxu0  ;;  %947 = vmatprep.subr.mxu1 %v177_v19 }
  0xf3   : > { %928 = vmatprep.mubr.msk.f32.mxu1 %vm181_vm0, %v270_v23 }
  0xf4   : > { %929 = vmatmul.mubr.msk.f32.gmra.mrb[2].mxu1 %vm181_vm0, %v918_v22 }
  0xf5   : > { %v939_v24 = vpop.f32.mrb[4].mxu0  ;;  %948 = vmatpush3.msra.mxu1 %v177_v19 }
  0xf6   : > { %v451_v25 = vpop.f32.mrb[5].mxu0  ;;  %1000 = vmatprep.subr.bf16.mxu1 %v1061_v3 }
  0xf7   : > { %949 = vmatprep.mubr.msk.f32.mxu1 %vm181_vm0, %v451_v25 }
  0xf8   : > { %950 = vmatmul.mubr.msk.f32.vlgmr.msra.gmra.mrb[4].mxu1 %vm181_vm0, %v939_v24 }
  0xf9   : > { %v942_v26 = vpop.f32.mrb[6].mxu0  ;;  %1002 = vmatpush3.bf16.msra.mxu1 %v1061_v3 }
  0xfa   : > { %v461_v27 = vpop.f32.mrb[7].mxu0  ;;  %971 = vmatprep.subr.mxu1 %v177_v19 }
  0xfb   : > { %952 = vmatprep.mubr.msk.f32.mxu1 %vm181_vm0, %v461_v27 }
  0xfc   : > { %953 = vmatmul.mubr.msk.f32.gmra.mrb[6].mxu1 %vm181_vm0, %v942_v26 }
  0xfd   : > { %v963_v28 = vpop.f32.mrb[8].mxu0  ;;  %972 = vmatpush3.msra.mxu1 %v177_v19 }
  0xfe   : > { %v642_v29 = vpop.f32.mrb[9].mxu0 }
  0xff   : > { %973 = vmatprep.mubr.msk.f32.mxu1 %vm181_vm0, %v642_v29 }
 0x100   : > { %974 = vmatmul.mubr.msk.f32.vlgmr.msra.gmra.mrb[8].mxu1 %vm181_vm0, %v963_v28 }
 0x101   : > { %v966_v30 = vpop.f32.mrb[10].mxu0 }
 0x102   : > { %v652_v31 = vpop.f32.mrb[11].mxu0 }
 0x103   : > { %976 = vmatprep.mubr.msk.f32.mxu1 %vm181_vm0, %v652_v31 }
 0x104   : > { %977 = vmatmul.mubr.msk.f32.gmra.mrb[10].mxu1 %vm181_vm0, %v966_v30 }
 0x1c3   : > { %v927_v32 = vpop.f32.mrb[0].mxu1 }
 0x1c4   : > { %378 = vst.msk [vmem:[%s170_s8 + $0x8] sm:$0xff] %vm376_vm1, %v927_v32  ;;  %v357_v33 = vpop.f32.mrb[1].mxu1 }
 0x1c5   : > { %377 = vst.msk [vmem:[%s170_s8] sm:$0xff] %vm376_vm1, %v357_v33 }
 0x1c7   : > { %v930_v34 = vpop.f32.mrb[2].mxu1 }
 0x1c8   : > { %380 = vst.msk [vmem:[%s170_s8 + $0x18] sm:$0xff] %vm376_vm1, %v930_v34  ;;  %v367_v35 = vpop.f32.mrb[3].mxu1 }
 0x1c9   : > { %379 = vst.msk [vmem:[%s170_s8 + $0x10] sm:$0xff] %vm376_vm1, %v367_v35 }
 0x1cb   : > { %v951_v36 = vpop.f32.mrb[4].mxu1 }
 0x1cc   : > { %845 = vst.msk [vmem:[%s170_s8 + $0x28] sm:$0xff] %vm376_vm1, %v951_v36  ;;  %v548_v37 = vpop.f32.mrb[5].mxu1 }
 0x1cd   : > { %844 = vst.msk [vmem:[%s170_s8 + $0x20] sm:$0xff] %vm376_vm1, %v548_v37 }
 0x1cf   : > { %v954_v38 = vpop.f32.mrb[6].mxu1 }
 0x1d0   : > { %847 = vst.msk [vmem:[%s170_s8 + $0x38] sm:$0xff] %vm376_vm1, %v954_v38  ;;  %v558_v39 = vpop.f32.mrb[7].mxu1 }
 0x1d1   : > { %846 = vst.msk [vmem:[%s170_s8 + $0x30] sm:$0xff] %vm376_vm1, %v558_v39 }
 0x1d3   : > { %v975_v40 = vpop.f32.mrb[8].mxu1 }
 0x1d4   : > { %860 = vst.msk [vmem:[%s170_s8 + $0x48] sm:$0xff] %vm376_vm1, %v975_v40  ;;  %v739_v41 = vpop.f32.mrb[9].mxu1 }
 0x1d5   : > { %859 = vst.msk [vmem:[%s170_s8 + $0x40] sm:$0xff] %vm376_vm1, %v739_v41 }
 0x1d7   : > { %v978_v42 = vpop.f32.mrb[10].mxu1 }
 0x1d8   : > { %862 = vst.msk [vmem:[%s170_s8 + $0x58] sm:$0xff] %vm376_vm1, %v978_v42  ;;  %v749_v43 = vpop.f32.mrb[11].mxu1 }
 0x1d9   : > { %861 = vst.msk [vmem:[%s170_s8 + $0x50] sm:$0xff] %vm376_vm1, %v749_v43 }
 0x1da PF: > { %s13_s12 = sadd.s32 1, %s1019_s12  }
 0x1db   : > { %p10_p4 = scmp.ge.s32.totalorder %s13_s12, 4  }
 0x1dd   :  { %12 = sbr.rel (!%p10_p4) target bundleno = 1 (0x1), region = 66 }

// kernel: vit_reconstruction_forward.6
= control target key start
LH: loop header
LB: loop body
LE: loop exit
PB: predicated region body
PF: predicated region fallthrough
CT: control target
= control target key end

     0   :  { %vm193_vm0 = vcmask 523264   ;;  %v45_v28 = vlaneseq  ;;  %s498_s1 = inlined_call_operand.vmem [shape: bf16[192,192], index: 1, kind: input, shape index: {}]   ;;  %s499_s0 = inlined_call_operand.vmem [shape: bf16[32,192], index: 0, kind: input, shape index: {}]   ;;  %s500_s2 = inlined_call_operand.vmem [shape: f32[1,192], index: 2, kind: input, shape index: {}]   ;;  %s501_s3 = inlined_call_operand.vmem [shape: f32[32,192], index: 3, kind: output, shape index: {}]  }
   0x1   :  { %v319_v0 = vld [vmem:[%s498_s1 + $0x4] ss:$8 sps:$4 sm:$0xff]   ;;  %v321_v1 = vld [vmem:[%s498_s1] ss:$8 sps:$4 sm:$0xff]   ;;  %v322_v2 = vld [vmem:[%s498_s1 + $0x14] ss:$8 sps:$4 sm:$0xff]  }
   0x2   :  { %200 = vmatprep.subr.bf16.mxu0 %v319_v0  ;;  %295 = vmatprep.subr.bf16.mxu1 %v319_v0  ;;  %v324_v3 = vld [vmem:[%s498_s1 + $0x10] ss:$8 sps:$4 sm:$0xff]   ;;  %v325_v4 = vld [vmem:[%s498_s1 + $0x24] ss:$8 sps:$4 sm:$0xff]   ;;  %v327_v5 = vld [vmem:[%s498_s1 + $0x20] ss:$8 sps:$4 sm:$0xff]  }
   0x3   :  { %201 = vmatpush1.bf16.msra.mxu0 %v321_v1  ;;  %307 = vmatpush1.bf16.msra.mxu1 %v321_v1  ;;  %v328_v6 = vld [vmem:[%s498_s1 + $0x34] ss:$8 sps:$4 sm:$0xff]   ;;  %v330_v7 = vld [vmem:[%s498_s1 + $0x30] ss:$8 sps:$4 sm:$0xff]   ;;  %v331_v8 = vld [vmem:[%s498_s1 + $0x44] ss:$8 sps:$4 sm:$0xff]  }
   0x4   :  { %202 = vmatprep.subr.bf16.mxu0 %v322_v2  ;;  %296 = vmatprep.subr.bf16.mxu1 %v322_v2  ;;  %v333_v9 = vld [vmem:[%s498_s1 + $0x40] ss:$8 sps:$4 sm:$0xff]   ;;  %v334_v10 = vld [vmem:[%s498_s1 + $0x54] ss:$8 sps:$4 sm:$0xff]   ;;  %v357_v11 = vld [vmem:[%s499_s0 + $0x4] ss:$8 sps:$4 sm:$0xff]  }
   0x5   :  { %v360_v12 = vld [vmem:[%s499_s0 + $0x14] ss:$8 sps:$4 sm:$0xff]   ;;  %v336_v13 = vld [vmem:[%s498_s1 + $0x50] ss:$8 sps:$4 sm:$0xff]   ;;  %v337_v14 = vld [vmem:[%s498_s1 + $0x64] ss:$8 sps:$4 sm:$0xff]   ;;  %293 = vmatprep.mubr.msk.bf16.mxu0 %vm193_vm0, %v357_v11 }
   0x6   :  { %294 = vmatprep.mubr.msk.bf16.mxu1 %vm193_vm0, %v360_v12  ;;  %v339_v15 = vld [vmem:[%s498_s1 + $0x60] ss:$8 sps:$4 sm:$0xff]   ;;  %v340_v16 = vld [vmem:[%s498_s1 + $0x74] ss:$8 sps:$4 sm:$0xff]   ;;  %v342_v17 = vld [vmem:[%s498_s1 + $0x70] ss:$8 sps:$4 sm:$0xff]  }
   0x7   :  { %203 = vmatpush1.bf16.msra.mxu0 %v324_v3  ;;  %308 = vmatpush1.bf16.msra.mxu1 %v324_v3  ;;  %v343_v18 = vld [vmem:[%s498_s1 + $0x84] ss:$8 sps:$4 sm:$0xff]   ;;  %v345_v19 = vld [vmem:[%s498_s1 + $0x80] ss:$8 sps:$4 sm:$0xff]   ;;  %v346_v20 = vld [vmem:[%s498_s1 + $0x94] ss:$8 sps:$4 sm:$0xff]  }
   0x8   :  { %204 = vmatprep.subr.bf16.mxu0 %v325_v4  ;;  %297 = vmatprep.subr.bf16.mxu1 %v325_v4  ;;  %v348_v21 = vld [vmem:[%s498_s1 + $0x90] ss:$8 sps:$4 sm:$0xff]   ;;  %v349_v22 = vld [vmem:[%s498_s1 + $0xa4] ss:$8 sps:$4 sm:$0xff]   ;;  %v351_v23 = vld [vmem:[%s498_s1 + $0xa0] ss:$8 sps:$4 sm:$0xff]  }
   0x9   :  { %v352_v24 = vld [vmem:[%s498_s1 + $0xb4] ss:$8 sps:$4 sm:$0xff]   ;;  %v354_v25 = vld [vmem:[%s498_s1 + $0xb0] ss:$8 sps:$4 sm:$0xff]   ;;  %v355_v26 = vld [vmem:[%s499_s0] ss:$8 sps:$4 sm:$0xff]  }
   0xa   :  { %v358_v27 = vld [vmem:[%s499_s0 + $0x10] ss:$8 sps:$4 sm:$0xff]   ;;  %v46_v29 = vshrl.u32 %v45_v28, 7  ;;  %v43_v31 = vld [vmem:[%s500_s2] sm:$0x3] }
   0xb   :  { %205 = vmatpush1.bf16.msra.mxu0 %v327_v5  ;;  %309 = vmatpush1.bf16.msra.mxu1 %v327_v5 }
   0xc   :  { %206 = vmatprep.subr.bf16.mxu0 %v328_v6  ;;  %298 = vmatprep.subr.bf16.mxu1 %v328_v6  ;;  %v47_v30 = vsub.s32 0, %v46_v29  ;;  %v51_v32 = vsub.s32 1, %v46_v29 }
   0xe   :  { %v48_v33 = vrot.slane %v43_v31, %v47_v30  ;;  %v52_v34 = vrot.slane %v43_v31, %v51_v32 }
   0xf   :  { %207 = vmatpush1.bf16.msra.mxu0 %v330_v7  ;;  %310 = vmatpush1.bf16.msra.mxu1 %v330_v7 }
  0x10   :  { %208 = vmatprep.subr.bf16.mxu0 %v331_v8  ;;  %299 = vmatprep.subr.bf16.mxu1 %v331_v8 }
  0x13   :  { %209 = vmatpush1.bf16.msra.mxu0 %v333_v9  ;;  %311 = vmatpush1.bf16.msra.mxu1 %v333_v9 }
  0x14   :  { %210 = vmatprep.subr.bf16.mxu0 %v334_v10  ;;  %300 = vmatprep.subr.bf16.mxu1 %v334_v10 }
  0x17   :  { %211 = vmatpush1.bf16.msra.mxu0 %v336_v13  ;;  %312 = vmatpush1.bf16.msra.mxu1 %v336_v13 }
  0x18   :  { %212 = vmatprep.subr.bf16.mxu0 %v337_v14  ;;  %301 = vmatprep.subr.bf16.mxu1 %v337_v14 }
  0x1b   :  { %213 = vmatpush1.bf16.msra.mxu0 %v339_v15  ;;  %313 = vmatpush1.bf16.msra.mxu1 %v339_v15 }
  0x1c   :  { %214 = vmatprep.subr.bf16.mxu0 %v340_v16  ;;  %302 = vmatprep.subr.bf16.mxu1 %v340_v16 }
  0x1f   :  { %215 = vmatpush1.bf16.msra.mxu0 %v342_v17  ;;  %314 = vmatpush1.bf16.msra.mxu1 %v342_v17 }
  0x20   :  { %216 = vmatprep.subr.bf16.mxu0 %v343_v18  ;;  %303 = vmatprep.subr.bf16.mxu1 %v343_v18 }
  0x23   :  { %217 = vmatpush1.bf16.msra.mxu0 %v345_v19  ;;  %315 = vmatpush1.bf16.msra.mxu1 %v345_v19 }
  0x24   :  { %218 = vmatprep.subr.bf16.mxu0 %v346_v20  ;;  %304 = vmatprep.subr.bf16.mxu1 %v346_v20 }
  0x27   :  { %219 = vmatpush1.bf16.msra.mxu0 %v348_v21  ;;  %316 = vmatpush1.bf16.msra.mxu1 %v348_v21 }
  0x28   :  { %220 = vmatprep.subr.bf16.mxu0 %v349_v22  ;;  %305 = vmatprep.subr.bf16.mxu1 %v349_v22 }
  0x2b   :  { %221 = vmatpush1.bf16.msra.mxu0 %v351_v23  ;;  %317 = vmatpush1.bf16.msra.mxu1 %v351_v23 }
  0x2c   :  { %222 = vmatprep.subr.bf16.mxu0 %v352_v24  ;;  %306 = vmatprep.subr.bf16.mxu1 %v352_v24 }
  0x2f   :  { %223 = vmatpush1.bf16.msra.mxu0 %v354_v25  ;;  %318 = vmatpush1.bf16.msra.mxu1 %v354_v25 }
  0x32   :  { %233 = vmatmul.mubr.bf16.vlgmr.msra.gmra.mrb[0].mxu0 %v355_v26  ;;  %243 = vmatmul.mubr.bf16.vlgmr.msra.gmra.mrb[0].mxu1 %v358_v27 }
 0x105   :  { %v234_v35 = vpop.f32.mrb[0].mxu0  ;;  %v244_v36 = vpop.f32.mrb[0].mxu1 }
 0x106   :  { %v235_v37 = vadd.f32 %v234_v35, %v48_v33  ;;  %v245_v38 = vadd.f32 %v244_v36, %v48_v33  ;;  %v236_v39 = vpop.f32.mrb[1].mxu0  ;;  %v246_v40 = vpop.f32.mrb[1].mxu1 }
 0x107   :  { %v237_v41 = vadd.f32 %v236_v39, %v52_v34  ;;  %v247_v42 = vadd.f32 %v246_v40, %v52_v34  ;;  %v238_v43 = vpop.f32.mrb[2].mxu0  ;;  %v248_v44 = vpop.f32.mrb[2].mxu1 }
 0x108   :  { %253 = vst [vmem:[%s501_s3] sm:$0xff] %v235_v37  ;;  %257 = vst [vmem:[%s501_s3 + $0x20] sm:$0xff] %v245_v38  ;;  %v239_v45 = vadd.f32 %v238_v43, %v48_v33  ;;  %v249_v46 = vadd.f32 %v248_v44, %v48_v33  ;;  %v240_v47 = vpop.f32.mrb[3].mxu0  ;;  %v250_v48 = vpop.f32.mrb[3].mxu1 }
 0x109   :  { %254 = vst.msk [vmem:[%s501_s3 + $0x8] sm:$0xff] %vm193_vm0, %v237_v41  ;;  %258 = vst.msk [vmem:[%s501_s3 + $0x28] sm:$0xff] %vm193_vm0, %v247_v42  ;;  %v241_v49 = vadd.f32 %v240_v47, %v52_v34  ;;  %v251_v50 = vadd.f32 %v250_v48, %v52_v34 }
 0x10a   :  { %255 = vst [vmem:[%s501_s3 + $0x10] sm:$0xff] %v239_v45  ;;  %259 = vst [vmem:[%s501_s3 + $0x30] sm:$0xff] %v249_v46 }
 0x10b   :  { %256 = vst.msk [vmem:[%s501_s3 + $0x18] sm:$0xff] %vm193_vm0, %v241_v49  ;;  %260 = vst.msk [vmem:[%s501_s3 + $0x38] sm:$0xff] %vm193_vm0, %v251_v50 }

// kernel: vit_reconstruction_forward.7
= control target key start
LH: loop header
LB: loop body
LE: loop exit
PB: predicated region body
PF: predicated region fallthrough
CT: control target
= control target key end

     0   :  { %s6943_s21 = smov 0   ;;  %s8589_s0 = inlined_call_operand.vmem [shape: f32[2,17,192], index: 0, kind: input, shape index: {}]   ;;  %s8590_s1 = inlined_call_operand.vmem [shape: f32[2,1,192], index: 1, kind: input, shape index: {}]   ;;  %s8591_s2 = inlined_call_operand.vmem [shape: f32[2,1,192], index: 2, kind: input, shape index: {}]   ;;  %s8592_s3 = inlined_call_operand.vmem [shape: bf16[2,192,576], index: 3, kind: input, shape index: {}]   ;;  %s8593_s4 = inlined_call_operand.vmem [shape: bf16[2,192,192], index: 4, kind: input, shape index: {}]   ;;  %s8594_s5 = inlined_call_operand.vmem [shape: f32[2,1,192], index: 5, kind: input, shape index: {}]   ;;  %s8595_s6 = inlined_call_operand.vmem [shape: f32[2,1,192], index: 6, kind: input, shape index: {}]   ;;  %s8596_s7 = inlined_call_operand.vmem [shape: f32[2,1,192], index: 7, kind: input, shape index: {}]   ;;  %s8597_s8 = inlined_call_operand.vmem [shape: bf16[2,192,768], index: 8, kind: input, shape index: {}]   ;;  %s8598_s9 = inlined_call_operand.vmem [shape: f32[2,1,768], index: 9, kind: input, shape index: {}]   ;;  %s8599_s10 = inlined_call_operand.vmem [shape: bf16[2,768,192], index: 10, kind: input, shape index: {}]   ;;  %s8600_s11 = inlined_call_operand.vmem [shape: f32[2,1,192], index: 11, kind: input, shape index: {}]   ;;  %s8601_s12 = inlined_call_operand.vmem [shape: f32[2,17,192], index: 12, kind: output, shape index: {}]  }
   0x1   :  { %8603 = sst [smem:[#allocation3_spill]] %s8590_s1 }
   0x2   :  { %8604 = sst [smem:[#allocation4_spill]] %s8591_s2 }
   0x3   :  { %8605 = sst [smem:[#allocation5_spill]] %s8592_s3 }
   0x4   :  { %8606 = sst [smem:[#allocation6_spill]] %s8593_s4 }
   0x5   :  { %8607 = sst [smem:[#allocation7_spill]] %s8594_s5 }
   0x6   :  { %8608 = sst [smem:[#allocation8_spill]] %s8595_s6 }
   0x7   :  { %8609 = sst [smem:[#allocation9_spill]] %s8596_s7 }
   0x8 LB: > { %8610 = sst [smem:[#allocation2_spill]] %s6874_s21  ;;  %s5520_s22 = sadd.s32 4294967295, %s6874_s21   ;;  %s6874_s21 = sphi %s6943_s21, %s22_s21  }
   0x9   : > { %p5523_p0 = scmp.ge.s32.totalorder %s6874_s21, 1  ;;  %p450_p1 = scmp.lt.s32.totalorder %s6874_s21, 3 }
   0xb   : > { %p451_p2 = pnand %p5523_p0, %p450_p1 }
   0xc   : > { %p530_p3 = scmp.lt.s32.totalorder (!%p451_p2), %s5520_s22, 1  ;;  %s8611_s1 = sld [smem:[#allocation3_spill]] (!%p451_p2) }
   0xd   : > { %454 = sbr.rel (%p451_p2) target bundleno = 4994 (0x1382), region = 68  ;;  %s8612_s2 = sld [smem:[#allocation4_spill]] (!%p451_p2) }
   0xe   : > { %s8613_s3 = sld [smem:[#allocation5_spill]] (!%p451_p2)  ;;  %s8614_s5 = sld [smem:[#allocation7_spill]] (!%p451_p2) }
   0xf   : > { %s8615_s6 = sld [smem:[#allocation8_spill]] (!%p451_p2)  ;;  %s8616_s4 = sld [smem:[#allocation6_spill]] (!%p451_p2) }
  0x10   : > { %s8617_s7 = sld [smem:[#allocation9_spill]] (!%p451_p2)  ;;  %p5534_p4 = scmp.ne.s32.totalorder (!%p451_p2), %s5520_s22, 0 }
  0x14   : > { %s531_s23 = scalar_select %p530_p3, %s5520_s22, 1 }
  0x15   : > { %v583_v0 = vld [vmem:[%s8589_s0] sm:$0xff] (!%p5534_p4)  ;;  %v584_v1 = vld [vmem:[%s8589_s0 + $0x8] sm:$0xff] (!%p5534_p4)  ;;  %vm596_vm0 = vcmask (!%p5534_p4), 523264   ;;  %v585_v2 = vld [vmem:[%s8589_s0 + $0x10] sm:$0xff] (!%p5534_p4)  ;;  %vm601_vm1 = vcmask (!%p5534_p4), 516096  }
  0x16   : > { %s5524_s24 = sshll.u32 %s531_s23, 1  ;;  %s6049_s25 = smul.u32 480, %s531_s23  ;;  %595 = vst [vmem:[%s8601_s12] sm:$0xff] (!%p5534_p4), %v583_v0  ;;  %597 = vst.msk [vmem:[%s8601_s12 + $0x8] sm:$0xff] (!%p5534_p4), %vm596_vm0, %v584_v1  ;;  %v586_v3 = vld [vmem:[%s8589_s0 + $0x18] sm:$0xff] (!%p5534_p4)  ;;  %v587_v4 = vld [vmem:[%s8589_s0 + $0x20] sm:$0x1] (!%p5534_p4) }
  0x17   : > { %s6954_s28 = scalar_lea.vmem %s8611_s1, %s5524_s24  ;;  %s6959_s13 = scalar_lea.vmem %s8612_s2, %s5524_s24  ;;  %598 = vst [vmem:[%s8601_s12 + $0x10] sm:$0xff] (!%p5534_p4), %v585_v2  ;;  %v588_v5 = vld [vmem:[%s8589_s0 + $0x28] sm:$0x1] (!%p5534_p4)  ;;  %599 = vst.msk [vmem:[%s8601_s12 + $0x18] sm:$0xff] (!%p5534_p4), %vm596_vm0, %v586_v3  ;;  %v589_v6 = vld [vmem:[%s8589_s0 + $0x30] sm:$0xff] (!%p5534_p4) }
  0x18   : > { %s6964_s16 = scalar_lea.vmem %s8613_s3, %s6049_s25  ;;  %s6050_s17 = smul.u32 192, %s531_s23  ;;  %600 = vst [vmem:[%s8601_s12 + $0x20] sm:$0x1] (!%p5534_p4), %v587_v4  ;;  %602 = vst.msk [vmem:[%s8601_s12 + $0x28] sm:$0x1] (!%p5534_p4), %vm601_vm1, %v588_v5  ;;  %v590_v7 = vld [vmem:[%s8589_s0 + $0x38] sm:$0xff] (!%p5534_p4) }
  0x19   : > { %s6969_s20 = scalar_lea.vmem %s8614_s5, %s5524_s24  ;;  %s6974_s27 = scalar_lea.vmem %s8615_s6, %s5524_s24  ;;  %v591_v8 = vld [vmem:[%s8589_s0 + $0x40] sm:$0xff] (!%p5534_p4)  ;;  %603 = vst [vmem:[%s8601_s12 + $0x30] sm:$0xff] (!%p5534_p4), %v589_v6  ;;  %604 = vst.msk [vmem:[%s8601_s12 + $0x38] sm:$0xff] (!%p5534_p4), %vm596_vm0, %v590_v7  ;;  %v592_v9 = vld [vmem:[%s8589_s0 + $0x48] sm:$0xff] (!%p5534_p4) }
  0x1a   : > { %s6979_s30 = scalar_lea.vmem %s8616_s4, %s6050_s17  ;;  %s6984_s25 = scalar_lea.vmem %s8617_s7, %s5524_s24  ;;  %605 = vst [vmem:[%s8601_s12 + $0x40] sm:$0xff] (!%p5534_p4), %v591_v8  ;;  %v593_v10 = vld [vmem:[%s8589_s0 + $0x50] sm:$0x1] (!%p5534_p4)  ;;  %v594_v11 = vld [vmem:[%s8589_s0 + $0x58] sm:$0x1] (!%p5534_p4)  ;;  %606 = vst.msk [vmem:[%s8601_s12 + $0x48] sm:$0xff] (!%p5534_p4), %vm596_vm0, %v592_v9 }
  0x1b   : > { %s6051_s15 = smul.u32 576, %s531_s23  ;;  %s6989_s19 = scalar_lea.vmem %s8600_s11, %s5524_s24  ;;  %607 = vst [vmem:[%s8601_s12 + $0x50] sm:$0x1] (!%p5534_p4), %v593_v10  ;;  %608 = vst.msk [vmem:[%s8601_s12 + $0x58] sm:$0x1] (!%p5534_p4), %vm601_vm1, %v594_v11 }
  0x1c   : > { %s6052_s5 = smul.u32 6, %s531_s23 }
  0x1d   : > { %s6994_s6 = scalar_lea.vmem %s8597_s8, %s6051_s15  ;;  %s6053_s1 = smul.u32 768, %s531_s23 }
  0x1e   : > { %s6999_s4 = scalar_lea.vmem %s8598_s9, %s6052_s5  ;;  %582 = sbr.rel (%p5534_p4) target bundleno = 37 (0x25), region = 72 }
  0x1f   : > { %s7004_s7 = scalar_lea.vmem %s8599_s10, %s6053_s1 }
  0x25 PF: > { %v7087_v12 = vld [vmem:[%s8601_s12] sm:$0xff]  ;;  %v7092_v13 = vld [vmem:[%s8601_s12 + $0x8] sm:$0xff]  ;;  %vm881_vm2 = vcmask 523264   ;;  %vm890_vm3 = vcmask 1040384   ;;  %vm892_vm4 = vcmask 516096   ;;  %v7106_v18 = vld [vmem:[%s8601_s12 + $0x10] sm:$0xff] }
  0x26   : > { %v877_v14 = vld [vmem:[%s8601_s12 + $0x20] sm:$0x1]  ;;  %v882_v15 = vsel %vm881_vm2, %v7092_v13, 0.0  ;;  %v878_v16 = vld [vmem:[%s8601_s12 + $0x28] sm:$0x1]  ;;  %v876_v21 = vld [vmem:[%s8601_s12 + $0x18] sm:$0xff] }
  0x27   : > { %v891_v17 = vsel %vm890_vm3, %v877_v14, 0.0  ;;  %v883_v19 = vadd.f32 %v882_v15, %v7087_v12  ;;  %v893_v20 = vsel %vm892_vm4, %v878_v16, 0.0  ;;  %v886_v23 = vsel %vm881_vm2, %v876_v21, 0.0  ;;  %v6064_v25 = vld [vmem:[%s6964_s16 + $0x4] ss:$20 sps:$4 sm:$0xff]   ;;  %s6877_s23 = smov 64  }
  0x28   : > { %v894_v22 = vadd.f32 %v893_v20, %v891_v17  ;;  %v887_v24 = vadd.f32 %v886_v23, %v7106_v18  ;;  %v6066_v26 = vld [vmem:[%s6964_s16] ss:$20 sps:$4 sm:$0xff]   ;;  %v6069_v28 = vld [vmem:[%s6964_s16 + $0x8] ss:$20 sps:$4 sm:$0xff]   ;;  %1297 = vmatprep.subr.bf16.mxu0 %v6064_v25  ;;  %v6075_v32 = vld [vmem:[%s6964_s16 + $0x30] ss:$20 sps:$4 sm:$0xff]  }
  0x29   : > { %884 = vadd.xlane.f32.xlu0 %v883_v19  ;;  %v6067_v27 = vld [vmem:[%s6964_s16 + $0xc] ss:$20 sps:$4 sm:$0xff]   ;;  %v6073_v30 = vld [vmem:[%s6964_s16 + $0x34] ss:$20 sps:$4 sm:$0xff]   ;;  %1298 = vmatpush1.bf16.msra.mxu0 %v6066_v26  ;;  %v6079_v34 = vld [vmem:[%s6964_s16 + $0x5c] ss:$20 sps:$4 sm:$0xff]  }
  0x2a   : > { %895 = vadd.xlane.f32.xlu1 %v894_v22  ;;  %v6070_v29 = vld [vmem:[%s6964_s16 + $0x2c] ss:$20 sps:$4 sm:$0xff]   ;;  %1348 = vmatprep.subr.bf16.mxu1 %v6067_v27  ;;  %v6072_v31 = vld [vmem:[%s6964_s16 + $0x28] ss:$20 sps:$4 sm:$0xff]   ;;  %v6078_v35 = vld [vmem:[%s6964_s16 + $0x50] ss:$20 sps:$4 sm:$0xff]  }
  0x2b   : > { %1349 = vmatpush1.bf16.msra.mxu1 %v6069_v28  ;;  %1299 = vmatprep.subr.bf16.mxu0 %v6070_v29  ;;  %v6076_v33 = vld [vmem:[%s6964_s16 + $0x54] ss:$20 sps:$4 sm:$0xff]   ;;  %v6081_v36 = vld [vmem:[%s6964_s16 + $0x58] ss:$20 sps:$4 sm:$0xff]   ;;  %v6082_v37 = vld [vmem:[%s6964_s16 + $0x7c] ss:$20 sps:$4 sm:$0xff]  }
  0x2c   : > { %1350 = vmatprep.subr.bf16.mxu1 %v6073_v30  ;;  %v6085_v38 = vld [vmem:[%s6964_s16 + $0x84] ss:$20 sps:$4 sm:$0xff]   ;;  %v6087_v40 = vld [vmem:[%s6964_s16 + $0x80] ss:$20 sps:$4 sm:$0xff]   ;;  %v6093_v44 = vld [vmem:[%s6964_s16 + $0xa8] ss:$20 sps:$4 sm:$0xff]  }
  0x2d   : > { %888 = vadd.xlane.f32.xlu0 %v887_v24  ;;  %1300 = vmatpush1.bf16.msra.mxu0 %v6072_v31  ;;  %v6084_v39 = vld [vmem:[%s6964_s16 + $0x78] ss:$20 sps:$4 sm:$0xff]   ;;  %v6090_v43 = vld [vmem:[%s6964_s16 + $0xa0] ss:$20 sps:$4 sm:$0xff]   ;;  %v6096_v7 = vld [vmem:[%s6964_s16 + $0xc8] ss:$20 sps:$4 sm:$0xff]  }
  0x2e   : > { %1301 = vmatprep.subr.bf16.mxu0 %v6076_v33  ;;  %v6088_v41 = vld [vmem:[%s6964_s16 + $0xa4] ss:$20 sps:$4 sm:$0xff]   ;;  %v6091_v42 = vld [vmem:[%s6964_s16 + $0xac] ss:$20 sps:$4 sm:$0xff]   ;;  %v6097_v8 = vld [vmem:[%s6964_s16 + $0xd4] ss:$20 sps:$4 sm:$0xff]  }
  0x2f   : > { %1351 = vmatpush1.bf16.msra.mxu1 %v6075_v32  ;;  %v6094_v6 = vld [vmem:[%s6964_s16 + $0xcc] ss:$20 sps:$4 sm:$0xff]   ;;  %v6099_v9 = vld [vmem:[%s6964_s16 + $0xd0] ss:$20 sps:$4 sm:$0xff]   ;;  %v6100_v10 = vld [vmem:[%s6964_s16 + $0xf4] ss:$20 sps:$4 sm:$0xff]  }
  0x30   : > { %1352 = vmatprep.subr.bf16.mxu1 %v6079_v34  ;;  %v6102_v11 = vld [vmem:[%s6964_s16 + $0xf0] ss:$20 sps:$4 sm:$0xff]   ;;  %v6108_v15 = vld [vmem:[%s6964_s16 + $0x118] ss:$20 sps:$4 sm:$0xff]   ;;  %v6111_v17 = vld [vmem:[%s6964_s16 + $0x120] ss:$20 sps:$4 sm:$0xff]  }
  0x31   : > { %1302 = vmatpush1.bf16.msra.mxu0 %v6078_v35  ;;  %v6114_v19 = vld [vmem:[%s6964_s16 + $0x140] ss:$20 sps:$4 sm:$0xff]   ;;  %v6120_v24 = vld [vmem:[%s6964_s16 + $0x168] ss:$20 sps:$4 sm:$0xff]   ;;  %v6123_v25 = vld [vmem:[%s6964_s16 + $0x170] ss:$20 sps:$4 sm:$0xff]  }
  0x32   : > { %1303 = vmatprep.subr.bf16.mxu0 %v6082_v37  ;;  %v6115_v20 = vld [vmem:[%s6964_s16 + $0x14c] ss:$20 sps:$4 sm:$0xff]   ;;  %v6121_v23 = vld [vmem:[%s6964_s16 + $0x174] ss:$20 sps:$4 sm:$0xff]   ;;  %v6127_v27 = vld [vmem:[%s6964_s16 + $0x19c] ss:$20 sps:$4 sm:$0xff]  }
  0x33   : > { %1353 = vmatpush1.bf16.msra.mxu1 %v6081_v36  ;;  %v6118_v22 = vld [vmem:[%s6964_s16 + $0x16c] ss:$20 sps:$4 sm:$0xff]   ;;  %v6124_v26 = vld [vmem:[%s6964_s16 + $0x194] ss:$20 sps:$4 sm:$0xff]   ;;  %v6126_v28 = vld [vmem:[%s6964_s16 + $0x190] ss:$20 sps:$4 sm:$0xff]  }
  0x34   : > { %1354 = vmatprep.subr.bf16.mxu1 %v6085_v38  ;;  %v6129_v29 = vld [vmem:[%s6964_s16 + $0x198] ss:$20 sps:$4 sm:$0xff]   ;;  %v6130_v30 = vld [vmem:[%s6964_s16 + $0x1bc] ss:$20 sps:$4 sm:$0xff]   ;;  %v6135_v33 = vld [vmem:[%s6964_s16 + $0x1c0] ss:$20 sps:$4 sm:$0xff]  }
  0x35   : > { %1304 = vmatpush1.bf16.msra.mxu0 %v6084_v39  ;;  %v6133_v31 = vld [vmem:[%s6964_s16 + $0x1c4] ss:$20 sps:$4 sm:$0xff]   ;;  %v6876_v34 = vmov 0   ;;  %vm1522_vm5 = vcmask 138240   ;;  %vm1529_vm6 = vcmask 131072  }
  0x36   : > { %1305 = vmatprep.subr.bf16.mxu0 %v6088_v41  ;;  %v6132_v32 = vld [vmem:[%s6964_s16 + $0x1b8] ss:$20 sps:$4 sm:$0xff]  }
  0x37   : > { %1355 = vmatpush1.bf16.msra.mxu1 %v6087_v40  ;;  %v942_v40 = vlaneseq }
  0x38   : > { %1356 = vmatprep.subr.bf16.mxu1 %v6091_v42 }
  0x39   : > { %1306 = vmatpush1.bf16.msra.mxu0 %v6090_v43 }
  0x3a   : > { %1307 = vmatprep.subr.bf16.mxu0 %v6094_v6 }
  0x3b   : > { %1357 = vmatpush1.bf16.msra.mxu1 %v6093_v44 }
  0x3c   : > { %1358 = vmatprep.subr.bf16.mxu1 %v6097_v8 }
  0x3d   : > { %1308 = vmatpush1.bf16.msra.mxu0 %v6096_v7 }
  0x3e   : > { %1309 = vmatprep.subr.bf16.mxu0 %v6100_v10 }
  0x3f   : > { %1359 = vmatpush1.bf16.msra.mxu1 %v6099_v9 }
  0x41   : > { %1310 = vmatpush1.bf16.msra.mxu0 %v6102_v11 }
  0xb6   : > { %v885_v45 = vpop.xlane.xlu0 %884 }
  0xb7   : > { %v898_v46 = vmul.f32 0.0052083335, %v885_v45  ;;  %v896_v47 = vpop.xlane.xlu1 %895  ;;  %v7195_v45 = vshrl.u32 %v942_v40, 7 }
  0xb8   : > { %v900_v48 = vmul.f32 0.0052083335, %v896_v47  ;;  %v879_v47 = vld [vmem:[%s6954_s28] sm:$0x3] }
  0xb9   : > { %v7136_v49 = vsub.f32 %v7087_v12, %v898_v46  ;;  %v7139_v50 = vsub.f32 %v7092_v13, %v898_v46  ;;  %v6103_v12 = vld [vmem:[%s6964_s16 + $0xfc] ss:$20 sps:$4 sm:$0xff]   ;;  %v6105_v13 = vld [vmem:[%s6964_s16 + $0xf8] ss:$20 sps:$4 sm:$0xff]   ;;  %v7198_v46 = vsub.s32 1, %v7195_v45 }
  0xba   : > { %v7141_v51 = vsub.f32 %v877_v14, %v900_v48  ;;  %v7143_v52 = vsub.f32 %v878_v16, %v900_v48  ;;  %v889_v53 = vpop.xlane.xlu0 %888  ;;  %1360 = vmatprep.subr.bf16.mxu1 %v6103_v12  ;;  %v6106_v14 = vld [vmem:[%s6964_s16 + $0x11c] ss:$20 sps:$4 sm:$0xff]   ;;  %v6109_v16 = vld [vmem:[%s6964_s16 + $0x124] ss:$20 sps:$4 sm:$0xff]   ;;  %v7202_v48 = vsub.s32 0, %v7195_v45 }
  0xbb   : > { %v899_v54 = vmul.f32 0.0052083335, %v889_v53  ;;  %v907_v55 = vmul.f32 %v7136_v49, %v7136_v49  ;;  %v908_v56 = vmul.f32 %v7139_v50, %v7139_v50  ;;  %1361 = vmatpush1.bf16.msra.mxu1 %v6105_v13  ;;  %1311 = vmatprep.subr.bf16.mxu0 %v6106_v14 }
  0xbc   : > { %v911_v57 = vmul.f32 %v7141_v51, %v7141_v51  ;;  %v912_v58 = vmul.f32 %v7143_v52, %v7143_v52  ;;  %1312 = vmatpush1.bf16.msra.mxu0 %v6108_v15  ;;  %1362 = vmatprep.subr.bf16.mxu1 %v6109_v16  ;;  %v6138_v16 = vld [vmem:[%s6964_s16 + $0x60] ss:$20 sps:$4 sm:$0xff]  }
  0xbd   : > { %v7154_v59 = vsub.f32 %v7106_v18, %v899_v54  ;;  %v7156_v60 = vsub.f32 %v876_v21, %v899_v54  ;;  %v913_v61 = vsel %vm881_vm2, %v908_v56, 0.0  ;;  %v6112_v18 = vld [vmem:[%s6964_s16 + $0x144] ss:$20 sps:$4 sm:$0xff]   ;;  %v6117_v21 = vld [vmem:[%s6964_s16 + $0x148] ss:$20 sps:$4 sm:$0xff]  }
  0xbe   : > { %v914_v62 = vadd.f32 %v913_v61, %v907_v55  ;;  %v921_v63 = vsel %vm890_vm3, %v911_v57, 0.0  ;;  %v922_v0 = vsel %vm892_vm4, %v912_v58, 0.0  ;;  %1313 = vmatprep.subr.bf16.mxu0 %v6112_v18  ;;  %v949_v55 = vrot.slane %v879_v47, %v7198_v46  ;;  %v880_v56 = vld [vmem:[%s6959_s13] sm:$0x3]  ;;  %v6139_v18 = vld [vmem:[%s6964_s16 + $0x88] ss:$20 sps:$4 sm:$0xff]  }
  0xbf   : > { %v909_v1 = vmul.f32 %v7154_v59, %v7154_v59  ;;  %v910_v2 = vmul.f32 %v7156_v60, %v7156_v60  ;;  %v923_v3 = vadd.f32 %v922_v0, %v921_v63  ;;  %1363 = vmatpush1.bf16.msra.mxu1 %v6111_v17  ;;  %v945_v58 = vrot.slane %v879_v47, %v7202_v48 }
  0xc0   : > { %915 = vadd.xlane.f32.xlu1 %v914_v62  ;;  %1364 = vmatprep.subr.bf16.mxu1 %v6115_v20  ;;  %v966_v0 = vrot.slane %v880_v56, %v7198_v46  ;;  %v6141_v20 = vld [vmem:[%s6964_s16 + $0xd8] ss:$20 sps:$4 sm:$0xff]  }
  0xc1   : > { %v917_v4 = vsel %vm881_vm2, %v910_v2, 0.0  ;;  %1314 = vmatpush1.bf16.msra.mxu0 %v6114_v19  ;;  %v6140_v19 = vld [vmem:[%s6964_s16 + $0xb0] ss:$20 sps:$4 sm:$0xff]  }
  0xc2   : > { %v918_v5 = vadd.f32 %v917_v4, %v909_v1  ;;  %1315 = vmatprep.subr.bf16.mxu0 %v6118_v22  ;;  %v962_v4 = vrot.slane %v880_v56, %v7202_v48  ;;  %v6143_v22 = vld [vmem:[%s6964_s16 + $0x128] ss:$20 sps:$4 sm:$0xff]  }
  0xc3   : > { %1365 = vmatpush1.bf16.msra.mxu1 %v6117_v21  ;;  %v6142_v21 = vld [vmem:[%s6964_s16 + $0x100] ss:$20 sps:$4 sm:$0xff]  }
  0xc4   : > { %924 = vadd.xlane.f32.xlu1 %v923_v3  ;;  %919 = vadd.xlane.f32.xlu0 %v918_v5 }
  0xc5   : > { %1366 = vmatprep.subr.bf16.mxu1 %v6121_v23  ;;  %1316 = vmatpush1.bf16.msra.mxu0 %v6120_v24  ;;  %v6144_v23 = vld [vmem:[%s6964_s16 + $0x150] ss:$20 sps:$4 sm:$0xff]   ;;  %v6145_v24 = vld [vmem:[%s6964_s16 + $0x178] ss:$20 sps:$4 sm:$0xff]  }
  0xc6   : > { %1317 = vmatprep.subr.bf16.mxu0 %v6124_v26  ;;  %v6147_v26 = vld [vmem:[%s6964_s16 + $0x1c8] ss:$20 sps:$4 sm:$0xff]  }
  0xc7   : > { %1367 = vmatpush1.bf16.msra.mxu1 %v6123_v25  ;;  %v6146_v25 = vld [vmem:[%s6964_s16 + $0x1a0] ss:$20 sps:$4 sm:$0xff]  }
  0xc8   : > { %1368 = vmatprep.subr.bf16.mxu1 %v6127_v27 }
  0xc9   : > { %1318 = vmatpush1.bf16.msra.mxu0 %v6126_v28 }
  0xca   : > { %1319 = vmatprep.subr.bf16.mxu0 %v6130_v30 }
  0xcb   : > { %1369 = vmatpush1.bf16.msra.mxu1 %v6129_v29 }
  0xcc   : > { %1370 = vmatprep.subr.bf16.mxu1 %v6133_v31 }
  0xcd   : > { %1320 = vmatpush1.bf16.msra.mxu0 %v6132_v32 }
  0xce   : > { %1399 = vmatprep.subr.bf16.mxu0 %v6876_v34 }
  0xcf   : > { %1371 = vmatpush1.bf16.msra.mxu1 %v6135_v33 }
 0x14d   : > { %v916_v35 = vpop.xlane.xlu1 %915 }
 0x14e   : > { %v926_v36 = vmul.f32 0.0052083335, %v916_v35 }
 0x150   : > { %v929_v37 = vadd.f32 1e-05, %v926_v36 }
 0x151   : > { %v925_v38 = vpop.xlane.xlu1 %924  ;;  %v920_v39 = vpop.xlane.xlu0 %919 }
 0x152   : > { %6436 = vrsqrt.f32 %v929_v37  ;;  %v928_v41 = vmul.f32 0.0052083335, %v925_v38  ;;  %v927_v42 = vmul.f32 0.0052083335, %v920_v39 }
 0x154   : > { %v931_v43 = vadd.f32 1e-05, %v928_v41  ;;  %v930_v44 = vadd.f32 1e-05, %v927_v42 }
 0x156   : > { %6438 = vrsqrt.f32 %v931_v43 }
 0x157   : > { %6440 = vrsqrt.f32 %v930_v44 }
 0x15c   : > { %v6437_v53 = vpop.eup %6436 }
 0x15d   : > { %v936_v54 = vmul.f32 %v6437_v53, %v7139_v50  ;;  %v935_v57 = vmul.f32 %v6437_v53, %v7136_v49 }
 0x15f   : > { %v953_v63 = vmul.f32 %v949_v55, %v936_v54  ;;  %v952_v50 = vmul.f32 %v945_v58, %v935_v57 }
 0x160   : > { %v6439_v61 = vpop.eup %6438 }
 0x161   : > { %v6441_v62 = vpop.eup %6440  ;;  %v940_v1 = vmul.f32 %v6439_v61, %v7143_v52  ;;  %v970_v7 = vadd.f32 %v966_v0, %v953_v63  ;;  %v939_v8 = vmul.f32 %v6439_v61, %v7141_v51  ;;  %v969_v10 = vadd.f32 %v962_v4, %v952_v50  ;;  %v6137_v51 = vld [vmem:[%s6964_s16 + $0x38] ss:$20 sps:$4 sm:$0xff]  }
 0x162   : > { %v938_v2 = vmul.f32 %v6441_v62, %v7156_v60  ;;  %v937_v3 = vmul.f32 %v6441_v62, %v7154_v59  ;;  %v6136_v60 = vld [vmem:[%s6964_s16 + $0x10] ss:$20 sps:$4 sm:$0xff]  }
 0x163   : > { %v957_v5 = vmul.f32 %v949_v55, %v940_v1  ;;  %v956_v14 = vmul.f32 %v945_v58, %v939_v8 }
 0x164   : > { %v955_v6 = vmul.f32 %v949_v55, %v938_v2  ;;  %v954_v49 = vmul.f32 %v945_v58, %v937_v3 }
 0x165   : > { %v974_v12 = vadd.f32 %v966_v0, %v957_v5  ;;  %v973_v15 = vadd.f32 %v962_v4, %v956_v14 }
 0x166   : > { %v972_v9 = vadd.f32 %v966_v0, %v955_v6  ;;  %v971_v11 = vadd.f32 %v962_v4, %v954_v49 }
 0x167   : > { %v978_v59 = vpack.c.bf16 %v974_v12, %v974_v12  ;;  %v977_v17 = vpack.c.bf16 %v973_v15, %v973_v15 }
 0x168   : > { %v976_v52 = vpack.c.bf16 %v972_v9, %v970_v7  ;;  %v975_v13 = vpack.c.bf16 %v971_v11, %v969_v10  ;;  %v7283_v11 = vsel %vm890_vm3, 65535, %v6876_v34 }
 0x16a   : > { %5595 = vmatprep.mubr.msk.bf16.mxu0 %vm881_vm2, %v976_v52  ;;  %5597 = vmatprep.mubr.msk.bf16.mxu1 %vm881_vm2, %v976_v52 }
 0x16b   : > { %1330 = vmatmul.mubr.bf16.vlgmr.msra.gmra.mrb[0].mxu0 %v975_v13  ;;  %1381 = vmatmul.mubr.bf16.vlgmr.msra.gmra.mrb[0].mxu1 %v975_v13 }
 0x16c   : > { %1400 = vmatpush1.bf16.msra.mxu0 %v6136_v60  ;;  %5596 = vmatprep.mubr.msk.bf16.mxu0 %vm881_vm2, %v978_v59 }
 0x16d   : > { %5598 = vmatprep.mubr.msk.bf16.mxu1 %vm881_vm2, %v978_v59  ;;  %1401 = vmatprep.subr.bf16.mxu0 %v6876_v34 }
 0x170   : > { %1402 = vmatpush1.bf16.msra.mxu0 %v6137_v51 }
 0x171   : > { %1403 = vmatprep.subr.bf16.mxu0 %v6876_v34 }
 0x173   : > { %1340 = vmatmul.mubr.bf16.gmra.mrb[4].mxu0 %v977_v17  ;;  %1391 = vmatmul.mubr.bf16.gmra.mrb[4].mxu1 %v977_v17 }
 0x174   : > { %1404 = vmatpush1.bf16.msra.mxu0 %v6138_v16  ;;  %5599 = vmatprep.mubr.msk.bf16.mxu0 %vm881_vm2, %v976_v52 }
 0x175   : > { %1405 = vmatprep.subr.bf16.mxu0 %v6876_v34 }
 0x178   : > { %1406 = vmatpush1.bf16.msra.mxu0 %v6139_v18 }
 0x179   : > { %1407 = vmatprep.subr.bf16.mxu0 %v6876_v34 }
 0x17c   : > { %1408 = vmatpush1.bf16.msra.mxu0 %v6140_v19 }
 0x17d   : > { %1409 = vmatprep.subr.bf16.mxu0 %v6876_v34 }
 0x180   : > { %1410 = vmatpush1.bf16.msra.mxu0 %v6141_v20 }
 0x181   : > { %1411 = vmatprep.subr.bf16.mxu0 %v6876_v34 }
 0x184   : > { %1412 = vmatpush1.bf16.msra.mxu0 %v6142_v21 }
 0x185   : > { %1413 = vmatprep.subr.bf16.mxu0 %v6876_v34 }
 0x188   : > { %1414 = vmatpush1.bf16.msra.mxu0 %v6143_v22 }
 0x189   : > { %1415 = vmatprep.subr.bf16.mxu0 %v6876_v34 }
 0x18c   : > { %1416 = vmatpush1.bf16.msra.mxu0 %v6144_v23 }
 0x18d   : > { %1417 = vmatprep.subr.bf16.mxu0 %v6876_v34 }
 0x190   : > { %1418 = vmatpush1.bf16.msra.mxu0 %v6145_v24 }
 0x191   : > { %1419 = vmatprep.subr.bf16.mxu0 %v6876_v34 }
 0x194   : > { %1420 = vmatpush1.bf16.msra.mxu0 %v6146_v25 }
 0x195   : > { %1421 = vmatprep.subr.bf16.mxu0 %v6876_v34 }
 0x198   : > { %1422 = vmatpush1.bf16.msra.mxu0 %v6147_v26 }
 0x19b   : > { %1432 = vmatmul.mubr.bf16.vlgmr.msra.gmra.mrb[8].mxu0 %v975_v13 }
 0x19c   : > { %5600 = vmatprep.mubr.msk.bf16.mxu0 %vm881_vm2, %v978_v59 }
 0x1a3   : > { %1440 = vmatmul.mubr.bf16.gmra.mrb[12].mxu0 %v977_v17 }
 0x23e   : > { %v1331_v27 = vpop.f32.mrb[0].mxu0  ;;  %v1382_v28 = vpop.f32.mrb[0].mxu1 }
 0x23f   : > { %v1333_v29 = vpop.f32.mrb[1].mxu0  ;;  %v1384_v30 = vpop.f32.mrb[1].mxu1 }
 0x240   : > { %v1335_v31 = vpop.f32.mrb[2].mxu0  ;;  %v1386_v32 = vpop.f32.mrb[2].mxu1 }
 0x241   : > { %v1447_v33 = vpack.c.bf16 %v1335_v31, %v1331_v27  ;;  %v7244_v35 = vpack.c.bf16 %v1386_v32, %v1382_v28  ;;  %v1337_v36 = vpop.f32.mrb[3].mxu0  ;;  %v1388_v37 = vpop.f32.mrb[3].mxu1 }
 0x242   : > { %v7246_v38 = vpack.c.bf16 %v1337_v36, %v1333_v29  ;;  %v7248_v39 = vpack.c.bf16 %v1388_v37, %v1384_v30 }
 0x243   : > { %5913 = vmatprep.mubr.msk.bf16.mxu1 %vm881_vm2, %v1447_v33  ;;  %6039 = vmatprep.subr.msk.bf16.mxu0 %vm881_vm2, %v7244_v35  ;;  %v1635_v40 = vsel %vm881_vm2, %v7244_v35, 0 }
 0x244   : > { %5926 = vmatpush3.bf16.xpose.msra.mxu0 %v1635_v40  ;;  %1455 = vrot.lane.b32.xlu0 %v7246_v38, %s6877_s23 }
 0x246   : > { %v1341_v41 = vpop.f32.mrb[4].mxu0  ;;  %v1392_v42 = vpop.f32.mrb[4].mxu1 }
 0x247   : > { %v7257_v43 = vpack.c.bf16 %v1392_v42, %v1392_v42  ;;  %v1343_v44 = vpop.f32.mrb[5].mxu0  ;;  %v1394_v47 = vpop.f32.mrb[5].mxu1  ;;  %v1448_v61 = vpack.c.bf16 %v1341_v41, %v1341_v41 }
 0x248   : > { %v7259_v53 = vpack.c.bf16 %v1343_v44, %v1343_v44  ;;  %v1345_v54 = vpop.f32.mrb[6].mxu0  ;;  %v1396_v55 = vpop.f32.mrb[6].mxu1  ;;  %v7279_v10 = vpack.c.bf16 %v1394_v47, %v1394_v47 }
 0x249   : > { %v1346_v56 = vpop.f32.mrb[7].mxu0  ;;  %v1397_v57 = vpop.f32.mrb[7].mxu1  ;;  %6040 = vmatprep.subr.msk.bf16.mxu0 %vm881_vm2, %v7257_v43  ;;  %v1638_v58 = vsel %vm881_vm2, %v7257_v43, 0 }
 0x24a   : > { %1457 = vrot.lane.b32.xlu1 %v7259_v53, %s6877_s23  ;;  %v1568_v52 = vand.u32 %v7283_v11, %v7279_v10 }
 0x24c   : > { %5928 = vmatpush3.bf16.xpose.msra.mxu0 %v1638_v58 }
 0x24e   : > { %1624 = vrot.lane.b32.xlu1 %v1447_v33, %s6877_s23 }
 0x252   : > { %1626 = vrot.lane.b32.xlu1 %v1448_v61, %s6877_s23 }
 0x26e   : > { %v1433_v62 = vpop.f32.mrb[8].mxu0 }
 0x26f   : > { %v1435_v63 = vpop.f32.mrb[9].mxu0 }
 0x270   : > { %v1436_v0 = vpop.f32.mrb[10].mxu0 }
 0x271   : > { %v7269_v1 = vpack.c.bf16 %v1436_v0, %v1433_v62  ;;  %v1438_v2 = vpop.f32.mrb[11].mxu0 }
 0x276   : > { %v7271_v3 = vpop.f32.mrb[12].mxu0 }
 0x277   : > { %v1443_v50 = vpop.f32.mrb[13].mxu0 }
 0x278   : > { %v1444_v4 = vpop.f32.mrb[14].mxu0 }
 0x279   : > { %v1445_v5 = vpop.f32.mrb[15].mxu0 }
 0x2b6   : > { %v1456_v6 = vpop.permute.xlu0 %1455 }
 0x2b7   : > { %v1466_v49 = vsel %vm881_vm2, %v1456_v6, 0  ;;  %6037 = vmatprep.subr.msk.bf16.mxu1 %vm881_vm2, %v1456_v6 }
 0x2b8   : > { %5910 = vmatpush3.bf16.xpose.msra.mxu1 %v1466_v49 }
 0x2bc   : > { %v1458_v7 = vpop.permute.xlu1 %1457 }
 0x2bd   : > { %6038 = vmatprep.subr.msk.bf16.mxu1 %vm881_vm2, %v1458_v7  ;;  %v1469_v8 = vsel %vm881_vm2, %v1458_v7, 0 }
 0x2c0   : > { %5912 = vmatpush3.bf16.xpose.msra.mxu1 %v1469_v8  ;;  %v1625_v9 = vpop.permute.xlu1 %1624 }
 0x2c1   : > { %5917 = vmatprep.subr.bf16.mxu1 %v7248_v39  ;;  %5929 = vmatprep.mubr.msk.bf16.mxu0 %vm881_vm2, %v1625_v9 }
 0x2c4   : > { %v1627_v12 = vpop.permute.xlu1 %1626 }
 0x2c5   : > { %5930 = vmatmul.mubr.msk.bf16.vlgmr.msra.gmra.mrb[16].mxu0 %vm881_vm2, %v1627_v12 }
 0x2c6   : > { %1870 = vmatprep.mubr.bf16.mxu0 %v6876_v34 }
 0x2c7   : > { %5914 = vmatmul.mubr.msk.bf16.vlgmr.msra.gmra.mrb[8].mxu1 %vm881_vm2, %v1448_v61 }
 0x2c8   : > { %5918 = vmatpush3.bf16.msra.mxu1 %v7248_v39 }
 0x2c9   : > { %5919 = vmatprep.subr.bf16.mxu1 %v1568_v52 }
 0x2cc   : > { %5920 = vmatpush3.bf16.msra.mxu1 %v1568_v52  ;;  %v6148_v52 = vld [vmem:[%s6979_s30 + $0x40] ss:$8 sps:$4 sm:$0xff]  }
 0x398   : > { %v5931_v13 = vpop.f32.mrb[16].mxu0 }
 0x399   : > { %v1674_v60 = vpop.f32.mrb[17].mxu0  ;;  %v1690_v22 = vmul.f32 0.125, %v5931_v13  ;;  %v6150_v13 = vld [vmem:[%s6979_s30 + $0x44] ss:$8 sps:$4 sm:$0xff]  }
 0x39a   : > { %v5915_v14 = vpop.f32.mrb[8].mxu1  ;;  %v5932_v59 = vpop.f32.mrb[18].mxu0  ;;  %v1688_v24 = vmul.f32 0.125, %v1674_v60  ;;  %1838 = vmatprep.subr.bf16.mxu0 %v6150_v13 }
 0x39b   : > { %v1505_v51 = vpop.f32.mrb[9].mxu1  ;;  %v1677_v15 = vpop.f32.mrb[19].mxu0  ;;  %v1521_v19 = vmul.f32 0.125, %v5915_v14  ;;  %v1697_v26 = vsel %vm1529_vm6, %v1690_v22, -inf  ;;  %1839 = vmatpush1.bf16.msra.mxu0 %v6148_v52 }
 0x39c   : > { %v1519_v16 = vmul.f32 0.125, %v1505_v51  ;;  %v5916_v17 = vpop.f32.mrb[10].mxu1  ;;  %v1689_v27 = vmul.f32 0.125, %v1677_v15  ;;  %v1691_v28 = vsel %vm1522_vm5, %v1688_v24, -inf }
 0x39d   : > { %v1508_v18 = vpop.f32.mrb[11].mxu1  ;;  %v1530_v25 = vsel %vm1529_vm6, %v1521_v19, -inf }
 0x39e   : > { %v1520_v20 = vmul.f32 0.125, %v1508_v18  ;;  %v1523_v21 = vsel %vm1522_vm5, %v1519_v16, -inf  ;;  %v1694_v29 = vsel %vm1522_vm5, %v1689_v27, -inf }
 0x39f   : > { %1524 = vmax.xlane.f32.xlu0 %v1523_v21 }
 0x3a0   : > { %v1526_v23 = vsel %vm1522_vm5, %v1520_v20, -inf }
 0x3a1   : > { %1527 = vmax.xlane.f32.xlu1 %v1526_v23 }
 0x3a3   : > { %1531 = vmax.xlane.f32.xlu0 %v1530_v25 }
 0x3a5   : > { %1698 = vmax.xlane.f32.xlu1 %v1697_v26 }
 0x3a7   : > { %1692 = vmax.xlane.f32.xlu0 %v1691_v28 }
 0x3ab   : > { %1695 = vmax.xlane.f32.xlu0 %v1694_v29 }
 0x42c   : > { %v1525_v30 = vpop.xlane.xlu0 %1524 }
 0x42d   : > { %v1533_v57 = vsub.f32 %v1519_v16, %v1525_v30 }
 0x42e   : > { %v1528_v31 = vpop.xlane.xlu1 %1527 }
 0x42f   : > { %v1534_v37 = vsub.f32 %v1520_v20, %v1528_v31  ;;  %v1536_v62 = vmul.f32 1.442695, %v1533_v57 }
 0x430   : > { %v1532_v32 = vpop.xlane.xlu0 %1531 }
 0x431   : > { %v1535_v44 = vsub.f32 %v1521_v19, %v1532_v32  ;;  %v1538_v54 = vmul.f32 1.442695, %v1534_v37 }
 0x432   : > { %v1699_v33 = vpop.xlane.xlu1 %1698 }
 0x433   : > { %v1702_v36 = vsub.f32 %v1690_v22, %v1699_v33  ;;  %v1540_v58 = vmul.f32 1.442695, %v1535_v44  ;;  %v6154_v44 = vld [vmem:[%s6979_s30 + $0x60] ss:$8 sps:$4 sm:$0xff]  }
 0x434   : > { %v1693_v40 = vpop.xlane.xlu0 %1692 }
 0x435   : > { %v1707_v41 = vmul.f32 1.442695, %v1702_v36  ;;  %v1700_v42 = vsub.f32 %v1688_v24, %v1693_v40  ;;  %v1987_v40 = vpack.c.bf16 %v7271_v3, %v7271_v3  ;;  %v6159_v3 = vld [vmem:[%s6979_s30 + $0x74] ss:$8 sps:$4 sm:$0xff]  }
 0x437   : > { %6442 = vpow2.f32 %v1707_v41  ;;  %v1703_v47 = vmul.f32 1.442695, %v1700_v42  ;;  %v6153_v41 = vld [vmem:[%s6979_s30 + $0x54] ss:$8 sps:$4 sm:$0xff]   ;;  %v6151_v42 = vld [vmem:[%s6979_s30 + $0x50] ss:$8 sps:$4 sm:$0xff]  }
 0x438   : > { %v1696_v55 = vpop.xlane.xlu0 %1695  ;;  %1840 = vmatprep.subr.bf16.mxu0 %v6153_v41 }
 0x439   : > { %6444 = vpow2.f32 %v1703_v47  ;;  %v1701_v56 = vsub.f32 %v1689_v27, %v1696_v55  ;;  %1841 = vmatpush1.bf16.msra.mxu0 %v6151_v42  ;;  %v6156_v47 = vld [vmem:[%s6979_s30 + $0x64] ss:$8 sps:$4 sm:$0xff]  }
 0x43a   : > { %6446 = vpow2.f32 %v1538_v54  ;;  %1842 = vmatprep.subr.bf16.mxu0 %v6156_v47  ;;  %v6157_v54 = vld [vmem:[%s6979_s30 + $0x70] ss:$8 sps:$4 sm:$0xff]  }
 0x43b   : > { %v1705_v61 = vmul.f32 1.442695, %v1701_v56 }
 0x43d   : > { %6448 = vpow2.f32 %v1705_v61  ;;  %1843 = vmatpush1.bf16.msra.mxu0 %v6154_v44 }
 0x43e   : > { %6450 = vpow2.f32 %v1540_v58  ;;  %1844 = vmatprep.subr.bf16.mxu0 %v6159_v3 }
 0x43f   : > { %6452 = vpow2.f32 %v1536_v62 }
 0x441   : > { %v6443_v63 = vpop.eup %6442  ;;  %1845 = vmatpush1.bf16.msra.mxu0 %v6157_v54 }
 0x442   : > { %v1715_v0 = vsel %vm1529_vm6, %v6443_v63, 0.0 }
 0x443   : > { %v6445_v2 = vpop.eup %6444  ;;  %1716 = vadd.xlane.f32.xlu1 %v1715_v0 }
 0x444   : > { %v6447_v50 = vpop.eup %6446  ;;  %v1709_v4 = vsel %vm1522_vm5, %v6445_v2, 0.0 }
 0x445   : > { %v1545_v7 = vsel %vm1522_vm5, %v6447_v50, 0.0 }
 0x447   : > { %v6449_v5 = vpop.eup %6448  ;;  %1710 = vadd.xlane.f32.xlu1 %v1709_v4  ;;  %v6165_v4 = vld [vmem:[%s6979_s30 + $0x14] ss:$8 sps:$4 sm:$0xff]  }
 0x448   : > { %v1712_v6 = vsel %vm1522_vm5, %v6449_v5, 0.0  ;;  %v6451_v49 = vpop.eup %6450 }
 0x449   : > { %1713 = vadd.xlane.f32.xlu0 %v1712_v6  ;;  %v1548_v8 = vsel %vm1529_vm6, %v6451_v49, 0.0  ;;  %v6453_v9 = vpop.eup %6452  ;;  %v6168_v6 = vld [vmem:[%s6979_s30 + $0x24] ss:$8 sps:$4 sm:$0xff]  }
 0x44a   : > { %v1542_v12 = vsel %vm1522_vm5, %v6453_v9, 0.0 }
 0x44b   : > { %1546 = vadd.xlane.f32.xlu1 %v1545_v7 }
 0x44d   : > { %1549 = vadd.xlane.f32.xlu0 %v1548_v8  ;;  %v6171_v8 = vld [vmem:[%s6979_s30 + $0x34] ss:$8 sps:$4 sm:$0xff]  }
 0x451   : > { %1543 = vadd.xlane.f32.xlu0 %v1542_v12 }
 0x45c   : > { %1730 = vrot.lane.b32.xlu1 %v7279_v10, %s6877_s23 }
 0x460   : > { %1990 = vrot.lane.b32.xlu1 %v7244_v35, %s6877_s23 }
 0x464   : > { %1992 = vrot.lane.b32.xlu1 %v7257_v43, %s6877_s23 }
 0x467   : > { %1728 = vrot.lane.b32.xlu0 %v7248_v39, %s6877_s23 }
 0x4d0   : > { %v1717_v60 = vpop.xlane.xlu1 %1716 }
 0x4d4   : > { %v1711_v14 = vpop.xlane.xlu1 %1710 }
 0x4d6   : > { %v1714_v59 = vpop.xlane.xlu0 %1713 }
 0x4d7   : > { %6454 = vrcp.f32 %v1714_v59 }
 0x4d8   : > { %v1547_v51 = vpop.xlane.xlu1 %1546 }
 0x4da   : > { %v1550_v15 = vpop.xlane.xlu0 %1549 }
 0x4db   : > { %6456 = vrcp.f32 %v1550_v15 }
 0x4dc   : > { %6458 = vrcp.f32 %v1547_v51  ;;  %v1731_v23 = vpop.permute.xlu1 %1730 }
 0x4dd   : > { %6460 = vrcp.f32 %v1711_v14  ;;  %v1740_v29 = vand.u32 %v1731_v23, %v7283_v11 }
 0x4de   : > { %v1544_v35 = vpop.xlane.xlu0 %1543 }
 0x4df   : > { %6462 = vrcp.f32 %v1544_v35 }
 0x4e0   : > { %6464 = vrcp.f32 %v1717_v60  ;;  %v1991_v31 = vpop.permute.xlu1 %1990 }
 0x4e1   : > { %v6455_v43 = vpop.eup %6454  ;;  %v2001_v33 = vsel %vm881_vm2, %v1991_v31, 0 }
 0x4e2   : > { %v1729_v10 = vpop.permute.xlu0 %1728  ;;  %v1721_v22 = vmul.f32 %v6455_v43, %v6449_v5  ;;  %v6163_v5 = vld [vmem:[%s6979_s30 + $0x10] ss:$8 sps:$4 sm:$0xff]  }
 0x4e3   : > { %5933 = vmatprep.subr.bf16.mxu1 %v1729_v10 }
 0x4e4   : > { %v1993_v36 = vpop.permute.xlu1 %1992 }
 0x4e5   : > { %v6457_v39 = vpop.eup %6456  ;;  %v2004_v37 = vsel %vm881_vm2, %v1993_v36, 0 }
 0x4e6   : > { %v6459_v16 = vpop.eup %6458  ;;  %v1556_v19 = vmul.f32 %v6457_v39, %v6451_v49  ;;  %v6166_v49 = vld [vmem:[%s6979_s30 + $0x20] ss:$8 sps:$4 sm:$0xff]  }
 0x4e7   : > { %v6461_v17 = vpop.eup %6460  ;;  %v1554_v21 = vmul.f32 %v6459_v16, %v6447_v50 }
 0x4e8   : > { %v1719_v25 = vmul.f32 %v6461_v17, %v6445_v2  ;;  %v1558_v26 = vpack.c.bf16 %v1556_v19, %v1556_v19  ;;  %v6160_v2 = vld [vmem:[%s6979_s30] ss:$8 sps:$4 sm:$0xff]  }
 0x4e9   : > { %v6463_v18 = vpop.eup %6462 }
 0x4ea   : > { %v1552_v20 = vmul.f32 %v6463_v18, %v6453_v9  ;;  %v6465_v27 = vpop.eup %6464  ;;  %v1724_v28 = vpack.c.bf16 %v1721_v22, %v1719_v25  ;;  %v6169_v9 = vld [vmem:[%s6979_s30 + $0x30] ss:$8 sps:$4 sm:$0xff]  }
 0x4eb   : > { %v1723_v30 = vmul.f32 %v6465_v27, %v6443_v63 }
 0x4ec   : > { %v1557_v24 = vpack.c.bf16 %v1554_v21, %v1552_v20 }
 0x4ed   : > { %v1725_v32 = vpack.c.bf16 %v1723_v30, %v1723_v30  ;;  %v6172_v30 = vld [vmem:[%s6979_s30 + $0x80] ss:$8 sps:$4 sm:$0xff]  }
 0x4ee   : > { %5921 = vmatprep.mubr.msk.bf16.mxu1 %vm1522_vm5, %v1557_v24 }
 0x4ef   : > { %5922 = vmatmul.mubr.msk.bf16.vlgmr.msra.gmra.mrb[12].mxu1 %vm1522_vm5, %v1558_v26 }
 0x4f0   : > { %5934 = vmatpush3.bf16.msra.mxu1 %v1729_v10  ;;  %5937 = vmatprep.mubr.msk.bf16.mxu1 %vm1522_vm5, %v1724_v28 }
 0x4f1   : > { %5935 = vmatprep.subr.bf16.mxu1 %v1740_v29 }
 0x4f4   : > { %5936 = vmatpush3.bf16.msra.mxu1 %v1740_v29 }
 0x4f5   : > { %6041 = vmatprep.subr.msk.bf16.mxu1 %vm881_vm2, %v1991_v31  ;;  %v6174_v31 = vld [vmem:[%s6979_s30 + $0x84] ss:$8 sps:$4 sm:$0xff]  }
 0x4f7   : > { %5938 = vmatmul.mubr.msk.bf16.vlgmr.msra.gmra.mrb[16].mxu1 %vm1522_vm5, %v1725_v32  ;;  %v6177_v32 = vld [vmem:[%s6979_s30 + $0x94] ss:$8 sps:$4 sm:$0xff]  }
 0x4f8   : > { %5945 = vmatprep.mubr.msk.bf16.mxu1 %vm881_vm2, %v7246_v38  ;;  %v2099_v38 = vand.u32 %v1987_v40, %v7283_v11  ;;  %v6178_v40 = vld [vmem:[%s6979_s30 + $0xa0] ss:$8 sps:$4 sm:$0xff]  }
 0x4fd   : > { %5942 = vmatpush3.bf16.xpose.msra.mxu1 %v2001_v33  ;;  %v6175_v33 = vld [vmem:[%s6979_s30 + $0x90] ss:$8 sps:$4 sm:$0xff]  }
 0x4fe   : > { %6042 = vmatprep.subr.msk.bf16.mxu1 %vm881_vm2, %v1993_v36  ;;  %v6180_v36 = vld [vmem:[%s6979_s30 + $0xa4] ss:$8 sps:$4 sm:$0xff]  }
 0x505   : > { %5944 = vmatpush3.bf16.xpose.msra.mxu1 %v2004_v37 }
 0x506   : > { %5949 = vmatprep.subr.bf16.mxu1 %v7269_v1 }
 0x50c   : > { %5946 = vmatmul.mubr.msk.bf16.vlgmr.msra.gmra.mrb[20].mxu1 %vm881_vm2, %v7259_v53  ;;  %v6162_v53 = vld [vmem:[%s6979_s30 + $0x4] ss:$8 sps:$4 sm:$0xff]  }
 0x50d   : > { %5950 = vmatpush3.bf16.msra.mxu1 %v7269_v1  ;;  %1935 = vmatprep.subr.bf16.mxu0 %v6162_v53 }
 0x50e   : > { %5951 = vmatprep.subr.bf16.mxu1 %v2099_v38 }
 0x511   : > { %5952 = vmatpush3.bf16.msra.mxu1 %v2099_v38 }
 0x5c2   : > { %v5923_v1 = vpop.f32.mrb[12].mxu1 }
 0x5c3   : > { %v1604_v55 = vpop.f32.mrb[13].mxu1  ;;  %v1619_v10 = vpack.c.bf16 %v5923_v1, %v5923_v1 }
 0x5c4   : > { %v5924_v56 = vpop.f32.mrb[14].mxu1 }
 0x5c5   : > { %v1607_v57 = vpop.f32.mrb[15].mxu1 }
 0x5c6   : > { %v1618_v58 = vpack.c.bf16 %v1607_v57, %v1604_v55 }
 0x5ca   : > { %v5939_v61 = vpop.f32.mrb[16].mxu1 }
 0x5cb   : > { %v1776_v62 = vpop.f32.mrb[17].mxu1  ;;  %v1791_v7 = vpack.c.bf16 %v5939_v61, %v5939_v61 }
 0x5cc   : > { %v5940_v63 = vpop.f32.mrb[18].mxu1 }
 0x5cd   : > { %v1779_v0 = vpop.f32.mrb[19].mxu1 }
 0x5ce   : > { %v1790_v50 = vpack.c.bf16 %v1779_v0, %v1776_v62 }
 0x5d0   : > { %5617 = vmatmul.mubr.msk.bf16.vlgmr.msra.gmra.mrb[20].mxu0 %vm881_vm2, %v1790_v50 }
 0x5d1   : > { %1936 = vmatpush1.bf16.msra.mxu0 %v6160_v2  ;;  %1880 = vmatprep.mubr.bf16.mxu0 %v6876_v34 }
 0x5d2   : > { %1937 = vmatprep.subr.bf16.mxu0 %v6165_v4 }
 0x5d5   : > { %1938 = vmatpush1.bf16.msra.mxu0 %v6163_v5  ;;  %v6183_v5 = vld [vmem:[%s6979_s30 + $0xb4] ss:$8 sps:$4 sm:$0xff]  }
 0x5d6   : > { %1939 = vmatprep.subr.bf16.mxu0 %v6168_v6  ;;  %v6181_v6 = vld [vmem:[%s6979_s30 + $0xb0] ss:$8 sps:$4 sm:$0xff]  }
 0x5d8   : > { %5618 = vmatmul.mubr.msk.bf16.gmra.mrb[24].mxu0 %vm881_vm2, %v1791_v7 }
 0x5d9   : > { %1940 = vmatpush1.bf16.msra.mxu0 %v6166_v49  ;;  %1967 = vmatprep.mubr.bf16.mxu0 %v6876_v34 }
 0x5da   : > { %1941 = vmatprep.subr.bf16.mxu0 %v6171_v8 }
 0x5dd   : > { %1942 = vmatpush1.bf16.msra.mxu0 %v6169_v9 }
 0x5de   : > { %2197 = vmatprep.subr.bf16.mxu0 %v6174_v31 }
 0x5df   : > { %v5947_v12 = vpop.f32.mrb[20].mxu1 }
 0x5e0   : > { %v2040_v52 = vpop.f32.mrb[21].mxu1  ;;  %5627 = vmatmul.mubr.msk.bf16.vlgmr.msra.gmra.mrb[20].mxu0 %vm881_vm2, %v1618_v58  ;;  %v2056_v59 = vmul.f32 0.125, %v5947_v12 }
 0x5e1   : > { %v2054_v13 = vmul.f32 0.125, %v2040_v52  ;;  %v5948_v60 = vpop.f32.mrb[22].mxu1  ;;  %1977 = vmatprep.mubr.bf16.mxu0 %v6876_v34  ;;  %2198 = vmatpush1.bf16.msra.mxu0 %v6172_v30 }
 0x5e2   : > { %v2043_v14 = vpop.f32.mrb[23].mxu1  ;;  %v2063_v43 = vsel %vm1529_vm6, %v2056_v59, -inf  ;;  %2199 = vmatprep.subr.bf16.mxu0 %v6177_v32 }
 0x5e3   : > { %v2055_v51 = vmul.f32 0.125, %v2043_v14  ;;  %v2057_v15 = vsel %vm1522_vm5, %v2054_v13, -inf }
 0x5e4   : > { %2058 = vmax.xlane.f32.xlu0 %v2057_v15 }
 0x5e5   : > { %v2060_v35 = vsel %vm1522_vm5, %v2055_v51, -inf  ;;  %2200 = vmatpush1.bf16.msra.mxu0 %v6175_v33 }
 0x5e6   : > { %2061 = vmax.xlane.f32.xlu1 %v2060_v35  ;;  %2201 = vmatprep.subr.bf16.mxu0 %v6180_v36  ;;  %v6608_v36 = vld [vmem:[%s8601_s12 + $0x20] sm:$0x1] }
 0x5e8   : > { %2064 = vmax.xlane.f32.xlu0 %v2063_v43  ;;  %5628 = vmatmul.mubr.msk.bf16.gmra.mrb[28].mxu0 %vm881_vm2, %v1619_v10  ;;  %v6605_v10 = vld [vmem:[%s8601_s12 + $0x8] sm:$0xff] }
 0x5e9   : > { %2229 = vmatprep.mubr.bf16.mxu0 %v6876_v34  ;;  %2202 = vmatpush1.bf16.msra.mxu0 %v6178_v40 }
 0x5ea   : > { %2203 = vmatprep.subr.bf16.mxu0 %v6183_v5  ;;  %v6207_v5 = vld [vmem:[%s6994_s6 + $0x9c] ss:$24 sps:$4 sm:$0xff]  }
 0x5ed   : > { %2204 = vmatpush1.bf16.msra.mxu0 %v6181_v6  ;;  %v6202_v6 = vld [vmem:[%s6994_s6 + $0x90] ss:$24 sps:$4 sm:$0xff]  }
 0x671   : > { %v2059_v39 = vpop.xlane.xlu0 %2058 }
 0x672   : > { %v2066_v16 = vsub.f32 %v2054_v13, %v2059_v39  ;;  %v2260_v13 = vld [vmem:[%s6969_s20] sm:$0x3] }
 0x673   : > { %v2062_v17 = vpop.xlane.xlu1 %2061  ;;  %v2269_v14 = vrot.slane %v2260_v13, %v7198_v46  ;;  %v2265_v15 = vrot.slane %v2260_v13, %v7202_v48  ;;  %v6219_v13 = vld [vmem:[%s6994_s6 + $0xfc] ss:$24 sps:$4 sm:$0xff]  }
 0x674   : > { %v2069_v18 = vmul.f32 1.442695, %v2066_v16  ;;  %v2067_v19 = vsub.f32 %v2055_v51, %v2062_v17  ;;  %v6606_v16 = vld [vmem:[%s8601_s12 + $0x10] sm:$0xff] }
 0x675   : > { %v2065_v20 = vpop.xlane.xlu0 %2064 }
 0x676   : > { %6466 = vpow2.f32 %v2069_v18  ;;  %v2071_v21 = vmul.f32 1.442695, %v2067_v19  ;;  %v2068_v22 = vsub.f32 %v2056_v59, %v2065_v20  ;;  %v6604_v59 = vld [vmem:[%s8601_s12] sm:$0xff]  ;;  %v6607_v20 = vld [vmem:[%s8601_s12 + $0x18] sm:$0xff] }
 0x678   : > { %6468 = vpow2.f32 %v2071_v21  ;;  %v2073_v23 = vmul.f32 1.442695, %v2068_v22 }
 0x67a   : > { %6470 = vpow2.f32 %v2073_v23 }
 0x680   : > { %v6467_v24 = vpop.eup %6466 }
 0x681   : > { %v2075_v25 = vsel %vm1522_vm5, %v6467_v24, 0.0 }
 0x682   : > { %v6469_v26 = vpop.eup %6468  ;;  %2076 = vadd.xlane.f32.xlu0 %v2075_v25 }
 0x683   : > { %v2078_v29 = vsel %vm1522_vm5, %v6469_v26, 0.0 }
 0x684   : > { %v6471_v27 = vpop.eup %6470 }
 0x685   : > { %v2081_v28 = vsel %vm1529_vm6, %v6471_v27, 0.0 }
 0x686   : > { %2082 = vadd.xlane.f32.xlu1 %v2081_v28  ;;  %2079 = vadd.xlane.f32.xlu0 %v2078_v29 }
 0x6ab   : > { %v1882_v37 = vpop.f32.mrb[24].mxu0 }
 0x6ac   : > { %v1884_v38 = vpop.f32.mrb[25].mxu0 }
 0x6ad   : > { %v1886_v41 = vpop.f32.mrb[26].mxu0 }
 0x6ae   : > { %v1887_v42 = vpop.f32.mrb[27].mxu0 }
 0x6bb   : > { %v1979_v44 = vpop.f32.mrb[28].mxu0 }
 0x6bc   : > { %v1980_v47 = vadd.f32 %v1979_v44, %v1882_v37  ;;  %v1981_v3 = vpop.f32.mrb[29].mxu0 }
 0x6bd   : > { %v1982_v54 = vadd.f32 %v1981_v3, %v1884_v38  ;;  %v1983_v53 = vpop.f32.mrb[30].mxu0  ;;  %v6609_v38 = vld [vmem:[%s8601_s12 + $0x28] sm:$0x1] }
 0x6be   : > { %v1984_v1 = vpop.f32.mrb[31].mxu0  ;;  %v6184_v53 = vld [vmem:[%s6994_s6] ss:$24 sps:$4 sm:$0xff]  }
 0x6bf   : > { %v6186_v1 = vld [vmem:[%s6994_s6 + $0x4] ss:$24 sps:$4 sm:$0xff]  }
 0x6c0   : > { %2772 = vmatprep.subr.bf16.mxu1 %v6186_v1 }
 0x70f   : > { %v2077_v55 = vpop.xlane.xlu0 %2076 }
 0x710   : > { %6472 = vrcp.f32 %v2077_v55  ;;  %v6187_v55 = vld [vmem:[%s6994_s6 + $0x8] ss:$24 sps:$4 sm:$0xff]  }
 0x713   : > { %v2080_v56 = vpop.xlane.xlu0 %2079  ;;  %v2083_v57 = vpop.xlane.xlu1 %2082 }
 0x714   : > { %6474 = vrcp.f32 %v2080_v56  ;;  %v6189_v56 = vld [vmem:[%s6994_s6 + $0xc] ss:$24 sps:$4 sm:$0xff]  }
 0x715   : > { %6476 = vrcp.f32 %v2083_v57  ;;  %v6192_v57 = vld [vmem:[%s6994_s6 + $0x34] ss:$24 sps:$4 sm:$0xff]   ;;  %2823 = vmatprep.subr.bf16.mxu0 %v6189_v56 }
 0x71a   : > { %v6473_v58 = vpop.eup %6472 }
 0x71b   : > { %v2085_v63 = vmul.f32 %v6473_v58, %v6467_v24  ;;  %v6195_v58 = vld [vmem:[%s6994_s6 + $0x3c] ss:$24 sps:$4 sm:$0xff]  }
 0x71e   : > { %v6475_v61 = vpop.eup %6474 }
 0x71f   : > { %v6477_v62 = vpop.eup %6476  ;;  %v2087_v0 = vmul.f32 %v6475_v61, %v6469_v26  ;;  %v6190_v61 = vld [vmem:[%s6994_s6 + $0x30] ss:$24 sps:$4 sm:$0xff]  }
 0x720   : > { %v2089_v2 = vmul.f32 %v6477_v62, %v6471_v27  ;;  %v6193_v62 = vld [vmem:[%s6994_s6 + $0x38] ss:$24 sps:$4 sm:$0xff]  }
 0x721   : > { %v2090_v50 = vpack.c.bf16 %v2087_v0, %v2085_v63  ;;  %v6198_v63 = vld [vmem:[%s6994_s6 + $0x64] ss:$24 sps:$4 sm:$0xff]  }
 0x722   : > { %v2091_v4 = vpack.c.bf16 %v2089_v2, %v2089_v2  ;;  %v6201_v0 = vld [vmem:[%s6994_s6 + $0x6c] ss:$24 sps:$4 sm:$0xff]   ;;  %v6196_v2 = vld [vmem:[%s6994_s6 + $0x60] ss:$24 sps:$4 sm:$0xff]  }
 0x723   : > { %5953 = vmatprep.mubr.msk.bf16.mxu1 %vm1522_vm5, %v2090_v50  ;;  %v6199_v50 = vld [vmem:[%s6994_s6 + $0x68] ss:$24 sps:$4 sm:$0xff]  }
 0x724   : > { %5954 = vmatmul.mubr.msk.bf16.vlgmr.msra.gmra.mrb[24].mxu1 %vm1522_vm5, %v2091_v4  ;;  %v6204_v4 = vld [vmem:[%s6994_s6 + $0x94] ss:$24 sps:$4 sm:$0xff]  }
 0x725   : > { %2773 = vmatpush1.bf16.msra.mxu1 %v6184_v53 }
 0x726   : > { %2774 = vmatprep.subr.bf16.mxu1 %v6192_v57 }
 0x729   : > { %2775 = vmatpush1.bf16.msra.mxu1 %v6190_v61 }
 0x72a   : > { %2776 = vmatprep.subr.bf16.mxu1 %v6198_v63 }
 0x72d   : > { %2777 = vmatpush1.bf16.msra.mxu1 %v6196_v2  ;;  %v6220_v2 = vld [vmem:[%s6994_s6 + $0x120] ss:$24 sps:$4 sm:$0xff]  }
 0x72e   : > { %2778 = vmatprep.subr.bf16.mxu1 %v6204_v4  ;;  %v6223_v4 = vld [vmem:[%s6994_s6 + $0x128] ss:$24 sps:$4 sm:$0xff]  }
 0x731   : > { %2779 = vmatpush1.bf16.msra.mxu1 %v6202_v6  ;;  %v6226_v6 = vld [vmem:[%s6994_s6 + $0x150] ss:$24 sps:$4 sm:$0xff]  }
 0x7f7   : > { %v5955_v49 = vpop.f32.mrb[24].mxu1 }
 0x7f8   : > { %v2135_v7 = vpop.f32.mrb[25].mxu1  ;;  %v2150_v52 = vpack.c.bf16 %v5955_v49, %v5955_v49  ;;  %v6205_v49 = vld [vmem:[%s6994_s6 + $0x98] ss:$24 sps:$4 sm:$0xff]  }
 0x7f9   : > { %v5956_v8 = vpop.f32.mrb[26].mxu1 }
 0x7fa   : > { %v2138_v9 = vpop.f32.mrb[27].mxu1  ;;  %v6213_v8 = vld [vmem:[%s6994_s6 + $0xcc] ss:$24 sps:$4 sm:$0xff]  }
 0x7fb   : > { %v2149_v12 = vpack.c.bf16 %v2138_v9, %v2135_v7  ;;  %v6210_v7 = vld [vmem:[%s6994_s6 + $0xc4] ss:$24 sps:$4 sm:$0xff]   ;;  %v6208_v9 = vld [vmem:[%s6994_s6 + $0xc0] ss:$24 sps:$4 sm:$0xff]  }
 0x7fc   : > { %2780 = vmatprep.subr.bf16.mxu1 %v6210_v7  ;;  %v6229_v7 = vld [vmem:[%s6994_s6 + $0x158] ss:$24 sps:$4 sm:$0xff]  }
 0x7fd   : > { %5641 = vmatmul.mubr.msk.bf16.vlgmr.msra.gmra.mrb[20].mxu0 %vm881_vm2, %v2149_v12  ;;  %v6211_v12 = vld [vmem:[%s6994_s6 + $0xc8] ss:$24 sps:$4 sm:$0xff]   ;;  %2781 = vmatpush1.bf16.msra.mxu1 %v6208_v9 }
 0x7fe   : > { %2239 = vmatprep.mubr.bf16.mxu0 %v6876_v34  ;;  %2824 = vmatpush1.bf16.msra.mxu0 %v6187_v55  ;;  %v6232_v9 = vld [vmem:[%s6994_s6 + $0x180] ss:$24 sps:$4 sm:$0xff]  }
 0x7ff   : > { %2825 = vmatprep.subr.bf16.mxu0 %v6195_v58 }
 0x802   : > { %2826 = vmatpush1.bf16.msra.mxu0 %v6193_v62 }
 0x803   : > { %2827 = vmatprep.subr.bf16.mxu0 %v6201_v0  ;;  %v6222_v0 = vld [vmem:[%s6994_s6 + $0x124] ss:$24 sps:$4 sm:$0xff]  }
 0x805   : > { %5642 = vmatmul.mubr.msk.bf16.gmra.mrb[32].mxu0 %vm881_vm2, %v2150_v52  ;;  %v6216_v52 = vld [vmem:[%s6994_s6 + $0xf4] ss:$24 sps:$4 sm:$0xff]  }
 0x806   : > { %2828 = vmatpush1.bf16.msra.mxu0 %v6199_v50  ;;  %2782 = vmatprep.subr.bf16.mxu1 %v6216_v52  ;;  %v6225_v50 = vld [vmem:[%s6994_s6 + $0x12c] ss:$24 sps:$4 sm:$0xff]   ;;  %v6235_v52 = vld [vmem:[%s6994_s6 + $0x188] ss:$24 sps:$4 sm:$0xff]  }
 0x807   : > { %2829 = vmatprep.subr.bf16.mxu0 %v6207_v5  ;;  %v6228_v5 = vld [vmem:[%s6994_s6 + $0x154] ss:$24 sps:$4 sm:$0xff]  }
 0x80a   : > { %2830 = vmatpush1.bf16.msra.mxu0 %v6205_v49  ;;  %v6231_v49 = vld [vmem:[%s6994_s6 + $0x15c] ss:$24 sps:$4 sm:$0xff]  }
 0x80b   : > { %2831 = vmatprep.subr.bf16.mxu0 %v6213_v8  ;;  %v6234_v8 = vld [vmem:[%s6994_s6 + $0x184] ss:$24 sps:$4 sm:$0xff]  }
 0x80e   : > { %2832 = vmatpush1.bf16.msra.mxu0 %v6211_v12  ;;  %v6237_v12 = vld [vmem:[%s6994_s6 + $0x18c] ss:$24 sps:$4 sm:$0xff]  }
 0x80f   : > { %2833 = vmatprep.subr.bf16.mxu0 %v6219_v13  ;;  %v6240_v13 = vld [vmem:[%s6994_s6 + $0x1b4] ss:$24 sps:$4 sm:$0xff]  }
 0x8d0   : > { %v2231_v60 = vpop.f32.mrb[20].mxu0 }
 0x8d1   : > { %v2254_v51 = vadd.f32 %v6604_v59, %v2231_v60  ;;  %v2233_v35 = vpop.f32.mrb[21].mxu0  ;;  %v6214_v60 = vld [vmem:[%s6994_s6 + $0xf0] ss:$24 sps:$4 sm:$0xff]  }
 0x8d2   : > { %v2255_v43 = vadd.f32 %v6605_v10, %v2233_v35  ;;  %v2235_v39 = vpop.f32.mrb[22].mxu0  ;;  %2783 = vmatpush1.bf16.msra.mxu1 %v6214_v60  ;;  %v6238_v60 = vld [vmem:[%s6994_s6 + $0x1b0] ss:$24 sps:$4 sm:$0xff]  }
 0x8d3   : > { %v2256_v17 = vadd.f32 %v6606_v16, %v2235_v39  ;;  %v2237_v18 = vpop.f32.mrb[23].mxu0  ;;  %v7389_v22 = vadd.f32 %v2265_v15, %v2254_v51  ;;  %v7448_v39 = vld [vmem:[%s8601_s12 + $0x38] sm:$0xff]  ;;  %2784 = vmatprep.subr.bf16.mxu1 %v6222_v0 }
 0x8d4   : > { %v7384_v19 = vadd.f32 %v2269_v14, %v2255_v43  ;;  %v2257_v21 = vadd.f32 %v6607_v20, %v2237_v18 }
 0x8d5   : > { %v7395_v25 = vadd.f32 %v2265_v15, %v2256_v17 }
 0x8d6   : > { %v7391_v23 = vadd.f32 %v2269_v14, %v2257_v21  ;;  %v2280_v24 = vsel %vm881_vm2, %v7384_v19, 0.0  ;;  %v7463_v21 = vld [vmem:[%s8601_s12 + $0x48] sm:$0xff]  ;;  %2785 = vmatpush1.bf16.msra.mxu1 %v6220_v2 }
 0x8d7   : > { %v2281_v26 = vadd.f32 %v2280_v24, %v7389_v22  ;;  %2786 = vmatprep.subr.bf16.mxu1 %v6228_v5 }
 0x8d8   : > { %v2241_v27 = vpop.f32.mrb[32].mxu0  ;;  %v2284_v28 = vsel %vm881_vm2, %v7391_v23, 0.0 }
 0x8d9   : > { %v2252_v29 = vadd.f32 %v2241_v27, %v1980_v47  ;;  %2282 = vadd.xlane.f32.xlu0 %v2281_v26  ;;  %v2243_v30 = vpop.f32.mrb[33].mxu0  ;;  %v2285_v31 = vadd.f32 %v2284_v28, %v7395_v25  ;;  %v7473_v28 = vld [vmem:[%s8601_s12 + $0x30] sm:$0xff] }
 0x8da   : > { %v2253_v32 = vadd.f32 %v2243_v30, %v1982_v54  ;;  %v2245_v33 = vpop.f32.mrb[34].mxu0  ;;  %2787 = vmatpush1.bf16.msra.mxu1 %v6226_v6 }
 0x8db   : > { %v2258_v37 = vadd.f32 %v6608_v36, %v2252_v29  ;;  %2286 = vadd.xlane.f32.xlu1 %v2285_v31  ;;  %v2246_v40 = vpop.f32.mrb[35].mxu0  ;;  %v3771_v29 = vsel %vm881_vm2, %v7448_v39, 0.0  ;;  %v7480_v31 = vld [vmem:[%s8601_s12 + $0x50] sm:$0x1]  ;;  %v7491_v36 = vld [vmem:[%s8601_s12 + $0x40] sm:$0xff]  ;;  %2788 = vmatprep.subr.bf16.mxu1 %v6234_v8 }
 0x8dc   : > { %v2259_v41 = vadd.f32 %v6609_v38, %v2253_v32  ;;  %v7485_v32 = vld [vmem:[%s8601_s12 + $0x58] sm:$0x1] }
 0x8dd   : > { %v7407_v42 = vadd.f32 %v2265_v15, %v2258_v37  ;;  %v3775_v37 = vsel %vm881_vm2, %v7463_v21, 0.0 }
 0x8de   : > { %v7409_v44 = vadd.f32 %v2269_v14, %v2259_v41  ;;  %v6217_v14 = vld [vmem:[%s6994_s6 + $0xf8] ss:$24 sps:$4 sm:$0xff]   ;;  %v3772_v41 = vadd.f32 %v7473_v28, %v3771_v29  ;;  %v3776_v53 = vadd.f32 %v7491_v36, %v3775_v37  ;;  %2789 = vmatpush1.bf16.msra.mxu1 %v6232_v9  ;;  %v6258_v29 = vld [vmem:[%s6994_s6 + $0x14] ss:$24 sps:$4 sm:$0xff]   ;;  %v2279_v9 = vld [vmem:[%s6984_s25] sm:$0x3] }
 0x8df   : > { %v2288_v47 = vsel %vm890_vm3, %v7407_v42, 0.0  ;;  %2834 = vmatpush1.bf16.msra.mxu0 %v6217_v14  ;;  %v6243_v14 = vld [vmem:[%s6994_s6 + $0x1bc] ss:$24 sps:$4 sm:$0xff]   ;;  %2790 = vmatprep.subr.bf16.mxu1 %v6240_v13 }
 0x8e0   : > { %v2289_v3 = vsel %vm892_vm4, %v7409_v44, 0.0  ;;  %2835 = vmatprep.subr.bf16.mxu0 %v6225_v50 }
 0x8e1   : > { %v2290_v54 = vadd.f32 %v2289_v3, %v2288_v47  ;;  %v3779_v3 = vsel %vm890_vm3, %v7480_v31, 0.0 }
 0x8e2   : > { %2791 = vmatpush1.bf16.msra.mxu1 %v6238_v60 }
 0x8e3   : > { %2291 = vadd.xlane.f32.xlu0 %v2290_v54  ;;  %v3780_v54 = vsel %vm892_vm4, %v7485_v32, 0.0  ;;  %2836 = vmatpush1.bf16.msra.mxu0 %v6223_v4  ;;  %v2278_v4 = vld [vmem:[%s6974_s27] sm:$0x3] }
 0x8e4   : > { %v3781_v56 = vadd.f32 %v3780_v54, %v3779_v3  ;;  %2837 = vmatprep.subr.bf16.mxu0 %v6231_v49 }
 0x8e7   : > { %2838 = vmatpush1.bf16.msra.mxu0 %v6229_v7 }
 0x8e8   : > { %2839 = vmatprep.subr.bf16.mxu0 %v6237_v12  ;;  %v2344_v12 = vrot.slane %v2278_v4, %v7198_v46 }
 0x8eb   : > { %2840 = vmatpush1.bf16.msra.mxu0 %v6235_v52  ;;  %v2340_v52 = vrot.slane %v2278_v4, %v7202_v48  ;;  %v6267_v4 = vld [vmem:[%s6994_s6 + $0xa4] ss:$24 sps:$4 sm:$0xff]  }
 0x8ec   : > { %2841 = vmatprep.subr.bf16.mxu0 %v6243_v14 }
 0x966   : > { %v2283_v59 = vpop.xlane.xlu0 %2282 }
 0x967   : > { %v2293_v51 = vmul.f32 0.0052083335, %v2283_v59  ;;  %v6241_v59 = vld [vmem:[%s6994_s6 + $0x1b8] ss:$24 sps:$4 sm:$0xff]  }
 0x968   : > { %v2287_v15 = vpop.xlane.xlu1 %2286  ;;  %2842 = vmatpush1.bf16.msra.mxu0 %v6241_v59 }
 0x969   : > { %v7440_v35 = vsub.f32 %v7389_v22, %v2293_v51  ;;  %v7443_v10 = vsub.f32 %v7384_v19, %v2293_v51  ;;  %v2294_v43 = vmul.f32 0.0052083335, %v2287_v15  ;;  %v6246_v51 = vld [vmem:[%s6994_s6 + $0x1e4] ss:$24 sps:$4 sm:$0xff]   ;;  %v6244_v15 = vld [vmem:[%s6994_s6 + $0x1e0] ss:$24 sps:$4 sm:$0xff]  }
 0x96a   : > { %2792 = vmatprep.subr.bf16.mxu1 %v6246_v51 }
 0x96b   : > { %v7451_v16 = vsub.f32 %v7395_v25, %v2294_v43  ;;  %v7454_v17 = vsub.f32 %v7391_v23, %v2294_v43  ;;  %v2302_v18 = vmul.f32 %v7440_v35, %v7440_v35  ;;  %v2303_v20 = vmul.f32 %v7443_v10, %v7443_v10  ;;  %v6249_v43 = vld [vmem:[%s6994_s6 + $0x1ec] ss:$24 sps:$4 sm:$0xff]   ;;  %2793 = vmatpush1.bf16.msra.mxu1 %v6244_v15 }
 0x96c   : > { %2843 = vmatprep.subr.bf16.mxu0 %v6249_v43 }
 0x96d   : > { %v2308_v24 = vsel %vm881_vm2, %v2303_v20, 0.0  ;;  %v2304_v26 = vmul.f32 %v7451_v16, %v7451_v16  ;;  %v2305_v27 = vmul.f32 %v7454_v17, %v7454_v17  ;;  %v6252_v20 = vld [vmem:[%s6994_s6 + $0x214] ss:$24 sps:$4 sm:$0xff]  }
 0x96e   : > { %v2309_v30 = vadd.f32 %v2308_v24, %v2302_v18  ;;  %v6247_v18 = vld [vmem:[%s6994_s6 + $0x1e8] ss:$24 sps:$4 sm:$0xff]   ;;  %2794 = vmatprep.subr.bf16.mxu1 %v6252_v20  ;;  %v2361_v20 = vrot.slane %v2279_v9, %v7198_v46 }
 0x96f   : > { %v2312_v33 = vsel %vm881_vm2, %v2305_v27, 0.0  ;;  %v6250_v24 = vld [vmem:[%s6994_s6 + $0x210] ss:$24 sps:$4 sm:$0xff]   ;;  %2844 = vmatpush1.bf16.msra.mxu0 %v6247_v18 }
 0x970   : > { %2310 = vadd.xlane.f32.xlu1 %v2309_v30  ;;  %v2292_v40 = vpop.xlane.xlu0 %2291  ;;  %v2313_v38 = vadd.f32 %v2312_v33, %v2304_v26  ;;  %v6255_v26 = vld [vmem:[%s6994_s6 + $0x21c] ss:$24 sps:$4 sm:$0xff]   ;;  %v6253_v27 = vld [vmem:[%s6994_s6 + $0x218] ss:$24 sps:$4 sm:$0xff]   ;;  %2795 = vmatpush1.bf16.msra.mxu1 %v6250_v24  ;;  %v2357_v24 = vrot.slane %v2279_v9, %v7202_v48 }
 0x971   : > { %v2295_v47 = vmul.f32 0.0052083335, %v2292_v40  ;;  %2845 = vmatprep.subr.bf16.mxu0 %v6255_v26  ;;  %2874 = vmatprep.subr.bf16.mxu1 %v6258_v29  ;;  %v6279_v9 = vld [vmem:[%s6994_s6 + $0x164] ss:$24 sps:$4 sm:$0xff]  }
 0x972   : > { %2314 = vadd.xlane.f32.xlu0 %v2313_v38 }
 0x973   : > { %v7502_v1 = vsub.f32 %v7407_v42, %v2295_v47  ;;  %v7505_v55 = vsub.f32 %v7409_v44, %v2295_v47  ;;  %2846 = vmatpush1.bf16.msra.mxu0 %v6253_v27 }
 0x974   : > { %3773 = vadd.xlane.f32.xlu1 %v3772_v41 }
 0x975   : > { %v2306_v57 = vmul.f32 %v7502_v1, %v7502_v1  ;;  %v2307_v58 = vmul.f32 %v7505_v55, %v7505_v55 }
 0x976   : > { %3777 = vadd.xlane.f32.xlu0 %v3776_v53 }
 0x977   : > { %v2316_v61 = vsel %vm890_vm3, %v2306_v57, 0.0  ;;  %v2317_v62 = vsel %vm892_vm4, %v2307_v58, 0.0 }
 0x978   : > { %3782 = vadd.xlane.f32.xlu1 %v3781_v56  ;;  %v2318_v63 = vadd.f32 %v2317_v62, %v2316_v61 }
 0x97a   : > { %2319 = vadd.xlane.f32.xlu0 %v2318_v63 }
 0x9fd   : > { %v2311_v30 = vpop.xlane.xlu1 %2310 }
 0x9fe   : > { %v2321_v33 = vmul.f32 0.0052083335, %v2311_v30 }
 0x9ff   : > { %v2315_v37 = vpop.xlane.xlu0 %2314 }
 0xa00   : > { %v2324_v40 = vadd.f32 1e-05, %v2321_v33  ;;  %v2322_v38 = vmul.f32 0.0052083335, %v2315_v37 }
 0xa01   : > { %v3774_v41 = vpop.xlane.xlu1 %3773 }
 0xa02   : > { %6478 = vrsqrt.f32 %v2324_v40  ;;  %v2325_v47 = vadd.f32 1e-05, %v2322_v38  ;;  %v3784_v3 = vmul.f32 0.0052083335, %v3774_v41 }
 0xa03   : > { %v3778_v54 = vpop.xlane.xlu0 %3777 }
 0xa04   : > { %6480 = vrsqrt.f32 %v2325_v47  ;;  %v7539_v53 = vsub.f32 %v7473_v28, %v3784_v3  ;;  %v7542_v56 = vsub.f32 %v7448_v39, %v3784_v3  ;;  %v3785_v57 = vmul.f32 0.0052083335, %v3778_v54  ;;  %v6256_v47 = vld [vmem:[%s6994_s6 + $0x10] ss:$24 sps:$4 sm:$0xff]  }
 0xa05   : > { %v3783_v58 = vpop.xlane.xlu1 %3782 }
 0xa06   : > { %v7545_v61 = vsub.f32 %v7491_v36, %v3785_v57  ;;  %v7548_v62 = vsub.f32 %v7463_v21, %v3785_v57  ;;  %v3786_v63 = vmul.f32 0.0052083335, %v3783_v58  ;;  %v3793_v0 = vmul.f32 %v7539_v53, %v7539_v53  ;;  %v6261_v57 = vld [vmem:[%s6994_s6 + $0x44] ss:$24 sps:$4 sm:$0xff]   ;;  %v6259_v58 = vld [vmem:[%s6994_s6 + $0x40] ss:$24 sps:$4 sm:$0xff]  }
 0xa07   : > { %v2320_v2 = vpop.xlane.xlu0 %2319  ;;  %v3794_v28 = vmul.f32 %v7542_v56, %v7542_v56 }
 0xa08   : > { %v7555_v39 = vsub.f32 %v7480_v31, %v3786_v63  ;;  %v7558_v50 = vsub.f32 %v7485_v32, %v3786_v63  ;;  %v2323_v36 = vmul.f32 0.0052083335, %v2320_v2  ;;  %v3795_v21 = vmul.f32 %v7545_v61, %v7545_v61  ;;  %v6264_v2 = vld [vmem:[%s6994_s6 + $0x74] ss:$24 sps:$4 sm:$0xff]  }
 0xa09   : > { %v3799_v5 = vsel %vm881_vm2, %v3794_v28, 0.0  ;;  %v3796_v6 = vmul.f32 %v7548_v62, %v7548_v62 }
 0xa0a   : > { %v2326_v49 = vadd.f32 1e-05, %v2323_v36  ;;  %v3800_v7 = vadd.f32 %v3799_v5, %v3793_v0  ;;  %v3797_v8 = vmul.f32 %v7555_v39, %v7555_v39  ;;  %v3798_v31 = vmul.f32 %v7558_v50, %v7558_v50  ;;  %v6265_v5 = vld [vmem:[%s6994_s6 + $0xa0] ss:$24 sps:$4 sm:$0xff]  }
 0xa0b   : > { %v3803_v32 = vsel %vm881_vm2, %v3796_v6, 0.0  ;;  %v6270_v6 = vld [vmem:[%s6994_s6 + $0xd4] ss:$24 sps:$4 sm:$0xff]  }
 0xa0c   : > { %v6479_v13 = vpop.eup %6478  ;;  %6482 = vrsqrt.f32 %v2326_v49  ;;  %3801 = vadd.xlane.f32.xlu1 %v3800_v7  ;;  %v3804_v60 = vadd.f32 %v3803_v32, %v3795_v21  ;;  %v3807_v14 = vsel %vm890_vm3, %v3797_v8, 0.0  ;;  %v3808_v59 = vsel %vm892_vm4, %v3798_v31, 0.0  ;;  %v6262_v21 = vld [vmem:[%s6994_s6 + $0x70] ss:$24 sps:$4 sm:$0xff]   ;;  %v6273_v7 = vld [vmem:[%s6994_s6 + $0x104] ss:$24 sps:$4 sm:$0xff]  }
 0xa0d   : > { %v2330_v51 = vmul.f32 %v6479_v13, %v7440_v35  ;;  %v2331_v15 = vmul.f32 %v6479_v13, %v7443_v10  ;;  %v3809_v43 = vadd.f32 %v3808_v59, %v3807_v14  ;;  %v6268_v49 = vld [vmem:[%s6994_s6 + $0xd0] ss:$24 sps:$4 sm:$0xff]   ;;  %v6271_v8 = vld [vmem:[%s6994_s6 + $0x100] ss:$24 sps:$4 sm:$0xff]   ;;  %v6276_v31 = vld [vmem:[%s6994_s6 + $0x134] ss:$24 sps:$4 sm:$0xff]  }
 0xa0e   : > { %v6481_v18 = vpop.eup %6480  ;;  %3805 = vadd.xlane.f32.xlu0 %v3804_v60  ;;  %v6274_v32 = vld [vmem:[%s6994_s6 + $0x130] ss:$24 sps:$4 sm:$0xff]   ;;  %v6285_v60 = vld [vmem:[%s6994_s6 + $0x1c4] ss:$24 sps:$4 sm:$0xff]   ;;  %v6283_v14 = vld [vmem:[%s6994_s6 + $0x1c0] ss:$24 sps:$4 sm:$0xff]  }
 0xa0f   : > { %v2332_v26 = vmul.f32 %v6481_v18, %v7451_v16  ;;  %v2333_v27 = vmul.f32 %v6481_v18, %v7454_v17  ;;  %v2348_v29 = vmul.f32 %v2344_v12, %v2331_v15  ;;  %v2347_v30 = vmul.f32 %v2340_v52, %v2330_v51  ;;  %v6280_v13 = vld [vmem:[%s6994_s6 + $0x190] ss:$24 sps:$4 sm:$0xff]   ;;  %v6288_v59 = vld [vmem:[%s6994_s6 + $0x1f4] ss:$24 sps:$4 sm:$0xff]   ;;  %v6291_v15 = vld [vmem:[%s6994_s6 + $0x224] ss:$24 sps:$4 sm:$0xff]  }
 0xa10   : > { %3810 = vadd.xlane.f32.xlu1 %v3809_v43  ;;  %v6286_v51 = vld [vmem:[%s6994_s6 + $0x1f0] ss:$24 sps:$4 sm:$0xff]   ;;  %v6289_v43 = vld [vmem:[%s6994_s6 + $0x220] ss:$24 sps:$4 sm:$0xff]  }
 0xa11   : > { %v2350_v33 = vmul.f32 %v2344_v12, %v2333_v27  ;;  %v2349_v35 = vmul.f32 %v2340_v52, %v2332_v26  ;;  %v2365_v37 = vadd.f32 %v2361_v20, %v2348_v29  ;;  %v2364_v40 = vadd.f32 %v2357_v24, %v2347_v30  ;;  %v6610_v18 = vld [vmem:[%s6964_s16 + $0x4] ss:$20 sps:$4 sm:$0xff]   ;;  %v6613_v27 = vld [vmem:[%s6964_s16 + $0x28] ss:$20 sps:$4 sm:$0xff]  }
 0xa12   : > { %v6294_v26 = vld [vmem:[%s7004_s7 + $0x4] ss:$8 sps:$4 sm:$0xff]   ;;  %v6292_v29 = vld [vmem:[%s7004_s7] ss:$8 sps:$4 sm:$0xff]  }
 0xa13   : > { %v2367_v10 = vadd.f32 %v2361_v20, %v2350_v33  ;;  %v2366_v38 = vadd.f32 %v2357_v24, %v2349_v35  ;;  %v6614_v30 = vld [vmem:[%s6964_s16 + $0x54] ss:$20 sps:$4 sm:$0xff]   ;;  %3579 = vmatprep.subr.bf16.mxu0 %v6294_v26  ;;  %v6615_v35 = vld [vmem:[%s6964_s16 + $0x50] ss:$20 sps:$4 sm:$0xff]  }
 0xa14   : > { %v6297_v33 = vld [vmem:[%s7004_s7 + $0x14] ss:$8 sps:$4 sm:$0xff]   ;;  %v6330_v26 = vld [vmem:[%s7004_s7 + $0xc4] ss:$8 sps:$4 sm:$0xff]  }
 0xa15   : > { %v2371_v41 = vpack.c.bf16 %v2367_v10, %v2365_v37  ;;  %v7583_v3 = vpack.c.bf16 %v2366_v38, %v2364_v40  ;;  %v6295_v37 = vld [vmem:[%s7004_s7 + $0x10] ss:$8 sps:$4 sm:$0xff]   ;;  %v6300_v40 = vld [vmem:[%s7004_s7 + $0x24] ss:$8 sps:$4 sm:$0xff]  }
 0xa16   : > { %v6483_v54 = vpop.eup %6482  ;;  %v6616_v10 = vld [vmem:[%s6964_s16 + $0x7c] ss:$20 sps:$4 sm:$0xff]   ;;  %v6617_v38 = vld [vmem:[%s6964_s16 + $0x78] ss:$20 sps:$4 sm:$0xff]  }
 0xa17   : > { %5715 = vmatprep.mubr.msk.bf16.mxu1 %vm881_vm2, %v2371_v41  ;;  %5717 = vmatprep.mubr.msk.bf16.mxu0 %vm881_vm2, %v2371_v41  ;;  %v2335_v16 = vmul.f32 %v6483_v54, %v7505_v55  ;;  %v2334_v17 = vmul.f32 %v6483_v54, %v7502_v1  ;;  %v6619_v54 = vld [vmem:[%s6964_s16 + $0xa0] ss:$20 sps:$4 sm:$0xff]  }
 0xa18   : > { %2805 = vmatmul.mubr.bf16.vlgmr.msra.gmra.mrb[28].mxu1 %v7583_v3  ;;  %2856 = vmatmul.mubr.bf16.vlgmr.msra.gmra.mrb[36].mxu0 %v7583_v3 }
 0xa19   : > { %2875 = vmatpush1.bf16.msra.mxu1 %v6256_v47  ;;  %v2352_v63 = vmul.f32 %v2344_v12, %v2335_v16  ;;  %v2351_v0 = vmul.f32 %v2340_v52, %v2334_v17  ;;  %v6277_v12 = vld [vmem:[%s6994_s6 + $0x160] ss:$24 sps:$4 sm:$0xff]   ;;  %v6282_v52 = vld [vmem:[%s6994_s6 + $0x194] ss:$24 sps:$4 sm:$0xff]   ;;  %3580 = vmatpush1.bf16.msra.mxu0 %v6292_v29 }
 0xa1a   : > { %2876 = vmatprep.subr.bf16.mxu1 %v6261_v57  ;;  %3581 = vmatprep.subr.bf16.mxu0 %v6297_v33  ;;  %v6618_v47 = vld [vmem:[%s6964_s16 + $0xa4] ss:$20 sps:$4 sm:$0xff]   ;;  %v6620_v16 = vld [vmem:[%s6964_s16 + $0xcc] ss:$20 sps:$4 sm:$0xff]  }
 0xa1b   : > { %v2369_v28 = vadd.f32 %v2361_v20, %v2352_v63  ;;  %v2368_v36 = vadd.f32 %v2357_v24, %v2351_v0  ;;  %v6611_v20 = vld [vmem:[%s6964_s16] ss:$20 sps:$4 sm:$0xff]   ;;  %v6301_v57 = vld [vmem:[%s7004_s7 + $0x30] ss:$8 sps:$4 sm:$0xff]   ;;  %v6306_v17 = vld [vmem:[%s7004_s7 + $0x44] ss:$8 sps:$4 sm:$0xff]  }
 0xa1c   : > { %v6612_v24 = vld [vmem:[%s6964_s16 + $0x2c] ss:$20 sps:$4 sm:$0xff]   ;;  %v6622_v0 = vld [vmem:[%s6964_s16 + $0xf4] ss:$20 sps:$4 sm:$0xff]   ;;  %v6331_v29 = vld [vmem:[%s7004_s7 + $0xd0] ss:$8 sps:$4 sm:$0xff]  }
 0xa1d   : > { %2877 = vmatpush1.bf16.msra.mxu1 %v6259_v58  ;;  %v2373_v55 = vpack.c.bf16 %v2369_v28, %v2369_v28  ;;  %v2372_v1 = vpack.c.bf16 %v2368_v36, %v2368_v36  ;;  %3582 = vmatpush1.bf16.msra.mxu0 %v6295_v37  ;;  %v6621_v58 = vld [vmem:[%s6964_s16 + $0xc8] ss:$20 sps:$4 sm:$0xff]   ;;  %v6623_v28 = vld [vmem:[%s6964_s16 + $0xf0] ss:$20 sps:$4 sm:$0xff]  }
 0xa1e   : > { %2878 = vmatprep.subr.bf16.mxu1 %v6264_v2  ;;  %3583 = vmatprep.subr.bf16.mxu0 %v6300_v40  ;;  %v6304_v63 = vld [vmem:[%s7004_s7 + $0x40] ss:$8 sps:$4 sm:$0xff]   ;;  %v6309_v2 = vld [vmem:[%s7004_s7 + $0x54] ss:$8 sps:$4 sm:$0xff]   ;;  %v6307_v36 = vld [vmem:[%s7004_s7 + $0x50] ss:$8 sps:$4 sm:$0xff]  }
 0xa1f   : > { %5716 = vmatprep.mubr.msk.bf16.mxu1 %vm881_vm2, %v2373_v55  ;;  %5718 = vmatprep.mubr.msk.bf16.mxu0 %vm881_vm2, %v2373_v55  ;;  %v6334_v33 = vld [vmem:[%s7004_s7 + $0xe0] ss:$8 sps:$4 sm:$0xff]   ;;  %v6337_v37 = vld [vmem:[%s7004_s7 + $0xf0] ss:$8 sps:$4 sm:$0xff]  }
 0xa20   : > { %2815 = vmatmul.mubr.bf16.gmra.mrb[32].mxu1 %v2372_v1  ;;  %2866 = vmatmul.mubr.bf16.gmra.mrb[40].mxu0 %v2372_v1 }
 0xa21   : > { %2879 = vmatpush1.bf16.msra.mxu1 %v6262_v21  ;;  %5719 = vmatprep.mubr.msk.bf16.mxu1 %vm881_vm2, %v2371_v41  ;;  %v6298_v41 = vld [vmem:[%s7004_s7 + $0x20] ss:$8 sps:$4 sm:$0xff]   ;;  %v6312_v21 = vld [vmem:[%s7004_s7 + $0x64] ss:$8 sps:$4 sm:$0xff]  }
 0xa22   : > { %2880 = vmatprep.subr.bf16.mxu1 %v6267_v4  ;;  %3584 = vmatpush1.bf16.msra.mxu0 %v6298_v41  ;;  %v6310_v4 = vld [vmem:[%s7004_s7 + $0x60] ss:$8 sps:$4 sm:$0xff]  }
 0xa25   : > { %2881 = vmatpush1.bf16.msra.mxu1 %v6265_v5  ;;  %v6626_v5 = vld [vmem:[%s6964_s16 + $0x144] ss:$20 sps:$4 sm:$0xff]  }
 0xa26   : > { %2882 = vmatprep.subr.bf16.mxu1 %v6270_v6  ;;  %v6315_v6 = vld [vmem:[%s7004_s7 + $0x74] ss:$8 sps:$4 sm:$0xff]  }
 0xa29   : > { %2883 = vmatpush1.bf16.msra.mxu1 %v6268_v49  ;;  %v6627_v49 = vld [vmem:[%s6964_s16 + $0x140] ss:$20 sps:$4 sm:$0xff]  }
 0xa2a   : > { %2884 = vmatprep.subr.bf16.mxu1 %v6273_v7  ;;  %v6313_v7 = vld [vmem:[%s7004_s7 + $0x70] ss:$8 sps:$4 sm:$0xff]  }
 0xa2d   : > { %2885 = vmatpush1.bf16.msra.mxu1 %v6271_v8  ;;  %v6628_v8 = vld [vmem:[%s6964_s16 + $0x16c] ss:$20 sps:$4 sm:$0xff]  }
 0xa2e   : > { %2886 = vmatprep.subr.bf16.mxu1 %v6276_v31  ;;  %v6318_v31 = vld [vmem:[%s7004_s7 + $0x84] ss:$8 sps:$4 sm:$0xff]  }
 0xa31   : > { %2887 = vmatpush1.bf16.msra.mxu1 %v6274_v32  ;;  %v6629_v32 = vld [vmem:[%s6964_s16 + $0x168] ss:$20 sps:$4 sm:$0xff]  }
 0xa32   : > { %2888 = vmatprep.subr.bf16.mxu1 %v6279_v9  ;;  %v6316_v9 = vld [vmem:[%s7004_s7 + $0x80] ss:$8 sps:$4 sm:$0xff]  }
 0xa35   : > { %2889 = vmatpush1.bf16.msra.mxu1 %v6277_v12  ;;  %v6630_v12 = vld [vmem:[%s6964_s16 + $0x194] ss:$20 sps:$4 sm:$0xff]  }
 0xa36   : > { %2890 = vmatprep.subr.bf16.mxu1 %v6282_v52  ;;  %v6631_v52 = vld [vmem:[%s6964_s16 + $0x190] ss:$20 sps:$4 sm:$0xff]  }
 0xa39   : > { %2891 = vmatpush1.bf16.msra.mxu1 %v6280_v13  ;;  %v6321_v13 = vld [vmem:[%s7004_s7 + $0x94] ss:$8 sps:$4 sm:$0xff]  }
 0xa3a   : > { %2892 = vmatprep.subr.bf16.mxu1 %v6285_v60  ;;  %v6632_v60 = vld [vmem:[%s6964_s16 + $0x1bc] ss:$20 sps:$4 sm:$0xff]  }
 0xa3d   : > { %2893 = vmatpush1.bf16.msra.mxu1 %v6283_v14  ;;  %v6319_v14 = vld [vmem:[%s7004_s7 + $0x90] ss:$8 sps:$4 sm:$0xff]  }
 0xa3e   : > { %2894 = vmatprep.subr.bf16.mxu1 %v6288_v59  ;;  %v6633_v59 = vld [vmem:[%s6964_s16 + $0x1b8] ss:$20 sps:$4 sm:$0xff]  }
 0xa41   : > { %2895 = vmatpush1.bf16.msra.mxu1 %v6286_v51  ;;  %v6634_v51 = vld [vmem:[%s6964_s16 + $0xc] ss:$20 sps:$4 sm:$0xff]  }
 0xa42   : > { %2896 = vmatprep.subr.bf16.mxu1 %v6291_v15  ;;  %v6324_v15 = vld [vmem:[%s7004_s7 + $0xa4] ss:$8 sps:$4 sm:$0xff]  }
 0xa45   : > { %2897 = vmatpush1.bf16.msra.mxu1 %v6289_v43  ;;  %v6322_v43 = vld [vmem:[%s7004_s7 + $0xa0] ss:$8 sps:$4 sm:$0xff]  }
 0xa46   : > { %3871 = vmatprep.subr.bf16.mxu1 %v6610_v18  ;;  %v6327_v18 = vld [vmem:[%s7004_s7 + $0xb4] ss:$8 sps:$4 sm:$0xff]  }
 0xa48   : > { %2907 = vmatmul.mubr.bf16.vlgmr.msra.gmra.mrb[36].mxu1 %v7583_v3  ;;  %v6303_v3 = vld [vmem:[%s7004_s7 + $0x34] ss:$8 sps:$4 sm:$0xff]  }
 0xa49   : > { %5720 = vmatprep.mubr.msk.bf16.mxu1 %vm881_vm2, %v2373_v55  ;;  %3872 = vmatpush1.bf16.msra.mxu1 %v6611_v20  ;;  %v6624_v55 = vld [vmem:[%s6964_s16 + $0x11c] ss:$20 sps:$4 sm:$0xff]  }
 0xa4a   : > { %3873 = vmatprep.subr.bf16.mxu1 %v6612_v24  ;;  %3585 = vmatprep.subr.bf16.mxu0 %v6303_v3  ;;  %v6325_v20 = vld [vmem:[%s7004_s7 + $0xb0] ss:$8 sps:$4 sm:$0xff]   ;;  %v6328_v24 = vld [vmem:[%s7004_s7 + $0xc0] ss:$8 sps:$4 sm:$0xff]  }
 0xa4b   : > { %3586 = vmatpush1.bf16.msra.mxu0 %v6301_v57 }
 0xa4c   : > { %3587 = vmatprep.subr.bf16.mxu0 %v6306_v17 }
 0xa4d   : > { %3874 = vmatpush1.bf16.msra.mxu1 %v6613_v27  ;;  %v6333_v27 = vld [vmem:[%s7004_s7 + $0xd4] ss:$8 sps:$4 sm:$0xff]  }
 0xa4e   : > { %3875 = vmatprep.subr.bf16.mxu1 %v6614_v30  ;;  %v6336_v30 = vld [vmem:[%s7004_s7 + $0xe4] ss:$8 sps:$4 sm:$0xff]  }
 0xa4f   : > { %3588 = vmatpush1.bf16.msra.mxu0 %v6304_v63 }
 0xa50   : > { %2917 = vmatmul.mubr.bf16.gmra.mrb[40].mxu1 %v2372_v1  ;;  %3589 = vmatprep.subr.bf16.mxu0 %v6309_v2  ;;  %v6625_v1 = vld [vmem:[%s6964_s16 + $0x118] ss:$20 sps:$4 sm:$0xff]  }
 0xa51   : > { %3876 = vmatpush1.bf16.msra.mxu1 %v6615_v35  ;;  %v6339_v35 = vld [vmem:[%s7004_s7 + $0xf4] ss:$8 sps:$4 sm:$0xff]  }
 0xa52   : > { %3877 = vmatprep.subr.bf16.mxu1 %v6616_v10  ;;  %v6342_v10 = vld [vmem:[%s7004_s7 + $0x104] ss:$8 sps:$4 sm:$0xff]  }
 0xa53   : > { %3590 = vmatpush1.bf16.msra.mxu0 %v6307_v36 }
 0xa54   : > { %3591 = vmatprep.subr.bf16.mxu0 %v6312_v21 }
 0xa55   : > { %3878 = vmatpush1.bf16.msra.mxu1 %v6617_v38 }
 0xa56   : > { %3879 = vmatprep.subr.bf16.mxu1 %v6618_v47 }
 0xa57   : > { %3592 = vmatpush1.bf16.msra.mxu0 %v6310_v4 }
 0xa58   : > { %3593 = vmatprep.subr.bf16.mxu0 %v6315_v6 }
 0xa59   : > { %3880 = vmatpush1.bf16.msra.mxu1 %v6619_v54 }
 0xa5a   : > { %3881 = vmatprep.subr.bf16.mxu1 %v6620_v16 }
 0xa5b   : > { %3594 = vmatpush1.bf16.msra.mxu0 %v6313_v7 }
 0xa5c   : > { %3595 = vmatprep.subr.bf16.mxu0 %v6318_v31 }
 0xa5d   : > { %3882 = vmatpush1.bf16.msra.mxu1 %v6621_v58  ;;  %v3769_v58 = vld [vmem:[%s6954_s28] sm:$0x3] }
 0xa5e   : > { %3883 = vmatprep.subr.bf16.mxu1 %v6622_v0  ;;  %v3831_v63 = vrot.slane %v3769_v58, %v7202_v48  ;;  %v3770_v0 = vld [vmem:[%s6959_s13] sm:$0x3]  ;;  %v3835_v2 = vrot.slane %v3769_v58, %v7198_v46 }
 0xa5f   : > { %3596 = vmatpush1.bf16.msra.mxu0 %v6316_v9  ;;  %v3852_v4 = vrot.slane %v3770_v0, %v7198_v46  ;;  %v6657_v58 = vld [vmem:[%s6964_s16 + $0x1c0] ss:$20 sps:$4 sm:$0xff]  }
 0xa60   : > { %3597 = vmatprep.subr.bf16.mxu0 %v6321_v13 }
 0xa61   : > { %3884 = vmatpush1.bf16.msra.mxu1 %v6623_v28 }
 0xa62   : > { %3885 = vmatprep.subr.bf16.mxu1 %v6624_v55 }
 0xa63   : > { %3598 = vmatpush1.bf16.msra.mxu0 %v6319_v14 }
 0xa64   : > { %3599 = vmatprep.subr.bf16.mxu0 %v6324_v15 }
 0xa65   : > { %3886 = vmatpush1.bf16.msra.mxu1 %v6625_v1  ;;  %v3848_v1 = vrot.slane %v3770_v0, %v7202_v48  ;;  %v6658_v0 = vld [vmem:[%s6964_s16 + $0x10] ss:$20 sps:$4 sm:$0xff]  }
 0xa66   : > { %3887 = vmatprep.subr.bf16.mxu1 %v6626_v5 }
 0xa67   : > { %3600 = vmatpush1.bf16.msra.mxu0 %v6322_v43  ;;  %v6637_v43 = vld [vmem:[%s6964_s16 + $0x30] ss:$20 sps:$4 sm:$0xff]  }
 0xa68   : > { %3601 = vmatprep.subr.bf16.mxu0 %v6327_v18  ;;  %v6638_v18 = vld [vmem:[%s6964_s16 + $0x5c] ss:$20 sps:$4 sm:$0xff]  }
 0xa69   : > { %3888 = vmatpush1.bf16.msra.mxu1 %v6627_v49 }
 0xa6a   : > { %3889 = vmatprep.subr.bf16.mxu1 %v6628_v8 }
 0xa6b   : > { %3602 = vmatpush1.bf16.msra.mxu0 %v6325_v20 }
 0xa6c   : > { %3603 = vmatprep.subr.bf16.mxu0 %v6330_v26  ;;  %v6640_v26 = vld [vmem:[%s6964_s16 + $0x84] ss:$20 sps:$4 sm:$0xff]  }
 0xa6d   : > { %3890 = vmatpush1.bf16.msra.mxu1 %v6629_v32 }
 0xa6e   : > { %3891 = vmatprep.subr.bf16.mxu1 %v6630_v12 }
 0xa6f   : > { %3604 = vmatpush1.bf16.msra.mxu0 %v6328_v24  ;;  %v6639_v24 = vld [vmem:[%s6964_s16 + $0x58] ss:$20 sps:$4 sm:$0xff]  }
 0xa70   : > { %3605 = vmatprep.subr.bf16.mxu0 %v6333_v27  ;;  %v6641_v27 = vld [vmem:[%s6964_s16 + $0x80] ss:$20 sps:$4 sm:$0xff]  }
 0xa71   : > { %3892 = vmatpush1.bf16.msra.mxu1 %v6631_v52 }
 0xa72   : > { %3893 = vmatprep.subr.bf16.mxu1 %v6632_v60 }
 0xa73   : > { %3606 = vmatpush1.bf16.msra.mxu0 %v6331_v29  ;;  %v6642_v29 = vld [vmem:[%s6964_s16 + $0xac] ss:$20 sps:$4 sm:$0xff]  }
 0xa74   : > { %3607 = vmatprep.subr.bf16.mxu0 %v6336_v30  ;;  %v6643_v30 = vld [vmem:[%s6964_s16 + $0xa8] ss:$20 sps:$4 sm:$0xff]  }
 0xa75   : > { %3894 = vmatpush1.bf16.msra.mxu1 %v6633_v59 }
 0xa76   : > { %3922 = vmatprep.subr.bf16.mxu1 %v6634_v51  ;;  %v6636_v51 = vld [vmem:[%s6964_s16 + $0x34] ss:$20 sps:$4 sm:$0xff]  }
 0xa77   : > { %3608 = vmatpush1.bf16.msra.mxu0 %v6334_v33  ;;  %v6644_v33 = vld [vmem:[%s6964_s16 + $0xd4] ss:$20 sps:$4 sm:$0xff]  }
 0xa78   : > { %3609 = vmatprep.subr.bf16.mxu0 %v6339_v35  ;;  %v6645_v35 = vld [vmem:[%s6964_s16 + $0xd0] ss:$20 sps:$4 sm:$0xff]  }
 0xa7b   : > { %3610 = vmatpush1.bf16.msra.mxu0 %v6337_v37  ;;  %v6646_v37 = vld [vmem:[%s6964_s16 + $0xfc] ss:$20 sps:$4 sm:$0xff]  }
 0xa7c   : > { %3630 = vmatprep.subr.bf16.mxu0 %v6342_v10  ;;  %v6647_v10 = vld [vmem:[%s6964_s16 + $0xf8] ss:$20 sps:$4 sm:$0xff]  }
 0xa99   : > { %v3802_v40 = vpop.xlane.xlu1 %3801 }
 0xa9a   : > { %v3812_v38 = vmul.f32 0.0052083335, %v3802_v40  ;;  %v6648_v40 = vld [vmem:[%s6964_s16 + $0x124] ss:$20 sps:$4 sm:$0xff]  }
 0xa9b   : > { %v3806_v41 = vpop.xlane.xlu0 %3805 }
 0xa9c   : > { %v3815_v47 = vadd.f32 1e-05, %v3812_v38  ;;  %v3813_v3 = vmul.f32 0.0052083335, %v3806_v41  ;;  %v6649_v38 = vld [vmem:[%s6964_s16 + $0x120] ss:$20 sps:$4 sm:$0xff]  }
 0xa9d   : > { %v3811_v54 = vpop.xlane.xlu1 %3810  ;;  %v6650_v41 = vld [vmem:[%s6964_s16 + $0x14c] ss:$20 sps:$4 sm:$0xff]  }
 0xa9e   : > { %6484 = vrsqrt.f32 %v3815_v47  ;;  %v3816_v57 = vadd.f32 1e-05, %v3813_v3  ;;  %v3814_v16 = vmul.f32 0.0052083335, %v3811_v54  ;;  %v6651_v47 = vld [vmem:[%s6964_s16 + $0x148] ss:$20 sps:$4 sm:$0xff]  }
 0xa9f   : > { %v6652_v3 = vld [vmem:[%s6964_s16 + $0x174] ss:$20 sps:$4 sm:$0xff]   ;;  %v6653_v54 = vld [vmem:[%s6964_s16 + $0x170] ss:$20 sps:$4 sm:$0xff]  }
 0xaa0   : > { %6486 = vrsqrt.f32 %v3816_v57  ;;  %v3817_v17 = vadd.f32 1e-05, %v3814_v16  ;;  %v6654_v57 = vld [vmem:[%s6964_s16 + $0x19c] ss:$20 sps:$4 sm:$0xff]   ;;  %v6655_v16 = vld [vmem:[%s6964_s16 + $0x198] ss:$20 sps:$4 sm:$0xff]  }
 0xaa2   : > { %6488 = vrsqrt.f32 %v3817_v17  ;;  %v6656_v17 = vld [vmem:[%s6964_s16 + $0x1c4] ss:$20 sps:$4 sm:$0xff]  }
 0xaa8   : > { %v6485_v28 = vpop.eup %6484 }
 0xaa9   : > { %v3821_v36 = vmul.f32 %v6485_v28, %v7539_v53  ;;  %v3822_v55 = vmul.f32 %v6485_v28, %v7542_v56  ;;  %v2390_v28 = vsub.s32 3, %v7195_v45 }
 0xaaa   : > { %v6487_v21 = vpop.eup %6486 }
 0xaab   : > { %v3838_v5 = vmul.f32 %v3831_v63, %v3821_v36  ;;  %v3823_v6 = vmul.f32 %v6487_v21, %v7545_v61  ;;  %v3824_v49 = vmul.f32 %v6487_v21, %v7548_v62  ;;  %v3839_v7 = vmul.f32 %v3835_v2, %v3822_v55  ;;  %v6659_v21 = vld [vmem:[%s6964_s16 + $0x38] ss:$20 sps:$4 sm:$0xff]  }
 0xaac   : > { %v6489_v8 = vpop.eup %6488 }
 0xaad   : > { %v3840_v31 = vmul.f32 %v3831_v63, %v3823_v6  ;;  %v3841_v32 = vmul.f32 %v3835_v2, %v3824_v49  ;;  %v3826_v9 = vmul.f32 %v6489_v8, %v7558_v50  ;;  %v3825_v53 = vmul.f32 %v6489_v8, %v7555_v39  ;;  %v6635_v50 = vld [vmem:[%s6964_s16 + $0x8] ss:$20 sps:$4 sm:$0xff]  }
 0xaae   : > { %v3856_v56 = vadd.f32 %v3852_v4, %v3839_v7  ;;  %v3855_v52 = vadd.f32 %v3848_v1, %v3838_v5 }
 0xaaf   : > { %v3858_v12 = vadd.f32 %v3852_v4, %v3841_v32  ;;  %v3857_v13 = vadd.f32 %v3848_v1, %v3840_v31  ;;  %v3843_v60 = vmul.f32 %v3835_v2, %v3826_v9  ;;  %v3842_v59 = vmul.f32 %v3831_v63, %v3825_v53  ;;  %v7734_v2 = vld [vmem:[%s6999_s4] sm:$0x3f] }
 0xab0   : > { %v2386_v63 = vsub.s32 2, %v7195_v45  ;;  %v2379_v36 = vrot.slane %v7734_v2, %v7202_v48  ;;  %v6660_v32 = vld [vmem:[%s6964_s16 + $0x60] ss:$20 sps:$4 sm:$0xff]  }
 0xab1   : > { %v7688_v61 = vpack.c.bf16 %v3858_v12, %v3856_v56  ;;  %v7690_v62 = vpack.c.bf16 %v3857_v13, %v3855_v52  ;;  %v3860_v14 = vadd.f32 %v3852_v4, %v3843_v60  ;;  %v3859_v15 = vadd.f32 %v3848_v1, %v3842_v59 }
 0xab2   : > { %v2387_v55 = vrot.slane %v7734_v2, %v2386_v63  ;;  %v7746_v1 = vrot.slane %v7734_v2, %v7198_v46  ;;  %v7751_v4 = vrot.slane %v7734_v2, %v2390_v28 }
 0xab3   : > { %5823 = vmatprep.mubr.msk.bf16.mxu1 %vm881_vm2, %v7688_v61  ;;  %v7695_v39 = vpack.c.bf16 %v3860_v14, %v3860_v14  ;;  %v7703_v20 = vpack.c.bf16 %v3859_v15, %v3859_v15 }
 0xab4   : > { %3904 = vmatmul.mubr.bf16.vlgmr.msra.gmra.mrb[44].mxu1 %v7690_v62 }
 0xab5   : > { %3923 = vmatpush1.bf16.msra.mxu1 %v6635_v50  ;;  %5824 = vmatprep.mubr.msk.bf16.mxu1 %vm881_vm2, %v7695_v39 }
 0xab6   : > { %3924 = vmatprep.subr.bf16.mxu1 %v6636_v51 }
 0xab9   : > { %3925 = vmatpush1.bf16.msra.mxu1 %v6637_v43 }
 0xaba   : > { %3926 = vmatprep.subr.bf16.mxu1 %v6638_v18 }
 0xabc   : > { %3914 = vmatmul.mubr.bf16.gmra.mrb[48].mxu1 %v7703_v20 }
 0xabd   : > { %3927 = vmatpush1.bf16.msra.mxu1 %v6639_v24  ;;  %5825 = vmatprep.mubr.msk.bf16.mxu1 %vm881_vm2, %v7688_v61 }
 0xabe   : > { %3928 = vmatprep.subr.bf16.mxu1 %v6640_v26 }
 0xac1   : > { %3929 = vmatpush1.bf16.msra.mxu1 %v6641_v27  ;;  %v6661_v27 = vld [vmem:[%s6964_s16 + $0x88] ss:$20 sps:$4 sm:$0xff]  }
 0xac2   : > { %3930 = vmatprep.subr.bf16.mxu1 %v6642_v29 }
 0xac5   : > { %3931 = vmatpush1.bf16.msra.mxu1 %v6643_v30 }
 0xac6   : > { %3932 = vmatprep.subr.bf16.mxu1 %v6644_v33 }
 0xac9   : > { %3933 = vmatpush1.bf16.msra.mxu1 %v6645_v35 }
 0xaca   : > { %3934 = vmatprep.subr.bf16.mxu1 %v6646_v37 }
 0xacd   : > { %3935 = vmatpush1.bf16.msra.mxu1 %v6647_v10 }
 0xace   : > { %3936 = vmatprep.subr.bf16.mxu1 %v6648_v40 }
 0xad1   : > { %3937 = vmatpush1.bf16.msra.mxu1 %v6649_v38 }
 0xad2   : > { %3938 = vmatprep.subr.bf16.mxu1 %v6650_v41 }
 0xad5   : > { %3939 = vmatpush1.bf16.msra.mxu1 %v6651_v47 }
 0xad6   : > { %3940 = vmatprep.subr.bf16.mxu1 %v6652_v3 }
 0xad9   : > { %3941 = vmatpush1.bf16.msra.mxu1 %v6653_v54 }
 0xada   : > { %3942 = vmatprep.subr.bf16.mxu1 %v6654_v57 }
 0xadd   : > { %3943 = vmatpush1.bf16.msra.mxu1 %v6655_v16 }
 0xade   : > { %3944 = vmatprep.subr.bf16.mxu1 %v6656_v17 }
 0xae1   : > { %3945 = vmatpush1.bf16.msra.mxu1 %v6657_v58 }
 0xae2   : > { %3973 = vmatprep.subr.bf16.mxu1 %v6876_v34 }
 0xae4   : > { %3955 = vmatmul.mubr.bf16.vlgmr.msra.gmra.mrb[52].mxu1 %v7690_v62 }
 0xae5   : > { %5826 = vmatprep.mubr.msk.bf16.mxu1 %vm881_vm2, %v7695_v39  ;;  %3974 = vmatpush1.bf16.msra.mxu1 %v6658_v0 }
 0xae6   : > { %3975 = vmatprep.subr.bf16.mxu1 %v6876_v34 }
 0xae9   : > { %3976 = vmatpush1.bf16.msra.mxu1 %v6659_v21 }
 0xaea   : > { %3977 = vmatprep.subr.bf16.mxu1 %v6876_v34 }
 0xaeb   : > { %v2806_v5 = vpop.f32.mrb[28].mxu1  ;;  %v2857_v6 = vpop.f32.mrb[36].mxu0 }
 0xaec   : > { %3965 = vmatmul.mubr.bf16.gmra.mrb[56].mxu1 %v7703_v20  ;;  %v7755_v49 = vadd.f32 %v2806_v5, %v2379_v36  ;;  %v7757_v7 = vadd.f32 %v2857_v6, %v2387_v55  ;;  %v2808_v8 = vpop.f32.mrb[29].mxu1  ;;  %v2859_v31 = vpop.f32.mrb[37].mxu0  ;;  %v6662_v6 = vld [vmem:[%s6964_s16 + $0xb0] ss:$20 sps:$4 sm:$0xff]  }
 0xaed   : > { %3978 = vmatpush1.bf16.msra.mxu1 %v6660_v32  ;;  %5827 = vmatprep.mubr.msk.bf16.mxu1 %vm881_vm2, %v7688_v61  ;;  %v7763_v9 = vadd.f32 %v2808_v8, %v7746_v1  ;;  %v7766_v53 = vadd.f32 %v2859_v31, %v7751_v4  ;;  %v2810_v56 = vpop.f32.mrb[30].mxu1  ;;  %v2861_v12 = vpop.f32.mrb[38].mxu0 }
 0xaee   : > { %v2943_v52 = vmul.f32 0.044715, %v7755_v49  ;;  %v2945_v13 = vmul.f32 0.044715, %v7757_v7  ;;  %3979 = vmatprep.subr.bf16.mxu1 %v6876_v34  ;;  %v7773_v61 = vadd.f32 %v2810_v56, %v2379_v36  ;;  %v7775_v59 = vadd.f32 %v2861_v12, %v2387_v55  ;;  %v2812_v50 = vpop.f32.mrb[31].mxu1  ;;  %v2863_v51 = vpop.f32.mrb[39].mxu0 }
 0xaef   : > { %v2944_v60 = vmul.f32 0.044715, %v7763_v9  ;;  %v2946_v14 = vmul.f32 0.044715, %v7766_v53  ;;  %v7780_v18 = vadd.f32 %v2812_v50, %v7746_v1  ;;  %v7783_v24 = vadd.f32 %v2863_v51, %v7751_v4 }
 0xaf0   : > { %v2961_v15 = vmul.f32 %v2943_v52, %v7755_v49  ;;  %v2963_v43 = vmul.f32 %v2945_v13, %v7757_v7  ;;  %v2949_v26 = vmul.f32 0.044715, %v7773_v61  ;;  %v2951_v35 = vmul.f32 0.044715, %v7775_v59 }
 0xaf1   : > { %3980 = vmatpush1.bf16.msra.mxu1 %v6661_v27  ;;  %v2962_v33 = vmul.f32 %v2944_v60, %v7763_v9  ;;  %v2964_v37 = vmul.f32 %v2946_v14, %v7766_v53  ;;  %v2950_v40 = vmul.f32 0.044715, %v7780_v18  ;;  %v2952_v57 = vmul.f32 0.044715, %v7783_v24  ;;  %v6663_v27 = vld [vmem:[%s6964_s16 + $0xd8] ss:$20 sps:$4 sm:$0xff]  }
 0xaf2   : > { %v2979_v29 = vmul.f32 %v2961_v15, %v7755_v49  ;;  %v2981_v30 = vmul.f32 %v2963_v43, %v7757_v7  ;;  %3981 = vmatprep.subr.bf16.mxu1 %v6876_v34  ;;  %v2967_v10 = vmul.f32 %v2949_v26, %v7773_v61  ;;  %v2969_v54 = vmul.f32 %v2951_v35, %v7775_v59 }
 0xaf3   : > { %v2816_v38 = vpop.f32.mrb[32].mxu1  ;;  %v2867_v41 = vpop.f32.mrb[40].mxu0  ;;  %v2968_v0 = vmul.f32 %v2950_v40, %v7780_v18  ;;  %v2980_v12 = vmul.f32 %v2962_v33, %v7763_v9  ;;  %v2970_v14 = vmul.f32 %v2952_v57, %v7783_v24 }
 0xaf4   : > { %v2997_v47 = vadd.f32 %v2979_v29, %v7755_v49  ;;  %v2999_v3 = vadd.f32 %v2981_v30, %v7757_v7  ;;  %v2818_v16 = vpop.f32.mrb[33].mxu1  ;;  %v7799_v17 = vpop.f32.mrb[41].mxu0  ;;  %v2985_v58 = vmul.f32 %v2967_v10, %v7773_v61  ;;  %v7803_v21 = vadd.f32 %v2816_v38, %v2379_v36  ;;  %v6664_v38 = vld [vmem:[%s6964_s16 + $0x100] ss:$20 sps:$4 sm:$0xff]  }
 0xaf5   : > { %v7805_v5 = vadd.f32 %v2867_v41, %v2387_v55  ;;  %3982 = vmatpush1.bf16.msra.mxu1 %v6662_v6  ;;  %v2820_v8 = vpop.f32.mrb[34].mxu1  ;;  %v2871_v31 = vpop.f32.mrb[42].mxu0  ;;  %v2987_v52 = vmul.f32 %v2969_v54, %v7775_v59  ;;  %v2986_v55 = vmul.f32 %v2968_v0, %v7780_v18  ;;  %v7817_v15 = vadd.f32 %v2818_v16, %v7746_v1  ;;  %v6665_v0 = vld [vmem:[%s6964_s16 + $0x128] ss:$20 sps:$4 sm:$0xff]  }
 0xaf6   : > { %v3015_v32 = vmul.f32 0.7978846, %v2997_v47  ;;  %v3017_v56 = vmul.f32 0.7978846, %v2999_v3  ;;  %v2821_v13 = vpop.f32.mrb[35].mxu1  ;;  %v2872_v60 = vpop.f32.mrb[43].mxu0  ;;  %3983 = vmatprep.subr.bf16.mxu1 %v6876_v34  ;;  %v3003_v36 = vadd.f32 %v2985_v58, %v7773_v61  ;;  %v2982_v29 = vmul.f32 %v2964_v37, %v7766_v53 }
 0xaf7   : > { %v2955_v50 = vmul.f32 0.044715, %v7803_v21  ;;  %v3005_v51 = vadd.f32 %v2987_v52, %v7775_v59  ;;  %v2956_v33 = vmul.f32 0.044715, %v7817_v15  ;;  %v2988_v35 = vmul.f32 %v2970_v14, %v7783_v24  ;;  %v6666_v60 = vld [vmem:[%s6964_s16 + $0x150] ss:$20 sps:$4 sm:$0xff]  }
 0xaf8   : > { %6490 = vtanh.f32 %v3015_v32  ;;  %v3021_v43 = vmul.f32 0.7978846, %v3003_v36  ;;  %v2998_v1 = vadd.f32 %v2980_v12, %v7763_v9  ;;  %v3004_v10 = vadd.f32 %v2986_v55, %v7780_v18 }
 0xaf9   : > { %6492 = vtanh.f32 %v3017_v56  ;;  %v2973_v26 = vmul.f32 %v2955_v50, %v7803_v21  ;;  %3984 = vmatpush1.bf16.msra.mxu1 %v6663_v27  ;;  %v3023_v30 = vmul.f32 0.7978846, %v3005_v51  ;;  %v2974_v40 = vmul.f32 %v2956_v33, %v7817_v15 }
 0xafa   : > { %3985 = vmatprep.subr.bf16.mxu1 %v6876_v34  ;;  %6494 = vtanh.f32 %v3021_v43  ;;  %v3016_v41 = vmul.f32 0.7978846, %v2998_v1  ;;  %v3022_v37 = vmul.f32 0.7978846, %v3004_v10  ;;  %v3000_v57 = vadd.f32 %v2982_v29, %v7766_v53 }
 0xafb   : > { %6496 = vtanh.f32 %v3023_v30  ;;  %v2991_v47 = vmul.f32 %v2973_v26, %v7803_v21  ;;  %v2992_v3 = vmul.f32 %v2974_v40, %v7817_v15  ;;  %v3006_v16 = vadd.f32 %v2988_v35, %v7783_v24  ;;  %v6667_v35 = vld [vmem:[%s6964_s16 + $0x178] ss:$20 sps:$4 sm:$0xff]  }
 0xafc   : > { %6498 = vtanh.f32 %v3016_v41  ;;  %v3018_v8 = vmul.f32 0.7978846, %v3000_v57  ;;  %v2925_v14 = vmul.f32 0.5, %v7755_v49  ;;  %v2931_v50 = vmul.f32 0.5, %v7773_v61 }
 0xafd   : > { %3986 = vmatpush1.bf16.msra.mxu1 %v6664_v38  ;;  %v3009_v54 = vadd.f32 %v2991_v47, %v7803_v21  ;;  %6500 = vtanh.f32 %v3022_v37  ;;  %v3010_v58 = vadd.f32 %v2992_v3, %v7817_v15  ;;  %v3024_v56 = vmul.f32 0.7978846, %v3006_v16  ;;  %v6668_v47 = vld [vmem:[%s6964_s16 + $0x1a0] ss:$20 sps:$4 sm:$0xff]  }
 0xafe   : > { %3987 = vmatprep.subr.bf16.mxu1 %v6876_v34  ;;  %v2927_v43 = vmul.f32 0.5, %v7757_v7  ;;  %v2933_v26 = vmul.f32 0.5, %v7775_v59  ;;  %v2926_v7 = vmul.f32 0.5, %v7763_v9  ;;  %v2932_v59 = vmul.f32 0.5, %v7780_v18 }
 0xaff   : > { %v3027_v6 = vmul.f32 0.7978846, %v3009_v54  ;;  %v3028_v32 = vmul.f32 0.7978846, %v3010_v58  ;;  %v2938_v9 = vmul.f32 0.5, %v7817_v15 }
 0xb00   : > { %v6343_v15 = vld [vmem:[%s7004_s7 + $0x110] ss:$8 sps:$4 sm:$0xff]  }
 0xb01   : > { %3988 = vmatpush1.bf16.msra.mxu1 %v6665_v0  ;;  %6502 = vtanh.f32 %v3027_v6  ;;  %v6340_v0 = vld [vmem:[%s7004_s7 + $0x100] ss:$8 sps:$4 sm:$0xff]  }
 0xb02   : > { %v6491_v31 = vpop.eup %6490  ;;  %3989 = vmatprep.subr.bf16.mxu1 %v6876_v34  ;;  %6504 = vtanh.f32 %v3028_v32 }
 0xb03   : > { %v6493_v12 = vpop.eup %6492  ;;  %v3051_v52 = vadd.f32 1.0, %v6491_v31  ;;  %6506 = vtanh.f32 %v3018_v8  ;;  %v6345_v8 = vld [vmem:[%s7004_s7 + $0x114] ss:$8 sps:$4 sm:$0xff]  }
 0xb04   : > { %v6495_v13 = vpop.eup %6494  ;;  %v3053_v36 = vadd.f32 1.0, %v6493_v12  ;;  %6508 = vtanh.f32 %v3024_v56  ;;  %v6669_v56 = vld [vmem:[%s6964_s16 + $0x1c8] ss:$20 sps:$4 sm:$0xff]  }
 0xb05   : > { %3990 = vmatpush1.bf16.msra.mxu1 %v6666_v60  ;;  %v6497_v55 = vpop.eup %6496  ;;  %v3057_v51 = vadd.f32 1.0, %v6495_v13  ;;  %v3069_v29 = vmul.f32 %v3051_v52, %v2925_v14  ;;  %v2928_v52 = vmul.f32 0.5, %v7766_v53  ;;  %v2934_v13 = vmul.f32 0.5, %v7783_v24 }
 0xb06   : > { %3991 = vmatprep.subr.bf16.mxu1 %v6876_v34  ;;  %v3059_v27 = vadd.f32 1.0, %v6497_v55  ;;  %v6499_v33 = vpop.eup %6498  ;;  %v7845_v1 = vmul.f32 %v3053_v36, %v2927_v43  ;;  %v2937_v36 = vmul.f32 0.5, %v7803_v21  ;;  %v2394_v53 = vsub.s32 4, %v7195_v45 }
 0xb07   : > { %v3075_v30 = vmul.f32 %v3057_v51, %v2931_v50  ;;  %v6501_v61 = vpop.eup %6500  ;;  %v3052_v10 = vadd.f32 1.0, %v6499_v33  ;;  %v6348_v51 = vld [vmem:[%s7004_s7 + $0x124] ss:$8 sps:$4 sm:$0xff]   ;;  %v2398_v21 = vsub.s32 5, %v7195_v45  ;;  %v6842_v45 = vld [vmem:[%s7004_s7 + $0x234] ss:$8 sps:$4 sm:$0xff]  }
 0xb08   : > { %v7847_v49 = vmul.f32 %v3059_v27, %v2933_v26  ;;  %v3058_v38 = vadd.f32 1.0, %v6501_v61  ;;  %v6346_v26 = vld [vmem:[%s7004_s7 + $0x120] ss:$8 sps:$4 sm:$0xff]  }
 0xb09   : > { %3992 = vmatpush1.bf16.msra.mxu1 %v6667_v35  ;;  %v3087_v40 = vpack.c.bf16 %v3075_v30, %v3069_v29  ;;  %v3070_v3 = vmul.f32 %v3052_v10, %v2926_v7  ;;  %v6351_v29 = vld [vmem:[%s7004_s7 + $0x134] ss:$8 sps:$4 sm:$0xff]   ;;  %v2399_v30 = vrot.slane %v7734_v2, %v2398_v21  ;;  %v6354_v10 = vld [vmem:[%s7004_s7 + $0x144] ss:$8 sps:$4 sm:$0xff]  }
 0xb0a   : > { %3993 = vmatprep.subr.bf16.mxu1 %v6876_v34  ;;  %v3089_v41 = vpack.c.bf16 %v7847_v49, %v7845_v1  ;;  %v3076_v54 = vmul.f32 %v3058_v38, %v2932_v59  ;;  %v6399_v1 = vld [vmem:[%s7004_s7 + $0x234] ss:$8 sps:$4 sm:$0xff]   ;;  %v6402_v49 = vld [vmem:[%s7004_s7 + $0x244] ss:$8 sps:$4 sm:$0xff]  }
 0xb0b   : > { %v6503_v37 = vpop.eup %6502 }
 0xb0c   : > { %v6505_v57 = vpop.eup %6504  ;;  %v3088_v58 = vpack.c.bf16 %v3076_v54, %v3070_v3  ;;  %v3063_v31 = vadd.f32 1.0, %v6503_v37 }
 0xb0d   : > { %3994 = vmatpush1.bf16.msra.mxu1 %v6668_v47  ;;  %v6507_v16 = vpop.eup %6506  ;;  %v3064_v18 = vadd.f32 1.0, %v6505_v57  ;;  %v6352_v47 = vld [vmem:[%s7004_s7 + $0x140] ss:$8 sps:$4 sm:$0xff]   ;;  %v6357_v57 = vld [vmem:[%s7004_s7 + $0x154] ss:$8 sps:$4 sm:$0xff]  }
 0xb0e   : > { %3995 = vmatprep.subr.bf16.mxu1 %v6876_v34  ;;  %v6509_v6 = vpop.eup %6508  ;;  %v3054_v32 = vadd.f32 1.0, %v6507_v16  ;;  %3611 = vmatprep.mubr.bf16.mxu0 %v3088_v58  ;;  %v3081_v43 = vmul.f32 %v3063_v31, %v2937_v36 }
 0xb0f   : > { %v3082_v12 = vmul.f32 %v3064_v18, %v2938_v9  ;;  %v3060_v60 = vadd.f32 1.0, %v6509_v6  ;;  %3612 = vmatmul.mubr.bf16.vlgmr.msra.gmra.mrb[44].mxu0 %v3087_v40 }
 0xb10   : > { %3631 = vmatpush1.bf16.msra.mxu0 %v6340_v0  ;;  %v3072_v14 = vmul.f32 %v3054_v32, %v2928_v52  ;;  %v3093_v27 = vpack.c.bf16 %v3081_v43, %v3081_v43  ;;  %v7904_v32 = vadd.f32 %v7799_v17, %v7751_v4 }
 0xb11   : > { %3996 = vmatpush1.bf16.msra.mxu1 %v6669_v56  ;;  %v3094_v55 = vpack.c.bf16 %v3082_v12, %v3082_v12  ;;  %v3078_v50 = vmul.f32 %v3060_v60, %v2934_v13  ;;  %3632 = vmatprep.subr.bf16.mxu0 %v6345_v8  ;;  %v6355_v8 = vld [vmem:[%s7004_s7 + $0x150] ss:$8 sps:$4 sm:$0xff]   ;;  %v6360_v60 = vld [vmem:[%s7004_s7 + $0x164] ss:$8 sps:$4 sm:$0xff]  }
 0xb13   : > { %3621 = vmatprep.mubr.bf16.mxu0 %v3094_v55  ;;  %v3090_v24 = vpack.c.bf16 %v3078_v50, %v3072_v14 }
 0xb14   : > { %4006 = vmatmul.mubr.bf16.vlgmr.msra.gmra.mrb[60].mxu1 %v7690_v62  ;;  %3633 = vmatpush1.bf16.msra.mxu0 %v6343_v15  ;;  %v2395_v62 = vrot.slane %v7734_v2, %v2394_v53 }
 0xb15   : > { %5828 = vmatprep.mubr.msk.bf16.mxu1 %vm881_vm2, %v7695_v39  ;;  %3634 = vmatprep.subr.bf16.mxu0 %v6348_v51  ;;  %v6349_v39 = vld [vmem:[%s7004_s7 + $0x130] ss:$8 sps:$4 sm:$0xff]   ;;  %v6358_v51 = vld [vmem:[%s7004_s7 + $0x160] ss:$8 sps:$4 sm:$0xff]  }
 0xb17   : > { %3622 = vmatmul.mubr.bf16.gmra.mrb[48].mxu0 %v3093_v27 }
 0xb18   : > { %3635 = vmatpush1.bf16.msra.mxu0 %v6346_v26  ;;  %3662 = vmatprep.mubr.bf16.mxu0 %v3090_v24  ;;  %v2958_v26 = vmul.f32 0.044715, %v7904_v32 }
 0xb19   : > { %3636 = vmatprep.subr.bf16.mxu0 %v6351_v29  ;;  %v6363_v29 = vld [vmem:[%s7004_s7 + $0x174] ss:$8 sps:$4 sm:$0xff]  }
 0xb1b   : > { %v2908_v33 = vpop.f32.mrb[36].mxu1 }
 0xb1c   : > { %v7879_v35 = vadd.f32 %v2908_v33, %v2395_v62  ;;  %4014 = vmatmul.mubr.bf16.gmra.mrb[64].mxu1 %v7703_v20  ;;  %v2910_v61 = vpop.f32.mrb[37].mxu1  ;;  %3637 = vmatpush1.bf16.msra.mxu0 %v6349_v39  ;;  %v2976_v39 = vmul.f32 %v2958_v26, %v7904_v32  ;;  %v6366_v33 = vld [vmem:[%s7004_s7 + $0x184] ss:$8 sps:$4 sm:$0xff]   ;;  %v6381_v26 = vld [vmem:[%s7004_s7 + $0x1d4] ss:$8 sps:$4 sm:$0xff]  }
 0xb1d   : > { %v7883_v40 = vadd.f32 %v2910_v61, %v2399_v30  ;;  %v2912_v7 = vpop.f32.mrb[38].mxu1  ;;  %3638 = vmatprep.subr.bf16.mxu0 %v6354_v10  ;;  %v2957_v61 = vmul.f32 0.044715, %v7805_v5  ;;  %v6364_v10 = vld [vmem:[%s7004_s7 + $0x180] ss:$8 sps:$4 sm:$0xff]  }
 0xb1e   : > { %v2947_v59 = vmul.f32 0.044715, %v7879_v35  ;;  %v7886_v2 = vadd.f32 %v2912_v7, %v2395_v62  ;;  %v2914_v38 = vpop.f32.mrb[39].mxu1  ;;  %v6369_v7 = vld [vmem:[%s7004_s7 + $0x194] ss:$8 sps:$4 sm:$0xff]  }
 0xb1f   : > { %v2948_v37 = vmul.f32 0.044715, %v7883_v40  ;;  %v7890_v3 = vadd.f32 %v2914_v38, %v2399_v30 }
 0xb20   : > { %v2965_v54 = vmul.f32 %v2947_v59, %v7879_v35  ;;  %v2953_v20 = vmul.f32 0.044715, %v7886_v2  ;;  %3639 = vmatpush1.bf16.msra.mxu0 %v6352_v47  ;;  %v2994_v59 = vmul.f32 %v2976_v39, %v7904_v32  ;;  %v2975_v47 = vmul.f32 %v2957_v61, %v7805_v5  ;;  %v6387_v39 = vld [vmem:[%s7004_s7 + $0x1f4] ss:$8 sps:$4 sm:$0xff]   ;;  %v6385_v61 = vld [vmem:[%s7004_s7 + $0x1f0] ss:$8 sps:$4 sm:$0xff]  }
 0xb21   : > { %v2966_v16 = vmul.f32 %v2948_v37, %v7883_v40  ;;  %v2954_v58 = vmul.f32 0.044715, %v7890_v3  ;;  %3640 = vmatprep.subr.bf16.mxu0 %v6357_v57 }
 0xb22   : > { %v2983_v0 = vmul.f32 %v2965_v54, %v7879_v35  ;;  %v2971_v9 = vmul.f32 %v2953_v20, %v7886_v2  ;;  %v6367_v54 = vld [vmem:[%s7004_s7 + $0x190] ss:$8 sps:$4 sm:$0xff]  }
 0xb23   : > { %v2984_v18 = vmul.f32 %v2966_v16, %v7883_v40  ;;  %v2972_v6 = vmul.f32 %v2954_v58, %v7890_v3  ;;  %v2918_v31 = vpop.f32.mrb[40].mxu1  ;;  %v6372_v16 = vld [vmem:[%s7004_s7 + $0x1a4] ss:$8 sps:$4 sm:$0xff]   ;;  %v3012_v58 = vadd.f32 %v2994_v59, %v7904_v32 }
 0xb24   : > { %v3001_v56 = vadd.f32 %v2983_v0, %v7879_v35  ;;  %v2989_v12 = vmul.f32 %v2971_v9, %v7886_v2  ;;  %v7908_v52 = vadd.f32 %v2918_v31, %v2395_v62  ;;  %v2920_v13 = vpop.f32.mrb[41].mxu1  ;;  %3641 = vmatpush1.bf16.msra.mxu0 %v6355_v8  ;;  %v2930_v31 = vmul.f32 0.5, %v7883_v40 }
 0xb25   : > { %v2990_v36 = vmul.f32 %v2972_v6, %v7890_v3  ;;  %v7912_v15 = vadd.f32 %v2920_v13, %v2399_v30  ;;  %v2922_v55 = vpop.f32.mrb[42].mxu1  ;;  %v3002_v14 = vadd.f32 %v2984_v18, %v7883_v40  ;;  %3642 = vmatprep.subr.bf16.mxu0 %v6360_v60  ;;  %v6361_v30 = vld [vmem:[%s7004_s7 + $0x170] ss:$8 sps:$4 sm:$0xff]   ;;  %v2929_v18 = vmul.f32 0.5, %v7879_v35  ;;  %v6370_v13 = vld [vmem:[%s7004_s7 + $0x1a0] ss:$8 sps:$4 sm:$0xff]  }
 0xb26   : > { %v3019_v50 = vmul.f32 0.7978846, %v3001_v56  ;;  %v3007_v4 = vadd.f32 %v2989_v12, %v7886_v2  ;;  %v2923_v17 = vpop.f32.mrb[43].mxu1  ;;  %v2935_v6 = vmul.f32 0.5, %v7886_v2  ;;  %v2936_v56 = vmul.f32 0.5, %v7890_v3 }
 0xb27   : > { %v3008_v43 = vadd.f32 %v2990_v36, %v7890_v3  ;;  %v3020_v24 = vmul.f32 0.7978846, %v3002_v14  ;;  %v2993_v60 = vmul.f32 %v2975_v47, %v7805_v5  ;;  %v6375_v35 = vld [vmem:[%s7004_s7 + $0x1b4] ss:$8 sps:$4 sm:$0xff]   ;;  %v3030_v2 = vmul.f32 0.7978846, %v3012_v58 }
 0xb28   : > { %6510 = vtanh.f32 %v3019_v50  ;;  %v3025_v27 = vmul.f32 0.7978846, %v3007_v4  ;;  %3643 = vmatpush1.bf16.msra.mxu0 %v6358_v51  ;;  %v6373_v4 = vld [vmem:[%s7004_s7 + $0x1b0] ss:$8 sps:$4 sm:$0xff]   ;;  %v6378_v51 = vld [vmem:[%s7004_s7 + $0x1c4] ss:$8 sps:$4 sm:$0xff]  }
 0xb29   : > { %v3026_v62 = vmul.f32 0.7978846, %v3008_v43  ;;  %6512 = vtanh.f32 %v3020_v24  ;;  %3644 = vmatprep.subr.bf16.mxu0 %v6363_v29  ;;  %v3011_v17 = vadd.f32 %v2993_v60, %v7805_v5  ;;  %v6376_v43 = vld [vmem:[%s7004_s7 + $0x1c0] ss:$8 sps:$4 sm:$0xff]   ;;  %v6384_v29 = vld [vmem:[%s7004_s7 + $0x1e4] ss:$8 sps:$4 sm:$0xff]  }
 0xb2a   : > { %6514 = vtanh.f32 %v3025_v27  ;;  %v6379_v27 = vld [vmem:[%s7004_s7 + $0x1d0] ss:$8 sps:$4 sm:$0xff]   ;;  %v6393_v47 = vld [vmem:[%s7004_s7 + $0x214] ss:$8 sps:$4 sm:$0xff]   ;;  %v6396_v58 = vld [vmem:[%s7004_s7 + $0x224] ss:$8 sps:$4 sm:$0xff]  }
 0xb2b   : > { %6516 = vtanh.f32 %v3026_v62  ;;  %v3029_v24 = vmul.f32 0.7978846, %v3011_v17  ;;  %v6415_v17 = vld [vmem:[%s7004_s7 + $0x290] ss:$8 sps:$4 sm:$0xff]  }
 0xb2c   : > { %3645 = vmatpush1.bf16.msra.mxu0 %v6361_v30  ;;  %6518 = vtanh.f32 %v3030_v2  ;;  %v6382_v30 = vld [vmem:[%s7004_s7 + $0x1e0] ss:$8 sps:$4 sm:$0xff]   ;;  %v2959_v2 = vmul.f32 0.044715, %v7908_v52 }
 0xb2d   : > { %3646 = vmatprep.subr.bf16.mxu0 %v6366_v33  ;;  %6520 = vtanh.f32 %v3029_v24  ;;  %v6418_v24 = vld [vmem:[%s7004_s7 + $0x2a0] ss:$8 sps:$4 sm:$0xff]  }
 0xb30   : > { %3647 = vmatpush1.bf16.msra.mxu0 %v6364_v10  ;;  %v2940_v10 = vmul.f32 0.5, %v7904_v32  ;;  %v2939_v32 = vmul.f32 0.5, %v7805_v5  ;;  %v6397_v5 = vld [vmem:[%s7004_s7 + $0x230] ss:$8 sps:$4 sm:$0xff]  }
 0xb31   : > { %3648 = vmatprep.subr.bf16.mxu0 %v6369_v7  ;;  %v6390_v7 = vld [vmem:[%s7004_s7 + $0x204] ss:$8 sps:$4 sm:$0xff]  }
 0xb32   : > { %v6511_v38 = vpop.eup %6510 }
 0xb33   : > { %v6513_v37 = vpop.eup %6512  ;;  %v3055_v20 = vadd.f32 1.0, %v6511_v38 }
 0xb34   : > { %v6515_v57 = vpop.eup %6514  ;;  %v3056_v0 = vadd.f32 1.0, %v6513_v37  ;;  %3649 = vmatpush1.bf16.msra.mxu0 %v6367_v54  ;;  %v6388_v37 = vld [vmem:[%s7004_s7 + $0x200] ss:$8 sps:$4 sm:$0xff]  }
 0xb35   : > { %v6517_v9 = vpop.eup %6516  ;;  %v3061_v8 = vadd.f32 1.0, %v6515_v57  ;;  %v7937_v36 = vmul.f32 %v3055_v20, %v2929_v18  ;;  %3650 = vmatprep.subr.bf16.mxu0 %v6372_v16  ;;  %v6391_v57 = vld [vmem:[%s7004_s7 + $0x210] ss:$8 sps:$4 sm:$0xff]   ;;  %v6405_v18 = vld [vmem:[%s7004_s7 + $0x254] ss:$8 sps:$4 sm:$0xff]  }
 0xb36   : > { %v3062_v12 = vadd.f32 1.0, %v6517_v9  ;;  %v3074_v14 = vmul.f32 %v3056_v0, %v2930_v31  ;;  %v6519_v62 = vpop.eup %6518  ;;  %v6394_v0 = vld [vmem:[%s7004_s7 + $0x220] ss:$8 sps:$4 sm:$0xff]  }
 0xb37   : > { %v7939_v55 = vmul.f32 %v3061_v8, %v2935_v6  ;;  %v3066_v33 = vadd.f32 1.0, %v6519_v62  ;;  %v6521_v59 = vpop.eup %6520  ;;  %v6403_v6 = vld [vmem:[%s7004_s7 + $0x250] ss:$8 sps:$4 sm:$0xff]   ;;  %v6408_v8 = vld [vmem:[%s7004_s7 + $0x264] ss:$8 sps:$4 sm:$0xff]  }
 0xb38   : > { %v3080_v40 = vmul.f32 %v3062_v12, %v2936_v56  ;;  %3651 = vmatpush1.bf16.msra.mxu0 %v6370_v13  ;;  %v3065_v54 = vadd.f32 1.0, %v6521_v59  ;;  %v6406_v31 = vld [vmem:[%s7004_s7 + $0x260] ss:$8 sps:$4 sm:$0xff]   ;;  %v2960_v56 = vmul.f32 0.044715, %v7912_v15 }
 0xb39   : > { %v3091_v3 = vpack.c.bf16 %v7939_v55, %v7937_v36  ;;  %3652 = vmatprep.subr.bf16.mxu0 %v6375_v35  ;;  %v3084_v38 = vmul.f32 %v3066_v33, %v2940_v10  ;;  %v6411_v12 = vld [vmem:[%s7004_s7 + $0x274] ss:$8 sps:$4 sm:$0xff]   ;;  %v6409_v13 = vld [vmem:[%s7004_s7 + $0x270] ss:$8 sps:$4 sm:$0xff]   ;;  %v6414_v35 = vld [vmem:[%s7004_s7 + $0x284] ss:$8 sps:$4 sm:$0xff]  }
 0xb3a   : > { %v3092_v50 = vpack.c.bf16 %v3080_v40, %v3074_v14  ;;  %v3083_v16 = vmul.f32 %v3065_v54, %v2939_v32  ;;  %v2978_v60 = vmul.f32 %v2960_v56, %v7912_v15  ;;  %v6412_v14 = vld [vmem:[%s7004_s7 + $0x280] ss:$8 sps:$4 sm:$0xff]   ;;  %v6417_v40 = vld [vmem:[%s7004_s7 + $0x294] ss:$8 sps:$4 sm:$0xff]   ;;  %v6421_v62 = vld [vmem:[%s7004_s7 + $0x2b0] ss:$8 sps:$4 sm:$0xff]  }
 0xb3b   : > { %v3096_v20 = vpack.c.bf16 %v3084_v38, %v3084_v38  ;;  %v6424_v33 = vld [vmem:[%s7004_s7 + $0x2c0] ss:$8 sps:$4 sm:$0xff]   ;;  %v6429_v10 = vld [vmem:[%s7004_s7 + $0x2d4] ss:$8 sps:$4 sm:$0xff]   ;;  %v6432_v59 = vld [vmem:[%s7004_s7 + $0x2e4] ss:$8 sps:$4 sm:$0xff]  }
 0xb3c   : > { %3653 = vmatpush1.bf16.msra.mxu0 %v6373_v4  ;;  %v3095_v9 = vpack.c.bf16 %v3083_v16, %v3083_v16  ;;  %v2977_v4 = vmul.f32 %v2959_v2, %v7908_v52 }
 0xb3d   : > { %3654 = vmatprep.subr.bf16.mxu0 %v6378_v51  ;;  %v6420_v51 = vld [vmem:[%s7004_s7 + $0x2a4] ss:$8 sps:$4 sm:$0xff]  }
 0xb40   : > { %3655 = vmatpush1.bf16.msra.mxu0 %v6376_v43 }
 0xb41   : > { %3656 = vmatprep.subr.bf16.mxu0 %v6381_v26  ;;  %v2995_v26 = vmul.f32 %v2977_v4, %v7908_v52 }
 0xb44   : > { %3657 = vmatpush1.bf16.msra.mxu0 %v6379_v27  ;;  %v6423_v27 = vld [vmem:[%s7004_s7 + $0x2b4] ss:$8 sps:$4 sm:$0xff]  }
 0xb45   : > { %3658 = vmatprep.subr.bf16.mxu0 %v6384_v29 }
 0xb48   : > { %3659 = vmatpush1.bf16.msra.mxu0 %v6382_v30  ;;  %v3013_v30 = vadd.f32 %v2995_v26, %v7908_v52 }
 0xb49   : > { %3660 = vmatprep.subr.bf16.mxu0 %v6387_v39  ;;  %v6426_v39 = vld [vmem:[%s7004_s7 + $0x2c4] ss:$8 sps:$4 sm:$0xff]  }
 0xb4c   : > { %3661 = vmatpush1.bf16.msra.mxu0 %v6385_v61  ;;  %v3031_v61 = vmul.f32 0.7978846, %v3013_v30 }
 0xb4d   : > { %3681 = vmatprep.subr.bf16.mxu0 %v6390_v7  ;;  %v6427_v7 = vld [vmem:[%s7004_s7 + $0x2d0] ss:$8 sps:$4 sm:$0xff]  }
 0xb4f   : > { %3663 = vmatmul.mubr.bf16.vlgmr.msra.gmra.mrb[44].mxu0 %v3089_v41  ;;  %v6400_v41 = vld [vmem:[%s7004_s7 + $0x240] ss:$8 sps:$4 sm:$0xff]  }
 0xb50   : > { %3672 = vmatprep.mubr.bf16.mxu0 %v3096_v20  ;;  %3682 = vmatpush1.bf16.msra.mxu0 %v6388_v37  ;;  %v6430_v37 = vld [vmem:[%s7004_s7 + $0x2e0] ss:$8 sps:$4 sm:$0xff]   ;;  %v6435_v20 = vld [vmem:[%s7004_s7 + $0x2f4] ss:$8 sps:$4 sm:$0xff]  }
 0xb51   : > { %3683 = vmatprep.subr.bf16.mxu0 %v6393_v47 }
 0xb54   : > { %3684 = vmatpush1.bf16.msra.mxu0 %v6391_v57 }
 0xb55   : > { %3685 = vmatprep.subr.bf16.mxu0 %v6396_v58 }
 0xb57   : > { %3673 = vmatmul.mubr.bf16.gmra.mrb[52].mxu0 %v3095_v9 }
 0xb58   : > { %3686 = vmatpush1.bf16.msra.mxu0 %v6394_v0  ;;  %3713 = vmatprep.mubr.bf16.mxu0 %v3092_v50  ;;  %v2996_v50 = vmul.f32 %v2978_v60, %v7912_v15  ;;  %v6433_v0 = vld [vmem:[%s7004_s7 + $0x2f0] ss:$8 sps:$4 sm:$0xff]  }
 0xb59   : > { %3687 = vmatprep.subr.bf16.mxu0 %v6399_v1  ;;  %v2942_v1 = vmul.f32 0.5, %v7912_v15 }
 0xb5a   : > { %v3014_v43 = vadd.f32 %v2996_v50, %v7912_v15 }
 0xb5c   : > { %3688 = vmatpush1.bf16.msra.mxu0 %v6397_v5  ;;  %v3032_v29 = vmul.f32 0.7978846, %v3014_v43 }
 0xb5d   : > { %3689 = vmatprep.subr.bf16.mxu0 %v6402_v49 }
 0xb5e   : > { %6522 = vtanh.f32 %v3032_v29 }
 0xb5f   : > { %6524 = vtanh.f32 %v3031_v61 }
 0xb60   : > { %3690 = vmatpush1.bf16.msra.mxu0 %v6400_v41 }
 0xb61   : > { %3691 = vmatprep.subr.bf16.mxu0 %v6405_v18 }
 0xb64   : > { %3692 = vmatpush1.bf16.msra.mxu0 %v6403_v6 }
 0xb65   : > { %3693 = vmatprep.subr.bf16.mxu0 %v6408_v8 }
 0xb68   : > { %3694 = vmatpush1.bf16.msra.mxu0 %v6406_v31  ;;  %v6523_v38 = vpop.eup %6522 }
 0xb69   : > { %3695 = vmatprep.subr.bf16.mxu0 %v6411_v12  ;;  %v3068_v57 = vadd.f32 1.0, %v6523_v38  ;;  %v6525_v5 = vpop.eup %6524  ;;  %v2941_v12 = vmul.f32 0.5, %v7908_v52 }
 0xb6a   : > { %v3067_v6 = vadd.f32 1.0, %v6525_v5 }
 0xb6b   : > { %v3086_v49 = vmul.f32 %v3068_v57, %v2942_v1 }
 0xb6c   : > { %3696 = vmatpush1.bf16.msra.mxu0 %v6409_v13  ;;  %v3085_v13 = vmul.f32 %v3067_v6, %v2941_v12 }
 0xb6d   : > { %3697 = vmatprep.subr.bf16.mxu0 %v6414_v35  ;;  %v3098_v8 = vpack.c.bf16 %v3086_v49, %v3086_v49 }
 0xb6e   : > { %v3097_v60 = vpack.c.bf16 %v3085_v13, %v3085_v13 }
 0xb70   : > { %3698 = vmatpush1.bf16.msra.mxu0 %v6412_v14 }
 0xb71   : > { %3699 = vmatprep.subr.bf16.mxu0 %v6417_v40 }
 0xb74   : > { %3700 = vmatpush1.bf16.msra.mxu0 %v6415_v17 }
 0xb75   : > { %3701 = vmatprep.subr.bf16.mxu0 %v6420_v51 }
 0xb78   : > { %3702 = vmatpush1.bf16.msra.mxu0 %v6418_v24 }
 0xb79   : > { %3703 = vmatprep.subr.bf16.mxu0 %v6423_v27 }
 0xb7c   : > { %3704 = vmatpush1.bf16.msra.mxu0 %v6421_v62 }
 0xb7d   : > { %3705 = vmatprep.subr.bf16.mxu0 %v6426_v39 }
 0xb80   : > { %3706 = vmatpush1.bf16.msra.mxu0 %v6424_v33 }
 0xb81   : > { %3707 = vmatprep.subr.bf16.mxu0 %v6429_v10 }
 0xb84   : > { %3708 = vmatpush1.bf16.msra.mxu0 %v6427_v7 }
 0xb85   : > { %3709 = vmatprep.subr.bf16.mxu0 %v6432_v59 }
 0xb87   : > { %v3905_v47 = vpop.f32.mrb[44].mxu1 }
 0xb88   : > { %v3907_v54 = vpop.f32.mrb[45].mxu1  ;;  %3710 = vmatpush1.bf16.msra.mxu0 %v6430_v37 }
 0xb89   : > { %v3909_v32 = vpop.f32.mrb[46].mxu1  ;;  %3711 = vmatprep.subr.bf16.mxu0 %v6435_v20 }
 0xb8a   : > { %v4021_v16 = vpack.c.bf16 %v3909_v32, %v3905_v47  ;;  %v3911_v58 = vpop.f32.mrb[47].mxu1 }
 0xb8b   : > { %v7999_v9 = vpack.c.bf16 %v3911_v58, %v3907_v54 }
 0xb8c   : > { %5961 = vmatprep.mubr.msk.bf16.mxu1 %vm881_vm2, %v4021_v16  ;;  %3712 = vmatpush1.bf16.msra.mxu0 %v6433_v0 }
 0xb8d   : > { %4029 = vrot.lane.b32.xlu0 %v7999_v9, %s6877_s23 }
 0xb8f   : > { %v3915_v41 = vpop.f32.mrb[48].mxu1  ;;  %3714 = vmatmul.mubr.bf16.vlgmr.msra.gmra.mrb[44].mxu0 %v3091_v3 }
 0xb90   : > { %v3917_v18 = vpop.f32.mrb[49].mxu1  ;;  %3723 = vmatprep.mubr.bf16.mxu0 %v3098_v8  ;;  %v4022_v35 = vpack.c.bf16 %v3915_v41, %v3915_v41 }
 0xb91   : > { %v8005_v31 = vpack.c.bf16 %v3917_v18, %v3917_v18  ;;  %v3919_v56 = vpop.f32.mrb[50].mxu1 }
 0xb92   : > { %v3920_v15 = vpop.f32.mrb[51].mxu1 }
 0xb93   : > { %4031 = vrot.lane.b32.xlu1 %v8005_v31, %s6877_s23 }
 0xb97   : > { %4194 = vrot.lane.b32.xlu1 %v4021_v16, %s6877_s23  ;;  %3724 = vmatmul.mubr.bf16.gmra.mrb[56].mxu0 %v3097_v60  ;;  %v6670_v60 = vld [vmem:[%s6994_s6 + $0x4] ss:$24 sps:$4 sm:$0xff]  }
 0xb9b   : > { %4196 = vrot.lane.b32.xlu1 %v4022_v35, %s6877_s23 }
 0xbb7   : > { %v3956_v2 = vpop.f32.mrb[52].mxu1 }
 0xbb8   : > { %v3958_v14 = vpop.f32.mrb[53].mxu1 }
 0xbb9   : > { %v3960_v40 = vpop.f32.mrb[54].mxu1 }
 0xbba   : > { %v4190_v36 = vpack.c.bf16 %v3960_v40, %v3956_v2  ;;  %v3962_v55 = vpop.f32.mrb[55].mxu1 }
 0xbbb   : > { %v8015_v3 = vpack.c.bf16 %v3962_v55, %v3958_v14 }
 0xbbc   : > { %4480 = vrot.lane.b32.xlu0 %v4190_v36, %s6877_s23  ;;  %6045 = vmatprep.subr.msk.bf16.mxu0 %vm881_vm2, %v4190_v36  ;;  %v4205_v52 = vsel %vm881_vm2, %v4190_v36, 0 }
 0xbbd   : > { %5974 = vmatpush3.bf16.xpose.msra.mxu0 %v4205_v52 }
 0xbbf   : > { %v3966_v50 = vpop.f32.mrb[56].mxu1 }
 0xbc0   : > { %v4191_v4 = vpack.c.bf16 %v3966_v50, %v3966_v50  ;;  %v3968_v17 = vpop.f32.mrb[57].mxu1 }
 0xbc1   : > { %v3970_v51 = vpop.f32.mrb[58].mxu1  ;;  %v8029_v16 = vpack.c.bf16 %v3968_v17, %v3968_v17 }
 0xbc2   : > { %4482 = vrot.lane.b32.xlu1 %v4191_v4, %s6877_s23  ;;  %v3971_v43 = vpop.f32.mrb[59].mxu1  ;;  %6046 = vmatprep.subr.msk.bf16.mxu0 %vm881_vm2, %v4191_v4  ;;  %v4208_v24 = vsel %vm881_vm2, %v4191_v4, 0 }
 0xbc3   : > { %v4138_v0 = vand.u32 %v8029_v16, %v7283_v11 }
 0xbc5   : > { %5976 = vmatpush3.bf16.xpose.msra.mxu0 %v4208_v24 }
 0xbe7   : > { %v4007_v26 = vpop.f32.mrb[60].mxu1 }
 0xbe8   : > { %v4009_v27 = vpop.f32.mrb[61].mxu1 }
 0xbe9   : > { %v4010_v29 = vpop.f32.mrb[62].mxu1 }
 0xbea   : > { %v4476_v62 = vpack.c.bf16 %v4010_v29, %v4007_v26  ;;  %v4012_v30 = vpop.f32.mrb[63].mxu1  ;;  %v3623_v39 = vpop.f32.mrb[48].mxu0 }
 0xbeb   : > { %v3625_v33 = vpop.f32.mrb[49].mxu0 }
 0xbec   : > { %v3627_v61 = vpop.f32.mrb[50].mxu0 }
 0xbed   : > { %v3628_v7 = vpop.f32.mrb[51].mxu0 }
 0xbef   : > { %v4015_v10 = vpop.f32.mrb[64].mxu1 }
 0xbf0   : > { %v4017_v59 = vpop.f32.mrb[65].mxu1  ;;  %v4477_v12 = vpack.c.bf16 %v4015_v10, %v4015_v10 }
 0xbf1   : > { %v4018_v38 = vpop.f32.mrb[66].mxu1 }
 0xbf2   : > { %v4019_v37 = vpop.f32.mrb[67].mxu1  ;;  %v4589_v13 = vand.u32 %v4477_v12, %v7283_v11 }
 0xbff   : > { %v4030_v47 = vpop.permute.xlu0 %4029 }
 0xc00   : > { %v4040_v54 = vsel %vm881_vm2, %v4030_v47, 0  ;;  %6043 = vmatprep.subr.msk.bf16.mxu1 %vm881_vm2, %v4030_v47 }
 0xc01   : > { %5958 = vmatpush3.bf16.xpose.msra.mxu1 %v4040_v54 }
 0xc05   : > { %v4032_v20 = vpop.permute.xlu1 %4031 }
 0xc06   : > { %6044 = vmatprep.subr.msk.bf16.mxu1 %vm881_vm2, %v4032_v20  ;;  %v4043_v32 = vsel %vm881_vm2, %v4032_v20, 0 }
 0xc09   : > { %5960 = vmatpush3.bf16.xpose.msra.mxu1 %v4043_v32  ;;  %v4195_v57 = vpop.permute.xlu1 %4194 }
 0xc0a   : > { %5965 = vmatprep.subr.bf16.mxu1 %v8015_v3  ;;  %5977 = vmatprep.mubr.msk.bf16.mxu0 %vm881_vm2, %v4195_v57 }
 0xc0d   : > { %v4197_v58 = vpop.permute.xlu1 %4196 }
 0xc0e   : > { %5978 = vmatmul.mubr.msk.bf16.vlgmr.msra.gmra.mrb[60].mxu0 %vm881_vm2, %v4197_v58 }
 0xc0f   : > { %5993 = vmatprep.mubr.msk.bf16.mxu0 %vm881_vm2, %v7999_v9 }
 0xc10   : > { %5962 = vmatmul.mubr.msk.bf16.vlgmr.msra.gmra.mrb[68].mxu1 %vm881_vm2, %v4022_v35  ;;  %v3738_v35 = vld [vmem:[%s6989_s19] sm:$0x3] }
 0xc11   : > { %5966 = vmatpush3.bf16.msra.mxu1 %v8015_v3  ;;  %v3743_v2 = vrot.slane %v3738_v35, %v7202_v48  ;;  %v3747_v40 = vrot.slane %v3738_v35, %v7198_v46 }
 0xc12   : > { %5967 = vmatprep.subr.bf16.mxu1 %v4138_v0 }
 0xc15   : > { %5968 = vmatpush3.bf16.msra.mxu1 %v4138_v0 }
 0xc2a   : > { %v3674_v1 = vpop.f32.mrb[52].mxu0 }
 0xc2b   : > { %v3675_v5 = vadd.f32 %v3674_v1, %v3623_v39  ;;  %v3676_v49 = vpop.f32.mrb[53].mxu0 }
 0xc2c   : > { %v3677_v18 = vadd.f32 %v3676_v49, %v3625_v33  ;;  %v3678_v6 = vpop.f32.mrb[54].mxu0 }
 0xc2d   : > { %v3679_v9 = vpop.f32.mrb[55].mxu0 }
 0xc2e   : > { %v4481_v41 = vpop.permute.xlu0 %4480 }
 0xc2f   : > { %v4491_v8 = vsel %vm881_vm2, %v4481_v41, 0  ;;  %6047 = vmatprep.subr.msk.bf16.mxu0 %vm881_vm2, %v4481_v41 }
 0xc30   : > { %5990 = vmatpush3.bf16.xpose.msra.mxu0 %v4491_v8 }
 0xc34   : > { %v4483_v56 = vpop.permute.xlu1 %4482 }
 0xc35   : > { %6048 = vmatprep.subr.msk.bf16.mxu0 %vm881_vm2, %v4483_v56  ;;  %v4494_v15 = vsel %vm881_vm2, %v4483_v56, 0 }
 0xc38   : > { %5992 = vmatpush3.bf16.xpose.msra.mxu0 %v4494_v15 }
 0xc39   : > { %5997 = vmatprep.subr.bf16.mxu0 %v4476_v62 }
 0xc3f   : > { %5994 = vmatmul.mubr.msk.bf16.vlgmr.msra.gmra.mrb[64].mxu0 %vm881_vm2, %v8005_v31 }
 0xc40   : > { %5998 = vmatpush3.bf16.msra.mxu0 %v4476_v62 }
 0xc41   : > { %5999 = vmatprep.subr.bf16.mxu0 %v4589_v13 }
 0xc44   : > { %6000 = vmatpush3.bf16.msra.mxu0 %v4589_v13 }
 0xc45   : > { %4862 = vmatprep.subr.bf16.mxu0 %v6670_v60 }
 0xc62   : > { %v3715_v14 = vpop.f32.mrb[44].mxu0 }
 0xc63   : > { %v3732_v36 = vadd.f32 %v3715_v14, %v7389_v22  ;;  %v3717_v55 = vpop.f32.mrb[45].mxu0 }
 0xc64   : > { %v3733_v52 = vadd.f32 %v3717_v55, %v7384_v19  ;;  %v3719_v50 = vpop.f32.mrb[46].mxu0 }
 0xc65   : > { %v3750_v4 = vadd.f32 %v3743_v2, %v3732_v36  ;;  %v3734_v31 = vadd.f32 %v3719_v50, %v7395_v25  ;;  %v3721_v17 = vpop.f32.mrb[47].mxu0 }
 0xc66   : > { %v3751_v51 = vadd.f32 %v3747_v40, %v3733_v52  ;;  %v3735_v43 = vadd.f32 %v3721_v17, %v7391_v23 }
 0xc67   : > { %3756 = vst [vmem:[%s8601_s12] sm:$0xff] %v3750_v4  ;;  %v3752_v24 = vadd.f32 %v3743_v2, %v3734_v31 }
 0xc68   : > { %3757 = vst.msk [vmem:[%s8601_s12 + $0x8] sm:$0xff] %vm881_vm2, %v3751_v51  ;;  %v3753_v22 = vadd.f32 %v3747_v40, %v3735_v43 }
 0xc69   : > { %3758 = vst [vmem:[%s8601_s12 + $0x10] sm:$0xff] %v3752_v24 }
 0xc6a   : > { %3759 = vst.msk [vmem:[%s8601_s12 + $0x18] sm:$0xff] %vm881_vm2, %v3753_v22  ;;  %v3725_v19 = vpop.f32.mrb[56].mxu0 }
 0xc6b   : > { %v3726_v23 = vadd.f32 %v3725_v19, %v3675_v5  ;;  %v3727_v25 = vpop.f32.mrb[57].mxu0 }
 0xc6c   : > { %v3728_v26 = vadd.f32 %v3727_v25, %v3677_v18  ;;  %v3729_v27 = vpop.f32.mrb[58].mxu0 }
 0xc6d   : > { %v3736_v29 = vadd.f32 %v3726_v23, %v7407_v42  ;;  %v3730_v62 = vpop.f32.mrb[59].mxu0 }
 0xc6e   : > { %v3737_v30 = vadd.f32 %v3728_v26, %v7409_v44 }
 0xc6f   : > { %v3754_v39 = vadd.f32 %v3743_v2, %v3736_v29 }
 0xc70   : > { %v3755_v33 = vadd.f32 %v3747_v40, %v3737_v30 }
 0xc71   : > { %3760 = vst [vmem:[%s8601_s12 + $0x20] sm:$0x1] %v3754_v39 }
 0xc72   : > { %3761 = vst.msk [vmem:[%s8601_s12 + $0x28] sm:$0x1] %vm892_vm4, %v3755_v33 }
 0xce1   : > { %v5979_v61 = vpop.f32.mrb[60].mxu0 }
 0xce2   : > { %v4244_v10 = vpop.f32.mrb[61].mxu0  ;;  %v4260_v57 = vmul.f32 0.125, %v5979_v61 }
 0xce3   : > { %v5963_v7 = vpop.f32.mrb[68].mxu1  ;;  %v5980_v59 = vpop.f32.mrb[62].mxu0  ;;  %v4258_v0 = vmul.f32 0.125, %v4244_v10 }
 0xce4   : > { %v4079_v38 = vpop.f32.mrb[69].mxu1  ;;  %v4247_v42 = vpop.f32.mrb[63].mxu0  ;;  %v4095_v54 = vmul.f32 0.125, %v5963_v7  ;;  %v4267_v5 = vsel %vm1529_vm6, %v4260_v57, -inf }
 0xce5   : > { %v4093_v37 = vmul.f32 0.125, %v4079_v38  ;;  %v5964_v47 = vpop.f32.mrb[70].mxu1  ;;  %v4259_v49 = vmul.f32 0.125, %v4247_v42  ;;  %v4261_v41 = vsel %vm1522_vm5, %v4258_v0, -inf }
 0xce6   : > { %v4082_v44 = vpop.f32.mrb[71].mxu1  ;;  %v4102_v1 = vsel %vm1529_vm6, %v4095_v54, -inf }
 0xce7   : > { %v4094_v20 = vmul.f32 0.125, %v4082_v44  ;;  %v4096_v32 = vsel %vm1522_vm5, %v4093_v37, -inf  ;;  %v4264_v18 = vsel %vm1522_vm5, %v4259_v49, -inf }
 0xce8   : > { %4097 = vmax.xlane.f32.xlu0 %v4096_v32 }
 0xce9   : > { %v4099_v58 = vsel %vm1522_vm5, %v4094_v20, -inf }
 0xcea   : > { %4100 = vmax.xlane.f32.xlu1 %v4099_v58 }
 0xcec   : > { %4103 = vmax.xlane.f32.xlu0 %v4102_v1 }
 0xcee   : > { %4268 = vmax.xlane.f32.xlu1 %v4267_v5 }
 0xcf0   : > { %4262 = vmax.xlane.f32.xlu0 %v4261_v41 }
 0xcf4   : > { %4265 = vmax.xlane.f32.xlu0 %v4264_v18 }
 0xd12   : > { %v5995_v6 = vpop.f32.mrb[64].mxu0 }
 0xd13   : > { %v4530_v8 = vpop.f32.mrb[65].mxu0  ;;  %v4546_v12 = vmul.f32 0.125, %v5995_v6 }
 0xd14   : > { %v4544_v9 = vmul.f32 0.125, %v4530_v8  ;;  %v5996_v56 = vpop.f32.mrb[66].mxu0 }
 0xd15   : > { %v4533_v15 = vpop.f32.mrb[67].mxu0  ;;  %v4553_v2 = vsel %vm1529_vm6, %v4546_v12, -inf }
 0xd16   : > { %v4545_v13 = vmul.f32 0.125, %v4533_v15  ;;  %v4547_v60 = vsel %vm1522_vm5, %v4544_v9, -inf }
 0xd17   : > { %4548 = vmax.xlane.f32.xlu0 %v4547_v60 }
 0xd18   : > { %v4550_v35 = vsel %vm1522_vm5, %v4545_v13, -inf }
 0xd19   : > { %4551 = vmax.xlane.f32.xlu1 %v4550_v35 }
 0xd1b   : > { %4554 = vmax.xlane.f32.xlu0 %v4553_v2 }
 0xd75   : > { %v4098_v14 = vpop.xlane.xlu0 %4097 }
 0xd76   : > { %v4105_v23 = vsub.f32 %v4093_v37, %v4098_v14 }
 0xd77   : > { %v4101_v40 = vpop.xlane.xlu1 %4100 }
 0xd78   : > { %v4106_v50 = vsub.f32 %v4094_v20, %v4101_v40  ;;  %v4108_v27 = vmul.f32 1.442695, %v4105_v23 }
 0xd79   : > { %v4104_v36 = vpop.xlane.xlu0 %4103 }
 0xd7a   : > { %v4107_v51 = vsub.f32 %v4095_v54, %v4104_v36  ;;  %v4110_v24 = vmul.f32 1.442695, %v4106_v50 }
 0xd7b   : > { %v4269_v55 = vpop.xlane.xlu1 %4268 }
 0xd7c   : > { %v4272_v52 = vsub.f32 %v4260_v57, %v4269_v55  ;;  %v4112_v25 = vmul.f32 1.442695, %v4107_v51 }
 0xd7d   : > { %v4263_v4 = vpop.xlane.xlu0 %4262 }
 0xd7e   : > { %v4277_v31 = vmul.f32 1.442695, %v4272_v52  ;;  %v4270_v17 = vsub.f32 %v4258_v0, %v4263_v4 }
 0xd80   : > { %6526 = vpow2.f32 %v4277_v31  ;;  %v4273_v43 = vmul.f32 1.442695, %v4270_v17 }
 0xd81   : > { %v4266_v22 = vpop.xlane.xlu0 %4265 }
 0xd82   : > { %6528 = vpow2.f32 %v4273_v43  ;;  %v4271_v19 = vsub.f32 %v4259_v49, %v4266_v22 }
 0xd83   : > { %6530 = vpow2.f32 %v4110_v24 }
 0xd84   : > { %v4275_v26 = vmul.f32 1.442695, %v4271_v19 }
 0xd86   : > { %6532 = vpow2.f32 %v4275_v26  ;;  %v6673_v26 = vld [vmem:[%s6979_s30 + $0x54] ss:$8 sps:$4 sm:$0xff]  }
 0xd87   : > { %6534 = vpow2.f32 %v4112_v25  ;;  %v6671_v25 = vld [vmem:[%s6979_s30 + $0x44] ss:$8 sps:$4 sm:$0xff]  }
 0xd88   : > { %6536 = vpow2.f32 %v4108_v27  ;;  %v6674_v27 = vld [vmem:[%s6979_s30 + $0x50] ss:$8 sps:$4 sm:$0xff]  }
 0xd8a   : > { %v8085_v29 = vpop.eup %6526 }
 0xd8b   : > { %v4285_v62 = vsel %vm1529_vm6, %v8085_v29, 0.0 }
 0xd8c   : > { %v8089_v30 = vpop.eup %6528  ;;  %4286 = vadd.xlane.f32.xlu0 %v4285_v62  ;;  %v6676_v62 = vld [vmem:[%s6979_s30 + $0x60] ss:$8 sps:$4 sm:$0xff]  }
 0xd8d   : > { %v6531_v39 = vpop.eup %6530  ;;  %v4279_v33 = vsel %vm1522_vm5, %v8089_v30, 0.0 }
 0xd8e   : > { %v4117_v59 = vsel %vm1522_vm5, %v6531_v39, 0.0 }
 0xd90   : > { %v6533_v61 = vpop.eup %6532  ;;  %4280 = vadd.xlane.f32.xlu0 %v4279_v33  ;;  %v6679_v33 = vld [vmem:[%s6979_s30 + $0x4] ss:$8 sps:$4 sm:$0xff]  }
 0xd91   : > { %v4282_v10 = vsel %vm1522_vm5, %v6533_v61, 0.0  ;;  %v6535_v7 = vpop.eup %6534 }
 0xd92   : > { %4283 = vadd.xlane.f32.xlu1 %v4282_v10  ;;  %v4120_v38 = vsel %vm1529_vm6, %v6535_v7, 0.0  ;;  %v6537_v42 = vpop.eup %6536 }
 0xd93   : > { %v4114_v37 = vsel %vm1522_vm5, %v6537_v42, 0.0 }
 0xd94   : > { %4118 = vadd.xlane.f32.xlu0 %v4117_v59 }
 0xd96   : > { %4121 = vadd.xlane.f32.xlu1 %v4120_v38 }
 0xd9a   : > { %4115 = vadd.xlane.f32.xlu1 %v4114_v37 }
 0xda4   : > { %v4549_v54 = vpop.xlane.xlu0 %4548 }
 0xda5   : > { %v4556_v32 = vsub.f32 %v4544_v9, %v4549_v54 }
 0xda6   : > { %v4552_v47 = vpop.xlane.xlu1 %4551 }
 0xda7   : > { %v4557_v44 = vsub.f32 %v4545_v13, %v4552_v47  ;;  %v4559_v58 = vmul.f32 1.442695, %v4556_v32  ;;  %v6680_v32 = vld [vmem:[%s6994_s6] ss:$24 sps:$4 sm:$0xff]  }
 0xda8   : > { %v4555_v57 = vpop.xlane.xlu0 %4554 }
 0xda9   : > { %v4561_v20 = vmul.f32 1.442695, %v4557_v44  ;;  %v4558_v0 = vsub.f32 %v4546_v12, %v4555_v57  ;;  %v6681_v57 = vld [vmem:[%s6994_s6 + $0x34] ss:$24 sps:$4 sm:$0xff]  }
 0xdaa   : > { %4300 = vrot.lane.b32.xlu0 %v8029_v16, %s6877_s23 }
 0xdab   : > { %4298 = vrot.lane.b32.xlu1 %v8015_v3, %s6877_s23  ;;  %6538 = vpow2.f32 %v4561_v20  ;;  %v4563_v1 = vmul.f32 1.442695, %v4558_v0  ;;  %v6683_v0 = vld [vmem:[%s6994_s6 + $0x64] ss:$24 sps:$4 sm:$0xff]  }
 0xdac   : > { %6540 = vpow2.f32 %v4559_v58  ;;  %v6682_v58 = vld [vmem:[%s6994_s6 + $0x30] ss:$24 sps:$4 sm:$0xff]  }
 0xdad   : > { %6542 = vpow2.f32 %v4563_v1  ;;  %v6684_v1 = vld [vmem:[%s6994_s6 + $0x60] ss:$24 sps:$4 sm:$0xff]  }
 0xdb5   : > { %v8101_v5 = vpop.eup %6538 }
 0xdb6   : > { %v4568_v16 = vsel %vm1522_vm5, %v8101_v5, 0.0  ;;  %v8105_v49 = vpop.eup %6540 }
 0xdb7   : > { %v4565_v3 = vsel %vm1522_vm5, %v8105_v49, 0.0  ;;  %v8109_v41 = vpop.eup %6542 }
 0xdb8   : > { %v4571_v18 = vsel %vm1529_vm6, %v8109_v41, 0.0 }
 0xdc9   : > { %4569 = vadd.xlane.f32.xlu0 %v4568_v16  ;;  %v6686_v16 = vld [vmem:[%s6994_s6 + $0x90] ss:$24 sps:$4 sm:$0xff]  }
 0xdcf   : > { %4566 = vadd.xlane.f32.xlu1 %v4565_v3  ;;  %v6688_v3 = vld [vmem:[%s6994_s6 + $0xc0] ss:$24 sps:$4 sm:$0xff]  }
 0xdd3   : > { %4572 = vadd.xlane.f32.xlu1 %v4571_v18  ;;  %v6690_v18 = vld [vmem:[%s6994_s6 + $0xf0] ss:$24 sps:$4 sm:$0xff]  }
 0xe19   : > { %v4287_v6 = vpop.xlane.xlu0 %4286 }
 0xe1d   : > { %v4281_v8 = vpop.xlane.xlu0 %4280 }
 0xe1f   : > { %v4284_v9 = vpop.xlane.xlu1 %4283 }
 0xe20   : > { %6544 = vrcp.f32 %v4284_v9  ;;  %v6693_v9 = vld [vmem:[%s6994_s6 + $0x154] ss:$24 sps:$4 sm:$0xff]  }
 0xe21   : > { %v4119_v56 = vpop.xlane.xlu0 %4118 }
 0xe23   : > { %v4122_v15 = vpop.xlane.xlu1 %4121 }
 0xe24   : > { %6546 = vrcp.f32 %v4122_v15  ;;  %v6695_v15 = vld [vmem:[%s6994_s6 + $0x184] ss:$24 sps:$4 sm:$0xff]  }
 0xe25   : > { %6548 = vrcp.f32 %v4119_v56  ;;  %v4301_v4 = vpop.permute.xlu0 %4300  ;;  %v6694_v56 = vld [vmem:[%s6994_s6 + $0x150] ss:$24 sps:$4 sm:$0xff]  }
 0xe26   : > { %6550 = vrcp.f32 %v4281_v8  ;;  %v4310_v22 = vand.u32 %v4301_v4, %v7283_v11  ;;  %v6672_v11 = vld [vmem:[%s6979_s30 + $0x40] ss:$8 sps:$4 sm:$0xff]  }
 0xe27   : > { %v4116_v12 = vpop.xlane.xlu1 %4115  ;;  %v6692_v8 = vld [vmem:[%s6994_s6 + $0x120] ss:$24 sps:$4 sm:$0xff]  }
 0xe28   : > { %6552 = vrcp.f32 %v4116_v12  ;;  %v6696_v12 = vld [vmem:[%s6994_s6 + $0x180] ss:$24 sps:$4 sm:$0xff]  }
 0xe29   : > { %6554 = vrcp.f32 %v4287_v6  ;;  %v6691_v6 = vld [vmem:[%s6994_s6 + $0x124] ss:$24 sps:$4 sm:$0xff]  }
 0xe2a   : > { %v6545_v60 = vpop.eup %6544 }
 0xe2b   : > { %v4299_v13 = vpop.permute.xlu1 %4298  ;;  %v4291_v50 = vmul.f32 %v6545_v60, %v6533_v61  ;;  %v6698_v60 = vld [vmem:[%s6994_s6 + $0x1b0] ss:$24 sps:$4 sm:$0xff]  }
 0xe2c   : > { %5981 = vmatprep.subr.bf16.mxu1 %v4299_v13 }
 0xe2e   : > { %v6547_v35 = vpop.eup %6546 }
 0xe2f   : > { %v6549_v2 = vpop.eup %6548  ;;  %v4128_v36 = vmul.f32 %v6547_v35, %v6535_v7  ;;  %v6699_v35 = vld [vmem:[%s6994_s6 + $0x1e4] ss:$24 sps:$4 sm:$0xff]  }
 0xe30   : > { %v6551_v14 = vpop.eup %6550  ;;  %v4126_v52 = vmul.f32 %v6549_v2, %v6531_v39  ;;  %v6678_v39 = vld [vmem:[%s6979_s30 + $0x70] ss:$8 sps:$4 sm:$0xff]  }
 0xe31   : > { %v4289_v17 = vmul.f32 %v6551_v14, %v8089_v30  ;;  %v4130_v51 = vpack.c.bf16 %v4128_v36, %v4128_v36  ;;  %v6677_v30 = vld [vmem:[%s6979_s30 + $0x74] ss:$8 sps:$4 sm:$0xff]   ;;  %v6700_v2 = vld [vmem:[%s6994_s6 + $0x1e0] ss:$24 sps:$4 sm:$0xff]  }
 0xe32   : > { %v6553_v40 = vpop.eup %6552  ;;  %v6701_v14 = vld [vmem:[%s6994_s6 + $0x214] ss:$24 sps:$4 sm:$0xff]  }
 0xe33   : > { %v4124_v55 = vmul.f32 %v6553_v40, %v6537_v42  ;;  %v6555_v43 = vpop.eup %6554  ;;  %v4294_v24 = vpack.c.bf16 %v4291_v50, %v4289_v17  ;;  %v6702_v40 = vld [vmem:[%s6994_s6 + $0x210] ss:$24 sps:$4 sm:$0xff]   ;;  %v6703_v36 = vld [vmem:[%s6994_s6 + $0x14] ss:$24 sps:$4 sm:$0xff]  }
 0xe34   : > { %v4293_v19 = vmul.f32 %v6555_v43, %v8085_v29  ;;  %v6675_v29 = vld [vmem:[%s6979_s30 + $0x64] ss:$8 sps:$4 sm:$0xff]  }
 0xe35   : > { %v4129_v31 = vpack.c.bf16 %v4126_v52, %v4124_v55 }
 0xe36   : > { %v4295_v23 = vpack.c.bf16 %v4293_v19, %v4293_v19  ;;  %v6704_v19 = vld [vmem:[%s6979_s30] ss:$8 sps:$4 sm:$0xff]  }
 0xe37   : > { %5969 = vmatprep.mubr.msk.bf16.mxu1 %vm1522_vm5, %v4129_v31 }
 0xe38   : > { %5970 = vmatmul.mubr.msk.bf16.vlgmr.msra.gmra.mrb[72].mxu1 %vm1522_vm5, %v4130_v51 }
 0xe39   : > { %5982 = vmatpush3.bf16.msra.mxu1 %v4299_v13  ;;  %5985 = vmatprep.mubr.msk.bf16.mxu1 %vm1522_vm5, %v4294_v24  ;;  %v6697_v13 = vld [vmem:[%s6994_s6 + $0x1b4] ss:$24 sps:$4 sm:$0xff]  }
 0xe3a   : > { %5983 = vmatprep.subr.bf16.mxu1 %v4310_v22 }
 0xe3d   : > { %5984 = vmatpush3.bf16.msra.mxu1 %v4310_v22 }
 0xe3e   : > { %4368 = vmatprep.subr.bf16.mxu1 %v6671_v25  ;;  %v6706_v25 = vld [vmem:[%s6979_s30 + $0x10] ss:$8 sps:$4 sm:$0xff]  }
 0xe40   : > { %5986 = vmatmul.mubr.msk.bf16.vlgmr.msra.gmra.mrb[76].mxu1 %vm1522_vm5, %v4295_v23  ;;  %v6705_v23 = vld [vmem:[%s6979_s30 + $0x14] ss:$8 sps:$4 sm:$0xff]  }
 0xe41   : > { %4369 = vmatpush1.bf16.msra.mxu1 %v6672_v11  ;;  %4400 = vmatprep.mubr.bf16.mxu1 %v6876_v34 }
 0xe42   : > { %4370 = vmatprep.subr.bf16.mxu1 %v6673_v26  ;;  %v6707_v26 = vld [vmem:[%s6979_s30 + $0x24] ss:$8 sps:$4 sm:$0xff]  }
 0xe45   : > { %4371 = vmatpush1.bf16.msra.mxu1 %v6674_v27  ;;  %v6708_v27 = vld [vmem:[%s6979_s30 + $0x20] ss:$8 sps:$4 sm:$0xff]  }
 0xe46   : > { %4372 = vmatprep.subr.bf16.mxu1 %v6675_v29  ;;  %v6709_v29 = vld [vmem:[%s6979_s30 + $0x34] ss:$8 sps:$4 sm:$0xff]  }
 0xe49   : > { %4373 = vmatpush1.bf16.msra.mxu1 %v6676_v62  ;;  %v6710_v62 = vld [vmem:[%s6979_s30 + $0x30] ss:$8 sps:$4 sm:$0xff]  }
 0xe4a   : > { %4374 = vmatprep.subr.bf16.mxu1 %v6677_v30  ;;  %v6711_v30 = vld [vmem:[%s6979_s30 + $0x84] ss:$8 sps:$4 sm:$0xff]  }
 0xe4d   : > { %4375 = vmatpush1.bf16.msra.mxu1 %v6678_v39  ;;  %v6712_v39 = vld [vmem:[%s6979_s30 + $0x80] ss:$8 sps:$4 sm:$0xff]  }
 0xe4e   : > { %4425 = vmatprep.subr.bf16.mxu1 %v6679_v33  ;;  %v6713_v33 = vld [vmem:[%s6979_s30 + $0x94] ss:$8 sps:$4 sm:$0xff]  }
 0xe56   : > { %v4570_v61 = vpop.xlane.xlu0 %4569 }
 0xe57   : > { %6556 = vrcp.f32 %v4570_v61  ;;  %v6714_v61 = vld [vmem:[%s6979_s30 + $0x90] ss:$8 sps:$4 sm:$0xff]  }
 0xe5c   : > { %v4567_v10 = vpop.xlane.xlu1 %4566 }
 0xe5d   : > { %6558 = vrcp.f32 %v4567_v10 }
 0xe60   : > { %v4573_v7 = vpop.xlane.xlu1 %4572 }
 0xe61   : > { %6560 = vrcp.f32 %v4573_v7  ;;  %v6557_v59 = vpop.eup %6556  ;;  %v6715_v7 = vld [vmem:[%s6979_s30 + $0xa4] ss:$8 sps:$4 sm:$0xff]  }
 0xe62   : > { %v4577_v37 = vmul.f32 %v6557_v59, %v8101_v5  ;;  %v6685_v5 = vld [vmem:[%s6994_s6 + $0x94] ss:$24 sps:$4 sm:$0xff]   ;;  %v6716_v59 = vld [vmem:[%s6979_s30 + $0xa0] ss:$8 sps:$4 sm:$0xff]  }
 0xe67   : > { %v6559_v38 = vpop.eup %6558 }
 0xe68   : > { %v4575_v42 = vmul.f32 %v6559_v38, %v8105_v49  ;;  %v6687_v49 = vld [vmem:[%s6994_s6 + $0xc4] ss:$24 sps:$4 sm:$0xff]  }
 0xe69   : > { %v6717_v38 = vld [vmem:[%s6979_s30 + $0xb4] ss:$8 sps:$4 sm:$0xff]  }
 0xe6a   : > { %v4580_v47 = vpack.c.bf16 %v4577_v37, %v4575_v42  ;;  %v6718_v42 = vld [vmem:[%s6979_s30 + $0xb0] ss:$8 sps:$4 sm:$0xff]   ;;  %v6719_v37 = vld [vmem:[%s6994_s6 + $0xc] ss:$24 sps:$4 sm:$0xff]  }
 0xe6b   : > { %v6561_v44 = vpop.eup %6560 }
 0xe6c   : > { %v4579_v54 = vmul.f32 %v6561_v44, %v8109_v41  ;;  %6001 = vmatprep.mubr.msk.bf16.mxu0 %vm1522_vm5, %v4580_v47  ;;  %v6689_v41 = vld [vmem:[%s6994_s6 + $0xf4] ss:$24 sps:$4 sm:$0xff]  }
 0xe6e   : > { %v4581_v20 = vpack.c.bf16 %v4579_v54, %v4579_v54 }
 0xe70   : > { %6002 = vmatmul.mubr.msk.bf16.vlgmr.msra.gmra.mrb[68].mxu0 %vm1522_vm5, %v4581_v20 }
 0xe71   : > { %4863 = vmatpush1.bf16.msra.mxu0 %v6680_v32 }
 0xe72   : > { %4864 = vmatprep.subr.bf16.mxu0 %v6681_v57  ;;  %v6720_v57 = vld [vmem:[%s6994_s6 + $0x8] ss:$24 sps:$4 sm:$0xff]  }
 0xe75   : > { %4865 = vmatpush1.bf16.msra.mxu0 %v6682_v58  ;;  %v6721_v58 = vld [vmem:[%s6994_s6 + $0x3c] ss:$24 sps:$4 sm:$0xff]  }
 0xe76   : > { %4866 = vmatprep.subr.bf16.mxu0 %v6683_v0  ;;  %v6722_v0 = vld [vmem:[%s6994_s6 + $0x38] ss:$24 sps:$4 sm:$0xff]  }
 0xe79   : > { %4867 = vmatpush1.bf16.msra.mxu0 %v6684_v1 }
 0xe7a   : > { %4868 = vmatprep.subr.bf16.mxu0 %v6685_v5  ;;  %v6723_v5 = vld [vmem:[%s6994_s6 + $0x6c] ss:$24 sps:$4 sm:$0xff]  }
 0xe7d   : > { %4869 = vmatpush1.bf16.msra.mxu0 %v6686_v16  ;;  %v6724_v16 = vld [vmem:[%s6994_s6 + $0x68] ss:$24 sps:$4 sm:$0xff]  }
 0xe7e   : > { %4870 = vmatprep.subr.bf16.mxu0 %v6687_v49  ;;  %v6726_v49 = vld [vmem:[%s6994_s6 + $0x98] ss:$24 sps:$4 sm:$0xff]  }
 0xe81   : > { %4871 = vmatpush1.bf16.msra.mxu0 %v6688_v3  ;;  %v6727_v3 = vld [vmem:[%s6994_s6 + $0xcc] ss:$24 sps:$4 sm:$0xff]  }
 0xe82   : > { %4872 = vmatprep.subr.bf16.mxu0 %v6689_v41  ;;  %v6728_v41 = vld [vmem:[%s6994_s6 + $0xc8] ss:$24 sps:$4 sm:$0xff]  }
 0xe85   : > { %4873 = vmatpush1.bf16.msra.mxu0 %v6690_v18  ;;  %v6729_v18 = vld [vmem:[%s6994_s6 + $0xfc] ss:$24 sps:$4 sm:$0xff]  }
 0xe86   : > { %4874 = vmatprep.subr.bf16.mxu0 %v6691_v6  ;;  %v6730_v6 = vld [vmem:[%s6994_s6 + $0xf8] ss:$24 sps:$4 sm:$0xff]  }
 0xe89   : > { %4875 = vmatpush1.bf16.msra.mxu0 %v6692_v8  ;;  %v6731_v8 = vld [vmem:[%s6994_s6 + $0x12c] ss:$24 sps:$4 sm:$0xff]  }
 0xe8a   : > { %4876 = vmatprep.subr.bf16.mxu0 %v6693_v9  ;;  %v6732_v9 = vld [vmem:[%s6994_s6 + $0x128] ss:$24 sps:$4 sm:$0xff]  }
 0xe8d   : > { %4877 = vmatpush1.bf16.msra.mxu0 %v6694_v56  ;;  %v6733_v56 = vld [vmem:[%s6994_s6 + $0x15c] ss:$24 sps:$4 sm:$0xff]  }
 0xe8e   : > { %4878 = vmatprep.subr.bf16.mxu0 %v6695_v15  ;;  %v6734_v15 = vld [vmem:[%s6994_s6 + $0x158] ss:$24 sps:$4 sm:$0xff]  }
 0xe91   : > { %4879 = vmatpush1.bf16.msra.mxu0 %v6696_v12  ;;  %v6735_v12 = vld [vmem:[%s6994_s6 + $0x18c] ss:$24 sps:$4 sm:$0xff]  }
 0xe92   : > { %4880 = vmatprep.subr.bf16.mxu0 %v6697_v13  ;;  %v6736_v13 = vld [vmem:[%s6994_s6 + $0x188] ss:$24 sps:$4 sm:$0xff]  }
 0xe95   : > { %4881 = vmatpush1.bf16.msra.mxu0 %v6698_v60  ;;  %v6737_v60 = vld [vmem:[%s6994_s6 + $0x1bc] ss:$24 sps:$4 sm:$0xff]  }
 0xe96   : > { %4882 = vmatprep.subr.bf16.mxu0 %v6699_v35  ;;  %v6738_v35 = vld [vmem:[%s6994_s6 + $0x1b8] ss:$24 sps:$4 sm:$0xff]  }
 0xe99   : > { %4883 = vmatpush1.bf16.msra.mxu0 %v6700_v2  ;;  %v6739_v2 = vld [vmem:[%s6994_s6 + $0x1ec] ss:$24 sps:$4 sm:$0xff]  }
 0xe9a   : > { %4884 = vmatprep.subr.bf16.mxu0 %v6701_v14  ;;  %v6740_v14 = vld [vmem:[%s6994_s6 + $0x1e8] ss:$24 sps:$4 sm:$0xff]  }
 0xe9d   : > { %4885 = vmatpush1.bf16.msra.mxu0 %v6702_v40  ;;  %v6741_v40 = vld [vmem:[%s6994_s6 + $0x21c] ss:$24 sps:$4 sm:$0xff]  }
 0xe9e   : > { %4964 = vmatprep.subr.bf16.mxu0 %v6703_v36  ;;  %v6742_v36 = vld [vmem:[%s6994_s6 + $0x218] ss:$24 sps:$4 sm:$0xff]  }
 0xf0b   : > { %v5971_v55 = vpop.f32.mrb[72].mxu1 }
 0xf0c   : > { %v4174_v52 = vpop.f32.mrb[73].mxu1  ;;  %v4189_v10 = vpack.c.bf16 %v5971_v55, %v5971_v55  ;;  %v6743_v55 = vld [vmem:[%s7004_s7 + $0x104] ss:$8 sps:$4 sm:$0xff]  }
 0xf0d   : > { %v5972_v50 = vpop.f32.mrb[74].mxu1 }
 0xf0e   : > { %v4177_v4 = vpop.f32.mrb[75].mxu1 }
 0xf0f   : > { %v4188_v31 = vpack.c.bf16 %v4177_v4, %v4174_v52 }
 0xf13   : > { %v5987_v17 = vpop.f32.mrb[76].mxu1 }
 0xf14   : > { %v4346_v51 = vpop.f32.mrb[77].mxu1  ;;  %v4361_v11 = vpack.c.bf16 %v5987_v17, %v5987_v17 }
 0xf15   : > { %v5988_v43 = vpop.f32.mrb[78].mxu1 }
 0xf16   : > { %v4349_v24 = vpop.f32.mrb[79].mxu1 }
 0xf17   : > { %v4360_v22 = vpack.c.bf16 %v4349_v24, %v4346_v51 }
 0xf19   : > { %5837 = vmatmul.mubr.msk.bf16.vlgmr.msra.gmra.mrb[80].mxu1 %vm881_vm2, %v4360_v22 }
 0xf1a   : > { %4426 = vmatpush1.bf16.msra.mxu1 %v6704_v19  ;;  %4410 = vmatprep.mubr.bf16.mxu1 %v6876_v34 }
 0xf1b   : > { %4427 = vmatprep.subr.bf16.mxu1 %v6705_v23  ;;  %v4710_v23 = vld [vmem:[%s6969_s20] sm:$0x3] }
 0xf1e   : > { %4428 = vmatpush1.bf16.msra.mxu1 %v6706_v25 }
 0xf1f   : > { %4429 = vmatprep.subr.bf16.mxu1 %v6707_v26  ;;  %v6744_v26 = vld [vmem:[%s8601_s12 + $0x30] sm:$0xff] }
 0xf21   : > { %5838 = vmatmul.mubr.msk.bf16.gmra.mrb[84].mxu1 %vm881_vm2, %v4361_v11  ;;  %v4719_v11 = vrot.slane %v4710_v23, %v7198_v46 }
 0xf22   : > { %4430 = vmatpush1.bf16.msra.mxu1 %v6708_v27  ;;  %4457 = vmatprep.mubr.bf16.mxu1 %v6876_v34 }
 0xf23   : > { %4431 = vmatprep.subr.bf16.mxu1 %v6709_v29  ;;  %v4715_v29 = vrot.slane %v4710_v23, %v7202_v48 }
 0xf26   : > { %4432 = vmatpush1.bf16.msra.mxu1 %v6710_v62 }
 0xf27   : > { %4647 = vmatprep.subr.bf16.mxu1 %v6711_v30  ;;  %v6745_v30 = vld [vmem:[%s8601_s12 + $0x38] sm:$0xff] }
 0xf29   : > { %5839 = vmatmul.mubr.msk.bf16.vlgmr.msra.gmra.mrb[80].mxu1 %vm881_vm2, %v4188_v31 }
 0xf2a   : > { %4467 = vmatprep.mubr.bf16.mxu1 %v6876_v34  ;;  %4648 = vmatpush1.bf16.msra.mxu1 %v6712_v39 }
 0xf2b   : > { %4649 = vmatprep.subr.bf16.mxu1 %v6713_v33 }
 0xf2e   : > { %4650 = vmatpush1.bf16.msra.mxu1 %v6714_v61  ;;  %v6746_v61 = vld [vmem:[%s8601_s12 + $0x40] sm:$0xff] }
 0xf2f   : > { %4651 = vmatprep.subr.bf16.mxu1 %v6715_v7 }
 0xf31   : > { %5840 = vmatmul.mubr.msk.bf16.gmra.mrb[88].mxu1 %vm881_vm2, %v4189_v10 }
 0xf32   : > { %4652 = vmatpush1.bf16.msra.mxu1 %v6716_v59  ;;  %4679 = vmatprep.mubr.bf16.mxu1 %v6876_v34 }
 0xf33   : > { %4653 = vmatprep.subr.bf16.mxu1 %v6717_v38  ;;  %v6747_v38 = vld [vmem:[%s8601_s12 + $0x48] sm:$0xff] }
 0xf36   : > { %4654 = vmatpush1.bf16.msra.mxu1 %v6718_v42 }
 0xf37   : > { %4913 = vmatprep.subr.bf16.mxu1 %v6719_v37 }
 0xf43   : > { %v6003_v47 = vpop.f32.mrb[68].mxu0 }
 0xf44   : > { %v4625_v44 = vpop.f32.mrb[69].mxu0  ;;  %v4640_v1 = vpack.c.bf16 %v6003_v47, %v6003_v47 }
 0xf45   : > { %v6004_v54 = vpop.f32.mrb[70].mxu0 }
 0xf46   : > { %v4628_v20 = vpop.f32.mrb[71].mxu0 }
 0xf47   : > { %v4639_v32 = vpack.c.bf16 %v4628_v20, %v4625_v44 }
 0xf49   : > { %5845 = vmatmul.mubr.msk.bf16.vlgmr.msra.gmra.mrb[80].mxu1 %vm881_vm2, %v4639_v32 }
 0xf4a   : > { %4689 = vmatprep.mubr.bf16.mxu1 %v6876_v34  ;;  %4914 = vmatpush1.bf16.msra.mxu1 %v6720_v57  ;;  %v6725_v34 = vld [vmem:[%s6994_s6 + $0x9c] ss:$24 sps:$4 sm:$0xff]  }
 0xf4b   : > { %4915 = vmatprep.subr.bf16.mxu1 %v6721_v58 }
 0xf4e   : > { %4916 = vmatpush1.bf16.msra.mxu1 %v6722_v0 }
 0xf4f   : > { %4917 = vmatprep.subr.bf16.mxu1 %v6723_v5 }
 0xf51   : > { %5846 = vmatmul.mubr.msk.bf16.gmra.mrb[92].mxu1 %vm881_vm2, %v4640_v1 }
 0xf52   : > { %4918 = vmatpush1.bf16.msra.mxu1 %v6724_v16 }
 0xf53   : > { %4919 = vmatprep.subr.bf16.mxu1 %v6725_v34  ;;  %v6748_v34 = vld [vmem:[%s8601_s12 + $0x50] sm:$0x1] }
 0xf56   : > { %4920 = vmatpush1.bf16.msra.mxu1 %v6726_v49 }
 0xf57   : > { %4921 = vmatprep.subr.bf16.mxu1 %v6727_v3 }
 0xf5a   : > { %4922 = vmatpush1.bf16.msra.mxu1 %v6728_v41  ;;  %v6749_v41 = vld [vmem:[%s8601_s12 + $0x58] sm:$0x1] }
 0xf5b   : > { %4923 = vmatprep.subr.bf16.mxu1 %v6729_v18 }
 0xf5e   : > { %4924 = vmatpush1.bf16.msra.mxu1 %v6730_v6 }
 0xf5f   : > { %4925 = vmatprep.subr.bf16.mxu1 %v6731_v8 }
 0xf62   : > { %4926 = vmatpush1.bf16.msra.mxu1 %v6732_v9 }
 0xf63   : > { %4927 = vmatprep.subr.bf16.mxu1 %v6733_v56 }
 0xf66   : > { %4928 = vmatpush1.bf16.msra.mxu1 %v6734_v15 }
 0xf67   : > { %4929 = vmatprep.subr.bf16.mxu1 %v6735_v12 }
 0xf6a   : > { %4930 = vmatpush1.bf16.msra.mxu1 %v6736_v13 }
 0xf6b   : > { %4931 = vmatprep.subr.bf16.mxu1 %v6737_v60 }
 0xf6e   : > { %4932 = vmatpush1.bf16.msra.mxu1 %v6738_v35 }
 0xf6f   : > { %4933 = vmatprep.subr.bf16.mxu1 %v6739_v2 }
 0xf72   : > { %4934 = vmatpush1.bf16.msra.mxu1 %v6740_v14 }
 0xf73   : > { %4935 = vmatprep.subr.bf16.mxu1 %v6741_v40 }
 0xf76   : > { %4936 = vmatpush1.bf16.msra.mxu1 %v6742_v36 }
 0xf77   : > { %5240 = vmatprep.subr.bf16.mxu1 %v6743_v55 }
 0xff4   : > { %v4412_v52 = vpop.f32.mrb[84].mxu1 }
 0xff5   : > { %v4414_v50 = vpop.f32.mrb[85].mxu1 }
 0xff6   : > { %v4416_v4 = vpop.f32.mrb[86].mxu1 }
 0xff7   : > { %v4417_v31 = vpop.f32.mrb[87].mxu1 }
0x1004   : > { %v4469_v17 = vpop.f32.mrb[88].mxu1 }
0x1005   : > { %v4470_v51 = vadd.f32 %v4469_v17, %v4412_v52  ;;  %v4471_v43 = vpop.f32.mrb[89].mxu1 }
0x1006   : > { %v4472_v24 = vadd.f32 %v4471_v43, %v4414_v50  ;;  %v4473_v22 = vpop.f32.mrb[90].mxu1 }
0x1007   : > { %v4474_v19 = vpop.f32.mrb[91].mxu1 }
0x101c   : > { %v4681_v25 = vpop.f32.mrb[80].mxu1 }
0x101d   : > { %v4704_v27 = vadd.f32 %v6744_v26, %v4681_v25  ;;  %v4683_v62 = vpop.f32.mrb[81].mxu1 }
0x101e   : > { %v4705_v39 = vadd.f32 %v6745_v30, %v4683_v62  ;;  %v4685_v33 = vpop.f32.mrb[82].mxu1 }
0x101f   : > { %v4706_v10 = vadd.f32 %v6746_v61, %v4685_v33  ;;  %v4687_v7 = vpop.f32.mrb[83].mxu1  ;;  %v8227_v37 = vadd.f32 %v4715_v29, %v4704_v27 }
0x1020   : > { %v8222_v59 = vadd.f32 %v4719_v11, %v4705_v39  ;;  %v4707_v42 = vadd.f32 %v6747_v38, %v4687_v7 }
0x1021   : > { %v8233_v54 = vadd.f32 %v4715_v29, %v4706_v10 }
0x1022   : > { %v8229_v47 = vadd.f32 %v4719_v11, %v4707_v42  ;;  %v4730_v44 = vsel %vm881_vm2, %v8222_v59, 0.0  ;;  %v4728_v42 = vld [vmem:[%s6974_s27] sm:$0x3] }
0x1023   : > { %v4731_v20 = vadd.f32 %v4730_v44, %v8227_v37 }
0x1024   : > { %v4691_v32 = vpop.f32.mrb[92].mxu1  ;;  %v4734_v57 = vsel %vm881_vm2, %v8229_v47, 0.0 }
0x1025   : > { %v4702_v58 = vadd.f32 %v4691_v32, %v4470_v51  ;;  %4732 = vadd.xlane.f32.xlu0 %v4731_v20  ;;  %v4693_v0 = vpop.f32.mrb[93].mxu1  ;;  %v4735_v1 = vadd.f32 %v4734_v57, %v8233_v54  ;;  %v4729_v20 = vld [vmem:[%s6984_s25] sm:$0x3]  ;;  %v4794_v32 = vrot.slane %v4728_v42, %v7198_v46  ;;  %v4790_v57 = vrot.slane %v4728_v42, %v7202_v48  ;;  %v6769_v42 = vld [vmem:[%s7004_s7 + $0x154] ss:$8 sps:$4 sm:$0xff]  }
0x1026   : > { %v4703_v5 = vadd.f32 %v4693_v0, %v4472_v24  ;;  %v4695_v16 = vpop.f32.mrb[94].mxu1 }
0x1027   : > { %v4708_v49 = vadd.f32 %v6748_v34, %v4702_v58  ;;  %4736 = vadd.xlane.f32.xlu1 %v4735_v1  ;;  %v4696_v3 = vpop.f32.mrb[95].mxu1  ;;  %v4811_v16 = vrot.slane %v4729_v20, %v7198_v46  ;;  %v4807_v34 = vrot.slane %v4729_v20, %v7202_v48  ;;  %v6771_v20 = vld [vmem:[%s6994_s6 + $0x134] ss:$24 sps:$4 sm:$0xff]  }
0x1028   : > { %v4709_v18 = vadd.f32 %v6749_v41, %v4703_v5 }
0x1029   : > { %v8245_v6 = vadd.f32 %v4715_v29, %v4708_v49 }
0x102a   : > { %v8247_v8 = vadd.f32 %v4719_v11, %v4709_v18 }
0x102b   : > { %v4738_v9 = vsel %vm890_vm3, %v8245_v6, 0.0 }
0x102c   : > { %v4739_v56 = vsel %vm892_vm4, %v8247_v8, 0.0 }
0x102d   : > { %v4740_v15 = vadd.f32 %v4739_v56, %v4738_v9 }
0x102f   : > { %4741 = vadd.xlane.f32.xlu0 %v4740_v15 }
0x10b2   : > { %v4733_v12 = vpop.xlane.xlu0 %4732 }
0x10b3   : > { %v4743_v13 = vmul.f32 0.0052083335, %v4733_v12 }
0x10b4   : > { %v4737_v60 = vpop.xlane.xlu1 %4736 }
0x10b5   : > { %v4746_v35 = vsub.f32 %v8227_v37, %v4743_v13  ;;  %v4747_v2 = vsub.f32 %v8222_v59, %v4743_v13  ;;  %v4744_v14 = vmul.f32 0.0052083335, %v4737_v60 }
0x10b7   : > { %v4748_v40 = vsub.f32 %v8233_v54, %v4744_v14  ;;  %v4749_v36 = vsub.f32 %v8229_v47, %v4744_v14  ;;  %v4752_v55 = vmul.f32 %v4746_v35, %v4746_v35  ;;  %v4753_v52 = vmul.f32 %v4747_v2, %v4747_v2 }
0x10b9   : > { %v4758_v50 = vsel %vm881_vm2, %v4753_v52, 0.0  ;;  %v4754_v4 = vmul.f32 %v4748_v40, %v4748_v40  ;;  %v4755_v31 = vmul.f32 %v4749_v36, %v4749_v36 }
0x10ba   : > { %v4759_v17 = vadd.f32 %v4758_v50, %v4752_v55 }
0x10bb   : > { %v4762_v51 = vsel %vm881_vm2, %v4755_v31, 0.0  ;;  %v6752_v31 = vld [vmem:[%s6994_s6 + $0x44] ss:$24 sps:$4 sm:$0xff]  }
0x10bc   : > { %4760 = vadd.xlane.f32.xlu1 %v4759_v17  ;;  %v4742_v43 = vpop.xlane.xlu0 %4741  ;;  %v4763_v24 = vadd.f32 %v4762_v51, %v4754_v4  ;;  %v6751_v4 = vld [vmem:[%s7004_s7 + $0x100] ss:$8 sps:$4 sm:$0xff]   ;;  %v6753_v17 = vld [vmem:[%s7004_s7 + $0x114] ss:$8 sps:$4 sm:$0xff]  }
0x10bd   : > { %v4745_v22 = vmul.f32 0.0052083335, %v4742_v43 }
0x10be   : > { %4764 = vadd.xlane.f32.xlu0 %v4763_v24  ;;  %v6754_v24 = vld [vmem:[%s6994_s6 + $0x40] ss:$24 sps:$4 sm:$0xff]  }
0x10bf   : > { %v4750_v19 = vsub.f32 %v8245_v6, %v4745_v22  ;;  %v4751_v23 = vsub.f32 %v8247_v8, %v4745_v22 }
0x10c1   : > { %v4756_v25 = vmul.f32 %v4750_v19, %v4750_v19  ;;  %v4757_v11 = vmul.f32 %v4751_v23, %v4751_v23 }
0x10c3   : > { %v4766_v26 = vsel %vm890_vm3, %v4756_v25, 0.0  ;;  %v4767_v27 = vsel %vm892_vm4, %v4757_v11, 0.0  ;;  %v6756_v25 = vld [vmem:[%s6994_s6 + $0x74] ss:$24 sps:$4 sm:$0xff]  }
0x10c4   : > { %v4768_v29 = vadd.f32 %v4767_v27, %v4766_v26  ;;  %v6757_v11 = vld [vmem:[%s7004_s7 + $0x124] ss:$8 sps:$4 sm:$0xff]   ;;  %v6758_v26 = vld [vmem:[%s6994_s6 + $0x70] ss:$24 sps:$4 sm:$0xff]  }
0x10c5   : > { %v6759_v27 = vld [vmem:[%s6994_s6 + $0xa4] ss:$24 sps:$4 sm:$0xff]  }
0x10c6   : > { %4769 = vadd.xlane.f32.xlu1 %v4768_v29  ;;  %v6760_v29 = vld [vmem:[%s7004_s7 + $0x120] ss:$8 sps:$4 sm:$0xff]  }
0x1149   : > { %v4761_v62 = vpop.xlane.xlu1 %4760 }
0x114a   : > { %v4771_v30 = vmul.f32 0.0052083335, %v4761_v62  ;;  %v6761_v62 = vld [vmem:[%s7004_s7 + $0x134] ss:$8 sps:$4 sm:$0xff]  }
0x114b   : > { %v4765_v39 = vpop.xlane.xlu0 %4764 }
0x114c   : > { %v4774_v33 = vadd.f32 1e-05, %v4771_v30  ;;  %v4772_v61 = vmul.f32 0.0052083335, %v4765_v39  ;;  %v6762_v30 = vld [vmem:[%s6994_s6 + $0xa0] ss:$24 sps:$4 sm:$0xff]  }
0x114d   : > { %v6763_v39 = vld [vmem:[%s6994_s6 + $0xd4] ss:$24 sps:$4 sm:$0xff]  }
0x114e   : > { %6562 = vrsqrt.f32 %v4774_v33  ;;  %v4775_v10 = vadd.f32 1e-05, %v4772_v61  ;;  %v6764_v33 = vld [vmem:[%s7004_s7 + $0x130] ss:$8 sps:$4 sm:$0xff]   ;;  %v6765_v61 = vld [vmem:[%s7004_s7 + $0x144] ss:$8 sps:$4 sm:$0xff]  }
0x1150   : > { %6564 = vrsqrt.f32 %v4775_v10  ;;  %v6766_v10 = vld [vmem:[%s6994_s6 + $0xd0] ss:$24 sps:$4 sm:$0xff]  }
0x1153   : > { %v4770_v7 = vpop.xlane.xlu1 %4769 }
0x1154   : > { %v4773_v38 = vmul.f32 0.0052083335, %v4770_v7  ;;  %v6767_v7 = vld [vmem:[%s6994_s6 + $0x104] ss:$24 sps:$4 sm:$0xff]  }
0x1156   : > { %v4776_v44 = vadd.f32 1e-05, %v4773_v38  ;;  %v6768_v38 = vld [vmem:[%s7004_s7 + $0x140] ss:$8 sps:$4 sm:$0xff]  }
0x1158   : > { %v6563_v58 = vpop.eup %6562  ;;  %6566 = vrsqrt.f32 %v4776_v44  ;;  %v6770_v44 = vld [vmem:[%s6994_s6 + $0x100] ss:$24 sps:$4 sm:$0xff]  }
0x1159   : > { %v4780_v0 = vmul.f32 %v6563_v58, %v4746_v35  ;;  %v4781_v1 = vmul.f32 %v6563_v58, %v4747_v2  ;;  %v6774_v58 = vld [vmem:[%s6994_s6 + $0x130] ss:$24 sps:$4 sm:$0xff]  }
0x115a   : > { %v6565_v5 = vpop.eup %6564 }
0x115b   : > { %v4782_v49 = vmul.f32 %v6565_v5, %v4748_v40  ;;  %v4783_v3 = vmul.f32 %v6565_v5, %v4749_v36  ;;  %v4798_v41 = vmul.f32 %v4794_v32, %v4781_v1  ;;  %v4797_v18 = vmul.f32 %v4790_v57, %v4780_v0  ;;  %v6750_v36 = vld [vmem:[%s6994_s6 + $0x10] ss:$24 sps:$4 sm:$0xff]   ;;  %v6775_v0 = vld [vmem:[%s6994_s6 + $0x164] ss:$24 sps:$4 sm:$0xff]  }
0x115c   : > { %v6776_v1 = vld [vmem:[%s7004_s7 + $0x160] ss:$8 sps:$4 sm:$0xff]   ;;  %v6777_v5 = vld [vmem:[%s7004_s7 + $0x174] ss:$8 sps:$4 sm:$0xff]  }
0x115d   : > { %v4800_v9 = vmul.f32 %v4794_v32, %v4783_v3  ;;  %v4799_v56 = vmul.f32 %v4790_v57, %v4782_v49  ;;  %v4815_v15 = vadd.f32 %v4811_v16, %v4798_v41  ;;  %v4814_v13 = vadd.f32 %v4807_v34, %v4797_v18  ;;  %v6780_v49 = vld [vmem:[%s7004_s7 + $0x170] ss:$8 sps:$4 sm:$0xff]   ;;  %v6781_v3 = vld [vmem:[%s7004_s7 + $0x184] ss:$8 sps:$4 sm:$0xff]  }
0x115e   : > { %v6782_v41 = vld [vmem:[%s6994_s6 + $0x190] ss:$24 sps:$4 sm:$0xff]   ;;  %v6783_v18 = vld [vmem:[%s6994_s6 + $0x1c4] ss:$24 sps:$4 sm:$0xff]  }
0x115f   : > { %v4817_v12 = vadd.f32 %v4811_v16, %v4800_v9  ;;  %v4816_v60 = vadd.f32 %v4807_v34, %v4799_v56  ;;  %v6784_v9 = vld [vmem:[%s7004_s7 + $0x180] ss:$8 sps:$4 sm:$0xff]   ;;  %v6785_v56 = vld [vmem:[%s7004_s7 + $0x194] ss:$8 sps:$4 sm:$0xff]  }
0x1161   : > { %v4821_v35 = vpack.c.bf16 %v4817_v12, %v4815_v15  ;;  %v8269_v2 = vpack.c.bf16 %v4816_v60, %v4814_v13  ;;  %v6786_v15 = vld [vmem:[%s6994_s6 + $0x1c0] ss:$24 sps:$4 sm:$0xff]   ;;  %v6787_v12 = vld [vmem:[%s6994_s6 + $0x1f4] ss:$24 sps:$4 sm:$0xff]  }
0x1162   : > { %v6567_v14 = vpop.eup %6566  ;;  %v6788_v13 = vld [vmem:[%s7004_s7 + $0x190] ss:$8 sps:$4 sm:$0xff]   ;;  %v6789_v60 = vld [vmem:[%s7004_s7 + $0x1a4] ss:$8 sps:$4 sm:$0xff]  }
0x1163   : > { %v4785_v55 = vmul.f32 %v6567_v14, %v4751_v23  ;;  %5847 = vmatprep.mubr.msk.bf16.mxu0 %vm881_vm2, %v4821_v35  ;;  %5849 = vmatprep.mubr.msk.bf16.mxu1 %vm881_vm2, %v4821_v35  ;;  %v4784_v40 = vmul.f32 %v6567_v14, %v4750_v19  ;;  %v6755_v23 = vld [vmem:[%s7004_s7 + $0x110] ss:$8 sps:$4 sm:$0xff]   ;;  %v6791_v14 = vld [vmem:[%s6994_s6 + $0x224] ss:$24 sps:$4 sm:$0xff]  }
0x1164   : > { %4895 = vmatmul.mubr.bf16.vlgmr.msra.gmra.mrb[72].mxu0 %v8269_v2  ;;  %4946 = vmatmul.mubr.bf16.vlgmr.msra.gmra.mrb[96].mxu1 %v8269_v2 }
0x1165   : > { %4965 = vmatpush1.bf16.msra.mxu0 %v6750_v36  ;;  %v4802_v52 = vmul.f32 %v4794_v32, %v4785_v55  ;;  %v4801_v50 = vmul.f32 %v4790_v57, %v4784_v40  ;;  %5241 = vmatpush1.bf16.msra.mxu1 %v6751_v4  ;;  %v6772_v32 = vld [vmem:[%s7004_s7 + $0x150] ss:$8 sps:$4 sm:$0xff]   ;;  %v6773_v57 = vld [vmem:[%s7004_s7 + $0x164] ss:$8 sps:$4 sm:$0xff]   ;;  %v6792_v55 = vld [vmem:[%s7004_s7 + $0x1a0] ss:$8 sps:$4 sm:$0xff]  }
0x1166   : > { %4966 = vmatprep.subr.bf16.mxu0 %v6752_v31  ;;  %5242 = vmatprep.subr.bf16.mxu1 %v6753_v17  ;;  %v6793_v40 = vld [vmem:[%s7004_s7 + $0x1b4] ss:$8 sps:$4 sm:$0xff]   ;;  %v6794_v36 = vld [vmem:[%s6994_s6 + $0x220] ss:$24 sps:$4 sm:$0xff]   ;;  %v6797_v4 = vld [vmem:[%s7004_s7 + $0x1c4] ss:$8 sps:$4 sm:$0xff]  }
0x1167   : > { %v4819_v51 = vadd.f32 %v4811_v16, %v4802_v52  ;;  %v4818_v43 = vadd.f32 %v4807_v34, %v4801_v50  ;;  %v6778_v16 = vld [vmem:[%s6994_s6 + $0x160] ss:$24 sps:$4 sm:$0xff]   ;;  %v6779_v34 = vld [vmem:[%s6994_s6 + $0x194] ss:$24 sps:$4 sm:$0xff]  }
0x1168   : > { %v6795_v52 = vld [vmem:[%s7004_s7 + $0x4] ss:$8 sps:$4 sm:$0xff]   ;;  %v6796_v50 = vld [vmem:[%s7004_s7 + $0x1b0] ss:$8 sps:$4 sm:$0xff]   ;;  %v6798_v31 = vld [vmem:[%s7004_s7] ss:$8 sps:$4 sm:$0xff]  }
0x1169   : > { %4967 = vmatpush1.bf16.msra.mxu0 %v6754_v24  ;;  %v8280_v22 = vpack.c.bf16 %v4819_v51, %v4819_v51  ;;  %v8282_v19 = vpack.c.bf16 %v4818_v43, %v4818_v43  ;;  %5243 = vmatpush1.bf16.msra.mxu1 %v6755_v23  ;;  %v6799_v17 = vld [vmem:[%s7004_s7 + $0x14] ss:$8 sps:$4 sm:$0xff]   ;;  %v6800_v51 = vld [vmem:[%s7004_s7 + $0x1c0] ss:$8 sps:$4 sm:$0xff]   ;;  %v6802_v24 = vld [vmem:[%s7004_s7 + $0x10] ss:$8 sps:$4 sm:$0xff]  }
0x116a   : > { %4968 = vmatprep.subr.bf16.mxu0 %v6756_v25  ;;  %5244 = vmatprep.subr.bf16.mxu1 %v6757_v11  ;;  %v6801_v43 = vld [vmem:[%s7004_s7 + $0x1d4] ss:$8 sps:$4 sm:$0xff]   ;;  %v6804_v23 = vld [vmem:[%s7004_s7 + $0x1d0] ss:$8 sps:$4 sm:$0xff]   ;;  %v6806_v25 = vld [vmem:[%s7004_s7 + $0x20] ss:$8 sps:$4 sm:$0xff]  }
0x116b   : > { %5848 = vmatprep.mubr.msk.bf16.mxu0 %vm881_vm2, %v8280_v22  ;;  %5850 = vmatprep.mubr.msk.bf16.mxu1 %vm881_vm2, %v8280_v22  ;;  %v6807_v11 = vld [vmem:[%s7004_s7 + $0x34] ss:$8 sps:$4 sm:$0xff]  }
0x116c   : > { %4905 = vmatmul.mubr.bf16.gmra.mrb[76].mxu0 %v8282_v19  ;;  %4956 = vmatmul.mubr.bf16.gmra.mrb[100].mxu1 %v8282_v19 }
0x116d   : > { %4969 = vmatpush1.bf16.msra.mxu0 %v6758_v26  ;;  %5851 = vmatprep.mubr.msk.bf16.mxu0 %vm881_vm2, %v4821_v35  ;;  %v6790_v35 = vld [vmem:[%s6994_s6 + $0x1f0] ss:$24 sps:$4 sm:$0xff]  }
0x116e   : > { %4970 = vmatprep.subr.bf16.mxu0 %v6759_v27  ;;  %5245 = vmatpush1.bf16.msra.mxu1 %v6760_v29  ;;  %v6808_v26 = vld [vmem:[%s7004_s7 + $0x1e0] ss:$8 sps:$4 sm:$0xff]   ;;  %v6809_v27 = vld [vmem:[%s7004_s7 + $0x1f4] ss:$8 sps:$4 sm:$0xff]   ;;  %v6810_v29 = vld [vmem:[%s7004_s7 + $0x30] ss:$8 sps:$4 sm:$0xff]  }
0x116f   : > { %5246 = vmatprep.subr.bf16.mxu1 %v6761_v62  ;;  %v6811_v62 = vld [vmem:[%s7004_s7 + $0x44] ss:$8 sps:$4 sm:$0xff]  }
0x1171   : > { %4971 = vmatpush1.bf16.msra.mxu0 %v6762_v30  ;;  %v6812_v30 = vld [vmem:[%s7004_s7 + $0x1f0] ss:$8 sps:$4 sm:$0xff]  }
0x1172   : > { %4972 = vmatprep.subr.bf16.mxu0 %v6763_v39  ;;  %5247 = vmatpush1.bf16.msra.mxu1 %v6764_v33  ;;  %v6814_v39 = vld [vmem:[%s7004_s7 + $0x40] ss:$8 sps:$4 sm:$0xff]   ;;  %v6815_v33 = vld [vmem:[%s7004_s7 + $0x54] ss:$8 sps:$4 sm:$0xff]  }
0x1173   : > { %5248 = vmatprep.subr.bf16.mxu1 %v6765_v61  ;;  %v6816_v61 = vld [vmem:[%s7004_s7 + $0x50] ss:$8 sps:$4 sm:$0xff]  }
0x1175   : > { %4973 = vmatpush1.bf16.msra.mxu0 %v6766_v10  ;;  %v6817_v10 = vld [vmem:[%s7004_s7 + $0x64] ss:$8 sps:$4 sm:$0xff]  }
0x1176   : > { %4974 = vmatprep.subr.bf16.mxu0 %v6767_v7  ;;  %5249 = vmatpush1.bf16.msra.mxu1 %v6768_v38  ;;  %v6818_v7 = vld [vmem:[%s7004_s7 + $0x60] ss:$8 sps:$4 sm:$0xff]   ;;  %v6819_v38 = vld [vmem:[%s7004_s7 + $0x74] ss:$8 sps:$4 sm:$0xff]  }
0x1177   : > { %5250 = vmatprep.subr.bf16.mxu1 %v6769_v42  ;;  %v6820_v42 = vld [vmem:[%s7004_s7 + $0x70] ss:$8 sps:$4 sm:$0xff]  }
0x1179   : > { %4975 = vmatpush1.bf16.msra.mxu0 %v6770_v44  ;;  %v6821_v44 = vld [vmem:[%s7004_s7 + $0x84] ss:$8 sps:$4 sm:$0xff]  }
0x117a   : > { %4976 = vmatprep.subr.bf16.mxu0 %v6771_v20  ;;  %5251 = vmatpush1.bf16.msra.mxu1 %v6772_v32  ;;  %v6822_v20 = vld [vmem:[%s7004_s7 + $0x80] ss:$8 sps:$4 sm:$0xff]   ;;  %v6823_v32 = vld [vmem:[%s7004_s7 + $0x94] ss:$8 sps:$4 sm:$0xff]  }
0x117b   : > { %5252 = vmatprep.subr.bf16.mxu1 %v6773_v57  ;;  %v6824_v57 = vld [vmem:[%s7004_s7 + $0x90] ss:$8 sps:$4 sm:$0xff]  }
0x117d   : > { %4977 = vmatpush1.bf16.msra.mxu0 %v6774_v58  ;;  %v6825_v58 = vld [vmem:[%s7004_s7 + $0xa4] ss:$8 sps:$4 sm:$0xff]  }
0x117e   : > { %4978 = vmatprep.subr.bf16.mxu0 %v6775_v0  ;;  %5253 = vmatpush1.bf16.msra.mxu1 %v6776_v1  ;;  %v6826_v0 = vld [vmem:[%s7004_s7 + $0xa0] ss:$8 sps:$4 sm:$0xff]   ;;  %v6827_v1 = vld [vmem:[%s7004_s7 + $0xb4] ss:$8 sps:$4 sm:$0xff]  }
0x117f   : > { %5254 = vmatprep.subr.bf16.mxu1 %v6777_v5  ;;  %v6828_v5 = vld [vmem:[%s7004_s7 + $0xb0] ss:$8 sps:$4 sm:$0xff]  }
0x1181   : > { %4979 = vmatpush1.bf16.msra.mxu0 %v6778_v16  ;;  %v6829_v16 = vld [vmem:[%s7004_s7 + $0xc4] ss:$8 sps:$4 sm:$0xff]  }
0x1182   : > { %4980 = vmatprep.subr.bf16.mxu0 %v6779_v34  ;;  %5255 = vmatpush1.bf16.msra.mxu1 %v6780_v49  ;;  %v6830_v34 = vld [vmem:[%s7004_s7 + $0xc0] ss:$8 sps:$4 sm:$0xff]   ;;  %v6831_v49 = vld [vmem:[%s7004_s7 + $0xd4] ss:$8 sps:$4 sm:$0xff]  }
0x1183   : > { %5256 = vmatprep.subr.bf16.mxu1 %v6781_v3  ;;  %v6832_v3 = vld [vmem:[%s7004_s7 + $0xd0] ss:$8 sps:$4 sm:$0xff]  }
0x1185   : > { %4981 = vmatpush1.bf16.msra.mxu0 %v6782_v41  ;;  %v6833_v41 = vld [vmem:[%s7004_s7 + $0xe4] ss:$8 sps:$4 sm:$0xff]  }
0x1186   : > { %4982 = vmatprep.subr.bf16.mxu0 %v6783_v18  ;;  %5257 = vmatpush1.bf16.msra.mxu1 %v6784_v9  ;;  %v6834_v18 = vld [vmem:[%s7004_s7 + $0xe0] ss:$8 sps:$4 sm:$0xff]   ;;  %v6835_v9 = vld [vmem:[%s7004_s7 + $0xf4] ss:$8 sps:$4 sm:$0xff]  }
0x1187   : > { %5258 = vmatprep.subr.bf16.mxu1 %v6785_v56  ;;  %v6836_v56 = vld [vmem:[%s7004_s7 + $0xf0] ss:$8 sps:$4 sm:$0xff]  }
0x1189   : > { %4983 = vmatpush1.bf16.msra.mxu0 %v6786_v15  ;;  %v8378_v15 = vld [vmem:[%s6999_s4] sm:$0x3f] }
0x118a   : > { %4984 = vmatprep.subr.bf16.mxu0 %v6787_v12  ;;  %5259 = vmatpush1.bf16.msra.mxu1 %v6788_v13  ;;  %v4829_v12 = vrot.slane %v8378_v15, %v7202_v48  ;;  %v4837_v13 = vrot.slane %v8378_v15, %v2386_v63 }
0x118b   : > { %5260 = vmatprep.subr.bf16.mxu1 %v6789_v60  ;;  %v4833_v60 = vrot.slane %v8378_v15, %v7198_v46 }
0x118d   : > { %4985 = vmatpush1.bf16.msra.mxu0 %v6790_v35  ;;  %v8390_v35 = vrot.slane %v8378_v15, %v2390_v28 }
0x118e   : > { %4986 = vmatprep.subr.bf16.mxu0 %v6791_v14  ;;  %5261 = vmatpush1.bf16.msra.mxu1 %v6792_v55 }
0x118f   : > { %5262 = vmatprep.subr.bf16.mxu1 %v6793_v40 }
0x1191   : > { %4987 = vmatpush1.bf16.msra.mxu0 %v6794_v36 }
0x1192   : > { %5189 = vmatprep.subr.bf16.mxu0 %v6795_v52  ;;  %5263 = vmatpush1.bf16.msra.mxu1 %v6796_v50 }
0x1193   : > { %5264 = vmatprep.subr.bf16.mxu1 %v6797_v4 }
0x1194   : > { %4997 = vmatmul.mubr.bf16.vlgmr.msra.gmra.mrb[80].mxu0 %v8269_v2  ;;  %v6803_v2 = vld [vmem:[%s7004_s7 + $0x24] ss:$8 sps:$4 sm:$0xff]  }
0x1195   : > { %5852 = vmatprep.mubr.msk.bf16.mxu0 %vm881_vm2, %v8280_v22  ;;  %5190 = vmatpush1.bf16.msra.mxu0 %v6798_v31  ;;  %v6805_v22 = vld [vmem:[%s7004_s7 + $0x1e4] ss:$8 sps:$4 sm:$0xff]  }
0x1196   : > { %5191 = vmatprep.subr.bf16.mxu0 %v6799_v17  ;;  %5265 = vmatpush1.bf16.msra.mxu1 %v6800_v51 }
0x1197   : > { %5266 = vmatprep.subr.bf16.mxu1 %v6801_v43 }
0x1199   : > { %5192 = vmatpush1.bf16.msra.mxu0 %v6802_v24 }
0x119a   : > { %5193 = vmatprep.subr.bf16.mxu0 %v6803_v2  ;;  %5267 = vmatpush1.bf16.msra.mxu1 %v6804_v23 }
0x119b   : > { %5268 = vmatprep.subr.bf16.mxu1 %v6805_v22 }
0x119c   : > { %5007 = vmatmul.mubr.bf16.gmra.mrb[84].mxu0 %v8282_v19  ;;  %v6813_v19 = vld [vmem:[%s7004_s7 + $0x204] ss:$8 sps:$4 sm:$0xff]  }
0x119d   : > { %5194 = vmatpush1.bf16.msra.mxu0 %v6806_v25 }
0x119e   : > { %5195 = vmatprep.subr.bf16.mxu0 %v6807_v11  ;;  %5269 = vmatpush1.bf16.msra.mxu1 %v6808_v26 }
0x119f   : > { %5270 = vmatprep.subr.bf16.mxu1 %v6809_v27 }
0x11a1   : > { %5196 = vmatpush1.bf16.msra.mxu0 %v6810_v29 }
0x11a2   : > { %5197 = vmatprep.subr.bf16.mxu0 %v6811_v62  ;;  %5271 = vmatpush1.bf16.msra.mxu1 %v6812_v30 }
0x11a3   : > { %5291 = vmatprep.subr.bf16.mxu1 %v6813_v19 }
0x11a5   : > { %5198 = vmatpush1.bf16.msra.mxu0 %v6814_v39 }
0x11a6   : > { %5199 = vmatprep.subr.bf16.mxu0 %v6815_v33 }
0x11a9   : > { %5200 = vmatpush1.bf16.msra.mxu0 %v6816_v61 }
0x11aa   : > { %5201 = vmatprep.subr.bf16.mxu0 %v6817_v10 }
0x11ad   : > { %5202 = vmatpush1.bf16.msra.mxu0 %v6818_v7 }
0x11ae   : > { %5203 = vmatprep.subr.bf16.mxu0 %v6819_v38 }
0x11b1   : > { %5204 = vmatpush1.bf16.msra.mxu0 %v6820_v42 }
0x11b2   : > { %5205 = vmatprep.subr.bf16.mxu0 %v6821_v44 }
0x11b5   : > { %5206 = vmatpush1.bf16.msra.mxu0 %v6822_v20 }
0x11b6   : > { %5207 = vmatprep.subr.bf16.mxu0 %v6823_v32 }
0x11b9   : > { %5208 = vmatpush1.bf16.msra.mxu0 %v6824_v57 }
0x11ba   : > { %5209 = vmatprep.subr.bf16.mxu0 %v6825_v58 }
0x11bd   : > { %5210 = vmatpush1.bf16.msra.mxu0 %v6826_v0 }
0x11be   : > { %5211 = vmatprep.subr.bf16.mxu0 %v6827_v1 }
0x11c1   : > { %5212 = vmatpush1.bf16.msra.mxu0 %v6828_v5 }
0x11c2   : > { %5213 = vmatprep.subr.bf16.mxu0 %v6829_v16 }
0x11c5   : > { %5214 = vmatpush1.bf16.msra.mxu0 %v6830_v34 }
0x11c6   : > { %5215 = vmatprep.subr.bf16.mxu0 %v6831_v49 }
0x11c9   : > { %5216 = vmatpush1.bf16.msra.mxu0 %v6832_v3 }
0x11ca   : > { %5217 = vmatprep.subr.bf16.mxu0 %v6833_v41 }
0x11cd   : > { %5218 = vmatpush1.bf16.msra.mxu0 %v6834_v18 }
0x11ce   : > { %5219 = vmatprep.subr.bf16.mxu0 %v6835_v9 }
0x11d1   : > { %5220 = vmatpush1.bf16.msra.mxu0 %v6836_v56 }
0x1237   : > { %v4896_v14 = vpop.f32.mrb[72].mxu0  ;;  %v4947_v55 = vpop.f32.mrb[96].mxu1 }
0x1238   : > { %v8392_v40 = vadd.f32 %v4896_v14, %v4829_v12  ;;  %v8394_v36 = vadd.f32 %v4947_v55, %v4837_v13  ;;  %v4898_v52 = vpop.f32.mrb[73].mxu0  ;;  %v4949_v50 = vpop.f32.mrb[97].mxu1 }
0x1239   : > { %v8396_v4 = vadd.f32 %v4898_v52, %v4833_v60  ;;  %v8399_v63 = vadd.f32 %v4949_v50, %v8390_v35  ;;  %v4900_v31 = vpop.f32.mrb[74].mxu0  ;;  %v4951_v17 = vpop.f32.mrb[98].mxu1 }
0x123a   : > { %v5033_v51 = vmul.f32 0.044715, %v8392_v40  ;;  %v5035_v28 = vmul.f32 0.044715, %v8394_v36  ;;  %v8405_v2 = vadd.f32 %v4900_v31, %v4829_v12  ;;  %v8407_v23 = vadd.f32 %v4951_v17, %v4837_v13  ;;  %v4902_v22 = vpop.f32.mrb[75].mxu0  ;;  %v4953_v25 = vpop.f32.mrb[99].mxu1 }
0x123b   : > { %v5034_v43 = vmul.f32 0.044715, %v8396_v4  ;;  %v5036_v24 = vmul.f32 0.044715, %v8399_v63  ;;  %v8411_v27 = vadd.f32 %v4902_v22, %v4833_v60  ;;  %v8414_v29 = vadd.f32 %v4953_v25, %v8390_v35 }
0x123c   : > { %v5051_v11 = vmul.f32 %v5033_v51, %v8392_v40  ;;  %v5053_v26 = vmul.f32 %v5035_v28, %v8394_v36  ;;  %v5039_v62 = vmul.f32 0.044715, %v8405_v2  ;;  %v5041_v39 = vmul.f32 0.044715, %v8407_v23 }
0x123d   : > { %v5052_v33 = vmul.f32 %v5034_v43, %v8396_v4  ;;  %v5054_v61 = vmul.f32 %v5036_v24, %v8399_v63  ;;  %v5040_v7 = vmul.f32 0.044715, %v8411_v27  ;;  %v5042_v57 = vmul.f32 0.044715, %v8414_v29 }
0x123e   : > { %v5069_v30 = vmul.f32 %v5051_v11, %v8392_v40  ;;  %v5071_v19 = vmul.f32 %v5053_v26, %v8394_v36  ;;  %v5057_v10 = vmul.f32 %v5039_v62, %v8405_v2  ;;  %v5059_v32 = vmul.f32 %v5041_v39, %v8407_v23 }
0x123f   : > { %v4906_v38 = vpop.f32.mrb[76].mxu0  ;;  %v4957_v42 = vpop.f32.mrb[100].mxu1  ;;  %v5058_v5 = vmul.f32 %v5040_v7, %v8411_v27  ;;  %v5060_v56 = vmul.f32 %v5042_v57, %v8414_v29  ;;  %v5070_v52 = vmul.f32 %v5052_v33, %v8396_v4  ;;  %v5072_v51 = vmul.f32 %v5054_v61, %v8399_v63 }
0x1240   : > { %v5087_v44 = vadd.f32 %v5069_v30, %v8392_v40  ;;  %v5089_v20 = vadd.f32 %v5071_v19, %v8394_v36  ;;  %v4908_v58 = vpop.f32.mrb[77].mxu0  ;;  %v4959_v0 = vpop.f32.mrb[101].mxu1  ;;  %v5075_v1 = vmul.f32 %v5057_v10, %v8405_v2  ;;  %v8430_v16 = vadd.f32 %v4906_v38, %v4829_v12 }
0x1241   : > { %v8432_v34 = vadd.f32 %v4957_v42, %v4837_v13  ;;  %v4910_v49 = vpop.f32.mrb[78].mxu0  ;;  %v4961_v3 = vpop.f32.mrb[102].mxu1  ;;  %v5077_v9 = vmul.f32 %v5059_v32, %v8407_v23  ;;  %v5076_v31 = vmul.f32 %v5058_v5, %v8411_v27  ;;  %v8441_v17 = vadd.f32 %v4908_v58, %v4833_v60 }
0x1242   : > { %v5105_v41 = vmul.f32 0.7978846, %v5087_v44  ;;  %v5107_v18 = vmul.f32 0.7978846, %v5089_v20  ;;  %v4911_v14 = vpop.f32.mrb[79].mxu0  ;;  %v4962_v55 = vpop.f32.mrb[103].mxu1  ;;  %v5093_v50 = vadd.f32 %v5075_v1, %v8405_v2  ;;  %v5078_v22 = vmul.f32 %v5060_v56, %v8414_v29 }
0x1243   : > { %v5095_v12 = vadd.f32 %v5077_v9, %v8407_v23  ;;  %v5045_v13 = vmul.f32 0.044715, %v8430_v16  ;;  %v5047_v43 = vmul.f32 0.044715, %v8432_v34  ;;  %v5046_v25 = vmul.f32 0.044715, %v8441_v17 }
0x1244   : > { %6568 = vtanh.f32 %v5105_v41  ;;  %v5111_v28 = vmul.f32 0.7978846, %v5093_v50  ;;  %v8448_v11 = vadd.f32 %v4959_v0, %v8390_v35  ;;  %v5088_v26 = vadd.f32 %v5070_v52, %v8396_v4 }
0x1245   : > { %6570 = vtanh.f32 %v5107_v18  ;;  %v5113_v24 = vmul.f32 0.7978846, %v5095_v12  ;;  %v5094_v60 = vadd.f32 %v5076_v31, %v8411_v27  ;;  %v5063_v62 = vmul.f32 %v5045_v13, %v8430_v16 }
0x1246   : > { %6572 = vtanh.f32 %v5111_v28  ;;  %v5064_v30 = vmul.f32 %v5046_v25, %v8441_v17  ;;  %v5048_v19 = vmul.f32 0.044715, %v8448_v11  ;;  %v5065_v39 = vmul.f32 %v5047_v43, %v8432_v34 }
0x1247   : > { %6574 = vtanh.f32 %v5113_v24  ;;  %v5106_v33 = vmul.f32 0.7978846, %v5088_v26  ;;  %v5112_v61 = vmul.f32 0.7978846, %v5094_v60  ;;  %v5090_v10 = vadd.f32 %v5072_v51, %v8399_v63 }
0x1248   : > { %v5066_v35 = vmul.f32 %v5048_v19, %v8448_v11  ;;  %v5096_v7 = vadd.f32 %v5078_v22, %v8414_v29  ;;  %v5082_v38 = vmul.f32 %v5064_v30, %v8441_v17  ;;  %v5081_v57 = vmul.f32 %v5063_v62, %v8430_v16 }
0x1249   : > { %6576 = vtanh.f32 %v5106_v33  ;;  %v5108_v42 = vmul.f32 0.7978846, %v5090_v10  ;;  %v5083_v58 = vmul.f32 %v5065_v39, %v8432_v34  ;;  %v5015_v31 = vmul.f32 0.5, %v8392_v40 }
0x124a   : > { %6578 = vtanh.f32 %v5112_v61  ;;  %v5114_v44 = vmul.f32 0.7978846, %v5096_v7  ;;  %v5100_v20 = vadd.f32 %v5082_v38, %v8441_v17  ;;  %v5084_v32 = vmul.f32 %v5066_v35, %v8448_v11 }
0x124b   : > { %6580 = vtanh.f32 %v5108_v42  ;;  %v5099_v3 = vadd.f32 %v5081_v57, %v8430_v16  ;;  %v5101_v41 = vadd.f32 %v5083_v58, %v8432_v34  ;;  %v5021_v12 = vmul.f32 0.5, %v8405_v2 }
0x124c   : > { %6582 = vtanh.f32 %v5114_v44  ;;  %v5118_v1 = vmul.f32 0.7978846, %v5100_v20  ;;  %v5102_v5 = vadd.f32 %v5084_v32, %v8448_v11  ;;  %v5017_v51 = vmul.f32 0.5, %v8394_v36 }
0x124d   : > { %v5117_v55 = vmul.f32 0.7978846, %v5099_v3  ;;  %v5119_v52 = vmul.f32 0.7978846, %v5101_v41  ;;  %v5023_v28 = vmul.f32 0.5, %v8407_v23  ;;  %v5016_v2 = vmul.f32 0.5, %v8396_v4 }
0x124e   : > { %v6569_v0 = vpop.eup %6568  ;;  %6584 = vtanh.f32 %v5118_v1  ;;  %v5120_v9 = vmul.f32 0.7978846, %v5102_v5  ;;  %v5022_v39 = vmul.f32 0.5, %v8411_v27  ;;  %v5018_v23 = vmul.f32 0.5, %v8399_v63 }
0x124f   : > { %v6571_v49 = vpop.eup %6570  ;;  %v5141_v18 = vadd.f32 1.0, %v6569_v0  ;;  %v5024_v38 = vmul.f32 0.5, %v8414_v29  ;;  %v5028_v20 = vmul.f32 0.5, %v8441_v17  ;;  %v5030_v63 = vmul.f32 0.5, %v8448_v11 }
0x1250   : > { %v6573_v56 = vpop.eup %6572  ;;  %v5143_v14 = vadd.f32 1.0, %v6571_v49  ;;  %6586 = vtanh.f32 %v5120_v9  ;;  %v5027_v29 = vmul.f32 0.5, %v8430_v16 }
0x1251   : > { %v6575_v50 = vpop.eup %6574  ;;  %v5147_v13 = vadd.f32 1.0, %v6573_v56  ;;  %6588 = vtanh.f32 %v5117_v55  ;;  %v5159_v24 = vmul.f32 %v5141_v18, %v5015_v31  ;;  %v6837_v55 = vld [vmem:[%s7004_s7 + $0x200] ss:$8 sps:$4 sm:$0xff]   ;;  %v8484_v31 = vrot.slane %v8378_v15, %v2394_v53 }
0x1252   : > { %v5149_v43 = vadd.f32 1.0, %v6575_v50  ;;  %6590 = vtanh.f32 %v5119_v52  ;;  %v5161_v26 = vmul.f32 %v5143_v14, %v5017_v51  ;;  %v5029_v14 = vmul.f32 0.5, %v8432_v34  ;;  %v6838_v52 = vld [vmem:[%s7004_s7 + $0x214] ss:$8 sps:$4 sm:$0xff]   ;;  %v6841_v53 = vld [vmem:[%s7004_s7 + $0x220] ss:$8 sps:$4 sm:$0xff]  }
0x1253   : > { %v5165_v22 = vmul.f32 %v5147_v13, %v5021_v12  ;;  %v6577_v25 = vpop.eup %6576  ;;  %v6839_v12 = vld [vmem:[%s7004_s7 + $0x210] ss:$8 sps:$4 sm:$0xff]   ;;  %v4849_v34 = vrot.slane %v8378_v15, %v2398_v21  ;;  %v6840_v13 = vld [vmem:[%s7004_s7 + $0x224] ss:$8 sps:$4 sm:$0xff]  }
0x1254   : > { %v5167_v60 = vmul.f32 %v5149_v43, %v5023_v28  ;;  %v6579_v62 = vpop.eup %6578  ;;  %v5142_v30 = vadd.f32 1.0, %v6577_v25 }
0x1255   : > { %v5177_v19 = vpack.c.bf16 %v5165_v22, %v5159_v24  ;;  %v6581_v40 = vpop.eup %6580  ;;  %v5148_v33 = vadd.f32 1.0, %v6579_v62 }
0x1256   : > { %v5179_v36 = vpack.c.bf16 %v5167_v60, %v5161_v26  ;;  %v6583_v61 = vpop.eup %6582  ;;  %v5144_v10 = vadd.f32 1.0, %v6581_v40  ;;  %v5160_v35 = vmul.f32 %v5142_v30, %v5016_v2  ;;  %v6843_v40 = vld [vmem:[%s7004_s7 + $0x230] ss:$8 sps:$4 sm:$0xff]  }
0x1257   : > { %v5166_v7 = vmul.f32 %v5148_v33, %v5022_v39  ;;  %v5150_v42 = vadd.f32 1.0, %v6583_v61  ;;  %v6844_v61 = vld [vmem:[%s7004_s7 + $0x244] ss:$8 sps:$4 sm:$0xff]  }
0x1258   : > { %v6585_v44 = vpop.eup %6584  ;;  %v5162_v57 = vmul.f32 %v5144_v10, %v5018_v23 }
0x1259   : > { %v5178_v32 = vpack.c.bf16 %v5166_v7, %v5160_v35  ;;  %v5168_v58 = vmul.f32 %v5150_v42, %v5024_v38  ;;  %v5154_v4 = vadd.f32 1.0, %v6585_v44 }
0x125a   : > { %v6587_v0 = vpop.eup %6586 }
0x125b   : > { %v6589_v27 = vpop.eup %6588  ;;  %5221 = vmatprep.mubr.bf16.mxu0 %v5178_v32  ;;  %v5180_v1 = vpack.c.bf16 %v5168_v58, %v5162_v57  ;;  %v5172_v5 = vmul.f32 %v5154_v4, %v5028_v20  ;;  %v5156_v49 = vadd.f32 1.0, %v6587_v0  ;;  %v6845_v20 = vld [vmem:[%s7004_s7 + $0x240] ss:$8 sps:$4 sm:$0xff]   ;;  %v6846_v0 = vld [vmem:[%s7004_s7 + $0x254] ss:$8 sps:$4 sm:$0xff]  }
0x125c   : > { %v6591_v3 = vpop.eup %6590  ;;  %5222 = vmatmul.mubr.bf16.vlgmr.msra.gmra.mrb[88].mxu0 %v5177_v19  ;;  %v5153_v41 = vadd.f32 1.0, %v6589_v27 }
0x125d   : > { %5272 = vmatprep.mubr.bf16.mxu1 %v5180_v1  ;;  %v5184_v17 = vpack.c.bf16 %v5172_v5, %v5172_v5  ;;  %v5174_v18 = vmul.f32 %v5156_v49, %v5030_v63  ;;  %v5155_v9 = vadd.f32 1.0, %v6591_v3  ;;  %v6847_v3 = vld [vmem:[%s7004_s7 + $0x250] ss:$8 sps:$4 sm:$0xff]  }
0x125e   : > { %5273 = vmatmul.mubr.bf16.vlgmr.msra.gmra.mrb[104].mxu1 %v5179_v36  ;;  %v5171_v56 = vmul.f32 %v5153_v41, %v5027_v29 }
0x125f   : > { %5292 = vmatpush1.bf16.msra.mxu1 %v6837_v55  ;;  %5231 = vmatprep.mubr.bf16.mxu0 %v5184_v17  ;;  %v5186_v11 = vpack.c.bf16 %v5174_v18, %v5174_v18  ;;  %v5173_v50 = vmul.f32 %v5155_v9, %v5029_v14  ;;  %v6848_v17 = vld [vmem:[%s7004_s7 + $0x264] ss:$8 sps:$4 sm:$0xff]   ;;  %v6849_v9 = vld [vmem:[%s7004_s7 + $0x260] ss:$8 sps:$4 sm:$0xff]   ;;  %v6850_v14 = vld [vmem:[%s7004_s7 + $0x274] ss:$8 sps:$4 sm:$0xff]  }
0x1260   : > { %5293 = vmatprep.subr.bf16.mxu1 %v6838_v52  ;;  %v5183_v16 = vpack.c.bf16 %v5171_v56, %v5171_v56 }
0x1261   : > { %5282 = vmatprep.mubr.bf16.mxu1 %v5186_v11  ;;  %v5185_v51 = vpack.c.bf16 %v5173_v50, %v5173_v50  ;;  %v6851_v11 = vld [vmem:[%s7004_s7 + $0x270] ss:$8 sps:$4 sm:$0xff]   ;;  %v6852_v50 = vld [vmem:[%s7004_s7 + $0x284] ss:$8 sps:$4 sm:$0xff]  }
0x1263   : > { %5294 = vmatpush1.bf16.msra.mxu1 %v6839_v12 }
0x1264   : > { %5295 = vmatprep.subr.bf16.mxu1 %v6840_v13  ;;  %5232 = vmatmul.mubr.bf16.gmra.mrb[92].mxu0 %v5183_v16 }
0x1266   : > { %5283 = vmatmul.mubr.bf16.gmra.mrb[108].mxu1 %v5185_v51 }
0x1267   : > { %v4998_v28 = vpop.f32.mrb[80].mxu0  ;;  %5296 = vmatpush1.bf16.msra.mxu1 %v6841_v53 }
0x1268   : > { %v8492_v43 = vadd.f32 %v4998_v28, %v8484_v31  ;;  %v5000_v24 = vpop.f32.mrb[81].mxu0  ;;  %5297 = vmatprep.subr.bf16.mxu1 %v6842_v45 }
0x1269   : > { %v8495_v22 = vadd.f32 %v5000_v24, %v4849_v34  ;;  %v5002_v25 = vpop.f32.mrb[82].mxu0 }
0x126a   : > { %v5037_v21 = vmul.f32 0.044715, %v8492_v43  ;;  %v5003_v15 = vadd.f32 %v5002_v25, %v8484_v31  ;;  %v5004_v26 = vpop.f32.mrb[83].mxu0  ;;  %v5019_v28 = vmul.f32 0.5, %v8492_v43  ;;  %v6853_v25 = vld [vmem:[%s7004_s7 + $0x280] ss:$8 sps:$4 sm:$0xff]  }
0x126b   : > { %v5038_v60 = vmul.f32 0.044715, %v8495_v22  ;;  %v8501_v62 = vadd.f32 %v5004_v26, %v4849_v34  ;;  %5298 = vmatpush1.bf16.msra.mxu1 %v6843_v40  ;;  %v5020_v26 = vmul.f32 0.5, %v8495_v22 }
0x126c   : > { %v5055_v30 = vmul.f32 %v5037_v21, %v8492_v43  ;;  %v5043_v19 = vmul.f32 0.044715, %v5003_v15  ;;  %5299 = vmatprep.subr.bf16.mxu1 %v6844_v61  ;;  %v5025_v24 = vmul.f32 0.5, %v5003_v15  ;;  %v6854_v21 = vld [vmem:[%s7004_s7 + $0x294] ss:$8 sps:$4 sm:$0xff]  }
0x126d   : > { %v5056_v2 = vmul.f32 %v5038_v60, %v8495_v22  ;;  %v5044_v39 = vmul.f32 0.044715, %v8501_v62  ;;  %v5026_v60 = vmul.f32 0.5, %v8501_v62  ;;  %v6856_v61 = vld [vmem:[%s7004_s7 + $0x2a4] ss:$8 sps:$4 sm:$0xff]  }
0x126e   : > { %v5073_v33 = vmul.f32 %v5055_v30, %v8492_v43  ;;  %v5061_v36 = vmul.f32 %v5043_v19, %v5003_v15 }
0x126f   : > { %v5074_v23 = vmul.f32 %v5056_v2, %v8495_v22  ;;  %v5062_v10 = vmul.f32 %v5044_v39, %v8501_v62  ;;  %v5008_v35 = vpop.f32.mrb[84].mxu0  ;;  %5300 = vmatpush1.bf16.msra.mxu1 %v6845_v20  ;;  %v6855_v39 = vld [vmem:[%s7004_s7 + $0x290] ss:$8 sps:$4 sm:$0xff]   ;;  %v6862_v20 = vld [vmem:[%s7004_s7 + $0x2d4] ss:$8 sps:$4 sm:$0xff]  }
0x1270   : > { %v5091_v7 = vadd.f32 %v5073_v33, %v8492_v43  ;;  %v5079_v38 = vmul.f32 %v5061_v36, %v5003_v15  ;;  %v5010_v42 = vpop.f32.mrb[85].mxu0  ;;  %5301 = vmatprep.subr.bf16.mxu1 %v6846_v0  ;;  %v8523_v18 = vadd.f32 %v5008_v35, %v8484_v31  ;;  %v6858_v35 = vld [vmem:[%s7004_s7 + $0x2b4] ss:$8 sps:$4 sm:$0xff]   ;;  %v6865_v0 = vld [vmem:[%s7004_s7 + $0x2e0] ss:$8 sps:$4 sm:$0xff]  }
0x1271   : > { %v5080_v44 = vmul.f32 %v5062_v10, %v8501_v62  ;;  %v5012_v32 = vpop.f32.mrb[86].mxu0  ;;  %v5092_v57 = vadd.f32 %v5074_v23, %v8495_v22  ;;  %v8516_v27 = vadd.f32 %v5010_v42, %v4849_v34  ;;  %v6857_v23 = vld [vmem:[%s7004_s7 + $0x2a0] ss:$8 sps:$4 sm:$0xff]   ;;  %v6860_v42 = vld [vmem:[%s7004_s7 + $0x2c4] ss:$8 sps:$4 sm:$0xff]  }
0x1272   : > { %v5109_v58 = vmul.f32 0.7978846, %v5091_v7  ;;  %v5097_v4 = vadd.f32 %v5079_v38, %v5003_v15  ;;  %v5013_v1 = vpop.f32.mrb[87].mxu0  ;;  %v5049_v55 = vmul.f32 0.044715, %v8523_v18 }
0x1273   : > { %v5098_v5 = vadd.f32 %v5080_v44, %v8501_v62  ;;  %v5110_v63 = vmul.f32 0.7978846, %v5092_v57  ;;  %5302 = vmatpush1.bf16.msra.mxu1 %v6847_v3  ;;  %v5050_v41 = vmul.f32 0.044715, %v8516_v27  ;;  %v6859_v7 = vld [vmem:[%s7004_s7 + $0x2b0] ss:$8 sps:$4 sm:$0xff]  }
0x1274   : > { %6592 = vtanh.f32 %v5109_v58  ;;  %v5115_v49 = vmul.f32 0.7978846, %v5097_v4  ;;  %5303 = vmatprep.subr.bf16.mxu1 %v6848_v17  ;;  %v5067_v53 = vmul.f32 %v5049_v55, %v8523_v18  ;;  %v6861_v44 = vld [vmem:[%s7004_s7 + $0x2c0] ss:$8 sps:$4 sm:$0xff]   ;;  %v6863_v57 = vld [vmem:[%s7004_s7 + $0x2d0] ss:$8 sps:$4 sm:$0xff]  }
0x1275   : > { %v5116_v29 = vmul.f32 0.7978846, %v5098_v5  ;;  %6594 = vtanh.f32 %v5110_v63  ;;  %v5068_v56 = vmul.f32 %v5050_v41, %v8516_v27  ;;  %v6864_v58 = vld [vmem:[%s7004_s7 + $0x2e4] ss:$8 sps:$4 sm:$0xff]   ;;  %v5032_v1 = vmul.f32 0.5, %v8516_v27 }
0x1276   : > { %6596 = vtanh.f32 %v5115_v49  ;;  %v5085_v36 = vmul.f32 %v5067_v53, %v8523_v18  ;;  %v6866_v5 = vld [vmem:[%s7004_s7 + $0x2f4] ss:$8 sps:$4 sm:$0xff]   ;;  %v6867_v3 = vld [vmem:[%s7004_s7 + $0x2f0] ss:$8 sps:$4 sm:$0xff]   ;;  %v5031_v17 = vmul.f32 0.5, %v8523_v18 }
0x1277   : > { %6598 = vtanh.f32 %v5116_v29  ;;  %5304 = vmatpush1.bf16.msra.mxu1 %v6849_v9  ;;  %v5086_v16 = vmul.f32 %v5068_v56, %v8516_v27 }
0x1278   : > { %5305 = vmatprep.subr.bf16.mxu1 %v6850_v14  ;;  %v5103_v10 = vadd.f32 %v5085_v36, %v8523_v18  ;;  %v5348_v18 = vld [vmem:[%s6989_s19] sm:$0x3] }
0x1279   : > { %v5104_v19 = vadd.f32 %v5086_v16, %v8516_v27 }
0x127a   : > { %v5121_v38 = vmul.f32 0.7978846, %v5103_v10 }
0x127b   : > { %5306 = vmatpush1.bf16.msra.mxu1 %v6851_v11  ;;  %v5122_v62 = vmul.f32 0.7978846, %v5104_v19 }
0x127c   : > { %5307 = vmatprep.subr.bf16.mxu1 %v6852_v50 }
0x127d   : > { %6600 = vtanh.f32 %v5122_v62 }
0x127e   : > { %v6593_v52 = vpop.eup %6592  ;;  %6602 = vtanh.f32 %v5121_v38 }
0x127f   : > { %v6595_v12 = vpop.eup %6594  ;;  %v5145_v31 = vadd.f32 1.0, %v6593_v52  ;;  %5308 = vmatpush1.bf16.msra.mxu1 %v6853_v25 }
0x1280   : > { %v6597_v34 = vpop.eup %6596  ;;  %v5146_v13 = vadd.f32 1.0, %v6595_v12  ;;  %5309 = vmatprep.subr.bf16.mxu1 %v6854_v21 }
0x1281   : > { %v6599_v51 = vpop.eup %6598  ;;  %v5151_v45 = vadd.f32 1.0, %v6597_v34  ;;  %v5163_v40 = vmul.f32 %v5145_v31, %v5019_v28 }
0x1282   : > { %v5152_v30 = vadd.f32 1.0, %v6599_v51  ;;  %v5164_v15 = vmul.f32 %v5146_v13, %v5020_v26 }
0x1283   : > { %v5169_v43 = vmul.f32 %v5151_v45, %v5025_v24  ;;  %5310 = vmatpush1.bf16.msra.mxu1 %v6855_v39  ;;  %v5353_v45 = vrot.slane %v5348_v18, %v7202_v48 }
0x1284   : > { %v5170_v2 = vmul.f32 %v5152_v30, %v5026_v60  ;;  %5311 = vmatprep.subr.bf16.mxu1 %v6856_v61  ;;  %v5357_v60 = vrot.slane %v5348_v18, %v7198_v46 }
0x1285   : > { %v5181_v33 = vpack.c.bf16 %v5169_v43, %v5163_v40 }
0x1286   : > { %v5182_v22 = vpack.c.bf16 %v5170_v2, %v5164_v15 }
0x1287   : > { %5312 = vmatpush1.bf16.msra.mxu1 %v6857_v23  ;;  %v6601_v32 = vpop.eup %6600 }
0x1288   : > { %5323 = vmatprep.mubr.bf16.mxu1 %v5182_v22  ;;  %5313 = vmatprep.subr.bf16.mxu1 %v6858_v35  ;;  %v5158_v4 = vadd.f32 1.0, %v6601_v32  ;;  %v6603_v63 = vpop.eup %6602 }
0x1289   : > { %v5157_v29 = vadd.f32 1.0, %v6603_v63 }
0x128a   : > { %v5176_v49 = vmul.f32 %v5158_v4, %v5032_v1 }
0x128b   : > { %5314 = vmatpush1.bf16.msra.mxu1 %v6859_v7  ;;  %v5175_v9 = vmul.f32 %v5157_v29, %v5031_v17 }
0x128c   : > { %5315 = vmatprep.subr.bf16.mxu1 %v6860_v42  ;;  %v5188_v41 = vpack.c.bf16 %v5176_v49, %v5176_v49 }
0x128d   : > { %v5187_v56 = vpack.c.bf16 %v5175_v9, %v5175_v9 }
0x128f   : > { %5316 = vmatpush1.bf16.msra.mxu1 %v6861_v44 }
0x1290   : > { %5317 = vmatprep.subr.bf16.mxu1 %v6862_v20 }
0x1293   : > { %5318 = vmatpush1.bf16.msra.mxu1 %v6863_v57 }
0x1294   : > { %5319 = vmatprep.subr.bf16.mxu1 %v6864_v58 }
0x1297   : > { %5320 = vmatpush1.bf16.msra.mxu1 %v6865_v0 }
0x1298   : > { %5321 = vmatprep.subr.bf16.mxu1 %v6866_v5 }
0x129b   : > { %5322 = vmatpush1.bf16.msra.mxu1 %v6867_v3 }
0x129e   : > { %5324 = vmatmul.mubr.bf16.vlgmr.msra.gmra.mrb[104].mxu1 %v5181_v33 }
0x129f   : > { %5333 = vmatprep.mubr.bf16.mxu1 %v5188_v41 }
0x12a6   : > { %5334 = vmatmul.mubr.bf16.gmra.mrb[112].mxu1 %v5187_v56 }
0x132f   : > { %v5223_v14 = vpop.f32.mrb[88].mxu0 }
0x1330   : > { %v5225_v55 = vpop.f32.mrb[89].mxu0 }
0x1331   : > { %v5227_v11 = vpop.f32.mrb[90].mxu0 }
0x1332   : > { %v5229_v27 = vpop.f32.mrb[91].mxu0 }
0x1337   : > { %v5233_v52 = vpop.f32.mrb[92].mxu0 }
0x1338   : > { %v5235_v50 = vpop.f32.mrb[93].mxu0 }
0x1339   : > { %v5284_v16 = vpop.f32.mrb[108].mxu1  ;;  %v5237_v12 = vpop.f32.mrb[94].mxu0 }
0x133a   : > { %v5285_v31 = vadd.f32 %v5284_v16, %v5233_v52  ;;  %v5286_v34 = vpop.f32.mrb[109].mxu1  ;;  %v5238_v13 = vpop.f32.mrb[95].mxu0 }
0x133b   : > { %v5287_v51 = vadd.f32 %v5286_v34, %v5235_v50  ;;  %v5288_v28 = vpop.f32.mrb[110].mxu1 }
0x133c   : > { %v5289_v24 = vpop.f32.mrb[111].mxu1 }
0x1371   : > { %v5325_v53 = vpop.f32.mrb[104].mxu1 }
0x1372   : > { %v6005_v25 = vadd.f32 %v5325_v53, %v5223_v14  ;;  %v5327_v21 = vpop.f32.mrb[105].mxu1 }
0x1373   : > { %v6006_v26 = vadd.f32 %v5327_v21, %v5225_v55  ;;  %v5329_v30 = vpop.f32.mrb[106].mxu1 }
0x1374   : > { %v5342_v19 = vadd.f32 %v6005_v25, %v8227_v37  ;;  %v6007_v40 = vadd.f32 %v5329_v30, %v5227_v11  ;;  %v5331_v43 = vpop.f32.mrb[107].mxu1 }
0x1375   : > { %v5343_v15 = vadd.f32 %v6006_v26, %v8222_v59  ;;  %v6008_v2 = vadd.f32 %v5331_v43, %v5229_v27 }
0x1376   : > { %v5360_v39 = vadd.f32 %v5353_v45, %v5342_v19  ;;  %v5344_v33 = vadd.f32 %v6007_v40, %v8233_v54 }
0x1377   : > { %v5361_v36 = vadd.f32 %v5357_v60, %v5343_v15  ;;  %v5345_v61 = vadd.f32 %v6008_v2, %v8229_v47 }
0x1378   : > { %5853 = vst [vmem:[%s8601_s12 + $0x30] sm:$0xff] %v5360_v39  ;;  %v5362_v48 = vadd.f32 %v5353_v45, %v5344_v33 }
0x1379   : > { %5854 = vst.msk [vmem:[%s8601_s12 + $0x38] sm:$0xff] %vm881_vm2, %v5361_v36  ;;  %v5363_v46 = vadd.f32 %v5357_v60, %v5345_v61  ;;  %v5335_v37 = vpop.f32.mrb[112].mxu1 }
0x137a   : > { %5855 = vst [vmem:[%s8601_s12 + $0x40] sm:$0xff] %v5362_v48  ;;  %v5336_v59 = vadd.f32 %v5335_v37, %v5285_v31  ;;  %v5337_v54 = vpop.f32.mrb[113].mxu1 }
0x137b   : > { %5856 = vst.msk [vmem:[%s8601_s12 + $0x48] sm:$0xff] %vm881_vm2, %v5363_v46  ;;  %v5338_v47 = vadd.f32 %v5337_v54, %v5287_v51  ;;  %v5339_v22 = vpop.f32.mrb[114].mxu1 }
0x137c   : > { %v5346_v62 = vadd.f32 %v5336_v59, %v8245_v6  ;;  %v5340_v23 = vpop.f32.mrb[115].mxu1 }
0x137d   : > { %v5347_v10 = vadd.f32 %v5338_v47, %v8247_v8 }
0x137e   : > { %v5364_v35 = vadd.f32 %v5353_v45, %v5346_v62 }
0x137f   : > { %v5365_v7 = vadd.f32 %v5357_v60, %v5347_v10 }
0x1380   : > { %5857 = vst [vmem:[%s8601_s12 + $0x50] sm:$0x1] %v5364_v35 }
0x1381   : > { %5858 = vst.msk [vmem:[%s8601_s12 + $0x58] sm:$0x1] %vm892_vm4, %v5365_v7 }
0x1382 PF: > { %s8618_s29 = sld [smem:[#allocation2_spill]] }
0x1388   : > { %s22_s21 = sadd.s32 1, %s8618_s29  }
0x1389   : > { %p19_p5 = scmp.ge.s32.totalorder %s22_s21, 4  }
0x138b   :  { %21 = sbr.rel (!%p19_p5) target bundleno = 8 (0x8), region = 129 }

// kernel: vit_reconstruction_forward.9
= control target key start
LH: loop header
LB: loop body
LE: loop exit
PB: predicated region body
PF: predicated region fallthrough
CT: control target
= control target key end

     0   :  { %s1847_s0 = inlined_call_operand.vmem [shape: f32[2,3,34,34], index: 0, kind: input, shape index: {}]   ;;  %s1848_s1 = inlined_call_operand.vmem [shape: f32[27], index: 1, kind: input, shape index: {}]   ;;  %s1849_s2 = inlined_call_operand.<no memory space> [shape: f32[1], index: 2, kind: input, shape index: {}]   ;;  %s1850_s3 = inlined_call_operand.hbm [shape: f32[2,1,32,32], index: 3, kind: output, shape index: {}]  }
   0x1   :  { %8 = sst [smem:[#allocation2]] %s1849_s2 }
   0x2   :  { %9 = vsyncpa [#allocation5], 0 }
   0x3   :  { %10 = vsyncpa [#allocation4], 0 }
   0x4   :  { %12 = vsyncpa [#allocation4 + $0x1], 0  ;;  %s1319_s14 = smov 0   ;;  %s1321_s15 = smov 0  }
   0x5   :  { %s1323_s16 = smov 0   ;;  %s1325_s17 = smov 0  }
   0x6 LB: > { %s1340_s2 = sadd.s32 4294967295, %s1288_s17   ;;  %s1102_s18 = sadd.s32 4294967294, %s1288_s17   ;;  %s1288_s17 = sphi %s1325_s17, %s1857_s17   ;;  %s1284_s16 = sphi %s1323_s16, %s1856_s16   ;;  %s1280_s15 = sphi %s1321_s15, %s1855_s15   ;;  %s1276_s14 = sphi %s1319_s14, %s1854_s14  }
   0x7   : > { %s1344_s19 = sadd.s32 1, %s1288_s17   ;;  %s93_s20 = sadd.s32 1, %s1284_s16 }
   0x8   : > { %s90_s21 = ssub.s32 %s1288_s17, %s1344_s19  ;;  %p103_p0 = scmp.ne.s32.totalorder %s1284_s16, %s1280_s15 }
   0x9   : > { %p91_p1 = scmp.eq.s32.totalorder %s90_s21, 0  ;;  %p104_p2 = scmp.eq.s32.totalorder %s1340_s2, 1 }
   0xa   : > { %p109_p3 = scmp.ne.s32.totalorder %s1280_s15, %s1276_s14  ;;  %p110_p4 = scmp.eq.s32.totalorder %s1102_s18, 1 }
   0xb   : > { %s1355_s22 = scalar_select %p91_p1, %s1284_s16, %s93_s20  }
   0xc   : > { %p1357_p5 = por %p104_p2, %p103_p0  ;;  %p1361_p6 = por %p110_p4, %p109_p3 }
   0xd   : > { %p1103_p7 = scmp.ge.s32.totalorder %s1288_s17, 1  ;;  %p117_p8 = scmp.lt.s32.totalorder %s1288_s17, 3 }
   0xe   : > { %p1167_p9 = scmp.eq.s32.totalorder %s1340_s2, 0  ;;  %s130_s28 = sshll.u32 %s1848_s1, 4  ;;  %s131_s28 = int_to_ptr.vmem [resolvable:$true] %s130_s28 }
   0xf   : > { %p1368_p10 = pnand %p1103_p7, %p117_p8  ;;  %s1207_s29 = scalar_lea.vmem %s131_s28, 16 }
  0x10   : > { %p1208_p13 = scmp.ne.s32.totalorder %s131_s28, %s1207_s29  ;;  %p1215_p3 = scmp.lt.s32.totalorder %s131_s28, %s131_s28 }
  0x11   : > { %p1159_p11 = pneg %p1368_p10  ;;  %p1216_p4 = scmp.lt.s32.totalorder %s1207_s29, %s1207_s29 }
  0x13   : > { %p1160_p12 = pnand %p1167_p9, %p1159_p11  ;;  %p1217_p7 = por %p1216_p4, %p1215_p3 }
  0x15   : > { %p1209_p0 = pneg %p1160_p12 }
  0x17   : > { %p1210_p1 = pnand %p1209_p0, %p1208_p13 }
  0x19   : > { %p1211_p2 = pneg %p1210_p1 }
  0x1b   : > { %p1218_p8 = pnand %p1217_p7, %p1211_p2 }
  0x1d   : > { %1221 = shalt.err (!%p1218_p8)
}
  0x1e   : > { %s1290_s30 = smov [#allocation3]   ;;  %154 = sbr.rel (%p1368_p10) target bundleno = 322 (0x142), region = 32 }
  0x1f   : > { %1162 = dma.vmem_to_smem (!%p1160_p12), %s131_s28, 16, %s1290_s30, [#allocation5]  }
  0x25   : > { %1267 = dma.done.wait (%p1167_p9), [#allocation5], 16  }
  0x26   : > { %1269 = vsyncadd (%p1167_p9), [#allocation5], 4294967280 }
  0x27   : > { %160 = sfence }
  0x28   : > { %p179_p11 = scmp.lt.s32.totalorder %s1340_s2, 1  ;;  %s1110_s4 = sld [smem:[#allocation3 + $0x1]]  ;;  %vm265_vm0 = vcmask 1046528   ;;  %vm369_vm1 = vcmask 1045504   ;;  %vm1009_vm2 = vcmask 261120  }
  0x29   : > { %s1111_s6 = sld [smem:[#allocation3 + $0x2]]  ;;  %s1113_s8 = sld [smem:[#allocation3 + $0x4]] }
  0x2a   : > { %s180_s5 = scalar_select %p179_p11, %s1340_s2, 1 }
  0x2b   : > { %s1291_s12 = smov 127   ;;  %s1114_s13 = sld [smem:[#allocation3 + $0x5]] }
  0x2c   : > { %s1152_s7 = smul.u32 120, %s180_s5  ;;  %s1292_s18 = smov 126  }
  0x2d   : > { %s1116_s20 = sld [smem:[#allocation3 + $0x7]]  ;;  %s1117_s21 = sld [smem:[#allocation3 + $0x8]] }
  0x2e   : > { %s1390_s11 = scalar_lea.vmem %s1847_s0, %s1152_s7  ;;  %v202_v0 = vstv %s1110_s4  ;;  %s1124_s25 = sld [smem:[#allocation3 + $0xa]] }
  0x2f   : > { %v1393_v1 = vld [vmem:[%s1390_s11 + $0x10] sm:$0xff]  ;;  %v1396_v2 = vld [vmem:[%s1390_s11] sm:$0xff]  ;;  %v1399_v3 = vld [vmem:[%s1390_s11 + $0x18] sm:$0xff]  ;;  %v228_v9 = vstv %s1111_s6  ;;  %s1127_s26 = sld [smem:[#allocation3 + $0xd]]  ;;  %s1125_s27 = sld [smem:[#allocation3 + $0xb]] }
  0x30   : > { %v205_v4 = vmul.f32 %v202_v0, %v1393_v1  ;;  %v203_v5 = vmul.f32 %v202_v0, %v1396_v2  ;;  %v1404_v6 = vld [vmem:[%s1390_s11 + $0x8] sm:$0xff]  ;;  %v206_v7 = vmul.f32 %v202_v0, %v1399_v3  ;;  %v284_v10 = vstv %s1113_s8  ;;  %v1418_v16 = vld [vmem:[%s1390_s11 + $0x20] sm:$0x3]  ;;  %s1112_s28 = sld [smem:[#allocation3 + $0x3]]  ;;  %s1128_s29 = sld [smem:[#allocation3 + $0xe]] }
  0x31   : > { %v204_v8 = vmul.f32 %v202_v0, %v1404_v6  ;;  %v230_v11 = vmul.f32 %v228_v9, %v1404_v6  ;;  %v229_v12 = vmul.f32 %v228_v9, %v1396_v2  ;;  %v286_v13 = vmul.f32 %v284_v10, %v1404_v6  ;;  %s1496_s30 = sld [smem:[#allocation3 + $0x10]]  ;;  %s1502_s4 = sld [smem:[#allocation3 + $0x6]] }
  0x32   : > { %215 = vrot.lane.b32.xlu1 %v205_v4, %s1291_s12  ;;  %211 = vrot.lane.b32.xlu0 %v203_v5, %s1291_s12  ;;  %v287_v14 = vmul.f32 %v284_v10, %v1393_v1  ;;  %v285_v15 = vmul.f32 %v284_v10, %v1396_v2  ;;  %v232_v17 = vmul.f32 %v228_v9, %v1399_v3  ;;  %v321_v20 = vstv %s1114_s13  ;;  %s1512_s5 = sld [smem:[#allocation3 + $0xc]]  ;;  %s1525_s6 = sld [smem:[#allocation3 + $0xf]] }
  0x33   : > { %v231_v18 = vmul.f32 %v228_v9, %v1393_v1  ;;  %v288_v19 = vmul.f32 %v284_v10, %v1399_v3  ;;  %v296_v21 = vrot.slane %v286_v13, 1  ;;  %v289_v24 = vmul.f32 %v284_v10, %v1418_v16  ;;  %s1592_s7 = sld [smem:[#allocation3 + $0x11]]  ;;  %s1138_s8 = sld [smem:[#allocation3 + $0x13]] }
  0x34   : > { %v298_v22 = vrot.slane %v287_v14, 1  ;;  %v295_v23 = vrot.slane %v285_v15, 1  ;;  %v323_v25 = vmul.f32 %v321_v20, %v1404_v6  ;;  %v324_v26 = vmul.f32 %v321_v20, %v1393_v1  ;;  %v1474_v15 = vld [vmem:[%s1390_s11 + $0x30] sm:$0xff]  ;;  %s1139_s9 = sld [smem:[#allocation3 + $0x14]]  ;;  %s1141_s10 = sld [smem:[#allocation3 + $0x16]] }
  0x35   : > { %v322_v27 = vmul.f32 %v321_v20, %v1396_v2  ;;  %v300_v30 = vrot.slane %v288_v19, 1  ;;  %v302_v31 = vrot.slane %v289_v24, 1  ;;  %v325_v35 = vmul.f32 %v321_v20, %v1399_v3  ;;  %s191_s13 = sld [smem:[#allocation3]] }
  0x36   : > { %217 = vrot.lane.b32.xlu1 %v206_v7, %s1291_s12  ;;  %213 = vrot.lane.b32.xlu0 %v204_v8, %s1291_s12  ;;  %v299_v28 = vsel %vm265_vm0, %v296_v21, %v298_v22  ;;  %v297_v29 = vsel %vm265_vm0, %v295_v23, %v296_v21  ;;  %v333_v32 = vrot.slane %v323_v25, 1  ;;  %v335_v33 = vrot.slane %v324_v26, 1  ;;  %v1483_v21 = vld [vmem:[%s1390_s11 + $0x38] sm:$0xff]  ;;  %v1491_v26 = vld [vmem:[%s1390_s11 + $0x48] sm:$0x3] }
  0x37   : > { %v332_v34 = vrot.slane %v322_v27, 1  ;;  %v303_v36 = vsel %vm265_vm0, %v300_v30, %v302_v31  ;;  %v301_v37 = vsel %vm265_vm0, %v298_v22, %v300_v30  ;;  %v326_v38 = vmul.f32 %v321_v20, %v1418_v16  ;;  %v1480_v20 = vld [vmem:[%s1390_s11 + $0x40] sm:$0xff] }
  0x38   : > { %v388_v39 = vstv %s1116_s20  ;;  %v336_v40 = vsel %vm265_vm0, %v333_v32, %v335_v33  ;;  %v337_v42 = vrot.slane %v325_v35, 1  ;;  %v425_v50 = vstv %s1117_s21  ;;  %s1142_s20 = sld [smem:[#allocation3 + $0x17]]  ;;  %s184_s21 = sld [smem:[#allocation2]] }
  0x39   : > { %v334_v41 = vsel %vm265_vm0, %v332_v34, %v333_v32  ;;  %v339_v43 = vrot.slane %v326_v38, 1  ;;  %v390_v44 = vmul.f32 %v388_v39, %v1404_v6  ;;  %v391_v45 = vmul.f32 %v388_v39, %v1393_v1 }
  0x3a   : > { %239 = vrot.lane.b32.xlu1 %v230_v11, %s1292_s18  ;;  %237 = vrot.lane.b32.xlu0 %v229_v12, %s1292_s18  ;;  %v389_v46 = vmul.f32 %v388_v39, %v1396_v2  ;;  %v338_v47 = vsel %vm265_vm0, %v335_v33, %v337_v42  ;;  %v392_v48 = vmul.f32 %v388_v39, %v1399_v3  ;;  %v559_v19 = vstv %s1127_s26  ;;  %s1140_s26 = sld [smem:[#allocation3 + $0x15]] }
  0x3b   : > { %v393_v49 = vmul.f32 %v388_v39, %v1418_v16  ;;  %v340_v51 = vsel %vm265_vm0, %v337_v42, %v339_v43  ;;  %v400_v52 = vrot.slane %v390_v44, 2  ;;  %v402_v53 = vrot.slane %v391_v45, 2 }
  0x3c   : > { %v399_v54 = vrot.slane %v389_v46, 2  ;;  %v404_v55 = vrot.slane %v392_v48, 2  ;;  %v427_v57 = vmul.f32 %v425_v50, %v1404_v6  ;;  %v428_v60 = vmul.f32 %v425_v50, %v1393_v1 }
  0x3d   : > { %v406_v56 = vrot.slane %v393_v49, 2  ;;  %v403_v58 = vsel %vm369_vm1, %v400_v52, %v402_v53  ;;  %v426_v61 = vmul.f32 %v425_v50, %v1396_v2  ;;  %v429_v7 = vmul.f32 %v425_v50, %v1399_v3 }
  0x3e   : > { %243 = vrot.lane.b32.xlu1 %v232_v17, %s1292_s18  ;;  %241 = vrot.lane.b32.xlu0 %v231_v18, %s1292_s18  ;;  %v401_v59 = vsel %vm369_vm1, %v399_v54, %v400_v52  ;;  %v405_v63 = vsel %vm369_vm1, %v402_v53, %v404_v55  ;;  %v437_v0 = vrot.slane %v427_v57, 2  ;;  %v439_v4 = vrot.slane %v428_v60, 2  ;;  %v1477_v18 = vld [vmem:[%s1390_s11 + $0x28] sm:$0xff] }
  0x3f   : > { %v407_v62 = vsel %vm369_vm1, %v404_v55, %v406_v56  ;;  %v436_v5 = vrot.slane %v426_v61, 2  ;;  %v430_v8 = vmul.f32 %v425_v50, %v1418_v16  ;;  %v441_v11 = vrot.slane %v429_v7, 2 }
  0x40   : > { %v440_v9 = vsel %vm369_vm1, %v437_v0, %v439_v4  ;;  %v478_v17 = vstv %s1124_s25  ;;  %v504_v24 = vstv %s1125_s27  ;;  %v561_v25 = vmul.f32 %v1474_v15, %v559_v19  ;;  %s1144_s25 = sld [smem:[#allocation3 + $0x19]]  ;;  %s1143_s27 = sld [smem:[#allocation3 + $0x18]] }
  0x41   : > { %v438_v10 = vsel %vm369_vm1, %v436_v5, %v437_v0  ;;  %v443_v12 = vrot.slane %v430_v8, 2  ;;  %v442_v14 = vsel %vm369_vm1, %v439_v4, %v441_v11  ;;  %v480_v22 = vmul.f32 %v1474_v15, %v478_v17 }
  0x42   : > { %306 = vrot.lane.b32.xlu1 %v299_v28, %s1291_s12  ;;  %304 = vrot.lane.b32.xlu0 %v297_v29, %s1291_s12  ;;  %v479_v23 = vmul.f32 %v1477_v18, %v478_v17  ;;  %v482_v27 = vmul.f32 %v1480_v20, %v478_v17  ;;  %v481_v28 = vmul.f32 %v1483_v21, %v478_v17  ;;  %v254_v30 = vstv %s1112_s28  ;;  %s176_s28 = sand.u32 1, %s1280_s15  }
  0x43   : > { %v444_v13 = vsel %vm369_vm1, %v441_v11, %v443_v12  ;;  %v562_v29 = vmul.f32 %v1483_v21, %v559_v19  ;;  %v506_v31 = vmul.f32 %v1474_v15, %v504_v24  ;;  %v560_v32 = vmul.f32 %v1477_v18, %v559_v19 }
  0x44   : > { %v563_v33 = vmul.f32 %v1480_v20, %v559_v19  ;;  %v256_v34 = vmul.f32 %v254_v30, %v1404_v6  ;;  %v564_v35 = vmul.f32 %v1491_v26, %v559_v19  ;;  %v255_v38 = vmul.f32 %v254_v30, %v1396_v2 }
  0x45   : > { %v505_v39 = vmul.f32 %v1477_v18, %v504_v24  ;;  %v258_v42 = vmul.f32 %v254_v30, %v1399_v3  ;;  %v573_v43 = vrot.slane %v562_v29, 1  ;;  %v259_v46 = vmul.f32 %v254_v30, %v1418_v16 }
  0x46   : > { %310 = vrot.lane.b32.xlu1 %v303_v36, %s1291_s12  ;;  %308 = vrot.lane.b32.xlu0 %v301_v37, %s1291_s12  ;;  %v596_v36 = vstv %s1128_s29  ;;  %v257_v37 = vmul.f32 %v254_v30, %v1393_v1  ;;  %v266_v45 = vrot.slane %v255_v38, 1  ;;  %v575_v48 = vrot.slane %v563_v33, 1  ;;  %s1108_s29 = sshll.u32 %s176_s28, 5 }
  0x47   : > { %v1515_v49 = vmul.f32 %v1474_v15, %v596_v36  ;;  %v271_v50 = vrot.slane %v258_v42, 1  ;;  %v273_v54 = vrot.slane %v259_v46, 1  ;;  %v508_v55 = vmul.f32 %v1480_v20, %v504_v24 }
  0x48   : > { %v269_v44 = vrot.slane %v257_v37, 1  ;;  %v507_v57 = vmul.f32 %v1483_v21, %v504_v24  ;;  %v358_v0 = vstv %s1502_s4  ;;  %v1552_v7 = vmul.f32 %v1480_v20, %v596_v36 }
  0x49   : > { %v1539_v60 = vsel %vm265_vm0, %v271_v50, %v273_v54  ;;  %v608_v5 = vrot.slane %v1515_v49, 1  ;;  %v360_v8 = vmul.f32 %v358_v0, %v1404_v6  ;;  %v362_v11 = vmul.f32 %v358_v0, %v1399_v3 }
  0x4a   : > { %343 = vrot.lane.b32.xlu1 %v336_v40, %s1292_s18  ;;  %341 = vrot.lane.b32.xlu0 %v334_v41, %s1292_s18  ;;  %v571_v40 = vrot.slane %v561_v25, 1  ;;  %v267_v41 = vrot.slane %v256_v34, 1  ;;  %v1529_v56 = vsel %vm265_vm0, %v269_v44, %v271_v50  ;;  %v363_v12 = vmul.f32 %v358_v0, %v1418_v16 }
  0x4b   : > { %v371_v17 = vrot.slane %v360_v8, 2  ;;  %v530_v19 = vstv %s1512_s5  ;;  %v375_v24 = vrot.slane %v362_v11, 2  ;;  %v612_v16 = vrot.slane %v1552_v7, 1  ;;  %s1151_s5 = sshll.u32 %s1340_s2, 9  ;;  %s1806_s2 = scalar_lea.sflag [#allocation4], %s176_s28 }
  0x4c   : > { %v1520_v52 = vsel %vm265_vm0, %v267_v41, %v269_v44  ;;  %v1523_v53 = vsel %vm265_vm0, %v266_v45, %v267_v41  ;;  %v574_v61 = vsel %vm265_vm0, %v571_v40, %v573_v43  ;;  %v377_v25 = vrot.slane %v363_v12, 2 }
  0x4d   : > { %v633_v29 = vstv %s1525_s6  ;;  %v531_v37 = vmul.f32 %v1477_v18, %v530_v19  ;;  %v534_v38 = vmul.f32 %v1480_v20, %v530_v19 }
  0x4e   : > { %347 = vrot.lane.b32.xlu1 %v340_v51, %s1292_s18  ;;  %345 = vrot.lane.b32.xlu0 %v338_v47, %s1292_s18  ;;  %v570_v47 = vrot.slane %v560_v32, 1  ;;  %v577_v51 = vrot.slane %v564_v35, 1  ;;  %v1575_v32 = vsel %vm369_vm1, %v375_v24, %v377_v25  ;;  %v532_v35 = vmul.f32 %v1474_v15, %v530_v19 }
  0x4f   : > { %v636_v41 = vmul.f32 %v1483_v21, %v633_v29  ;;  %v541_v44 = vrot.slane %v531_v37, 1  ;;  %v634_v45 = vmul.f32 %v1477_v18, %v633_v29  ;;  %v546_v46 = vrot.slane %v534_v38, 1 }
  0x50   : > { %v578_v4 = vsel %vm265_vm0, %v575_v48, %v577_v51  ;;  %v542_v42 = vrot.slane %v532_v35, 1 }
  0x51   : > { %v647_v49 = vrot.slane %v636_v41, 2  ;;  %v644_v54 = vrot.slane %v634_v45, 2 }
  0x52   : > { %410 = vrot.lane.b32.xlu1 %v403_v58, %s1291_s12  ;;  %408 = vrot.lane.b32.xlu0 %v401_v59, %s1291_s12  ;;  %v1533_v58 = vmul.f32 %v1483_v21, %v596_v36  ;;  %v1536_v59 = vstv %s1496_s30  ;;  %v1598_v51 = vsel %vm265_vm0, %v541_v44, %v542_v42  ;;  %s178_s30 = scalar_lea.vmem [#allocation6], %s1108_s29 }
  0x53   : > { %v664_v34 = vmul.f32 %v1474_v15, %v1536_v59  ;;  %v663_v11 = vmul.f32 %v1477_v18, %v1536_v59  ;;  %v667_v25 = vmul.f32 %v1491_v26, %v1536_v59  ;;  %s1028_s4 = sshll.u32 %s178_s30, 4  ;;  %s1795_s4 = int_to_ptr.vmem [resolvable:$true] %s1028_s4 }
  0x55   : > { %v680_v35 = vrot.slane %v667_v25, 2 }
  0x56   : > { %414 = vrot.lane.b32.xlu1 %v407_v62, %s1291_s12  ;;  %412 = vrot.lane.b32.xlu0 %v405_v63, %s1291_s12  ;;  %v572_v62 = vsel %vm265_vm0, %v570_v47, %v571_v40  ;;  %v1544_v63 = vmul.f32 %v1477_v18, %v596_v36  ;;  %v635_v40 = vmul.f32 %v1474_v15, %v633_v29 }
  0x5a   : > { %447 = vrot.lane.b32.xlu1 %v440_v9, %s1292_s18  ;;  %445 = vrot.lane.b32.xlu0 %v438_v10, %s1292_s18  ;;  %v361_v9 = vmul.f32 %v358_v0, %v1393_v1  ;;  %v359_v10 = vmul.f32 %v358_v0, %v1396_v2  ;;  %v665_v0 = vmul.f32 %v1483_v21, %v1536_v59 }
  0x5e   : > { %451 = vrot.lane.b32.xlu1 %v444_v13, %s1292_s18  ;;  %449 = vrot.lane.b32.xlu0 %v442_v14, %s1292_s18  ;;  %v576_v13 = vsel %vm265_vm0, %v573_v43, %v575_v48  ;;  %v610_v14 = vrot.slane %v1533_v58, 1  ;;  %v645_v48 = vrot.slane %v635_v40, 2 }
  0x60   : > { %v1617_v7 = vsel %vm369_vm1, %v644_v54, %v645_v48  ;;  %v1662_v54 = vld [vmem:[%s1390_s11 + $0x50] sm:$0xff] }
  0x62   : > { %489 = vrot.lane.b32.xlu1 %v480_v22, %s1291_s12  ;;  %487 = vrot.lane.b32.xlu0 %v479_v23, %s1291_s12  ;;  %v373_v22 = vrot.slane %v361_v9, 2  ;;  %v370_v23 = vrot.slane %v359_v10, 2 }
  0x64   : > { %v1569_v30 = vsel %vm369_vm1, %v371_v17, %v373_v22  ;;  %v1578_v33 = vsel %vm369_vm1, %v373_v22, %v375_v24  ;;  %v676_v22 = vrot.slane %v665_v0, 2  ;;  %v673_v24 = vrot.slane %v663_v11, 2  ;;  %v1672_v0 = vld [vmem:[%s1390_s11 + $0x60] sm:$0xff] }
  0x65   : > { %v833_v11 = vstv %s1141_s10  ;;  %s1293_s10 = smov [#allocation6]  }
  0x66   : > { %493 = vrot.lane.b32.xlu1 %v482_v27, %s1291_s12  ;;  %491 = vrot.lane.b32.xlu0 %v481_v28, %s1291_s12  ;;  %v607_v27 = vrot.slane %v1544_v63, 1  ;;  %v601_v28 = vmul.f32 %v1491_v26, %v596_v36  ;;  %v533_v36 = vmul.f32 %v1483_v21, %v530_v19  ;;  %v611_v63 = vsel %vm265_vm0, %v608_v5, %v610_v14 }
  0x68   : > { %v544_v43 = vrot.slane %v533_v36, 1  ;;  %v609_v9 = vsel %vm265_vm0, %v607_v27, %v608_v5  ;;  %v614_v10 = vrot.slane %v601_v28, 1  ;;  %v666_v5 = vmul.f32 %v1480_v20, %v1536_v59 }
  0x69   : > { %v699_v27 = vstv %s1592_s7 }
  0x6a   : > { %515 = vrot.lane.b32.xlu1 %v506_v31, %s1292_s18  ;;  %513 = vrot.lane.b32.xlu0 %v505_v39, %s1292_s18  ;;  %v1572_v31 = vsel %vm369_vm1, %v370_v23, %v371_v17  ;;  %v535_v39 = vmul.f32 %v1491_v26, %v530_v19  ;;  %v1595_v50 = vsel %vm265_vm0, %v542_v42, %v544_v43  ;;  %v674_v19 = vrot.slane %v664_v34, 2 }
  0x6b   : > { %v1605_v58 = vsel %vm265_vm0, %v544_v43, %v546_v46  ;;  %v613_v17 = vsel %vm265_vm0, %v610_v14, %v612_v16  ;;  %v615_v23 = vsel %vm265_vm0, %v612_v16, %v614_v10  ;;  %v701_v14 = vmul.f32 %v1474_v15, %v699_v27 }
  0x6c   : > { %v548_v47 = vrot.slane %v535_v39, 1  ;;  %v677_v28 = vsel %vm369_vm1, %v674_v19, %v676_v22  ;;  %v675_v34 = vsel %vm369_vm1, %v673_v24, %v674_v19  ;;  %v702_v36 = vmul.f32 %v1483_v21, %v699_v27 }
  0x6d   : > { %v700_v16 = vmul.f32 %v1477_v18, %v699_v27  ;;  %v711_v37 = vrot.slane %v701_v14, 2  ;;  %v703_v38 = vmul.f32 %v1480_v20, %v699_v27  ;;  %v704_v42 = vmul.f32 %v1491_v26, %v699_v27 }
  0x6e   : > { %519 = vrot.lane.b32.xlu1 %v508_v55, %s1292_s18  ;;  %517 = vrot.lane.b32.xlu0 %v507_v57, %s1292_s18  ;;  %v637_v55 = vmul.f32 %v1480_v20, %v633_v29  ;;  %v1602_v57 = vsel %vm265_vm0, %v546_v46, %v548_v47  ;;  %v713_v40 = vrot.slane %v702_v36, 2  ;;  %v778_v10 = vstv %s1139_s9  ;;  %s1222_s9 = scalar_lea.vmem %s1795_s4, 512 }
  0x6f   : > { %v710_v41 = vrot.slane %v700_v16, 2  ;;  %v715_v45 = vrot.slane %v703_v38, 2  ;;  %v717_v46 = vrot.slane %v704_v42, 2  ;;  %v781_v25 = vmul.f32 %v1672_v0, %v778_v10  ;;  %p1223_p9 = scmp.ne.s32.totalorder %s1795_s4, %s1222_s9 }
  0x70   : > { %v649_v8 = vrot.slane %v637_v55, 2  ;;  %v714_v43 = vsel %vm369_vm1, %v711_v37, %v713_v40  ;;  %v192_v27 = vstv %s191_s13  ;;  %v870_v36 = vstv %s1142_s20  ;;  %s1226_s13 = sshll.u32 %s1293_s10, 4  ;;  %s1227_s13 = int_to_ptr.vmem [resolvable:$false] %s1226_s13 }
  0x71   : > { %v712_v44 = vsel %vm369_vm1, %v710_v41, %v711_v37  ;;  %v716_v47 = vsel %vm369_vm1, %v713_v40, %v715_v45  ;;  %v195_v16 = vmul.f32 %v192_v27, %v1393_v1  ;;  %v185_v38 = vstv %s184_s21  ;;  %p1224_p10 = pnand %p1223_p9, %p1357_p5  ;;  %s1228_s20 = scalar_lea.vmem %s1227_s13, 1024 }
  0x72   : > { %581 = vrot.lane.b32.xlu1 %v574_v61, %s1291_s12  ;;  %579 = vrot.lane.b32.xlu0 %v572_v62, %s1291_s12  ;;  %v1608_v61 = vsel %vm369_vm1, %v645_v48, %v647_v49  ;;  %v638_v62 = vmul.f32 %v1491_v26, %v633_v29  ;;  %v678_v29 = vrot.slane %v666_v5, 2  ;;  %v718_v26 = vsel %vm369_vm1, %v715_v45, %v717_v46  ;;  %v1659_v48 = vld [vmem:[%s1390_s11 + $0x58] sm:$0xff]  ;;  %p1229_p13 = scmp.lt.s32.totalorder %s1795_s4, %s1227_s13  ;;  %p1230_p0 = scmp.lt.s32.totalorder %s1228_s20, %s1222_s9 }
  0x73   : > { %v835_v19 = vmul.f32 %v1659_v48, %v833_v11  ;;  %v834_v5 = vmul.f32 %v1662_v54, %v833_v11  ;;  %v872_v42 = vmul.f32 %v1659_v48, %v870_v36  ;;  %v196_v1 = vmul.f32 %v192_v27, %v1399_v3  ;;  %p1225_p12 = pneg %p1224_p10 }
  0x74   : > { %v651_v12 = vrot.slane %v638_v62, 2  ;;  %v679_v59 = vsel %vm369_vm1, %v676_v22, %v678_v29  ;;  %v681_v39 = vsel %vm369_vm1, %v678_v29, %v680_v35  ;;  %v836_v22 = vmul.f32 %v1672_v0, %v833_v11  ;;  %p1231_p1 = por %p1230_p0, %p1229_p13 }
  0x75   : > { %v844_v35 = vrot.slane %v834_v5, 1  ;;  %v194_v46 = vmul.f32 %v192_v27, %v1404_v6  ;;  %v200_v6 = vadd.f32 %v196_v1, %v185_v38 }
  0x76   : > { %585 = vrot.lane.b32.xlu1 %v578_v4, %s1291_s12  ;;  %583 = vrot.lane.b32.xlu0 %v576_v13, %s1291_s12  ;;  %v1623_v4 = vsel %vm369_vm1, %v647_v49, %v649_v8  ;;  %v1626_v13 = vsel %vm369_vm1, %v649_v8, %v651_v12  ;;  %v752_v49 = vstv %s1138_s8  ;;  %v780_v12 = vmul.f32 %v1659_v48, %v778_v10  ;;  %s1800_s8 = scalar_lea.hbm %s1850_s3, %s1151_s5  ;;  %p1232_p2 = pnand %p1231_p1, %p1225_p12 }
  0x77   : > { %v754_v55 = vmul.f32 %v1659_v48, %v752_v49  ;;  %v753_v62 = vmul.f32 %v1662_v54, %v752_v49  ;;  %v847_v29 = vrot.slane %v836_v22, 1 }
  0x7a   : > { %618 = vrot.lane.b32.xlu1 %v611_v63, %s1292_s18  ;;  %616 = vrot.lane.b32.xlu0 %v609_v9, %s1292_s18  ;;  %v1669_v63 = vld [vmem:[%s1390_s11 + $0x68] sm:$0xff]  ;;  %v755_v9 = vmul.f32 %v1672_v0, %v752_v49 }
  0x7b   : > { %v756_v8 = vmul.f32 %v1669_v63, %v752_v49  ;;  %v782_v24 = vmul.f32 %v1669_v63, %v778_v10  ;;  %v837_v14 = vmul.f32 %v1669_v63, %v833_v11  ;;  %v874_v49 = vmul.f32 %v1669_v63, %v870_v36 }
  0x7e   : > { %622 = vrot.lane.b32.xlu1 %v615_v23, %s1292_s18  ;;  %620 = vrot.lane.b32.xlu0 %v613_v17, %s1292_s18  ;;  %v779_v17 = vmul.f32 %v1662_v54, %v778_v10  ;;  %v1686_v23 = vld [vmem:[%s1390_s11 + $0x70] sm:$0x3]  ;;  %s1145_s11 = sld [smem:[#allocation3 + $0x1a]] }
  0x7f   : > { %v875_v3 = vmul.f32 %v1686_v23, %v870_v36 }
  0x82   : > { %684 = vrot.lane.b32.xlu1 %v677_v28, %s1291_s12  ;;  %682 = vrot.lane.b32.xlu0 %v675_v34, %s1291_s12  ;;  %v845_v28 = vrot.slane %v835_v19, 1  ;;  %v838_v34 = vmul.f32 %v1686_v23, %v833_v11  ;;  %v198_v19 = vadd.f32 %v194_v46, %v185_v38 }
  0x84   : > { %v848_v37 = vsel %vm265_vm0, %v845_v28, %v847_v29  ;;  %v851_v40 = vrot.slane %v838_v34, 1  ;;  %v846_v41 = vsel %vm265_vm0, %v844_v35, %v845_v28  ;;  %v886_v28 = vrot.slane %v874_v49, 1 }
  0x86   : > { %688 = vrot.lane.b32.xlu1 %v681_v39, %s1291_s12  ;;  %686 = vrot.lane.b32.xlu0 %v679_v59, %s1291_s12  ;;  %v193_v59 = vmul.f32 %v192_v27, %v1396_v2  ;;  %v849_v39 = vrot.slane %v837_v14, 1  ;;  %v199_v2 = vadd.f32 %v195_v16, %v185_v38 }
  0x88   : > { %v197_v45 = vadd.f32 %v193_v59, %v185_v38 }
  0x8a   : > { %721 = vrot.lane.b32.xlu1 %v714_v43, %s1292_s18  ;;  %719 = vrot.lane.b32.xlu0 %v712_v44, %s1292_s18  ;;  %v873_v43 = vmul.f32 %v1672_v0, %v870_v36  ;;  %v871_v44 = vmul.f32 %v1662_v54, %v870_v36 }
  0x8e   : > { %725 = vrot.lane.b32.xlu1 %v718_v26, %s1292_s18  ;;  %723 = vrot.lane.b32.xlu0 %v716_v47, %s1292_s18  ;;  %v852_v26 = vsel %vm265_vm0, %v849_v39, %v851_v40  ;;  %v850_v47 = vsel %vm265_vm0, %v847_v29, %v849_v39  ;;  %v888_v29 = vrot.slane %v875_v3, 1  ;;  %v973_v39 = vstv %s1145_s11 }
  0x8f   : > { %v976_v49 = vmul.f32 %v1672_v0, %v973_v39 }
  0x90   : > { %v889_v40 = vsel %vm265_vm0, %v886_v28, %v888_v29 }
  0x92   : > { %763 = vrot.lane.b32.xlu1 %v754_v55, %s1291_s12  ;;  %761 = vrot.lane.b32.xlu0 %v753_v62, %s1291_s12  ;;  %v936_v55 = vstv %s1144_s25  ;;  %v882_v62 = vrot.slane %v872_v42, 1 }
  0x93   : > { %v938_v22 = vmul.f32 %v1659_v48, %v936_v55  ;;  %v939_v5 = vmul.f32 %v1672_v0, %v936_v55  ;;  %v941_v38 = vmul.f32 %v1686_v23, %v936_v55 }
  0x95   : > { %v948_v16 = vrot.slane %v938_v22, 2  ;;  %v950_v59 = vrot.slane %v939_v5, 2  ;;  %v987_v5 = vrot.slane %v976_v49, 2 }
  0x96   : > { %767 = vrot.lane.b32.xlu1 %v756_v8, %s1291_s12  ;;  %765 = vrot.lane.b32.xlu0 %v755_v9, %s1291_s12  ;;  %v884_v8 = vrot.slane %v873_v43, 1  ;;  %v881_v9 = vrot.slane %v871_v44, 1 }
  0x97   : > { %v951_v46 = vsel %vm369_vm1, %v948_v16, %v950_v59 }
  0x98   : > { %v883_v27 = vsel %vm265_vm0, %v881_v9, %v882_v62  ;;  %v974_v9 = vmul.f32 %v1662_v54, %v973_v39 }
  0x9a   : > { %789 = vrot.lane.b32.xlu1 %v780_v12, %s1292_s18  ;;  %787 = vrot.lane.b32.xlu0 %v779_v17, %s1292_s18 }
  0x9e   : > { %793 = vrot.lane.b32.xlu1 %v782_v24, %s1292_s18  ;;  %791 = vrot.lane.b32.xlu0 %v781_v25, %s1292_s18  ;;  %v937_v24 = vmul.f32 %v1662_v54, %v936_v55  ;;  %v885_v25 = vsel %vm265_vm0, %v882_v62, %v884_v8 }
  0xa0   : > { %v947_v42 = vrot.slane %v937_v24, 2 }
  0xa2   : > { %855 = vrot.lane.b32.xlu1 %v848_v37, %s1291_s12  ;;  %853 = vrot.lane.b32.xlu0 %v846_v41, %s1291_s12  ;;  %v940_v37 = vmul.f32 %v1669_v63, %v936_v55  ;;  %v887_v41 = vsel %vm265_vm0, %v884_v8, %v886_v28  ;;  %v949_v55 = vsel %vm369_vm1, %v947_v42, %v948_v16 }
  0xa4   : > { %v216_v10 = vpop.permute.xlu1 %215  ;;  %v212_v11 = vpop.permute.xlu0 %211 }
  0xa5   : > { %v225_v12 = vadd.f32 %v216_v10, %v199_v2  ;;  %v223_v17 = vadd.f32 %v212_v11, %v197_v45  ;;  %v975_v45 = vmul.f32 %v1659_v48, %v973_v39 }
  0xa6   : > { %859 = vrot.lane.b32.xlu1 %v852_v26, %s1291_s12  ;;  %857 = vrot.lane.b32.xlu0 %v850_v47, %s1291_s12  ;;  %v952_v26 = vrot.slane %v940_v37, 2  ;;  %v954_v47 = vrot.slane %v941_v38, 2 }
  0xa8   : > { %v218_v14 = vpop.permute.xlu1 %217  ;;  %v214_v34 = vpop.permute.xlu0 %213  ;;  %v953_v22 = vsel %vm369_vm1, %v950_v59, %v952_v26 }
  0xa9   : > { %v226_v35 = vadd.f32 %v218_v14, %v200_v6  ;;  %v224_v36 = vadd.f32 %v214_v34, %v198_v19  ;;  %v955_v19 = vsel %vm369_vm1, %v952_v26, %v954_v47 }
  0xaa   : > { %892 = vrot.lane.b32.xlu1 %v885_v25, %s1292_s18  ;;  %890 = vrot.lane.b32.xlu0 %v883_v27, %s1292_s18  ;;  %v984_v25 = vrot.slane %v974_v9, 2  ;;  %v978_v27 = vmul.f32 %v1686_v23, %v973_v39 }
  0xac   : > { %v240_v43 = vpop.permute.xlu1 %239  ;;  %v238_v44 = vpop.permute.xlu0 %237  ;;  %v991_v16 = vrot.slane %v978_v27, 2 }
  0xad   : > { %v250_v1 = vadd.f32 %v240_v43, %v224_v36  ;;  %v249_v2 = vadd.f32 %v238_v44, %v223_v17  ;;  %v985_v17 = vrot.slane %v975_v45, 2 }
  0xae   : > { %896 = vrot.lane.b32.xlu1 %v889_v40, %s1292_s18  ;;  %894 = vrot.lane.b32.xlu0 %v887_v41, %s1292_s18 }
  0xaf   : > { %v280_v62 = vadd.f32 %v1520_v52, %v250_v1  ;;  %v279_v8 = vadd.f32 %v1523_v53, %v249_v2  ;;  %v977_v52 = vmul.f32 %v1669_v63, %v973_v39  ;;  %v988_v34 = vsel %vm369_vm1, %v985_v17, %v987_v5 }
  0xb0   : > { %v244_v3 = vpop.permute.xlu1 %243  ;;  %v242_v10 = vpop.permute.xlu0 %241 }
  0xb1   : > { %v252_v11 = vadd.f32 %v244_v3, %v226_v35  ;;  %v251_v6 = vadd.f32 %v242_v10, %v225_v12  ;;  %v986_v35 = vsel %vm369_vm1, %v984_v25, %v985_v17  ;;  %v989_v36 = vrot.slane %v977_v52, 2 }
  0xb2   : > { %958 = vrot.lane.b32.xlu1 %v951_v46, %s1291_s12  ;;  %956 = vrot.lane.b32.xlu0 %v949_v55, %s1291_s12 }
  0xb3   : > { %v282_v53 = vadd.f32 %v1539_v60, %v252_v11  ;;  %v281_v24 = vadd.f32 %v1529_v56, %v251_v6  ;;  %v992_v38 = vsel %vm369_vm1, %v989_v36, %v991_v16  ;;  %v990_v39 = vsel %vm369_vm1, %v987_v5, %v989_v36 }
  0xb4   : > { %v307_v12 = vpop.permute.xlu1 %306  ;;  %v305_v28 = vpop.permute.xlu0 %304 }
  0xb5   : > { %v317_v29 = vadd.f32 %v307_v12, %v280_v62  ;;  %v316_v14 = vadd.f32 %v305_v28, %v279_v8 }
  0xb6   : > { %962 = vrot.lane.b32.xlu1 %v955_v19, %s1291_s12  ;;  %960 = vrot.lane.b32.xlu0 %v953_v22, %s1291_s12  ;;  %s1123_s12 = sld [smem:[#allocation3 + $0x9]] }
  0xb8   : > { %v311_v60 = vpop.permute.xlu1 %310  ;;  %v309_v59 = vpop.permute.xlu0 %308 }
  0xb9   : > { %v319_v56 = vadd.f32 %v311_v60, %v282_v53  ;;  %v318_v37 = vadd.f32 %v309_v59, %v281_v24 }
  0xba   : > { %995 = vrot.lane.b32.xlu1 %v988_v34, %s1292_s18  ;;  %993 = vrot.lane.b32.xlu0 %v986_v35, %s1292_s18 }
  0xbc   : > { %v344_v40 = vpop.permute.xlu1 %343  ;;  %v342_v41 = vpop.permute.xlu0 %341  ;;  %v468_v11 = vstv %s1123_s12 }
  0xbd   : > { %v354_v42 = vadd.f32 %v344_v40, %v317_v29  ;;  %v353_v43 = vadd.f32 %v342_v41, %v316_v14  ;;  %v469_v17 = vmul.f32 %v1477_v18, %v468_v11  ;;  %v471_v24 = vmul.f32 %v1483_v21, %v468_v11 }
  0xbe   : > { %999 = vrot.lane.b32.xlu1 %v992_v38, %s1292_s18  ;;  %997 = vrot.lane.b32.xlu0 %v990_v39, %s1292_s18  ;;  %s1137_s18 = sld [smem:[#allocation3 + $0x12]] }
  0xbf   : > { %v384_v44 = vadd.f32 %v1569_v30, %v354_v42  ;;  %v383_v1 = vadd.f32 %v1572_v31, %v353_v43  ;;  %v470_v31 = vmul.f32 %v1474_v15, %v468_v11 }
  0xc0   : > { %v348_v2 = vpop.permute.xlu1 %347  ;;  %v346_v45 = vpop.permute.xlu0 %345 }
  0xc1   : > { %v356_v46 = vadd.f32 %v348_v2, %v319_v56  ;;  %v355_v26 = vadd.f32 %v346_v45, %v318_v37 }
  0xc3   : > { %v386_v47 = vadd.f32 %v1575_v32, %v356_v46  ;;  %v385_v49 = vadd.f32 %v1578_v33, %v355_v26  ;;  %v472_v33 = vmul.f32 %v1480_v20, %v468_v11 }
  0xc4   : > { %v411_v55 = vpop.permute.xlu1 %410  ;;  %v409_v62 = vpop.permute.xlu0 %408 }
  0xc5   : > { %v421_v8 = vadd.f32 %v411_v55, %v384_v44  ;;  %v420_v9 = vadd.f32 %v409_v62, %v383_v1 }
  0xc8   : > { %v415_v3 = vpop.permute.xlu1 %414  ;;  %v413_v10 = vpop.permute.xlu0 %412 }
  0xc9   : > { %v423_v6 = vadd.f32 %v415_v3, %v386_v47  ;;  %v422_v30 = vadd.f32 %v413_v10, %v385_v49 }
  0xcc   : > { %v448_v19 = vpop.permute.xlu1 %447  ;;  %v446_v22 = vpop.permute.xlu0 %445 }
  0xcd   : > { %v458_v5 = vadd.f32 %v448_v19, %v421_v8  ;;  %v457_v52 = vadd.f32 %v446_v22, %v420_v9 }
  0xcf   : > { %v474_v32 = vadd.f32 %v470_v31, %v458_v5  ;;  %v473_v53 = vadd.f32 %v469_v17, %v457_v52 }
  0xd0   : > { %v452_v25 = vpop.permute.xlu1 %451  ;;  %v450_v27 = vpop.permute.xlu0 %449 }
  0xd1   : > { %v460_v12 = vadd.f32 %v452_v25, %v423_v6  ;;  %v459_v28 = vadd.f32 %v450_v27, %v422_v30 }
  0xd3   : > { %v476_v29 = vadd.f32 %v472_v33, %v460_v12  ;;  %v475_v14 = vadd.f32 %v471_v24, %v459_v28 }
  0xd4   : > { %v490_v34 = vpop.permute.xlu1 %489  ;;  %v488_v15 = vpop.permute.xlu0 %487 }
  0xd5   : > { %v500_v36 = vadd.f32 %v490_v34, %v474_v32  ;;  %v499_v16 = vadd.f32 %v488_v15, %v473_v53  ;;  %v804_v34 = vstv %s1140_s26 }
  0xd8   : > { %v494_v35 = vpop.permute.xlu1 %493  ;;  %v492_v18 = vpop.permute.xlu0 %491 }
  0xd9   : > { %v502_v38 = vadd.f32 %v494_v35, %v476_v29  ;;  %v501_v20 = vadd.f32 %v492_v18, %v475_v14 }
  0xdc   : > { %v516_v60 = vpop.permute.xlu1 %515  ;;  %v514_v59 = vpop.permute.xlu0 %513 }
  0xdd   : > { %v526_v56 = vadd.f32 %v516_v60, %v500_v36  ;;  %v525_v37 = vadd.f32 %v514_v59, %v499_v16  ;;  %v806_v59 = vmul.f32 %v1659_v48, %v804_v34 }
  0xdf   : > { %v555_v21 = vadd.f32 %v1595_v50, %v526_v56  ;;  %v554_v39 = vadd.f32 %v1598_v51, %v525_v37  ;;  %v807_v56 = vmul.f32 %v1672_v0, %v804_v34  ;;  %v805_v37 = vmul.f32 %v1662_v54, %v804_v34 }
  0xe0   : > { %v520_v40 = vpop.permute.xlu1 %519  ;;  %v518_v41 = vpop.permute.xlu0 %517 }
  0xe1   : > { %v528_v42 = vadd.f32 %v520_v40, %v502_v38  ;;  %v527_v43 = vadd.f32 %v518_v41, %v501_v20  ;;  %v808_v40 = vmul.f32 %v1669_v63, %v804_v34  ;;  %v809_v41 = vmul.f32 %v1686_v23, %v804_v34 }
  0xe3   : > { %v557_v44 = vadd.f32 %v1602_v57, %v528_v42  ;;  %v556_v1 = vadd.f32 %v1605_v58, %v527_v43 }
  0xe4   : > { %v582_v2 = vpop.permute.xlu1 %581  ;;  %v580_v45 = vpop.permute.xlu0 %579 }
  0xe5   : > { %v592_v47 = vadd.f32 %v582_v2, %v555_v21  ;;  %v591_v49 = vadd.f32 %v580_v45, %v554_v39 }
  0xe8   : > { %v586_v46 = vpop.permute.xlu1 %585  ;;  %v584_v26 = vpop.permute.xlu0 %583 }
  0xe9   : > { %v594_v9 = vadd.f32 %v586_v46, %v557_v44  ;;  %v593_v51 = vadd.f32 %v584_v26, %v556_v1  ;;  %v907_v44 = vstv %s1143_s27  ;;  %v816_v26 = vrot.slane %v806_v59, 1 }
  0xec   : > { %v619_v55 = vpop.permute.xlu1 %618  ;;  %v617_v62 = vpop.permute.xlu0 %616 }
  0xed   : > { %v629_v8 = vadd.f32 %v619_v55, %v592_v47  ;;  %v628_v50 = vadd.f32 %v617_v62, %v591_v49  ;;  %v818_v47 = vrot.slane %v807_v56, 1  ;;  %v815_v49 = vrot.slane %v805_v37, 1 }
  0xef   : > { %v658_v3 = vadd.f32 %v1608_v61, %v629_v8  ;;  %v657_v10 = vadd.f32 %v1617_v7, %v628_v50  ;;  %v820_v8 = vrot.slane %v808_v40, 1  ;;  %v822_v50 = vrot.slane %v809_v41, 1 }
  0xf0   : > { %v623_v11 = vpop.permute.xlu1 %622  ;;  %v621_v57 = vpop.permute.xlu0 %620 }
  0xf1   : > { %v631_v6 = vadd.f32 %v623_v11, %v594_v9  ;;  %v630_v58 = vadd.f32 %v621_v57, %v593_v51 }
  0xf3   : > { %v660_v30 = vadd.f32 %v1626_v13, %v631_v6  ;;  %v659_v31 = vadd.f32 %v1623_v4, %v630_v58  ;;  %v742_v4 = vstv %s1137_s18  ;;  %v819_v58 = vsel %vm265_vm0, %v816_v26, %v818_v47 }
  0xf4   : > { %v685_v17 = vpop.permute.xlu1 %684  ;;  %v683_v19 = vpop.permute.xlu0 %682  ;;  %v744_v16 = vmul.f32 %v1659_v48, %v742_v4  ;;  %v743_v60 = vmul.f32 %v1662_v54, %v742_v4  ;;  %v746_v21 = vmul.f32 %v1669_v63, %v742_v4  ;;  %v745_v39 = vmul.f32 %v1672_v0, %v742_v4 }
  0xf5   : > { %v695_v29 = vadd.f32 %v685_v17, %v658_v3  ;;  %v694_v14 = vadd.f32 %v683_v19, %v657_v10  ;;  %v909_v3 = vmul.f32 %v1659_v48, %v907_v44  ;;  %v908_v17 = vmul.f32 %v1662_v54, %v907_v44 }
  0xf6   : > { %v912_v54 = vmul.f32 %v1686_v23, %v907_v44 }
  0xf7   : > { %v918_v4 = vrot.slane %v908_v17, 2 }
  0xf8   : > { %v689_v22 = vpop.permute.xlu1 %688  ;;  %v687_v5 = vpop.permute.xlu0 %686  ;;  %v925_v59 = vrot.slane %v912_v54, 2 }
  0xf9   : > { %v697_v38 = vadd.f32 %v689_v22, %v660_v30  ;;  %v696_v20 = vadd.f32 %v687_v5, %v659_v31  ;;  %v817_v30 = vsel %vm265_vm0, %v815_v49, %v816_v26  ;;  %v910_v31 = vmul.f32 %v1672_v0, %v907_v44 }
  0xfa   : > { %v823_v5 = vsel %vm265_vm0, %v820_v8, %v822_v50  ;;  %v911_v0 = vmul.f32 %v1669_v63, %v907_v44 }
  0xfc   : > { %v722_v52 = vpop.permute.xlu1 %721  ;;  %v720_v32 = vpop.permute.xlu0 %719 }
  0xfd   : > { %v732_v18 = vadd.f32 %v722_v52, %v695_v29  ;;  %v731_v36 = vadd.f32 %v720_v32, %v694_v14  ;;  %v821_v52 = vsel %vm265_vm0, %v818_v47, %v820_v8 }
  0xff   : > { %v748_v45 = vadd.f32 %v744_v16, %v732_v18  ;;  %v747_v46 = vadd.f32 %v743_v60, %v731_v36  ;;  %v923_v60 = vrot.slane %v911_v0, 2 }
 0x100   : > { %v726_v53 = vpop.permute.xlu1 %725  ;;  %v724_v33 = vpop.permute.xlu0 %723 }
 0x101   : > { %v734_v1 = vadd.f32 %v726_v53, %v697_v38  ;;  %v733_v2 = vadd.f32 %v724_v33, %v696_v20  ;;  %v919_v53 = vrot.slane %v909_v3, 2 }
 0x103   : > { %v750_v10 = vadd.f32 %v746_v21, %v734_v1  ;;  %v749_v11 = vadd.f32 %v745_v39, %v733_v2  ;;  %v926_v21 = vsel %vm369_vm1, %v923_v60, %v925_v59 }
 0x104   : > { %v764_v24 = vpop.permute.xlu1 %763  ;;  %v762_v61 = vpop.permute.xlu0 %761 }
 0x105   : > { %v774_v55 = vadd.f32 %v764_v24, %v748_v45  ;;  %v773_v62 = vadd.f32 %v762_v61, %v747_v46 }
 0x108   : > { %v768_v25 = vpop.permute.xlu1 %767  ;;  %v766_v7 = vpop.permute.xlu0 %765 }
 0x109   : > { %v776_v19 = vadd.f32 %v768_v25, %v750_v10  ;;  %v775_v22 = vadd.f32 %v766_v7, %v749_v11 }
 0x10c   : > { %v790_v27 = vpop.permute.xlu1 %789  ;;  %v788_v12 = vpop.permute.xlu0 %787 }
 0x10d   : > { %v800_v57 = vadd.f32 %v790_v27, %v774_v55  ;;  %v799_v6 = vadd.f32 %v788_v12, %v773_v62  ;;  %v921_v12 = vrot.slane %v910_v31, 2 }
 0x10f   : > { %v829_v61 = vadd.f32 %v819_v58, %v800_v57  ;;  %v828_v27 = vadd.f32 %v817_v30, %v799_v6  ;;  %v924_v39 = vsel %vm369_vm1, %v921_v12, %v923_v60 }
 0x110   : > { %v794_v28 = vpop.permute.xlu1 %793  ;;  %v792_v13 = vpop.permute.xlu0 %791 }
 0x111   : > { %v802_v33 = vadd.f32 %v794_v28, %v776_v19  ;;  %v801_v24 = vadd.f32 %v792_v13, %v775_v22  ;;  %v922_v28 = vsel %vm369_vm1, %v919_v53, %v921_v12  ;;  %v920_v13 = vsel %vm369_vm1, %v918_v4, %v919_v53 }
 0x113   : > { %v831_v34 = vadd.f32 %v823_v5, %v802_v33  ;;  %v830_v18 = vadd.f32 %v821_v52, %v801_v24 }
 0x114   : > { %v856_v15 = vpop.permute.xlu1 %855  ;;  %v854_v35 = vpop.permute.xlu0 %853 }
 0x115   : > { %v866_v25 = vadd.f32 %v856_v15, %v829_v61  ;;  %v865_v7 = vadd.f32 %v854_v35, %v828_v27 }
 0x118   : > { %v860_v42 = vpop.permute.xlu1 %859  ;;  %v858_v43 = vpop.permute.xlu0 %857 }
 0x119   : > { %v868_v56 = vadd.f32 %v860_v42, %v831_v34  ;;  %v867_v63 = vadd.f32 %v858_v43, %v830_v18 }
 0x11c   : > { %v893_v9 = vpop.permute.xlu1 %892  ;;  %v891_v51 = vpop.permute.xlu0 %890 }
 0x11d   : > { %v903_v36 = vadd.f32 %v893_v9, %v866_v25  ;;  %v902_v16 = vadd.f32 %v891_v51, %v865_v7 }
 0x11f   : > { %v932_v38 = vadd.f32 %v922_v28, %v903_v36  ;;  %v931_v20 = vadd.f32 %v920_v13, %v902_v16 }
 0x120   : > { %v897_v32 = vpop.permute.xlu1 %896  ;;  %v895_v48 = vpop.permute.xlu0 %894 }
 0x121   : > { %v905_v15 = vadd.f32 %v897_v32, %v868_v56  ;;  %v904_v35 = vadd.f32 %v895_v48, %v867_v63 }
 0x123   : > { %v934_v42 = vadd.f32 %v926_v21, %v905_v15  ;;  %v933_v43 = vadd.f32 %v924_v39, %v904_v35 }
 0x124   : > { %v959_v29 = vpop.permute.xlu1 %958  ;;  %v957_v14 = vpop.permute.xlu0 %956 }
 0x125   : > { %v969_v40 = vadd.f32 %v959_v29, %v932_v38  ;;  %v968_v41 = vadd.f32 %v957_v14, %v931_v20 }
 0x128   : > { %v963_v37 = vpop.permute.xlu1 %962  ;;  %v961_v23 = vpop.permute.xlu0 %960 }
 0x129   : > { %v971_v46 = vadd.f32 %v963_v37, %v934_v42  ;;  %v970_v26 = vadd.f32 %v961_v23, %v933_v43 }
 0x12c   : > { %v996_v44 = vpop.permute.xlu1 %995  ;;  %v994_v1 = vpop.permute.xlu0 %993 }
 0x12d   : > { %v1006_v2 = vadd.f32 %v996_v44, %v969_v40  ;;  %v1005_v45 = vadd.f32 %v994_v1, %v968_v41 }
 0x12f   : > { %1011 = vst.msk [vmem:[%s178_s30 + $0x8] sm:$0xff] %vm1009_vm2, %v1006_v2  ;;  %1010 = vst.msk [vmem:[%s178_s30] sm:$0xff] %vm1009_vm2, %v1005_v45 }
 0x130   : > { %v1000_v47 = vpop.permute.xlu1 %999  ;;  %v998_v49 = vpop.permute.xlu0 %997 }
 0x131   : > { %v1008_v55 = vadd.f32 %v1000_v47, %v971_v46  ;;  %v1007_v62 = vadd.f32 %v998_v49, %v970_v26 }
 0x133   : > { %1013 = vst.msk [vmem:[%s178_s30 + $0x18] sm:$0xff] %vm1009_vm2, %v1008_v55  ;;  %1012 = vst.msk [vmem:[%s178_s30 + $0x10] sm:$0xff] %vm1009_vm2, %v1007_v62 }
 0x134   : > { %1235 = shalt.err (!%p1232_p2)
}
 0x135   : > { %s1236_s21 = scalar_lea.hbm %s1800_s8, 512  ;;  %s1240_s12 = scalar_lea.hbm %s1850_s3, 1024 }
 0x136   : > { %p1237_p3 = scmp.ne.s32.totalorder %s1800_s8, %s1236_s21  ;;  %p1241_p8 = scmp.lt.u32.totalorder %s1800_s8, %s1850_s3 }
 0x137   : > { %p1242_p11 = scmp.lt.u32.totalorder %s1240_s12, %s1236_s21  ;;  %p1244_p10 = scmp.lt.u32.totalorder %s1236_s21, %s1800_s8 }
 0x138   : > { %p1238_p4 = pnand %p1237_p3, %p1357_p5 }
 0x139   : > { %p1243_p9 = por %p1242_p11, %p1241_p8 }
 0x13a   : > { %p1239_p7 = pneg %p1238_p4 }
 0x13b   : > { %p1245_p12 = por %p1244_p10, %p1243_p9 }
 0x13d   : > { %p1246_p13 = pnand %p1245_p12, %p1239_p7 }
 0x13f   : > { %1249 = shalt.err (!%p1246_p13)
}
 0x140   : > { %s1294_s27 = smov 128   ;;  %s1295_s28 = smov 8  }
 0x141   : > { %1157 = dma.vmem_to_hbm [thread:$0]  (%p1357_p5), %s1795_s4, 512, %s1800_s8, %s1806_s2, %s1294_s27, %s1294_s27, %s1295_s28  }
 0x142 PF: > { %p1169_p0 = scmp.ge.s32.totalorder %s1288_s17, 2  ;;  %s1043_s29 = sand.u32 1, %s1276_s14  }
 0x143   : > { %s1044_s30 = scalar_lea.sflag [#allocation4], %s1043_s29 }
 0x144   : > { %p1164_p1 = pnand %p1169_p0, %p1361_p6 }
 0x146   : > { %1271 = dma.done.wait (!%p1164_p1), %s1044_s30, 512  }
 0x147   : > { %1273 = vsyncadd (!%p1164_p1), %s1044_s30, 4294966784  ;;  %p15_p2 = scmp.ge.s32.totalorder %s1344_s19, 4   ;;  %s1854_s14 = smov %s1280_s15 }
 0x148   : > { %s1855_s15 = smov %s1284_s16  ;;  %s1856_s16 = smov %s1355_s22 }
 0x149   : > { %s1857_s17 = smov %s1344_s19  ;;  %17 = sbr.rel (!%p15_p2) target bundleno = 6 (0x6), region = 74 }
 0x150   :  { %1049 = vsyncpa [#allocation4], 1 }
 0x151   :  { %1051 = vsyncpa [#allocation4 + $0x1], 1 }
 0x152   :  { %1052 = vsyncpa [#allocation5], 1 }
 0x153   :  { %1054 = vsyncpa [#allocation5 + $0x1], 1 }

// kernel: vit_reconstruction_forward.8
= control target key start
LH: loop header
LB: loop body
LE: loop exit
PB: predicated region body
PF: predicated region fallthrough
CT: control target
= control target key end

     0   :  { %8 = vsyncpa [#allocation3], 0  ;;  %s4858_s0 = inlined_call_operand.vmem [shape: f32[2,3,34,34], index: 0, kind: input, shape index: {}]   ;;  %s4859_s1 = inlined_call_operand.vmem [shape: f32[81], index: 1, kind: input, shape index: {}]   ;;  %s4860_s2 = inlined_call_operand.vmem [shape: f32[3], index: 2, kind: input, shape index: {}]   ;;  %s4861_s3 = inlined_call_operand.vmem [shape: f32[2,3,32,32], index: 3, kind: output, shape index: {}]  }
   0x1   :  { %9 = vsyncpa [#allocation5], 0  ;;  %s3027_s12 = smov 0  }
   0x2 LB: > { %s3033_s13 = sadd.s32 4294967295, %s3001_s12   ;;  %p2759_p0 = scmp.ge.s32.totalorder %s3001_s12, 1  ;;  %s3001_s12 = sphi %s3027_s12, %s15_s12  }
   0x3   : > { %p114_p1 = scmp.lt.s32.totalorder %s3001_s12, 3  ;;  %s127_s16 = sshll.u32 %s4859_s1, 4  ;;  %s128_s16 = int_to_ptr.vmem [resolvable:$true] %s127_s16 }
   0x4   : > { %p4862_p3 = scmp.eq.s32.totalorder %s3033_s13, 0  ;;  %s138_s20 = sshll.u32 %s4860_s2, 4  ;;  %s139_s20 = int_to_ptr.vmem [resolvable:$true] %s138_s20 }
   0x5   : > { %p3040_p2 = pnand %p2759_p0, %p114_p1  ;;  %s2957_s22 = scalar_lea.vmem %s128_s16, 16 }
   0x6   : > { %p2958_p6 = scmp.ne.s32.totalorder %s128_s16, %s2957_s22  ;;  %p2965_p10 = scmp.lt.s32.totalorder %s128_s16, %s128_s16 }
   0x7   : > { %s4875_s17 = scalar_select %p3040_p2, 1, 0 }
   0x8   : > { %p2900_p4 = pneg %p3040_p2  ;;  %p2966_p11 = scmp.lt.s32.totalorder %s2957_s22, %s2957_s22 }
   0xa   : > { %p3052_p5 = pnand %p4862_p3, %p2900_p4  ;;  %p2967_p12 = por %p2966_p11, %p2965_p10 }
   0xc   : > { %p2959_p7 = pneg %p3052_p5 }
   0xe   : > { %p2960_p8 = pnand %p2959_p7, %p2958_p6 }
  0x10   : > { %p2961_p9 = pneg %p2960_p8 }
  0x12   : > { %p2968_p13 = pnand %p2967_p12, %p2961_p9 }
  0x14   : > { %2971 = shalt.err (!%p2968_p13)
}
  0x15   : > { %s3003_s23 = smov [#allocation2]   ;;  %s2972_s24 = scalar_lea.vmem %s139_s20, 16 }
  0x16   : > { %2903 = dma.vmem_to_smem (!%p3052_p5), %s128_s16, 16, %s3003_s23, [#allocation3]  }
  0x17   : > { %p2973_p0 = scmp.ne.s32.totalorder %s139_s20, %s2972_s24  ;;  %p2980_p3 = scmp.lt.s32.totalorder %s139_s20, %s139_s20 }
  0x18   : > { %p2981_p2 = scmp.lt.s32.totalorder %s2972_s24, %s2972_s24 }
  0x19   : > { %p2975_p1 = pnand %p2973_p0, %p2959_p7 }
  0x1a   : > { %p2982_p6 = por %p2981_p2, %p2980_p3 }
  0x1b   : > { %p2976_p4 = pneg %p2975_p1 }
  0x1d   : > { %p2983_p8 = pnand %p2982_p6, %p2976_p4 }
  0x1f   : > { %2986 = shalt.err (!%p2983_p8)
}
  0x20   : > { %s3004_s25 = smov [#allocation4]   ;;  %p4877_p9 = scmp.ne.s32.totalorder %s4875_s17, 0 }
  0x21   : > { %2906 = dma.vmem_to_smem (!%p3052_p5), %s139_s20, 16, %s3004_s25, [#allocation5]  }
  0x22   : > { %159 = sbr.rel (%p4877_p9) target bundleno = 605 (0x25d), region = 32 }
  0x29   : > { %p4878_p10 = scmp.eq.s32.totalorder %s3033_s13, 0 }
  0x2b   : > { %2992 = dma.done.wait (%p4878_p10), [#allocation3], 16   ;;  %p4879_p11 = pmov %p4878_p10 }
  0x2c   : > { %p4880_p7 = pmov %p4878_p10 }
  0x2d   : > { %2994 = vsyncadd (%p4879_p11), [#allocation3], 4294967280 }
  0x2e   : > { %2996 = dma.done.wait (%p4880_p7), [#allocation5], 16   ;;  %p4881_p2 = pmov %p4880_p7 }
  0x30   : > { %2998 = vsyncadd (%p4881_p2), [#allocation5], 4294967280 }
  0x31   : > { %169 = sfence }
  0x32   : > { %p188_p3 = scmp.lt.s32.totalorder %s3033_s13, 1  ;;  %s2768_s26 = sld [smem:[#allocation2 + $0x1]]  ;;  %vm279_vm0 = vcmask 1046528   ;;  %vm383_vm1 = vcmask 1045504   ;;  %vm1023_vm2 = vcmask 261120  }
  0x33   : > { %s2769_s27 = sld [smem:[#allocation2 + $0x2]]  ;;  %s2771_s29 = sld [smem:[#allocation2 + $0x4]] }
  0x34   : > { %s4939_s13 = smov (!%p188_p3, %s3033_s13), 1  ;;  %s3005_s6 = smov 127  }
  0x35   : > { %s2890_s28 = smul.u32 120, %s4939_s13  ;;  %s2772_s7 = sld [smem:[#allocation2 + $0x5]] }
  0x36   : > { %s3006_s8 = smov 126   ;;  %s2774_s9 = sld [smem:[#allocation2 + $0x7]] }
  0x37   : > { %s3080_s5 = scalar_lea.vmem %s4858_s0, %s2890_s28  ;;  %s2775_s10 = sld [smem:[#allocation2 + $0x8]] }
  0x38   : > { %v216_v0 = vstv %s2768_s26  ;;  %v3083_v1 = vld [vmem:[%s3080_s5 + $0x10] sm:$0xff]  ;;  %v3086_v2 = vld [vmem:[%s3080_s5] sm:$0xff]  ;;  %v3089_v3 = vld [vmem:[%s3080_s5 + $0x18] sm:$0xff]  ;;  %s2782_s11 = sld [smem:[#allocation2 + $0xa]]  ;;  %s2783_s14 = sld [smem:[#allocation2 + $0xb]] }
  0x39   : > { %v219_v4 = vmul.f32 %v216_v0, %v3083_v1  ;;  %v217_v5 = vmul.f32 %v216_v0, %v3086_v2  ;;  %v3094_v6 = vld [vmem:[%s3080_s5 + $0x8] sm:$0xff]  ;;  %v220_v7 = vmul.f32 %v216_v0, %v3089_v3  ;;  %v242_v9 = vstv %s2769_s27  ;;  %v3108_v16 = vld [vmem:[%s3080_s5 + $0x20] sm:$0x3]  ;;  %s2785_s15 = sld [smem:[#allocation2 + $0xd]]  ;;  %s2786_s16 = sld [smem:[#allocation2 + $0xe]] }
  0x3a   : > { %v218_v8 = vmul.f32 %v216_v0, %v3094_v6  ;;  %v298_v10 = vstv %s2771_s29  ;;  %v244_v11 = vmul.f32 %v242_v9, %v3094_v6  ;;  %v243_v12 = vmul.f32 %v242_v9, %v3086_v2  ;;  %s2788_s17 = sld [smem:[#allocation2 + $0x10]]  ;;  %s2789_s18 = sld [smem:[#allocation2 + $0x11]] }
  0x3b   : > { %229 = vrot.lane.b32.xlu1 %v219_v4, %s3005_s6  ;;  %225 = vrot.lane.b32.xlu0 %v217_v5, %s3005_s6  ;;  %v300_v13 = vmul.f32 %v298_v10, %v3094_v6  ;;  %v301_v14 = vmul.f32 %v298_v10, %v3083_v1  ;;  %v299_v15 = vmul.f32 %v298_v10, %v3086_v2  ;;  %v335_v20 = vstv %s2772_s7  ;;  %s2796_s19 = sld [smem:[#allocation2 + $0x13]]  ;;  %s2797_s20 = sld [smem:[#allocation2 + $0x14]] }
  0x3c   : > { %v246_v17 = vmul.f32 %v242_v9, %v3089_v3  ;;  %v245_v18 = vmul.f32 %v242_v9, %v3083_v1  ;;  %v302_v19 = vmul.f32 %v298_v10, %v3089_v3  ;;  %v303_v24 = vmul.f32 %v298_v10, %v3108_v16  ;;  %s2799_s21 = sld [smem:[#allocation2 + $0x16]]  ;;  %s2800_s22 = sld [smem:[#allocation2 + $0x17]] }
  0x3d   : > { %v310_v21 = vrot.slane %v300_v13, 1  ;;  %v312_v22 = vrot.slane %v301_v14, 1  ;;  %v309_v23 = vrot.slane %v299_v15, 1  ;;  %v337_v25 = vmul.f32 %v335_v20, %v3094_v6  ;;  %v3164_v15 = vld [vmem:[%s3080_s5 + $0x30] sm:$0xff]  ;;  %s2802_s23 = sld [smem:[#allocation2 + $0x19]]  ;;  %s2803_s24 = sld [smem:[#allocation2 + $0x1a]] }
  0x3e   : > { %v338_v26 = vmul.f32 %v335_v20, %v3083_v1  ;;  %v336_v27 = vmul.f32 %v335_v20, %v3086_v2  ;;  %v314_v30 = vrot.slane %v302_v19, 1  ;;  %v316_v31 = vrot.slane %v303_v24, 1  ;;  %s2806_s25 = sld [smem:[#allocation2 + $0x1c]]  ;;  %s2807_s26 = sld [smem:[#allocation2 + $0x1d]] }
  0x3f   : > { %231 = vrot.lane.b32.xlu1 %v220_v7, %s3005_s6  ;;  %227 = vrot.lane.b32.xlu0 %v218_v8, %s3005_s6  ;;  %v313_v28 = vsel %vm279_vm0, %v310_v21, %v312_v22  ;;  %v311_v29 = vsel %vm279_vm0, %v309_v23, %v310_v21  ;;  %v347_v32 = vrot.slane %v337_v25, 1  ;;  %v339_v35 = vmul.f32 %v335_v20, %v3089_v3  ;;  %v3174_v21 = vld [vmem:[%s3080_s5 + $0x40] sm:$0xff]  ;;  %s2809_s27 = sld [smem:[#allocation2 + $0x1f]]  ;;  %s2810_s28 = sld [smem:[#allocation2 + $0x20]] }
  0x40   : > { %v349_v33 = vrot.slane %v338_v26, 1  ;;  %v346_v34 = vrot.slane %v336_v27, 1  ;;  %v317_v36 = vsel %vm279_vm0, %v314_v30, %v316_v31  ;;  %v315_v37 = vsel %vm279_vm0, %v312_v22, %v314_v30  ;;  %v3177_v22 = vld [vmem:[%s3080_s5 + $0x38] sm:$0xff]  ;;  %s2812_s29 = sld [smem:[#allocation2 + $0x22]]  ;;  %s205_s30 = sld [smem:[#allocation2]] }
  0x41   : > { %v340_v38 = vmul.f32 %v335_v20, %v3108_v16  ;;  %v402_v39 = vstv %s2774_s9  ;;  %v351_v42 = vrot.slane %v339_v35, 1  ;;  %v439_v50 = vstv %s2775_s10  ;;  %s198_s4 = sld [smem:[#allocation4]]  ;;  %s2770_s7 = sld [smem:[#allocation2 + $0x3]] }
  0x42   : > { %v350_v40 = vsel %vm279_vm0, %v347_v32, %v349_v33  ;;  %v348_v41 = vsel %vm279_vm0, %v346_v34, %v347_v32  ;;  %v404_v44 = vmul.f32 %v402_v39, %v3094_v6  ;;  %v405_v45 = vmul.f32 %v402_v39, %v3083_v1  ;;  %v3191_v32 = vld [vmem:[%s3080_s5 + $0x48] sm:$0x3]  ;;  %s3418_s9 = sld [smem:[#allocation2 + $0x23]]  ;;  %s3420_s10 = sld [smem:[#allocation2 + $0x6]] }
  0x43   : > { %253 = vrot.lane.b32.xlu1 %v244_v11, %s3006_s8  ;;  %251 = vrot.lane.b32.xlu0 %v243_v12, %s3006_s8  ;;  %v353_v43 = vrot.slane %v340_v38, 1  ;;  %v403_v46 = vmul.f32 %v402_v39, %v3086_v2  ;;  %v352_v47 = vsel %vm279_vm0, %v349_v33, %v351_v42  ;;  %v406_v48 = vmul.f32 %v402_v39, %v3089_v3 }
  0x44   : > { %v407_v49 = vmul.f32 %v402_v39, %v3108_v16  ;;  %v414_v52 = vrot.slane %v404_v44, 2  ;;  %v416_v53 = vrot.slane %v405_v45, 2  ;;  %v441_v57 = vmul.f32 %v439_v50, %v3094_v6 }
  0x45   : > { %v354_v51 = vsel %vm279_vm0, %v351_v42, %v353_v43  ;;  %v413_v54 = vrot.slane %v403_v46, 2  ;;  %v418_v55 = vrot.slane %v406_v48, 2  ;;  %v442_v60 = vmul.f32 %v439_v50, %v3083_v1 }
  0x46   : > { %v420_v56 = vrot.slane %v407_v49, 2  ;;  %v417_v58 = vsel %vm383_vm1, %v414_v52, %v416_v53  ;;  %v440_v61 = vmul.f32 %v439_v50, %v3086_v2  ;;  %v451_v0 = vrot.slane %v441_v57, 2 }
  0x47   : > { %257 = vrot.lane.b32.xlu1 %v246_v17, %s3006_s8  ;;  %255 = vrot.lane.b32.xlu0 %v245_v18, %s3006_s8  ;;  %v415_v59 = vsel %vm383_vm1, %v413_v54, %v414_v52  ;;  %v419_v63 = vsel %vm383_vm1, %v416_v53, %v418_v55  ;;  %v453_v4 = vrot.slane %v442_v60, 2  ;;  %v443_v7 = vmul.f32 %v439_v50, %v3089_v3  ;;  %v3167_v18 = vld [vmem:[%s3080_s5 + $0x28] sm:$0xff] }
  0x48   : > { %v421_v62 = vsel %vm383_vm1, %v418_v55, %v420_v56  ;;  %v450_v5 = vrot.slane %v440_v61, 2  ;;  %v444_v8 = vmul.f32 %v439_v50, %v3108_v16  ;;  %v492_v17 = vstv %s2782_s11  ;;  %s3461_s11 = sld [smem:[#allocation2 + $0xc]] }
  0x49   : > { %v454_v9 = vsel %vm383_vm1, %v451_v0, %v453_v4  ;;  %v455_v11 = vrot.slane %v443_v7, 2  ;;  %v494_v19 = vmul.f32 %v3164_v15, %v492_v17  ;;  %v493_v20 = vmul.f32 %v3167_v18, %v492_v17 }
  0x4a   : > { %v452_v10 = vsel %vm383_vm1, %v450_v5, %v451_v0  ;;  %v457_v12 = vrot.slane %v444_v8, 2  ;;  %v496_v23 = vmul.f32 %v3174_v21, %v492_v17  ;;  %v495_v24 = vmul.f32 %v3177_v22, %v492_v17 }
  0x4b   : > { %320 = vrot.lane.b32.xlu1 %v313_v28, %s3005_s6  ;;  %318 = vrot.lane.b32.xlu0 %v311_v29, %s3005_s6  ;;  %v456_v14 = vsel %vm383_vm1, %v453_v4, %v455_v11  ;;  %v518_v25 = vstv %s2783_s14  ;;  %v573_v26 = vstv %s2785_s15  ;;  %s3485_s14 = sld [smem:[#allocation2 + $0x9]]  ;;  %s3492_s15 = sld [smem:[#allocation2 + $0x25]] }
  0x4c   : > { %v458_v13 = vsel %vm383_vm1, %v455_v11, %v457_v12  ;;  %v520_v27 = vmul.f32 %v3164_v15, %v518_v25  ;;  %v519_v28 = vmul.f32 %v3167_v18, %v518_v25  ;;  %v575_v29 = vmul.f32 %v3164_v15, %v573_v26 }
  0x4d   : > { %v576_v30 = vmul.f32 %v3177_v22, %v573_v26  ;;  %v574_v31 = vmul.f32 %v3167_v18, %v573_v26  ;;  %v522_v33 = vmul.f32 %v3174_v21, %v518_v25  ;;  %v521_v34 = vmul.f32 %v3177_v22, %v518_v25 }
  0x4e   : > { %v577_v35 = vmul.f32 %v3174_v21, %v573_v26 }
  0x4f   : > { %324 = vrot.lane.b32.xlu1 %v317_v36, %s3005_s6  ;;  %322 = vrot.lane.b32.xlu0 %v315_v37, %s3005_s6  ;;  %v578_v36 = vmul.f32 %v3191_v32, %v573_v26  ;;  %v585_v37 = vrot.slane %v575_v29, 1  ;;  %v587_v38 = vrot.slane %v576_v30, 1  ;;  %v584_v39 = vrot.slane %v574_v31, 1 }
  0x51   : > { %v591_v42 = vrot.slane %v578_v36, 1  ;;  %v588_v44 = vsel %vm279_vm0, %v585_v37, %v587_v38  ;;  %v586_v45 = vsel %vm279_vm0, %v584_v39, %v585_v37  ;;  %v3247_v37 = vld [vmem:[%s3080_s5 + $0x58] sm:$0xff]  ;;  %v3250_v39 = vld [vmem:[%s3080_s5 + $0x50] sm:$0xff] }
  0x52   : > { %4882 = vst [vmem:[#allocation8_spill] sm:$0xff] %v3247_v37  ;;  %4883 = vst [vmem:[#allocation9_spill] sm:$0xff] %v3250_v39 }
  0x53   : > { %357 = vrot.lane.b32.xlu1 %v350_v40, %s3006_s8  ;;  %355 = vrot.lane.b32.xlu0 %v348_v41, %s3006_s8  ;;  %v610_v40 = vstv %s2786_s16  ;;  %v589_v41 = vrot.slane %v577_v35, 1  ;;  %s3518_s16 = sld [smem:[#allocation2 + $0xf]] }
  0x54   : > { %v612_v43 = vmul.f32 %v3164_v15, %v610_v40  ;;  %v613_v46 = vmul.f32 %v3177_v22, %v610_v40  ;;  %v614_v50 = vmul.f32 %v3174_v21, %v610_v40  ;;  %v615_v55 = vmul.f32 %v3191_v32, %v610_v40 }
  0x55   : > { %v592_v48 = vsel %vm279_vm0, %v589_v41, %v591_v42  ;;  %v590_v52 = vsel %vm279_vm0, %v587_v38, %v589_v41  ;;  %v766_v38 = vstv %s2796_s19  ;;  %v3257_v42 = vld [vmem:[%s3080_s5 + $0x68] sm:$0xff]  ;;  %s3598_s19 = sld [smem:[#allocation2 + $0x29]] }
  0x56   : > { %v622_v49 = vrot.slane %v612_v43, 1  ;;  %v624_v53 = vrot.slane %v613_v46, 1  ;;  %v626_v56 = vrot.slane %v614_v50, 1  ;;  %v628_v61 = vrot.slane %v615_v55, 1  ;;  %4884 = vst [vmem:[#allocation10_spill] sm:$0xff] %v3257_v42  ;;  %v3260_v43 = vld [vmem:[%s3080_s5 + $0x60] sm:$0xff] }
  0x57   : > { %361 = vrot.lane.b32.xlu1 %v354_v51, %s3006_s8  ;;  %359 = vrot.lane.b32.xlu0 %v352_v47, %s3006_s8  ;;  %v611_v47 = vmul.f32 %v3167_v18, %v610_v40  ;;  %v676_v51 = vstv %s2788_s17  ;;  %v768_v40 = vmul.f32 %v3247_v37, %v766_v38  ;;  %v767_v41 = vmul.f32 %v3250_v39, %v766_v38  ;;  %s3520_s17 = sld [smem:[#allocation2 + $0x26]] }
  0x58   : > { %v678_v57 = vmul.f32 %v3164_v15, %v676_v51  ;;  %v680_v5 = vmul.f32 %v3174_v21, %v676_v51  ;;  %v629_v7 = vsel %vm279_vm0, %v626_v56, %v628_v61  ;;  %4885 = vst [vmem:[#allocation11_spill] sm:$0xff] %v3260_v43  ;;  %v792_v46 = vstv %s2797_s20  ;;  %s3644_s20 = sld [smem:[#allocation2 + $0x2b]] }
  0x59   : > { %v621_v54 = vrot.slane %v611_v47, 1  ;;  %v847_v47 = vstv %s2799_s21  ;;  %v795_v55 = vmul.f32 %v3260_v43, %v792_v46  ;;  %v884_v61 = vstv %s2800_s22  ;;  %s3660_s21 = sld [smem:[#allocation2 + $0x12]]  ;;  %s3703_s22 = sld [smem:[#allocation2 + $0x2c]] }
  0x5a   : > { %v688_v0 = vrot.slane %v678_v57, 2  ;;  %v692_v12 = vrot.slane %v680_v5, 2  ;;  %v849_v50 = vmul.f32 %v3247_v37, %v847_v47  ;;  %v886_v5 = vmul.f32 %v3247_v37, %v884_v61 }
  0x5b   : > { %424 = vrot.lane.b32.xlu1 %v417_v58, %s3005_s6  ;;  %422 = vrot.lane.b32.xlu0 %v415_v59, %s3005_s6  ;;  %v679_v58 = vmul.f32 %v3177_v22, %v676_v51  ;;  %v625_v59 = vsel %vm279_vm0, %v622_v49, %v624_v53  ;;  %v623_v60 = vsel %vm279_vm0, %v621_v54, %v622_v49 }
  0x5c   : > { %v793_v49 = vmul.f32 %v3250_v39, %v792_v46  ;;  %v796_v54 = vmul.f32 %v3257_v42, %v792_v46 }
  0x5d   : > { %v690_v4 = vrot.slane %v679_v58, 2  ;;  %v851_v58 = vmul.f32 %v3257_v42, %v847_v47 }
  0x5f   : > { %428 = vrot.lane.b32.xlu1 %v421_v62, %s3005_s6  ;;  %426 = vrot.lane.b32.xlu0 %v419_v63, %s3005_s6  ;;  %v677_v62 = vmul.f32 %v3167_v18, %v676_v51  ;;  %v627_v63 = vsel %vm279_vm0, %v624_v53, %v626_v56  ;;  %v691_v11 = vsel %vm383_vm1, %v688_v0, %v690_v4  ;;  %v3274_v53 = vld [vmem:[%s3080_s5 + $0x70] sm:$0x3]  ;;  %v859_v56 = vrot.slane %v849_v50, 1 }
  0x60   : > { %4886 = vst [vmem:[#allocation12_spill] sm:$0xff] %v3274_v53 }
  0x61   : > { %v687_v8 = vrot.slane %v677_v62, 2 }
  0x63   : > { %461 = vrot.lane.b32.xlu1 %v454_v9, %s3006_s8  ;;  %459 = vrot.lane.b32.xlu0 %v452_v10, %s3006_s8  ;;  %v681_v9 = vmul.f32 %v3191_v32, %v676_v51  ;;  %v713_v10 = vstv %s2789_s18  ;;  %v850_v51 = vmul.f32 %v3260_v43, %v847_v47  ;;  %s3543_s18 = sld [smem:[#allocation2 + $0x28]] }
  0x64   : > { %v717_v25 = vmul.f32 %v3174_v21, %v713_v10  ;;  %v718_v29 = vmul.f32 %v3191_v32, %v713_v10 }
  0x65   : > { %v694_v17 = vrot.slane %v681_v9, 2  ;;  %v861_v57 = vrot.slane %v850_v51, 1 }
  0x67   : > { %465 = vrot.lane.b32.xlu1 %v458_v13, %s3006_s8  ;;  %463 = vrot.lane.b32.xlu0 %v456_v14, %s3006_s8  ;;  %v715_v13 = vmul.f32 %v3164_v15, %v713_v10  ;;  %v689_v14 = vsel %vm383_vm1, %v687_v8, %v688_v0  ;;  %v695_v26 = vsel %vm383_vm1, %v692_v12, %v694_v17 }
  0x68   : > { %v862_v62 = vsel %vm279_vm0, %v859_v56, %v861_v57  ;;  %v885_v8 = vmul.f32 %v3250_v39, %v884_v61 }
  0x6a   : > { %v895_v17 = vrot.slane %v885_v8, 1 }
  0x6b   : > { %503 = vrot.lane.b32.xlu1 %v494_v19, %s3005_s6  ;;  %501 = vrot.lane.b32.xlu0 %v493_v20, %s3005_s6  ;;  %v716_v19 = vmul.f32 %v3177_v22, %v713_v10  ;;  %v714_v20 = vmul.f32 %v3167_v18, %v713_v10 }
  0x6f   : > { %507 = vrot.lane.b32.xlu1 %v496_v23, %s3005_s6  ;;  %505 = vrot.lane.b32.xlu0 %v495_v24, %s3005_s6  ;;  %v693_v23 = vsel %vm383_vm1, %v690_v4, %v692_v12  ;;  %v725_v24 = vrot.slane %v715_v13, 2  ;;  %v950_v12 = vstv %s2802_s23  ;;  %v896_v13 = vrot.slane %v886_v5, 1  ;;  %s3714_s23 = sld [smem:[#allocation2 + $0x15]] }
  0x73   : > { %529 = vrot.lane.b32.xlu1 %v520_v27, %s3006_s8  ;;  %527 = vrot.lane.b32.xlu0 %v519_v28, %s3006_s8  ;;  %v727_v27 = vrot.slane %v716_v19, 2  ;;  %v724_v28 = vrot.slane %v714_v20, 2  ;;  %v889_v19 = vmul.f32 %v3274_v53, %v884_v61 }
  0x75   : > { %v728_v30 = vsel %vm383_vm1, %v725_v24, %v727_v27  ;;  %v726_v31 = vsel %vm383_vm1, %v724_v28, %v725_v24  ;;  %v952_v24 = vmul.f32 %v3247_v37, %v950_v12  ;;  %v897_v28 = vsel %vm279_vm0, %v895_v17, %v896_v13 }
  0x76   : > { %v1046_v17 = vstv %s2806_s25  ;;  %s3815_s25 = sld [smem:[#allocation2 + $0x2e]] }
  0x77   : > { %533 = vrot.lane.b32.xlu1 %v522_v33, %s3006_s8  ;;  %531 = vrot.lane.b32.xlu0 %v521_v34, %s3006_s8  ;;  %v729_v33 = vrot.slane %v717_v25, 2  ;;  %v731_v34 = vrot.slane %v718_v29, 2  ;;  %v953_v25 = vmul.f32 %v3260_v43, %v950_v12 }
  0x79   : > { %v732_v35 = vsel %vm383_vm1, %v729_v33, %v731_v34  ;;  %v730_v36 = vsel %vm383_vm1, %v727_v27, %v729_v33  ;;  %v962_v34 = vrot.slane %v952_v24, 2 }
  0x7b   : > { %595 = vrot.lane.b32.xlu1 %v588_v44, %s3005_s6  ;;  %593 = vrot.lane.b32.xlu0 %v586_v45, %s3005_s6  ;;  %v770_v44 = vmul.f32 %v3257_v42, %v766_v38  ;;  %v769_v45 = vmul.f32 %v3260_v43, %v766_v38  ;;  %v955_v38 = vmul.f32 %v3274_v53, %v950_v12 }
  0x7f   : > { %599 = vrot.lane.b32.xlu1 %v592_v48, %s3005_s6  ;;  %597 = vrot.lane.b32.xlu0 %v590_v52, %s3005_s6  ;;  %v794_v48 = vmul.f32 %v3247_v37, %v792_v46  ;;  %v848_v52 = vmul.f32 %v3250_v39, %v847_v47 }
  0x83   : > { %632 = vrot.lane.b32.xlu1 %v625_v59, %s3006_s8  ;;  %630 = vrot.lane.b32.xlu0 %v623_v60, %s3006_s8  ;;  %v852_v59 = vmul.f32 %v3274_v53, %v847_v47  ;;  %v858_v60 = vrot.slane %v848_v52, 1 }
  0x85   : > { %v865_v0 = vrot.slane %v852_v59, 1  ;;  %v860_v4 = vsel %vm279_vm0, %v858_v60, %v859_v56 }
  0x87   : > { %636 = vrot.lane.b32.xlu1 %v629_v7, %s3006_s8  ;;  %634 = vrot.lane.b32.xlu0 %v627_v63, %s3006_s8  ;;  %v863_v63 = vrot.slane %v851_v58, 1  ;;  %v887_v7 = vmul.f32 %v3260_v43, %v884_v61 }
  0x89   : > { %v866_v9 = vsel %vm279_vm0, %v863_v63, %v865_v0  ;;  %v864_v10 = vsel %vm279_vm0, %v861_v57, %v863_v63 }
  0x8b   : > { %698 = vrot.lane.b32.xlu1 %v691_v11, %s3005_s6  ;;  %696 = vrot.lane.b32.xlu0 %v689_v14, %s3005_s6  ;;  %v888_v11 = vmul.f32 %v3257_v42, %v884_v61  ;;  %v898_v14 = vrot.slane %v887_v7, 1 }
  0x8d   : > { %v899_v27 = vsel %vm279_vm0, %v896_v13, %v898_v14  ;;  %v900_v29 = vrot.slane %v888_v11, 1 }
  0x8f   : > { %702 = vrot.lane.b32.xlu1 %v695_v26, %s3005_s6  ;;  %700 = vrot.lane.b32.xlu0 %v693_v23, %s3005_s6  ;;  %v951_v26 = vmul.f32 %v3250_v39, %v950_v12 }
  0x93   : > { %735 = vrot.lane.b32.xlu1 %v728_v30, %s3006_s8  ;;  %733 = vrot.lane.b32.xlu0 %v726_v31, %s3006_s8  ;;  %v902_v30 = vrot.slane %v889_v19, 1 }
  0x97   : > { %739 = vrot.lane.b32.xlu1 %v732_v35, %s3006_s8  ;;  %737 = vrot.lane.b32.xlu0 %v730_v36, %s3006_s8  ;;  %v964_v35 = vrot.slane %v953_v25, 2  ;;  %v954_v36 = vmul.f32 %v3257_v42, %v950_v12  ;;  %v1048_v25 = vmul.f32 %v1046_v17, %v3094_v6 }
  0x99   : > { %v965_v51 = vsel %vm383_vm1, %v962_v34, %v964_v35 }
  0x9b   : > { %777 = vrot.lane.b32.xlu1 %v768_v40, %s3005_s6  ;;  %775 = vrot.lane.b32.xlu0 %v767_v41, %s3005_s6  ;;  %v903_v40 = vsel %vm279_vm0, %v900_v29, %v902_v30  ;;  %v901_v41 = vsel %vm279_vm0, %v898_v14, %v900_v29  ;;  %v1050_v29 = vmul.f32 %v1046_v17, %v3089_v3 }
  0x9c   : > { %v1049_v30 = vmul.f32 %v1046_v17, %v3083_v1 }
  0x9f   : > { %781 = vrot.lane.b32.xlu1 %v770_v44, %s3005_s6  ;;  %779 = vrot.lane.b32.xlu0 %v769_v45, %s3005_s6  ;;  %v961_v44 = vrot.slane %v951_v26, 2  ;;  %v987_v45 = vstv %s2803_s24  ;;  %v1047_v26 = vmul.f32 %v1046_v17, %v3086_v2  ;;  %s3786_s24 = sld [smem:[#allocation2 + $0x18]] }
  0xa0   : > { %v989_v50 = vmul.f32 %v3247_v37, %v987_v45  ;;  %v991_v63 = vmul.f32 %v3257_v42, %v987_v45  ;;  %v992_v0 = vmul.f32 %v3274_v53, %v987_v45 }
  0xa1   : > { %v963_v52 = vsel %vm383_vm1, %v961_v44, %v962_v34  ;;  %v1072_v34 = vstv %s2807_s26  ;;  %s3852_s26 = sld [smem:[#allocation2 + $0x31]] }
  0xa2   : > { %v999_v60 = vrot.slane %v989_v50, 2 }
  0xa3   : > { %803 = vrot.lane.b32.xlu1 %v794_v48, %s3006_s8  ;;  %801 = vrot.lane.b32.xlu0 %v793_v49, %s3006_s8  ;;  %v966_v48 = vrot.slane %v954_v36, 2  ;;  %v968_v49 = vrot.slane %v955_v38, 2 }
  0xa5   : > { %v969_v58 = vsel %vm383_vm1, %v966_v48, %v968_v49  ;;  %v967_v59 = vsel %vm383_vm1, %v964_v35, %v966_v48  ;;  %v1127_v35 = vstv %s2809_s27  ;;  %v3381_v49 = vld [vmem:[%s3080_s5 + $0x20] sm:$0x3]  ;;  %s3875_s27 = sld [smem:[#allocation2 + $0x2f]] }
  0xa6   : > { %v1129_v44 = vmul.f32 %v1127_v35, %v3094_v6  ;;  %v1128_v48 = vmul.f32 %v1127_v35, %v3086_v2 }
  0xa7   : > { %807 = vrot.lane.b32.xlu1 %v796_v54, %s3006_s8  ;;  %805 = vrot.lane.b32.xlu0 %v795_v55, %s3006_s8  ;;  %v990_v54 = vmul.f32 %v3260_v43, %v987_v45  ;;  %v988_v55 = vmul.f32 %v3250_v39, %v987_v45  ;;  %v1130_v45 = vmul.f32 %v1127_v35, %v3083_v1 }
  0xa9   : > { %v1001_v61 = vrot.slane %v990_v54, 2  ;;  %v1075_v54 = vmul.f32 %v1072_v34, %v3083_v1 }
  0xab   : > { %869 = vrot.lane.b32.xlu1 %v862_v62, %s3005_s6  ;;  %867 = vrot.lane.b32.xlu0 %v860_v4, %s3005_s6  ;;  %v998_v62 = vrot.slane %v988_v55, 2  ;;  %v1002_v7 = vsel %vm383_vm1, %v999_v60, %v1001_v61  ;;  %v1139_v55 = vrot.slane %v1129_v44, 1 }
  0xad   : > { %v3295_v20 = vpop.permute.xlu1 %229  ;;  %v3297_v23 = vpop.permute.xlu0 %225  ;;  %v1000_v8 = vsel %vm383_vm1, %v998_v62, %v999_v60  ;;  %v1132_v60 = vmul.f32 %v1127_v35, %v3381_v49 }
  0xaf   : > { %873 = vrot.lane.b32.xlu1 %v866_v9, %s3005_s6  ;;  %871 = vrot.lane.b32.xlu0 %v864_v10, %s3005_s6  ;;  %v1003_v9 = vrot.slane %v991_v63, 2  ;;  %v1005_v10 = vrot.slane %v992_v0, 2  ;;  %v1164_v0 = vstv %s2810_s28  ;;  %s3911_s28 = sld [smem:[#allocation2 + $0x32]] }
  0xb0   : > { %v1165_v17 = vmul.f32 %v1164_v0, %v3086_v2 }
  0xb1   : > { %v3306_v31 = vpop.permute.xlu1 %231  ;;  %v3308_v33 = vpop.permute.xlu0 %227  ;;  %v1006_v13 = vsel %vm383_vm1, %v1003_v9, %v1005_v10  ;;  %v1004_v14 = vsel %vm383_vm1, %v1001_v61, %v1003_v9  ;;  %v1138_v61 = vrot.slane %v1128_v48, 1  ;;  %v1145_v9 = vrot.slane %v1132_v60, 1 }
  0xb2   : > { %v1175_v44 = vrot.slane %v1165_v17, 1  ;;  %v268_v17 = vstv %s2770_s7  ;;  %s3944_s7 = sld [smem:[#allocation2 + $0x34]] }
  0xb3   : > { %906 = vrot.lane.b32.xlu1 %v899_v27, %s3006_s8  ;;  %904 = vrot.lane.b32.xlu0 %v897_v28, %s3006_s8  ;;  %v1140_v10 = vsel %vm279_vm0, %v1138_v61, %v1139_v55 }
  0xb5   : > { %v3316_v46 = vpop.permute.xlu1 %253  ;;  %v3318_v47 = vpop.permute.xlu0 %251 }
  0xb7   : > { %910 = vrot.lane.b32.xlu1 %v903_v40, %s3006_s8  ;;  %908 = vrot.lane.b32.xlu0 %v901_v41, %s3006_s8  ;;  %v1074_v40 = vmul.f32 %v1072_v34, %v3094_v6  ;;  %v1073_v41 = vmul.f32 %v1072_v34, %v3086_v2 }
  0xb9   : > { %v3327_v56 = vpop.permute.xlu1 %257  ;;  %v3329_v57 = vpop.permute.xlu0 %255 }
  0xbb   : > { %972 = vrot.lane.b32.xlu1 %v965_v51, %s3005_s6  ;;  %970 = vrot.lane.b32.xlu0 %v963_v52, %s3005_s6  ;;  %v1076_v52 = vmul.f32 %v1072_v34, %v3089_v3  ;;  %v1168_v34 = vmul.f32 %v1164_v0, %v3089_v3 }
  0xbd   : > { %v3337_v4 = vpop.permute.xlu1 %320  ;;  %v3339_v5 = vpop.permute.xlu0 %318 }
  0xbf   : > { %976 = vrot.lane.b32.xlu1 %v969_v58, %s3005_s6  ;;  %974 = vrot.lane.b32.xlu0 %v967_v59, %s3005_s6  ;;  %v1141_v58 = vrot.slane %v1130_v45, 1  ;;  %v1131_v59 = vmul.f32 %v1127_v35, %v3089_v3  ;;  %v1230_v35 = vstv %s2812_s29  ;;  %v1169_v45 = vmul.f32 %v1164_v0, %v3381_v49  ;;  %s2891_s29 = smul.u32 96, %s4939_s13  ;;  %s4411_s13 = sld [smem:[#allocation2 + $0x47]] }
  0xc1   : > { %v3345_v11 = vpop.permute.xlu1 %324  ;;  %v3347_v12 = vpop.permute.xlu0 %322 }
  0xc3   : > { %1009 = vrot.lane.b32.xlu1 %v1002_v7, %s3006_s8  ;;  %1007 = vrot.lane.b32.xlu0 %v1000_v8, %s3006_s8  ;;  %v1142_v7 = vsel %vm279_vm0, %v1139_v55, %v1141_v58  ;;  %v1143_v8 = vrot.slane %v1131_v59, 1  ;;  %v1180_v55 = vrot.slane %v1168_v34, 1  ;;  %v1233_v59 = vmul.f32 %v1230_v35, %v3083_v1 }
  0xc4   : > { %v1234_v34 = vmul.f32 %v1230_v35, %v3089_v3 }
  0xc5   : > { %v3353_v19 = vpop.permute.xlu1 %357  ;;  %v3355_v24 = vpop.permute.xlu0 %355 }
  0xc6   : > { %v1246_v39 = vrot.slane %v1234_v34, 2 }
  0xc7   : > { %1013 = vrot.lane.b32.xlu1 %v1006_v13, %s3006_s8  ;;  %1011 = vrot.lane.b32.xlu0 %v1004_v14, %s3006_s8  ;;  %v1166_v13 = vmul.f32 %v1164_v0, %v3094_v6  ;;  %v1167_v14 = vmul.f32 %v1164_v0, %v3083_v1  ;;  %v1182_v0 = vrot.slane %v1169_v45, 1 }
  0xc9   : > { %v3361_v27 = vpop.permute.xlu1 %361  ;;  %v3363_v28 = vpop.permute.xlu0 %359 }
  0xcb   : > { %1057 = vrot.lane.b32.xlu1 %v1048_v25, %s3005_s6  ;;  %1055 = vrot.lane.b32.xlu0 %v1047_v26, %s3005_s6 }
  0xcd   : > { %v3369_v36 = vpop.permute.xlu1 %424  ;;  %v3371_v38 = vpop.permute.xlu0 %422 }
  0xcf   : > { %1061 = vrot.lane.b32.xlu1 %v1050_v29, %s3005_s6  ;;  %1059 = vrot.lane.b32.xlu0 %v1049_v30, %s3005_s6  ;;  %v1146_v29 = vsel %vm279_vm0, %v1143_v8, %v1145_v9  ;;  %v1144_v30 = vsel %vm279_vm0, %v1141_v58, %v1143_v8  ;;  %v1232_v58 = vmul.f32 %v1230_v35, %v3094_v6 }
  0xd1   : > { %v3383_v50 = vpop.permute.xlu1 %428  ;;  %v3385_v51 = vpop.permute.xlu0 %426 }
  0xd2   : > { %4887 = vst [vmem:[#allocation13_spill] sm:$0xff] %v3385_v51 }
  0xd3   : > { %1083 = vrot.lane.b32.xlu1 %v1074_v40, %s3006_s8  ;;  %1081 = vrot.lane.b32.xlu0 %v1073_v41, %s3006_s8  ;;  %v1176_v40 = vrot.slane %v1166_v13, 1  ;;  %v1178_v41 = vrot.slane %v1167_v14, 1  ;;  %v3434_v13 = vstv %s198_s4  ;;  %s3941_s4 = scalar_lea.vmem %s4861_s3, %s2891_s29  ;;  %s4364_s29 = sld [smem:[#allocation2 + $0x46]] }
  0xd5   : > { %v3393_v62 = vpop.permute.xlu1 %461  ;;  %v3395_v63 = vpop.permute.xlu0 %459  ;;  %v1179_v60 = vsel %vm279_vm0, %v1176_v40, %v1178_v41  ;;  %v1177_v61 = vsel %vm279_vm0, %v1175_v44, %v1176_v40  ;;  %v1235_v40 = vmul.f32 %v1230_v35, %v3381_v49  ;;  %v1183_v44 = vsel %vm279_vm0, %v1180_v55, %v1182_v0 }
  0xd6   : > { %v1181_v45 = vsel %vm279_vm0, %v1178_v41, %v1180_v55  ;;  %v271_v41 = vmul.f32 %v268_v17, %v3083_v1  ;;  %v372_v55 = vstv %s3420_s10  ;;  %s2848_s10 = sld [smem:[#allocation2 + $0x37]] }
  0xd7   : > { %1087 = vrot.lane.b32.xlu1 %v1076_v52, %s3006_s8  ;;  %1085 = vrot.lane.b32.xlu0 %v1075_v54, %s3006_s8  ;;  %v206_v54 = vstv %s205_s30  ;;  %v1248_v37 = vrot.slane %v1235_v40, 2  ;;  %v376_v40 = vmul.f32 %v372_v55, %v3089_v3  ;;  %s4425_s30 = sld [smem:[#allocation2 + $0x30]] }
  0xd8   : > { %v209_v8 = vmul.f32 %v206_v54, %v3083_v1  ;;  %v207_v14 = vmul.f32 %v206_v54, %v3086_v2  ;;  %v210_v42 = vmul.f32 %v206_v54, %v3089_v3  ;;  %v208_v0 = vmul.f32 %v206_v54, %v3094_v6 }
  0xd9   : > { %v3404_v25 = vpop.permute.xlu1 %465  ;;  %v3406_v26 = vpop.permute.xlu0 %463 }
  0xda   : > { %4888 = vst [vmem:[#allocation14_spill] sm:$0xff] %v3404_v25  ;;  %4889 = vst [vmem:[#allocation15_spill] sm:$0xff] %v3406_v26  ;;  %v3444_v43 = vadd.f32 %v209_v8, %v3434_v13  ;;  %v544_v25 = vstv %s3461_s11  ;;  %s2849_s11 = sld [smem:[#allocation2 + $0x38]] }
  0xdb   : > { %1149 = vrot.lane.b32.xlu1 %v1142_v7, %s3005_s6  ;;  %1147 = vrot.lane.b32.xlu0 %v1140_v10, %s3005_s6  ;;  %v1231_v7 = vmul.f32 %v1230_v35, %v3086_v2  ;;  %v3456_v35 = vadd.f32 %v207_v14, %v3434_v13 }
  0xdd   : > { %v3414_v48 = vpop.permute.xlu1 %503  ;;  %v3416_v52 = vpop.permute.xlu0 %501  ;;  %v1241_v53 = vrot.slane %v1231_v7, 2  ;;  %v269_v7 = vmul.f32 %v268_v17, %v3086_v2 }
  0xde   : > { %4890 = vst [vmem:[#allocation16_spill] sm:$0xff] %v3414_v48  ;;  %4891 = vst [vmem:[#allocation17_spill] sm:$0xff] %v3416_v52  ;;  %v377_v48 = vmul.f32 %v372_v55, %v3108_v16 }
  0xdf   : > { %1153 = vrot.lane.b32.xlu1 %v1146_v29, %s3005_s6  ;;  %1151 = vrot.lane.b32.xlu0 %v1144_v30, %s3005_s6  ;;  %v1242_v29 = vrot.slane %v1232_v58, 2  ;;  %v1244_v30 = vrot.slane %v1233_v59, 2 }
  0xe0   : > { %v391_v51 = vrot.slane %v377_v48, 2  ;;  %v547_v48 = vmul.f32 %v3177_v22, %v544_v25 }
  0xe1   : > { %v3430_v9 = vpop.permute.xlu1 %507  ;;  %v3432_v10 = vpop.permute.xlu0 %505  ;;  %v1245_v8 = vsel %vm383_vm1, %v1242_v29, %v1244_v30  ;;  %v1243_v14 = vsel %vm383_vm1, %v1241_v53, %v1242_v29  ;;  %v375_v53 = vmul.f32 %v372_v55, %v3083_v1  ;;  %v373_v29 = vmul.f32 %v372_v55, %v3086_v2 }
  0xe2   : > { %4892 = vst [vmem:[#allocation18_spill] sm:$0xff] %v3430_v9  ;;  %4893 = vst [vmem:[#allocation19_spill] sm:$0xff] %v3432_v10 }
  0xe3   : > { %1186 = vrot.lane.b32.xlu1 %v1179_v60, %s3006_s8  ;;  %1184 = vrot.lane.b32.xlu0 %v1177_v61, %s3006_s8  ;;  %v3448_v60 = vmul.f32 %v268_v17, %v3094_v6  ;;  %v1267_v61 = vstv %s3418_s9  ;;  %s2841_s9 = sld [smem:[#allocation2 + $0x35]] }
  0xe4   : > { %v1269_v10 = vmul.f32 %v1267_v61, %v3094_v6  ;;  %v3470_v54 = vmul.f32 %v1267_v61, %v3083_v1  ;;  %v1268_v9 = vmul.f32 %v1267_v61, %v3086_v2  ;;  %v1271_v1 = vmul.f32 %v1267_v61, %v3089_v3 }
  0xe5   : > { %v3450_v58 = vpop.permute.xlu1 %529  ;;  %v3452_v59 = vpop.permute.xlu0 %527 }
  0xe6   : > { %4894 = vst [vmem:[#allocation20_spill] sm:$0xff] %v3450_v58  ;;  %4895 = vst [vmem:[#allocation21_spill] sm:$0xff] %v3452_v59  ;;  %v281_v59 = vrot.slane %v3448_v60, 1  ;;  %v272_v58 = vmul.f32 %v268_v17, %v3089_v3  ;;  %v283_v60 = vrot.slane %v271_v41, 1  ;;  %v1279_v2 = vrot.slane %v1269_v10, 2 }
  0xe7   : > { %1190 = vrot.lane.b32.xlu1 %v1183_v44, %s3006_s8  ;;  %1188 = vrot.lane.b32.xlu0 %v1181_v45, %s3006_s8  ;;  %v273_v44 = vmul.f32 %v268_v17, %v3108_v16  ;;  %v374_v45 = vmul.f32 %v372_v55, %v3094_v6  ;;  %v1249_v6 = vsel %vm383_vm1, %v1246_v39, %v1248_v37  ;;  %v1278_v16 = vrot.slane %v1268_v9, 2 }
  0xe8   : > { %v1247_v17 = vsel %vm383_vm1, %v1244_v30, %v1246_v39  ;;  %v1272_v55 = vmul.f32 %v1267_v61, %v3381_v49  ;;  %v214_v41 = vadd.f32 %v210_v42, %v3434_v13  ;;  %v387_v30 = vrot.slane %v375_v53, 2 }
  0xe9   : > { %v3477_v52 = vpop.permute.xlu1 %533  ;;  %v3479_v34 = vpop.permute.xlu0 %531  ;;  %v385_v39 = vrot.slane %v374_v45, 2  ;;  %v384_v3 = vrot.slane %v373_v29, 2  ;;  %v212_v10 = vadd.f32 %v208_v0, %v3434_v13  ;;  %v389_v9 = vrot.slane %v376_v40, 2 }
  0xea   : > { %4896 = vst [vmem:[#allocation22_spill] sm:$0xff] %v3477_v52  ;;  %4897 = vst [vmem:[#allocation23_spill] sm:$0xff] %v3479_v34  ;;  %v1281_v34 = vrot.slane %v3470_v54, 2  ;;  %v285_v52 = vrot.slane %v272_v58, 1  ;;  %v284_v54 = vsel %vm279_vm0, %v281_v59, %v283_v60  ;;  %v1280_v49 = vsel %vm383_vm1, %v1278_v16, %v1279_v2 }
  0xeb   : > { %1252 = vrot.lane.b32.xlu1 %v1245_v8, %s3005_s6  ;;  %1250 = vrot.lane.b32.xlu0 %v1243_v14, %s3005_s6  ;;  %v280_v8 = vrot.slane %v269_v7, 1  ;;  %v287_v14 = vrot.slane %v273_v44, 1  ;;  %v1283_v58 = vrot.slane %v1271_v1, 2  ;;  %v1285_v61 = vrot.slane %v1272_v55, 2 }
  0xec   : > { %v1282_v42 = vsel %vm383_vm1, %v1279_v2, %v1281_v34  ;;  %v3510_v44 = vsel %vm279_vm0, %v283_v60, %v285_v52  ;;  %v546_v13 = vmul.f32 %v3164_v15, %v544_v25  ;;  %v3527_v29 = vsel %vm383_vm1, %v384_v3, %v385_v39 }
  0xed   : > { %v3497_v26 = vpop.permute.xlu1 %595  ;;  %v3499_v37 = vpop.permute.xlu0 %593  ;;  %v282_v7 = vsel %vm279_vm0, %v280_v8, %v281_v59  ;;  %v288_v53 = vsel %vm279_vm0, %v285_v52, %v287_v14  ;;  %v3524_v59 = vsel %vm383_vm1, %v385_v39, %v387_v30  ;;  %v482_v40 = vstv %s3485_s14  ;;  %s2851_s14 = sld [smem:[#allocation2 + $0x3a]] }
  0xee   : > { %v3531_v60 = vsel %vm383_vm1, %v389_v9, %v391_v51  ;;  %v1319_v1 = vstv %s3492_s15  ;;  %v237_v52 = vadd.f32 %v3297_v23, %v3456_v35  ;;  %v238_v2 = vadd.f32 %v3308_v33, %v212_v10  ;;  %s2852_s15 = sld [smem:[#allocation2 + $0x3b]] }
  0xef   : > { %1256 = vrot.lane.b32.xlu1 %v1249_v6, %s3005_s6  ;;  %1254 = vrot.lane.b32.xlu0 %v1247_v17, %s3005_s6  ;;  %v545_v6 = vmul.f32 %v3167_v18, %v544_v25  ;;  %v548_v17 = vmul.f32 %v3174_v21, %v544_v25  ;;  %v1286_v16 = vsel %vm383_vm1, %v1283_v58, %v1285_v61  ;;  %v556_v8 = vrot.slane %v546_v13, 1 }
  0xf0   : > { %v1284_v55 = vsel %vm383_vm1, %v1281_v34, %v1283_v58  ;;  %v3546_v51 = vsel %vm383_vm1, %v387_v30, %v389_v9  ;;  %v558_v14 = vrot.slane %v547_v48, 1  ;;  %v549_v39 = vmul.f32 %v3191_v32, %v544_v25 }
  0xf1   : > { %v3514_v0 = vpop.permute.xlu1 %599  ;;  %v3516_v45 = vpop.permute.xlu0 %597  ;;  %v264_v23 = vadd.f32 %v3316_v46, %v238_v2  ;;  %v263_v33 = vadd.f32 %v3318_v47, %v237_v52  ;;  %v3556_v35 = vmul.f32 %v3164_v15, %v482_v40  ;;  %v3559_v34 = vmul.f32 %v3167_v18, %v482_v40 }
  0xf2   : > { %v3562_v30 = vmul.f32 %v3174_v21, %v482_v40  ;;  %v555_v25 = vrot.slane %v545_v6, 1  ;;  %v1321_v46 = vmul.f32 %v3164_v15, %v1319_v1  ;;  %v1320_v47 = vmul.f32 %v3167_v18, %v1319_v1 }
  0xf3   : > { %1289 = vrot.lane.b32.xlu1 %v1282_v42, %s3006_s8  ;;  %1287 = vrot.lane.b32.xlu0 %v1280_v49, %s3006_s8  ;;  %v239_v10 = vadd.f32 %v3295_v20, %v3444_v43  ;;  %v240_v9 = vadd.f32 %v3306_v31, %v214_v41  ;;  %v3572_v49 = vmul.f32 %v3177_v22, %v482_v40  ;;  %v560_v58 = vrot.slane %v548_v17, 1 }
  0xf4   : > { %v3575_v61 = vsel %vm279_vm0, %v556_v8, %v558_v14  ;;  %v562_v13 = vrot.slane %v549_v39, 1  ;;  %v647_v52 = vstv %s3518_s16  ;;  %v1345_v2 = vstv %s3520_s17  ;;  %s2854_s16 = sld [smem:[#allocation2 + $0x3d]]  ;;  %s2805_s17 = sld [smem:[#allocation2 + $0x1b]] }
  0xf5   : > { %v3549_v3 = vpop.permute.xlu1 %632  ;;  %v3551_v42 = vpop.permute.xlu0 %630  ;;  %v265_v43 = vadd.f32 %v3329_v57, %v239_v10  ;;  %v294_v20 = vadd.f32 %v284_v54, %v264_v23  ;;  %v293_v31 = vadd.f32 %v282_v7, %v263_v33  ;;  %v3586_v41 = vsel %vm279_vm0, %v555_v25, %v556_v8 }
  0xf6   : > { %v1323_v40 = vmul.f32 %v3174_v21, %v1319_v1  ;;  %v1322_v17 = vmul.f32 %v3177_v22, %v1319_v1  ;;  %v1400_v57 = vstv %s3543_s18  ;;  %v3601_v54 = vsel %vm279_vm0, %v560_v58, %v562_v13  ;;  %s4092_s18 = sld [smem:[#allocation4 + $0x1]] }
  0xf7   : > { %1293 = vrot.lane.b32.xlu1 %v1286_v16, %s3006_s8  ;;  %1291 = vrot.lane.b32.xlu0 %v1284_v55, %s3006_s8  ;;  %v266_v16 = vadd.f32 %v3327_v56, %v240_v9  ;;  %v331_v55 = vadd.f32 %v3337_v4, %v294_v20  ;;  %v330_v39 = vadd.f32 %v3339_v5, %v293_v31 }
  0xf8   : > { %v3595_v56 = vsel %vm279_vm0, %v558_v14, %v560_v58  ;;  %v3604_v7 = vmul.f32 %v3164_v15, %v647_v52  ;;  %v1347_v4 = vmul.f32 %v3164_v15, %v1345_v2  ;;  %v1346_v5 = vmul.f32 %v3167_v18, %v1345_v2 }
  0xf9   : > { %v3577_v48 = vpop.permute.xlu1 %636  ;;  %v3579_v6 = vpop.permute.xlu0 %634  ;;  %v296_v1 = vadd.f32 %v288_v53, %v266_v16  ;;  %v295_v14 = vadd.f32 %v3510_v44, %v265_v43  ;;  %v368_v33 = vadd.f32 %v3353_v19, %v331_v55  ;;  %v367_v25 = vadd.f32 %v3355_v24, %v330_v39  ;;  %v3627_v24 = vld [vmem:[%s3080_s5 + $0x48] sm:$0x3] }
  0xfa   : > { %v1401_v10 = vmul.f32 %v3167_v18, %v1400_v57  ;;  %v3623_v44 = vmul.f32 %v3177_v22, %v647_v52  ;;  %v648_v19 = vmul.f32 %v3167_v18, %v647_v52  ;;  %v659_v58 = vrot.slane %v3604_v7, 2 }
  0xfb   : > { %1330 = vrot.lane.b32.xlu1 %v1321_v46, %s3005_s6  ;;  %1328 = vrot.lane.b32.xlu0 %v1320_v47, %s3005_s6  ;;  %v1402_v46 = vmul.f32 %v3164_v15, %v1400_v57  ;;  %v1403_v47 = vmul.f32 %v3177_v22, %v1400_v57  ;;  %v333_v9 = vadd.f32 %v3345_v11, %v296_v1 }
  0xfc   : > { %v332_v53 = vadd.f32 %v3347_v12, %v295_v14  ;;  %v1349_v43 = vmul.f32 %v3174_v21, %v1345_v2  ;;  %v1348_v20 = vmul.f32 %v3177_v22, %v1345_v2  ;;  %v1404_v11 = vmul.f32 %v3174_v21, %v1400_v57 }
  0xfd   : > { %v3606_v8 = vpop.permute.xlu1 %698  ;;  %v3608_v23 = vpop.permute.xlu0 %696  ;;  %v370_v12 = vadd.f32 %v3361_v27, %v333_v9  ;;  %v1412_v55 = vrot.slane %v1402_v46, 1  ;;  %v1414_v39 = vrot.slane %v1403_v47, 1  ;;  %v1411_v7 = vrot.slane %v1401_v10, 1 }
  0xfe   : > { %v369_v31 = vadd.f32 %v3363_v28, %v332_v53  ;;  %v1405_v2 = vmul.f32 %v3627_v24, %v1400_v57  ;;  %v661_v28 = vrot.slane %v3623_v44, 2  ;;  %v658_v14 = vrot.slane %v648_v19, 2 }
  0xff   : > { %1334 = vrot.lane.b32.xlu1 %v1323_v40, %s3005_s6  ;;  %1332 = vrot.lane.b32.xlu0 %v1322_v17, %s3005_s6  ;;  %v398_v40 = vadd.f32 %v3524_v59, %v368_v33  ;;  %v397_v17 = vadd.f32 %v3527_v29, %v367_v25  ;;  %v1437_v59 = vstv %s3598_s19  ;;  %v3651_v29 = vmul.f32 %v3174_v21, %v647_v52  ;;  %s4094_s19 = sld [smem:[#allocation2 + $0x1e]] }
 0x100   : > { %v1416_v57 = vrot.slane %v1404_v11, 1  ;;  %v1418_v47 = vrot.slane %v1405_v2, 1  ;;  %v1439_v10 = vmul.f32 %v3164_v15, %v1437_v59  ;;  %v3683_v19 = vsel %vm383_vm1, %v658_v14, %v659_v58  ;;  %v4902_v2 = vld [vmem:[#allocation17_spill] sm:$0xff] }
 0x101   : > { %v3630_v13 = vpop.permute.xlu1 %702  ;;  %v3632_v16 = vpop.permute.xlu0 %700  ;;  %v435_v1 = vadd.f32 %v3369_v36, %v398_v40  ;;  %v434_v27 = vadd.f32 %v3371_v38, %v397_v17  ;;  %v400_v36 = vadd.f32 %v3531_v60, %v370_v12  ;;  %v399_v38 = vadd.f32 %v3546_v51, %v369_v31  ;;  %v4898_v60 = vld [vmem:[#allocation13_spill] sm:$0xff] }
 0x102   : > { %v3674_v51 = vmul.f32 %v3177_v22, %v1437_v59  ;;  %v1441_v22 = vmul.f32 %v3174_v21, %v1437_v59  ;;  %v1449_v17 = vrot.slane %v1439_v10, 1  ;;  %v4901_v21 = vld [vmem:[#allocation16_spill] sm:$0xff]  ;;  %v3723_v10 = vld [vmem:[%s3080_s5 + $0x30] sm:$0xff] }
 0x103   : > { %1356 = vrot.lane.b32.xlu1 %v1347_v4, %s3006_s8  ;;  %1354 = vrot.lane.b32.xlu0 %v1346_v5, %s3006_s8  ;;  %v3654_v4 = vmul.f32 %v3191_v32, %v647_v52  ;;  %v472_v25 = vadd.f32 %v3393_v62, %v435_v1  ;;  %v471_v46 = vadd.f32 %v3395_v63, %v434_v27 }
 0x104   : > { %v1415_v32 = vsel %vm279_vm0, %v1412_v55, %v1414_v39  ;;  %v1413_v52 = vsel %vm279_vm0, %v1411_v7, %v1412_v55  ;;  %v437_v9 = vadd.f32 %v3383_v50, %v400_v36  ;;  %v436_v53 = vadd.f32 %v4898_v60, %v399_v38  ;;  %v3727_v60 = vld [vmem:[%s3080_s5 + $0x38] sm:$0xff] }
 0x105   : > { %v3656_v5 = vpop.permute.xlu1 %735  ;;  %v3658_v33 = vpop.permute.xlu0 %733  ;;  %v1438_v62 = vmul.f32 %v3167_v18, %v1437_v59  ;;  %v3680_v63 = vsel %vm383_vm1, %v659_v58, %v661_v28  ;;  %v1417_v50 = vsel %vm279_vm0, %v1414_v39, %v1416_v57  ;;  %v4900_v18 = vld [vmem:[#allocation15_spill] sm:$0xff]  ;;  %v488_v31 = vadd.f32 %v3556_v35, %v472_v25 }
 0x106   : > { %v473_v12 = vadd.f32 %v4900_v18, %v436_v53  ;;  %v487_v40 = vadd.f32 %v3559_v34, %v471_v46  ;;  %v1419_v58 = vsel %vm279_vm0, %v1416_v57, %v1418_v47  ;;  %v1442_v55 = vmul.f32 %v3627_v24, %v1437_v59  ;;  %v3731_v53 = vld [vmem:[%s3080_s5 + $0x28] sm:$0xff] }
 0x107   : > { %1360 = vrot.lane.b32.xlu1 %v1349_v43, %s3006_s8  ;;  %1358 = vrot.lane.b32.xlu0 %v1348_v20, %s3006_s8  ;;  %v4899_v20 = vld [vmem:[#allocation14_spill] sm:$0xff]  ;;  %v1503_v39 = vstv %s3644_s20  ;;  %v514_v7 = vadd.f32 %v4901_v21, %v488_v31  ;;  %v1451_v27 = vrot.slane %v3674_v51, 1  ;;  %v1448_v14 = vrot.slane %v1438_v62, 1  ;;  %s4106_s20 = sld [smem:[#allocation2 + $0x3e]] }
 0x108   : > { %v474_v11 = vadd.f32 %v4899_v20, %v437_v9  ;;  %v513_v1 = vadd.f32 %v4902_v2, %v487_v40  ;;  %v663_v35 = vrot.slane %v3651_v29, 2  ;;  %v665_v34 = vrot.slane %v3654_v4, 2  ;;  %v4904_v29 = vld [vmem:[#allocation21_spill] sm:$0xff]  ;;  %v4905_v51 = vld [vmem:[#allocation18_spill] sm:$0xff]  ;;  %v4908_v2 = vld [vmem:[#allocation23_spill] sm:$0xff] }
 0x109   : > { %v3685_v43 = vpop.permute.xlu1 %739  ;;  %v3687_v15 = vpop.permute.xlu0 %737  ;;  %v3708_v57 = vstv %s3660_s21  ;;  %v1453_v38 = vrot.slane %v1441_v22, 1  ;;  %v489_v46 = vadd.f32 %v3572_v49, %v473_v12  ;;  %v1455_v4 = vrot.slane %v1442_v55, 1  ;;  %v4906_v22 = vld [vmem:[#allocation19_spill] sm:$0xff]  ;;  %s4108_s21 = sld [smem:[#allocation2 + $0x21]] }
 0x10a   : > { %v490_v25 = vadd.f32 %v3562_v30, %v474_v11  ;;  %v539_v47 = vadd.f32 %v4904_v29, %v513_v1  ;;  %v1505_v9 = vmul.f32 %v3723_v10, %v1503_v39  ;;  %v1506_v30 = vmul.f32 %v3727_v60, %v1503_v39 }
 0x10b   : > { %1422 = vrot.lane.b32.xlu1 %v1415_v32, %s3005_s6  ;;  %1420 = vrot.lane.b32.xlu0 %v1413_v52, %s3005_s6  ;;  %v4903_v32 = vld [vmem:[#allocation20_spill] sm:$0xff]  ;;  %v1504_v49 = vmul.f32 %v3731_v53, %v1503_v39  ;;  %v515_v20 = vadd.f32 %v4906_v22, %v489_v46  ;;  %v1450_v11 = vsel %vm279_vm0, %v1448_v14, %v1449_v17  ;;  %v1540_v29 = vstv %s3703_s22  ;;  %v4910_v22 = vld [vmem:[#allocation9_spill] sm:$0xff]  ;;  %s4147_s22 = sld [smem:[#allocation2 + $0x27]] }
 0x10c   : > { %v540_v52 = vadd.f32 %v4903_v32, %v514_v7  ;;  %v516_v62 = vadd.f32 %v4905_v51, %v490_v25  ;;  %v3739_v18 = vsel %vm383_vm1, %v663_v35, %v665_v34  ;;  %v3744_v12 = vsel %vm383_vm1, %v661_v28, %v663_v35 }
 0x10d   : > { %v3710_v59 = vpop.permute.xlu1 %777  ;;  %v3712_v36 = vpop.permute.xlu0 %775  ;;  %v1508_v21 = vmul.f32 %v3627_v24, %v1503_v39  ;;  %v541_v1 = vadd.f32 %v4908_v2, %v515_v20  ;;  %v568_v28 = vadd.f32 %v3586_v41, %v539_v47  ;;  %v1456_v14 = vsel %vm279_vm0, %v1453_v38, %v1455_v4 }
 0x10e   : > { %v569_v44 = vadd.f32 %v3575_v61, %v540_v52  ;;  %v1454_v35 = vsel %vm279_vm0, %v1451_v27, %v1453_v38  ;;  %v1515_v34 = vrot.slane %v1505_v9, 2  ;;  %v1517_v25 = vrot.slane %v1506_v30, 2  ;;  %v4909_v61 = vld [vmem:[#allocation8_spill] sm:$0xff] }
 0x10f   : > { %1426 = vrot.lane.b32.xlu1 %v1419_v58, %s3005_s6  ;;  %1424 = vrot.lane.b32.xlu0 %v1417_v50, %s3005_s6  ;;  %v1452_v50 = vsel %vm279_vm0, %v1449_v17, %v1451_v27  ;;  %v3751_v58 = vld [vmem:[%s3080_s5 + $0x40] sm:$0xff]  ;;  %v4907_v17 = vld [vmem:[#allocation22_spill] sm:$0xff]  ;;  %v605_v46 = vadd.f32 %v3499_v37, %v568_v28  ;;  %v1514_v32 = vrot.slane %v1504_v49, 2  ;;  %v3768_v52 = vmul.f32 %v4909_v61, %v3708_v57 }
 0x110   : > { %v1507_v55 = vmul.f32 %v3751_v58, %v1503_v39  ;;  %v542_v7 = vadd.f32 %v4907_v17, %v516_v62  ;;  %v606_v39 = vadd.f32 %v3497_v26, %v569_v44  ;;  %v818_v51 = vstv %s3714_s23  ;;  %s4169_s23 = sld [smem:[#allocation2 + $0x24]] }
 0x111   : > { %v3746_v31 = vpop.permute.xlu1 %781  ;;  %v3748_v40 = vpop.permute.xlu0 %779  ;;  %v1521_v62 = vrot.slane %v1508_v21, 2  ;;  %v570_v38 = vadd.f32 %v3595_v56, %v541_v1  ;;  %v642_v37 = vadd.f32 %v3551_v42, %v605_v46  ;;  %v1518_v9 = vsel %vm383_vm1, %v1515_v34, %v1517_v25 }
 0x112   : > { %v1519_v4 = vrot.slane %v1507_v55, 2  ;;  %v571_v27 = vadd.f32 %v3601_v54, %v542_v7  ;;  %v643_v26 = vadd.f32 %v3549_v3, %v606_v39  ;;  %v1542_v30 = vmul.f32 %v3723_v10, %v1540_v29 }
 0x113   : > { %1459 = vrot.lane.b32.xlu1 %v1452_v50, %s3006_s8  ;;  %1457 = vrot.lane.b32.xlu0 %v1450_v11, %s3006_s8  ;;  %v3784_v49 = vmul.f32 %v3727_v60, %v1540_v29  ;;  %v607_v56 = vadd.f32 %v3516_v45, %v570_v38  ;;  %v1516_v3 = vsel %vm383_vm1, %v1514_v32, %v1515_v34  ;;  %v4911_v50 = vld [vmem:[#allocation10_spill] sm:$0xff]  ;;  %v4912_v34 = vld [vmem:[#allocation11_spill] sm:$0xff]  ;;  %v921_v38 = vstv %s3786_s24  ;;  %s4178_s24 = sld [smem:[#allocation2 + $0x40]] }
 0x114   : > { %v608_v54 = vadd.f32 %v3514_v0, %v571_v27  ;;  %v1541_v42 = vmul.f32 %v3731_v53, %v1540_v29  ;;  %v757_v20 = vmul.f32 %v4910_v22, %v3708_v57  ;;  %v3796_v11 = vmul.f32 %v4911_v50, %v3708_v57 }
 0x115   : > { %v3770_v41 = vpop.permute.xlu1 %803  ;;  %v3772_v47 = vpop.permute.xlu0 %801  ;;  %v3803_v17 = vmul.f32 %v4909_v61, %v818_v51  ;;  %v1522_v0 = vsel %vm383_vm1, %v1519_v4, %v1521_v62  ;;  %v644_v7 = vadd.f32 %v3579_v6, %v607_v56  ;;  %v672_v2 = vadd.f32 %v3680_v63, %v643_v26 }
 0x116   : > { %v645_v45 = vadd.f32 %v3577_v48, %v608_v54  ;;  %v671_v1 = vadd.f32 %v3683_v19, %v642_v37  ;;  %v1520_v44 = vsel %vm383_vm1, %v1517_v25, %v1519_v4  ;;  %v1552_v28 = vrot.slane %v1542_v30, 2 }
 0x117   : > { %1463 = vrot.lane.b32.xlu1 %v1456_v14, %s3006_s8  ;;  %1461 = vrot.lane.b32.xlu0 %v1454_v35, %s3006_s8  ;;  %v1554_v14 = vrot.slane %v3784_v49, 2  ;;  %v1544_v35 = vmul.f32 %v3751_v58, %v1540_v29  ;;  %v709_v48 = vadd.f32 %v3606_v8, %v672_v2  ;;  %v1551_v63 = vrot.slane %v1541_v42, 2  ;;  %v3870_v2 = vld [vmem:[%s3080_s5 + $0x58] sm:$0xff] }
 0x118   : > { %v708_v6 = vadd.f32 %v3608_v23, %v671_v1  ;;  %v1545_v19 = vmul.f32 %v3627_v24, %v1540_v29  ;;  %v759_v39 = vmul.f32 %v4912_v34, %v3708_v57  ;;  %v3823_v25 = vmul.f32 %v4912_v34, %v818_v51  ;;  %v3873_v1 = vld [vmem:[%s3080_s5 + $0x50] sm:$0xff] }
 0x119   : > { %v3798_v55 = vpop.permute.xlu1 %807  ;;  %v3800_v21 = vpop.permute.xlu0 %805  ;;  %v819_v32 = vmul.f32 %v4910_v22, %v818_v51  ;;  %v3831_v8 = vmul.f32 %v4911_v50, %v818_v51  ;;  %v674_v23 = vadd.f32 %v3739_v18, %v645_v45  ;;  %v673_v24 = vadd.f32 %v3744_v12, %v644_v7  ;;  %v2927_v22 = vld [vmem:[%s3080_s5 + $0x58] sm:$0xff]  ;;  %v2929_v45 = vld [vmem:[%s3080_s5 + $0x50] sm:$0xff] }
 0x11a   : > { %v746_v29 = vadd.f32 %v3656_v5, %v709_v48  ;;  %v745_v57 = vadd.f32 %v3658_v33, %v708_v6  ;;  %v830_v4 = vrot.slane %v3803_v17, 1  ;;  %v1555_v62 = vsel %vm383_vm1, %v1552_v28, %v1554_v14  ;;  %v2928_v17 = vld [vmem:[%s3080_s5 + $0x60] sm:$0xff] }
 0x11b   : > { %1525 = vrot.lane.b32.xlu1 %v1518_v9, %s3005_s6  ;;  %1523 = vrot.lane.b32.xlu0 %v1516_v3, %s3005_s6  ;;  %v1556_v27 = vrot.slane %v1544_v35, 2  ;;  %v711_v26 = vadd.f32 %v3630_v13, %v674_v23  ;;  %v710_v18 = vadd.f32 %v3632_v16, %v673_v24  ;;  %v1553_v12 = vsel %vm383_vm1, %v1551_v63, %v1552_v28  ;;  %v4913_v9 = vld [vmem:[#allocation12_spill] sm:$0xff] }
 0x11c   : > { %v1558_v5 = vrot.slane %v1545_v19, 2  ;;  %v832_v33 = vrot.slane %v3823_v25, 1  ;;  %v829_v37 = vrot.slane %v819_v32, 1  ;;  %v823_v30 = vmul.f32 %v4913_v9, %v818_v51  ;;  %v3894_v23 = vld [vmem:[%s3080_s5 + $0x60] sm:$0xff] }
 0x11d   : > { %v3825_v46 = vpop.permute.xlu1 %869  ;;  %v3828_v61 = vpop.permute.xlu0 %867  ;;  %v834_v49 = vrot.slane %v3831_v8, 1  ;;  %v748_v13 = vadd.f32 %v3685_v43, %v711_v26  ;;  %v747_v16 = vadd.f32 %v3687_v15, %v710_v18  ;;  %v762_v3 = vadd.f32 %v3768_v52, %v746_v29  ;;  %v3891_v8 = vld [vmem:[%s3080_s5 + $0x68] sm:$0xff] }
 0x11e   : > { %v761_v42 = vadd.f32 %v757_v20, %v745_v57  ;;  %v1592_v51 = vstv %s3815_s25  ;;  %v923_v50 = vmul.f32 %v2927_v22, %v921_v38  ;;  %v922_v7 = vmul.f32 %v2929_v45, %v921_v38  ;;  %s4204_s25 = sld [smem:[#allocation2 + $0x43]] }
 0x11f   : > { %1529 = vrot.lane.b32.xlu1 %v1522_v0, %s3005_s6  ;;  %1527 = vrot.lane.b32.xlu0 %v1520_v44, %s3005_s6  ;;  %v3862_v0 = vmul.f32 %v2928_v17, %v921_v38  ;;  %v788_v43 = vadd.f32 %v3710_v59, %v762_v3  ;;  %v1559_v52 = vsel %vm383_vm1, %v1556_v27, %v1558_v5  ;;  %v836_v35 = vrot.slane %v823_v30, 1 }
 0x120   : > { %v787_v15 = vadd.f32 %v3712_v36, %v761_v42  ;;  %v1557_v20 = vsel %vm383_vm1, %v1554_v14, %v1556_v27  ;;  %v833_v44 = vsel %vm279_vm0, %v830_v4, %v832_v33  ;;  %v831_v28 = vsel %vm279_vm0, %v829_v37, %v830_v4  ;;  %v2930_v4 = vld [vmem:[%s3080_s5 + $0x68] sm:$0xff]  ;;  %v2931_v27 = vld [vmem:[%s3080_s5 + $0x70] sm:$0x3] }
 0x121   : > { %v3848_v54 = vpop.permute.xlu1 %873  ;;  %v3850_v56 = vpop.permute.xlu0 %871  ;;  %v764_v36 = vadd.f32 %v3796_v11, %v748_v13  ;;  %v763_v6 = vadd.f32 %v759_v39, %v747_v16  ;;  %v814_v14 = vadd.f32 %v3770_v41, %v788_v43  ;;  %v1594_v19 = vmul.f32 %v3870_v2, %v1592_v51 }
 0x122   : > { %v813_v63 = vadd.f32 %v3772_v47, %v787_v15  ;;  %v1593_v34 = vmul.f32 %v3873_v1, %v1592_v51  ;;  %v933_v25 = vrot.slane %v923_v50, 2  ;;  %v935_v32 = vrot.slane %v3862_v0, 2 }
 0x123   : > { %1562 = vrot.lane.b32.xlu1 %v1555_v62, %s3006_s8  ;;  %1560 = vrot.lane.b32.xlu0 %v1553_v12, %s3006_s8  ;;  %v790_v11 = vadd.f32 %v3746_v31, %v764_v36  ;;  %v789_v41 = vadd.f32 %v3748_v40, %v763_v6  ;;  %v835_v47 = vsel %vm279_vm0, %v832_v33, %v834_v49  ;;  %v932_v39 = vrot.slane %v922_v7, 2 }
 0x124   : > { %v837_v24 = vsel %vm279_vm0, %v834_v49, %v836_v35  ;;  %v925_v62 = vmul.f32 %v2930_v4, %v921_v38  ;;  %v926_v26 = vmul.f32 %v2931_v27, %v921_v38  ;;  %v1673_v18 = vstv %s3852_s26  ;;  %s4238_s26 = sld [smem:[#allocation2 + $0x2a]] }
 0x125   : > { %v907_v48 = vpop.permute.xlu1 %906  ;;  %v905_v59 = vpop.permute.xlu0 %904  ;;  %v816_v31 = vadd.f32 %v3798_v55, %v790_v11  ;;  %v815_v40 = vadd.f32 %v3800_v21, %v789_v41  ;;  %v843_v12 = vadd.f32 %v833_v44, %v814_v14  ;;  %v842_v5 = vadd.f32 %v831_v28, %v813_v63 }
 0x126   : > { %v936_v33 = vsel %vm383_vm1, %v933_v25, %v935_v32  ;;  %v1596_v37 = vmul.f32 %v3891_v8, %v1592_v51  ;;  %v1595_v9 = vmul.f32 %v3894_v23, %v1592_v51  ;;  %v934_v55 = vsel %vm383_vm1, %v932_v39, %v933_v25 }
 0x127   : > { %1566 = vrot.lane.b32.xlu1 %v1559_v52, %s3006_s8  ;;  %1564 = vrot.lane.b32.xlu0 %v1557_v20, %s3006_s8  ;;  %v880_v30 = vadd.f32 %v3825_v46, %v843_v12  ;;  %v879_v38 = vadd.f32 %v3828_v61, %v842_v5  ;;  %v1618_v49 = vstv %s3875_s27  ;;  %v937_v16 = vrot.slane %v925_v62, 2  ;;  %s4240_s27 = sld [smem:[#allocation2 + $0x41]] }
 0x128   : > { %v939_v3 = vrot.slane %v926_v26, 2  ;;  %v1675_v42 = vmul.f32 %v3870_v2, %v1673_v18  ;;  %v3915_v22 = vmul.f32 %v3894_v23, %v1673_v18  ;;  %v845_v51 = vadd.f32 %v837_v24, %v816_v31 }
 0x129   : > { %v911_v29 = vpop.permute.xlu1 %910  ;;  %v909_v57 = vpop.permute.xlu0 %908  ;;  %v844_v50 = vadd.f32 %v835_v47, %v815_v40  ;;  %v917_v46 = vadd.f32 %v907_v48, %v880_v30  ;;  %v916_v61 = vadd.f32 %v905_v59, %v879_v38  ;;  %v1620_v17 = vmul.f32 %v3870_v2, %v1618_v49  ;;  %v3929_v48 = vld [vmem:[%s3080_s5 + $0x70] sm:$0x3] }
 0x12a   : > { %v1619_v0 = vmul.f32 %v3873_v1, %v1618_v49  ;;  %v1674_v45 = vmul.f32 %v3873_v1, %v1673_v18  ;;  %v882_v7 = vadd.f32 %v3848_v54, %v845_v51  ;;  %v940_v15 = vsel %vm383_vm1, %v937_v16, %v939_v3 }
 0x12b   : > { %1603 = vrot.lane.b32.xlu1 %v1594_v19, %s3005_s6  ;;  %1601 = vrot.lane.b32.xlu0 %v1593_v34, %s3005_s6  ;;  %v881_v43 = vadd.f32 %v3850_v56, %v844_v50  ;;  %v938_v20 = vsel %vm383_vm1, %v935_v32, %v937_v16  ;;  %v1685_v28 = vrot.slane %v1675_v42, 1  ;;  %v1687_v35 = vrot.slane %v3915_v22, 1 }
 0x12c   : > { %v919_v59 = vadd.f32 %v911_v29, %v882_v7  ;;  %v946_v6 = vadd.f32 %v936_v33, %v917_v46  ;;  %v945_v14 = vadd.f32 %v934_v55, %v916_v61  ;;  %v1622_v54 = vmul.f32 %v3891_v8, %v1618_v49 }
 0x12d   : > { %v973_v21 = vpop.permute.xlu1 %972  ;;  %v971_v13 = vpop.permute.xlu0 %970  ;;  %v918_v36 = vadd.f32 %v909_v57, %v881_v43  ;;  %v1621_v56 = vmul.f32 %v3894_v23, %v1618_v49  ;;  %v1684_v63 = vrot.slane %v1674_v45, 1  ;;  %v1677_v19 = vmul.f32 %v3891_v8, %v1673_v18 }
 0x12e   : > { %v983_v34 = vadd.f32 %v973_v21, %v946_v6  ;;  %v982_v25 = vadd.f32 %v971_v13, %v945_v14  ;;  %v1678_v32 = vmul.f32 %v3929_v48, %v1673_v18  ;;  %v1710_v11 = vstv %s3911_s28  ;;  %s4304_s28 = sld [smem:[#allocation2 + $0x44]] }
 0x12f   : > { %1607 = vrot.lane.b32.xlu1 %v1596_v37, %s3005_s6  ;;  %1605 = vrot.lane.b32.xlu0 %v1595_v9, %s3005_s6  ;;  %v1688_v39 = vsel %vm279_vm0, %v1685_v28, %v1687_v35  ;;  %v948_v24 = vadd.f32 %v940_v15, %v919_v59  ;;  %v947_v29 = vadd.f32 %v938_v20, %v918_v36  ;;  %v1689_v27 = vrot.slane %v1677_v19, 1 }
 0x130   : > { %v1686_v62 = vsel %vm279_vm0, %v1684_v63, %v1685_v28  ;;  %v1712_v26 = vmul.f32 %v3870_v2, %v1710_v11  ;;  %v1713_v18 = vmul.f32 %v3894_v23, %v1710_v11  ;;  %v1691_v12 = vrot.slane %v1678_v32, 1 }
 0x131   : > { %v977_v52 = vpop.permute.xlu1 %976  ;;  %v975_v44 = vpop.permute.xlu0 %974  ;;  %v1711_v5 = vmul.f32 %v3873_v1, %v1710_v11  ;;  %v1714_v38 = vmul.f32 %v3891_v8, %v1710_v11  ;;  %v1715_v55 = vmul.f32 %v3929_v48, %v1710_v11  ;;  %v1690_v16 = vsel %vm279_vm0, %v1687_v35, %v1689_v27 }
 0x132   : > { %v985_v31 = vadd.f32 %v977_v52, %v948_v24  ;;  %v984_v40 = vadd.f32 %v975_v44, %v947_v29  ;;  %v1722_v49 = vrot.slane %v1712_v26, 1  ;;  %v1724_v21 = vrot.slane %v1713_v18, 1 }
 0x133   : > { %1629 = vrot.lane.b32.xlu1 %v1620_v17, %s3006_s8  ;;  %1627 = vrot.lane.b32.xlu0 %v1619_v0, %s3006_s8  ;;  %v1692_v13 = vsel %vm279_vm0, %v1689_v27, %v1691_v12  ;;  %v1721_v3 = vrot.slane %v1711_v5, 1  ;;  %v1776_v51 = vstv %s3944_s7  ;;  %v1726_v50 = vrot.slane %v1714_v38, 1  ;;  %v4026_v5 = vld [vmem:[%s3080_s5 + $0x8] sm:$0xff]  ;;  %s4442_s7 = sld [smem:[#allocation2 + $0x2d]] }
 0x134   : > { %v1728_v46 = vrot.slane %v1715_v55, 1  ;;  %v1725_v61 = vsel %vm279_vm0, %v1722_v49, %v1724_v21  ;;  %v1778_v0 = vmul.f32 %v3870_v2, %v1776_v51  ;;  %v1779_v45 = vmul.f32 %v3894_v23, %v1776_v51 }
 0x135   : > { %v1010_v41 = vpop.permute.xlu1 %1009  ;;  %v1008_v47 = vpop.permute.xlu0 %1007  ;;  %v1723_v17 = vsel %vm279_vm0, %v1721_v3, %v1722_v49  ;;  %v1777_v7 = vmul.f32 %v3873_v1, %v1776_v51  ;;  %v1727_v20 = vsel %vm279_vm0, %v1724_v21, %v1726_v50  ;;  %v1780_v44 = vmul.f32 %v3891_v8, %v1776_v51  ;;  %v4040_v49 = vld [vmem:[%s3080_s5 + $0x18] sm:$0xff]  ;;  %v4043_v21 = vld [vmem:[%s3080_s5 + $0x10] sm:$0xff] }
 0x136   : > { %v1020_v57 = vadd.f32 %v1010_v41, %v983_v34  ;;  %v1019_v4 = vadd.f32 %v1008_v47, %v982_v25  ;;  %v1729_v52 = vsel %vm279_vm0, %v1726_v50, %v1728_v46  ;;  %v1781_v28 = vmul.f32 %v3929_v48, %v1776_v51 }
 0x137   : > { %1633 = vrot.lane.b32.xlu1 %v1622_v54, %s3006_s8  ;;  %1631 = vrot.lane.b32.xlu0 %v1621_v56, %s3006_s8  ;;  %v1788_v35 = vrot.slane %v1778_v0, 2  ;;  %v1790_v59 = vrot.slane %v1779_v45, 2  ;;  %v1787_v36 = vrot.slane %v1777_v7, 2  ;;  %v1813_v6 = vstv %s2841_s9  ;;  %s4507_s9 = sld [smem:[#allocation2 + $0x33]] }
 0x138   : > { %1025 = vst.msk [vmem:[%s3941_s4 + $0x8] sm:$0xff] %vm1023_vm2, %v1020_v57  ;;  %1024 = vst.msk [vmem:[%s3941_s4] sm:$0xff] %vm1023_vm2, %v1019_v4  ;;  %v1792_v56 = vrot.slane %v1780_v44, 2  ;;  %v1794_v63 = vrot.slane %v1781_v28, 2  ;;  %v1815_v19 = vmul.f32 %v3870_v2, %v1813_v6  ;;  %v1816_v32 = vmul.f32 %v3894_v23, %v1813_v6  ;;  %v4065_v44 = vld [vmem:[%s3080_s5 + $0x20] sm:$0x3] }
 0x139   : > { %v1014_v33 = vpop.permute.xlu1 %1013  ;;  %v1012_v37 = vpop.permute.xlu0 %1011  ;;  %v1791_v34 = vsel %vm383_vm1, %v1788_v35, %v1790_v59  ;;  %v1789_v25 = vsel %vm383_vm1, %v1787_v36, %v1788_v35  ;;  %v1814_v11 = vmul.f32 %v3873_v1, %v1813_v6  ;;  %v1817_v4 = vmul.f32 %v3891_v8, %v1813_v6 }
 0x13a   : > { %v1022_v9 = vadd.f32 %v1014_v33, %v985_v31  ;;  %v1021_v30 = vadd.f32 %v1012_v37, %v984_v40  ;;  %v1793_v2 = vsel %vm383_vm1, %v1790_v59, %v1792_v56  ;;  %v1825_v24 = vrot.slane %v1815_v19, 2  ;;  %v4029_v37 = vld [vmem:[%s3080_s5] sm:$0xff] }
 0x13b   : > { %1695 = vrot.lane.b32.xlu1 %v1688_v39, %s3005_s6  ;;  %1693 = vrot.lane.b32.xlu0 %v1686_v62, %s3005_s6  ;;  %v1795_v39 = vsel %vm383_vm1, %v1792_v56, %v1794_v63  ;;  %v1827_v29 = vrot.slane %v1816_v32, 2  ;;  %v1824_v57 = vrot.slane %v1814_v11, 2  ;;  %v1818_v23 = vmul.f32 %v3929_v48, %v1813_v6 }
 0x13c   : > { %1027 = vst.msk [vmem:[%s3941_s4 + $0x18] sm:$0xff] %vm1023_vm2, %v1022_v9  ;;  %1026 = vst.msk [vmem:[%s3941_s4 + $0x10] sm:$0xff] %vm1023_vm2, %v1021_v30  ;;  %v1829_v18 = vrot.slane %v1817_v4, 2  ;;  %v1872_v33 = vstv %s2848_s10  ;;  %v1898_v50 = vstv %s2849_s11  ;;  %s4521_s10 = sld [smem:[#allocation2 + $0x49]]  ;;  %s4550_s11 = sld [smem:[#allocation2 + $0x4a]] }
 0x13d   : > { %v3966_v42 = vpop.permute.xlu1 %1057  ;;  %v3968_v22 = vpop.permute.xlu0 %1055  ;;  %v1828_v27 = vsel %vm383_vm1, %v1825_v24, %v1827_v29  ;;  %v1826_v26 = vsel %vm383_vm1, %v1824_v57, %v1825_v24  ;;  %v1831_v31 = vrot.slane %v1818_v23, 2  ;;  %v1874_v38 = vmul.f32 %v1872_v33, %v4026_v5 }
 0x13e   : > { %v1830_v12 = vsel %vm383_vm1, %v1827_v29, %v1829_v18  ;;  %v1873_v55 = vmul.f32 %v1872_v33, %v4029_v37  ;;  %v1876_v3 = vmul.f32 %v1872_v33, %v4040_v49  ;;  %v1875_v51 = vmul.f32 %v1872_v33, %v4043_v21 }
 0x13f   : > { %1699 = vrot.lane.b32.xlu1 %v1692_v13, %s3005_s6  ;;  %1697 = vrot.lane.b32.xlu0 %v1690_v16, %s3005_s6  ;;  %v1832_v40 = vsel %vm383_vm1, %v1829_v18, %v1831_v31  ;;  %v1900_v0 = vmul.f32 %v1898_v50, %v4026_v5  ;;  %v1899_v45 = vmul.f32 %v1898_v50, %v4029_v37 }
 0x140   : > { %v1902_v59 = vmul.f32 %v1898_v50, %v4040_v49  ;;  %v1901_v36 = vmul.f32 %v1898_v50, %v4043_v21 }
 0x141   : > { %v3978_v43 = vpop.permute.xlu1 %1061  ;;  %v3980_v15 = vpop.permute.xlu0 %1059 }
 0x143   : > { %1732 = vrot.lane.b32.xlu1 %v1725_v61, %s3006_s8  ;;  %1730 = vrot.lane.b32.xlu0 %v1723_v17, %s3006_s8  ;;  %v1953_v17 = vstv %s2851_s14  ;;  %s4571_s14 = sld [smem:[#allocation2 + $0x4c]] }
 0x144   : > { %v1955_v7 = vmul.f32 %v1953_v17, %v4026_v5  ;;  %v1957_v6 = vmul.f32 %v1953_v17, %v4040_v49  ;;  %v1958_v56 = vmul.f32 %v1953_v17, %v4065_v44 }
 0x145   : > { %v3988_v14 = vpop.permute.xlu1 %1083  ;;  %v3990_v54 = vpop.permute.xlu0 %1081 }
 0x146   : > { %v1965_v63 = vrot.slane %v1955_v7, 1 }
 0x147   : > { %1736 = vrot.lane.b32.xlu1 %v1729_v52, %s3006_s8  ;;  %1734 = vrot.lane.b32.xlu0 %v1727_v20, %s3006_s8  ;;  %v1956_v52 = vmul.f32 %v1953_v17, %v4043_v21  ;;  %v1954_v20 = vmul.f32 %v1953_v17, %v4029_v37  ;;  %v1036_v17 = vstv %s2805_s17  ;;  %s4628_s17 = sld [smem:[#allocation2 + $0x4f]] }
 0x149   : > { %v3999_v41 = vpop.permute.xlu1 %1087  ;;  %v4001_v47 = vpop.permute.xlu0 %1085  ;;  %v1967_v19 = vrot.slane %v1956_v52, 1 }
 0x14b   : > { %1798 = vrot.lane.b32.xlu1 %v1791_v34, %s3005_s6  ;;  %1796 = vrot.lane.b32.xlu0 %v1789_v25, %s3005_s6  ;;  %v1964_v34 = vrot.slane %v1954_v20, 1  ;;  %v1990_v25 = vstv %s2852_s15  ;;  %v1968_v57 = vsel %vm279_vm0, %v1965_v63, %v1967_v19  ;;  %s4602_s15 = sld [smem:[#allocation2 + $0x4d]] }
 0x14c   : > { %v1992_v24 = vmul.f32 %v1990_v25, %v4026_v5  ;;  %v1993_v29 = vmul.f32 %v1990_v25, %v4043_v21  ;;  %v1991_v23 = vmul.f32 %v1990_v25, %v4029_v37 }
 0x14d   : > { %v4009_v1 = vpop.permute.xlu1 %1149  ;;  %v4011_v62 = vpop.permute.xlu0 %1147  ;;  %v1966_v4 = vsel %vm279_vm0, %v1964_v34, %v1965_v63  ;;  %v2933_v63 = vld [vmem:[%s3080_s5] sm:$0xff] }
 0x14e   : > { %v2001_v33 = vrot.slane %v1991_v23, 1 }
 0x14f   : > { %1802 = vrot.lane.b32.xlu1 %v1795_v39, %s3005_s6  ;;  %1800 = vrot.lane.b32.xlu0 %v1793_v2, %s3005_s6  ;;  %v1969_v39 = vrot.slane %v1957_v6, 1  ;;  %v1971_v2 = vrot.slane %v1958_v56, 1  ;;  %v2932_v6 = vld [vmem:[%s3080_s5 + $0x8] sm:$0xff] }
 0x150   : > { %v1038_v56 = vmul.f32 %v2932_v6, %v1036_v17 }
 0x151   : > { %v4017_v8 = vpop.permute.xlu1 %1153  ;;  %v4019_v48 = vpop.permute.xlu0 %1151  ;;  %v1972_v18 = vsel %vm279_vm0, %v1969_v39, %v1971_v2  ;;  %v1970_v31 = vsel %vm279_vm0, %v1967_v19, %v1969_v39  ;;  %v1037_v19 = vmul.f32 %v2933_v63, %v1036_v17  ;;  %v4124_v39 = vstv %s4092_s18  ;;  %s4631_s18 = sld [smem:[#allocation2 + $0x39]] }
 0x152   : > { %v1098_v2 = vstv %s4094_s19  ;;  %s4633_s19 = sld [smem:[#allocation4 + $0x2]] }
 0x153   : > { %1835 = vrot.lane.b32.xlu1 %v1828_v27, %s3006_s8  ;;  %1833 = vrot.lane.b32.xlu0 %v1826_v26, %s3006_s8 }
 0x155   : > { %v4031_v9 = vpop.permute.xlu1 %1186  ;;  %v4033_v30 = vpop.permute.xlu0 %1184 }
 0x157   : > { %1839 = vrot.lane.b32.xlu1 %v1832_v40, %s3006_s8  ;;  %1837 = vrot.lane.b32.xlu0 %v1830_v12, %s3006_s8  ;;  %v2002_v40 = vrot.slane %v1992_v24, 1  ;;  %v2004_v12 = vrot.slane %v1993_v29, 1 }
 0x159   : > { %v4045_v13 = vpop.permute.xlu1 %1190  ;;  %v4047_v16 = vpop.permute.xlu0 %1188  ;;  %v2003_v52 = vsel %vm279_vm0, %v2001_v33, %v2002_v40  ;;  %v4137_v33 = vadd.f32 %v1037_v19, %v4124_v39 }
 0x15b   : > { %1883 = vrot.lane.b32.xlu1 %v1874_v38, %s3005_s6  ;;  %1881 = vrot.lane.b32.xlu0 %v1873_v55, %s3005_s6  ;;  %v1994_v38 = vmul.f32 %v1990_v25, %v4040_v49  ;;  %v1995_v55 = vmul.f32 %v1990_v25, %v4065_v44 }
 0x15d   : > { %v4053_v46 = vpop.permute.xlu1 %1252  ;;  %v4055_v61 = vpop.permute.xlu0 %1250  ;;  %v2006_v20 = vrot.slane %v1994_v38, 1 }
 0x15f   : > { %1887 = vrot.lane.b32.xlu1 %v1876_v3, %s3005_s6  ;;  %1885 = vrot.lane.b32.xlu0 %v1875_v51, %s3005_s6  ;;  %v2056_v3 = vstv %s2854_s16  ;;  %s4608_s16 = sld [smem:[#allocation2 + $0x36]] }
 0x160   : > { %v2059_v7 = vmul.f32 %v2056_v3, %v4043_v21 }
 0x161   : > { %v4067_v28 = vpop.permute.xlu1 %1256  ;;  %v4069_v35 = vpop.permute.xlu0 %1254 }
 0x162   : > { %v2070_v29 = vrot.slane %v2059_v7, 2 }
 0x163   : > { %1909 = vrot.lane.b32.xlu1 %v1900_v0, %s3006_s8  ;;  %1907 = vrot.lane.b32.xlu0 %v1899_v45, %s3006_s8  ;;  %v2005_v0 = vsel %vm279_vm0, %v2002_v40, %v2004_v12  ;;  %v2058_v45 = vmul.f32 %v2056_v3, %v4026_v5  ;;  %v4134_v40 = vadd.f32 %v1038_v56, %v4124_v39 }
 0x165   : > { %v4077_v32 = vpop.permute.xlu1 %1289  ;;  %v4079_v11 = vpop.permute.xlu0 %1287  ;;  %v2068_v24 = vrot.slane %v2058_v45, 2  ;;  %v2934_v45 = vld [vmem:[%s3080_s5 + $0x18] sm:$0xff] }
 0x166   : > { %v1040_v7 = vmul.f32 %v2934_v45, %v1036_v17 }
 0x167   : > { %1913 = vrot.lane.b32.xlu1 %v1902_v59, %s3006_s8  ;;  %1911 = vrot.lane.b32.xlu0 %v1901_v36, %s3006_s8  ;;  %v2008_v59 = vrot.slane %v1995_v55, 1  ;;  %v2057_v36 = vmul.f32 %v2056_v3, %v4029_v37 }
 0x169   : > { %v4088_v27 = vpop.permute.xlu1 %1293  ;;  %v4090_v26 = vpop.permute.xlu0 %1291  ;;  %v2009_v23 = vsel %vm279_vm0, %v2006_v20, %v2008_v59  ;;  %v1100_v59 = vmul.f32 %v2932_v6, %v1098_v2 }
 0x16a   : > { %4914 = vst [vmem:[#allocation13_spill] sm:$0xff] %v4088_v27  ;;  %4915 = vst [vmem:[#allocation14_spill] sm:$0xff] %v4090_v26 }
 0x16b   : > { %1975 = vrot.lane.b32.xlu1 %v1968_v57, %s3005_s6  ;;  %1973 = vrot.lane.b32.xlu0 %v1966_v4, %s3005_s6  ;;  %v2060_v57 = vmul.f32 %v2056_v3, %v4040_v49  ;;  %v2061_v4 = vmul.f32 %v2056_v3, %v4065_v44 }
 0x16d   : > { %v4102_v51 = vpop.permute.xlu1 %1330  ;;  %v4104_v50 = vpop.permute.xlu0 %1328  ;;  %v2074_v56 = vrot.slane %v2061_v4, 2 }
 0x16e   : > { %4916 = vst [vmem:[#allocation15_spill] sm:$0xff] %v4102_v51  ;;  %4917 = vst [vmem:[#allocation16_spill] sm:$0xff] %v4104_v50  ;;  %v1102_v50 = vmul.f32 %v2934_v45, %v1098_v2  ;;  %v2936_v51 = vld [vmem:[%s3080_s5 + $0x20] sm:$0x3] }
 0x16f   : > { %1979 = vrot.lane.b32.xlu1 %v1972_v18, %s3005_s6  ;;  %1977 = vrot.lane.b32.xlu0 %v1970_v31, %s3005_s6  ;;  %v2007_v18 = vsel %vm279_vm0, %v2004_v12, %v2006_v20  ;;  %v2067_v31 = vrot.slane %v2057_v36, 2  ;;  %v2071_v20 = vsel %vm383_vm1, %v2068_v24, %v2070_v29  ;;  %v2072_v36 = vrot.slane %v2060_v57, 2 }
 0x170   : > { %v1103_v26 = vmul.f32 %v2936_v51, %v1098_v2 }
 0x171   : > { %v4119_v34 = vpop.permute.xlu1 %1334  ;;  %v4121_v25 = vpop.permute.xlu0 %1332  ;;  %v2069_v19 = vsel %vm383_vm1, %v2067_v31, %v2068_v24  ;;  %v1110_v31 = vrot.slane %v1100_v59, 1  ;;  %v1114_v59 = vrot.slane %v1102_v50, 1 }
 0x172   : > { %4918 = vst [vmem:[#allocation17_spill] sm:$0xff] %v4119_v34  ;;  %4919 = vst [vmem:[#allocation20_spill] sm:$0xff] %v4121_v25  ;;  %v1201_v25 = vstv %s4108_s21  ;;  %s4700_s21 = sld [smem:[#allocation2 + $0x3c]] }
 0x173   : > { %2012 = vrot.lane.b32.xlu1 %v2005_v0, %s3006_s8  ;;  %2010 = vrot.lane.b32.xlu0 %v2003_v52, %s3006_s8  ;;  %v2093_v0 = vstv %s4106_s20  ;;  %v2935_v52 = vld [vmem:[%s3080_s5 + $0x10] sm:$0xff]  ;;  %v1202_v4 = vmul.f32 %v2933_v63, %v1201_v25  ;;  %v4167_v24 = vmul.f32 %v2934_v45, %v1201_v25  ;;  %s4667_s20 = sld [smem:[#allocation2 + $0x50]] }
 0x174   : > { %v1039_v3 = vmul.f32 %v2935_v52, %v1036_v17  ;;  %v4149_v12 = vmul.f32 %v2935_v52, %v1098_v2  ;;  %v2095_v34 = vmul.f32 %v2093_v0, %v4026_v5  ;;  %v4157_v17 = vmul.f32 %v2093_v0, %v4043_v21 }
 0x175   : > { %v4139_v38 = vpop.permute.xlu1 %1356  ;;  %v4141_v55 = vpop.permute.xlu0 %1354  ;;  %v4165_v57 = vmul.f32 %v2935_v52, %v1201_v25  ;;  %v1206_v5 = vmul.f32 %v2936_v51, %v1201_v25  ;;  %v2073_v21 = vsel %vm383_vm1, %v2070_v29, %v2072_v36  ;;  %v2098_v51 = vmul.f32 %v2093_v0, %v4065_v44 }
 0x176   : > { %4920 = vst [vmem:[#allocation21_spill] sm:$0xff] %v4139_v38  ;;  %4921 = vst [vmem:[#allocation18_spill] sm:$0xff] %v4141_v55  ;;  %v2094_v55 = vmul.f32 %v2093_v0, %v4029_v37  ;;  %v1099_v38 = vmul.f32 %v2933_v63, %v1098_v2  ;;  %v2075_v37 = vsel %vm383_vm1, %v2072_v36, %v2074_v56  ;;  %v2105_v2 = vrot.slane %v2095_v34, 2 }
 0x177   : > { %2016 = vrot.lane.b32.xlu1 %v2009_v23, %s3006_s8  ;;  %2014 = vrot.lane.b32.xlu0 %v2007_v18, %s3006_s8  ;;  %v1203_v23 = vmul.f32 %v2932_v6, %v1201_v25  ;;  %v2097_v6 = vmul.f32 %v2093_v0, %v4040_v49  ;;  %v2107_v63 = vrot.slane %v4157_v17, 2  ;;  %v1112_v25 = vrot.slane %v4149_v12, 1 }
 0x178   : > { %v2104_v45 = vrot.slane %v2094_v55, 2  ;;  %v1109_v52 = vrot.slane %v1099_v38, 1  ;;  %v1215_v49 = vrot.slane %v4165_v57, 2  ;;  %v1212_v34 = vrot.slane %v1202_v4, 2 }
 0x179   : > { %v4161_v27 = vpop.permute.xlu1 %1360  ;;  %v4163_v18 = vpop.permute.xlu0 %1358  ;;  %v1213_v29 = vrot.slane %v1203_v23, 2  ;;  %v1371_v36 = vstv %s4147_s22  ;;  %v1044_v55 = vadd.f32 %v1040_v7, %v4124_v39  ;;  %v1217_v44 = vrot.slane %v4167_v24, 2  ;;  %s2867_s22 = sld [smem:[#allocation2 + $0x45]] }
 0x17a   : > { %v1219_v0 = vrot.slane %v1206_v5, 2  ;;  %v2109_v50 = vrot.slane %v2097_v6, 2  ;;  %v2108_v38 = vsel %vm383_vm1, %v2105_v2, %v2107_v63  ;;  %v2106_v12 = vsel %vm383_vm1, %v2104_v45, %v2105_v2 }
 0x17b   : > { %2078 = vrot.lane.b32.xlu1 %v2071_v20, %s3005_s6  ;;  %2076 = vrot.lane.b32.xlu0 %v2069_v19, %s3005_s6  ;;  %v1116_v20 = vrot.slane %v1103_v26, 1  ;;  %v1043_v26 = vadd.f32 %v1039_v3, %v4124_v39  ;;  %v2111_v17 = vrot.slane %v2098_v51, 2  ;;  %v1113_v23 = vsel %vm279_vm0, %v1110_v31, %v1112_v25 }
 0x17c   : > { %v1111_v7 = vsel %vm279_vm0, %v1109_v52, %v1110_v31  ;;  %v1373_v57 = vmul.f32 %v3723_v10, %v1371_v36  ;;  %v4198_v4 = vmul.f32 %v3727_v60, %v1371_v36  ;;  %v4210_v3 = vsel %vm279_vm0, %v1112_v25, %v1114_v59 }
 0x17d   : > { %v4181_v19 = vpop.permute.xlu1 %1422  ;;  %v4183_v56 = vpop.permute.xlu0 %1420  ;;  %v4207_v39 = vsel %vm279_vm0, %v1114_v59, %v1116_v20  ;;  %v4213_v31 = vsel %vm383_vm1, %v1213_v29, %v1215_v49  ;;  %v1309_v6 = vstv %s4169_s23  ;;  %v1372_v2 = vmul.f32 %v3731_v53, %v1371_v36  ;;  %v4232_v59 = vld [vmem:[%s3080_s5 + $0x30] sm:$0xff]  ;;  %s2875_s23 = sld [smem:[#allocation2 + $0x48]] }
 0x17e   : > { %v2110_v45 = vsel %vm383_vm1, %v2107_v63, %v2109_v50  ;;  %v1068_v51 = vadd.f32 %v3966_v42, %v4134_v40  ;;  %v1067_v25 = vadd.f32 %v3968_v22, %v4137_v33  ;;  %v2112_v52 = vsel %vm383_vm1, %v2109_v50, %v2111_v17  ;;  %v4245_v42 = vld [vmem:[%s3080_s5 + $0x48] sm:$0x3] }
 0x17f   : > { %2082 = vrot.lane.b32.xlu1 %v2075_v37, %s3005_s6  ;;  %2080 = vrot.lane.b32.xlu0 %v2073_v21, %s3005_s6  ;;  %v4216_v37 = vsel %vm383_vm1, %v1212_v34, %v1213_v29  ;;  %v4219_v21 = vsel %vm383_vm1, %v1217_v44, %v1219_v0  ;;  %v2145_v20 = vstv %s4178_s24  ;;  %v4236_v29 = vld [vmem:[%s3080_s5 + $0x28] sm:$0xff]  ;;  %v1383_v34 = vrot.slane %v1373_v57, 1  ;;  %s2878_s24 = sld [smem:[#allocation2 + $0x4b]] }
 0x180   : > { %v1385_v63 = vrot.slane %v4198_v4, 1  ;;  %v1375_v0 = vmul.f32 %v3751_v58, %v1371_v36  ;;  %v1376_v22 = vmul.f32 %v4245_v42, %v1371_v36  ;;  %v1094_v50 = vadd.f32 %v3988_v14, %v1068_v51 }
 0x181   : > { %v4200_v24 = vpop.permute.xlu1 %1426  ;;  %v4202_v5 = vpop.permute.xlu0 %1424  ;;  %v4258_v17 = vmul.f32 %v3723_v10, %v1309_v6  ;;  %v4261_v57 = vmul.f32 %v3731_v53, %v1309_v6  ;;  %v1382_v36 = vrot.slane %v1372_v2, 1  ;;  %v2147_v4 = vmul.f32 %v4232_v59, %v2145_v20  ;;  %v4279_v2 = vld [vmem:[%s3080_s5 + $0x38] sm:$0xff] }
 0x182   : > { %v2146_v14 = vmul.f32 %v4236_v29, %v2145_v20  ;;  %v4270_v10 = vmul.f32 %v3751_v58, %v1309_v6  ;;  %v4273_v53 = vmul.f32 %v3727_v60, %v1309_v6  ;;  %v1387_v51 = vrot.slane %v1375_v0, 1 }
 0x183   : > { %2115 = vrot.lane.b32.xlu1 %v2108_v38, %s3006_s8  ;;  %2113 = vrot.lane.b32.xlu0 %v2106_v12, %s3006_s8  ;;  %v1093_v38 = vadd.f32 %v3990_v54, %v1067_v25  ;;  %v4255_v12 = vsel %vm383_vm1, %v1215_v49, %v1217_v44  ;;  %v1070_v54 = vadd.f32 %v3978_v43, %v1044_v55  ;;  %v4276_v44 = vld [vmem:[%s3080_s5 + $0x40] sm:$0xff]  ;;  %v1389_v25 = vrot.slane %v1376_v22, 1 }
 0x184   : > { %v1069_v49 = vadd.f32 %v3980_v15, %v1043_v26  ;;  %v2226_v58 = vstv %s4204_s25  ;;  %v1123_v26 = vadd.f32 %v1113_v23, %v1094_v50  ;;  %v2149_v0 = vmul.f32 %v4276_v44, %v2145_v20 }
 0x185   : > { %v4248_v40 = vpop.permute.xlu1 %1459  ;;  %v4250_v33 = vpop.permute.xlu0 %1457  ;;  %v1096_v55 = vadd.f32 %v3999_v41, %v1070_v54  ;;  %v1122_v6 = vadd.f32 %v1111_v7, %v1093_v38  ;;  %v2148_v22 = vmul.f32 %v4279_v2, %v2145_v20  ;;  %v4301_v54 = vstv %s4238_s26 }
 0x186   : > { %v1095_v60 = vadd.f32 %v4001_v47, %v1069_v49  ;;  %v2171_v47 = vstv %s4240_s27  ;;  %v4307_v23 = vsel %vm279_vm0, %v1387_v51, %v1389_v25  ;;  %v4310_v7 = vsel %vm279_vm0, %v1385_v63, %v1387_v51  ;;  %v2939_v25 = vld [vmem:[%s3080_s5 + $0x38] sm:$0xff] }
 0x187   : > { %2119 = vrot.lane.b32.xlu1 %v2112_v52, %s3006_s8  ;;  %2117 = vrot.lane.b32.xlu0 %v2110_v45, %s3006_s8  ;;  %v4282_v45 = vsel %vm279_vm0, %v1383_v34, %v1385_v63  ;;  %v4292_v52 = vsel %vm279_vm0, %v1382_v36, %v1383_v34  ;;  %v1159_v41 = vadd.f32 %v4011_v62, %v1122_v6 }
 0x188   : > { %v4318_v62 = vmul.f32 %v4279_v2, %v2226_v58  ;;  %v1125_v50 = vadd.f32 %v4207_v39, %v1096_v55  ;;  %v1124_v38 = vadd.f32 %v4210_v3, %v1095_v60  ;;  %v2173_v49 = vmul.f32 %v4232_v59, %v2171_v47  ;;  %v2940_v55 = vld [vmem:[%s3080_s5 + $0x28] sm:$0xff] }
 0x189   : > { %v4284_v43 = vpop.permute.xlu1 %1463  ;;  %v4286_v15 = vpop.permute.xlu0 %1461  ;;  %v1196_v63 = vadd.f32 %v4033_v30, %v1159_v41  ;;  %v2172_v51 = vmul.f32 %v4236_v29, %v2171_v47  ;;  %v2227_v30 = vmul.f32 %v4236_v29, %v2226_v58  ;;  %v4344_v60 = vmul.f32 %v2940_v55, %v4301_v54 }
 0x18a   : > { %4922 = vst [vmem:[#allocation19_spill] sm:$0xff] %v4286_v15  ;;  %v1160_v15 = vadd.f32 %v4009_v1, %v1123_v26  ;;  %v2228_v1 = vmul.f32 %v4232_v59, %v2226_v58  ;;  %v1162_v39 = vadd.f32 %v4017_v8, %v1125_v50  ;;  %v1161_v3 = vadd.f32 %v4019_v48, %v1124_v38 }
 0x18b   : > { %2156 = vrot.lane.b32.xlu1 %v2147_v4, %s3005_s6  ;;  %2154 = vrot.lane.b32.xlu0 %v2146_v14, %s3005_s6  ;;  %v2938_v4 = vld [vmem:[%s3080_s5 + $0x30] sm:$0xff]  ;;  %v2175_v8 = vmul.f32 %v4276_v44, %v2171_v47  ;;  %v1225_v38 = vadd.f32 %v4216_v37, %v1196_v63 }
 0x18c   : > { %v1197_v36 = vadd.f32 %v4031_v9, %v1160_v15  ;;  %v4326_v14 = vmul.f32 %v2938_v4, %v4301_v54  ;;  %v4336_v9 = vmul.f32 %v2939_v25, %v4301_v54  ;;  %v4340_v15 = vld [vmem:[%s3080_s5 + $0x48] sm:$0x3]  ;;  %v2238_v48 = vrot.slane %v2228_v1, 1 }
 0x18d   : > { %v4312_v34 = vpop.permute.xlu1 %1525  ;;  %v4314_v20 = vpop.permute.xlu0 %1523  ;;  %v1198_v41 = vadd.f32 %v4047_v16, %v1161_v3  ;;  %v2174_v4 = vmul.f32 %v4279_v2, %v2171_v47  ;;  %v2230_v25 = vmul.f32 %v4276_v44, %v2226_v58  ;;  %v2231_v1 = vmul.f32 %v4340_v15, %v2226_v58 }
 0x18e   : > { %v1226_v50 = vadd.f32 %v4213_v31, %v1197_v36  ;;  %v2263_v16 = vstv %s4304_s28  ;;  %v1486_v31 = vrot.slane %v4326_v14, 2  ;;  %v1488_v37 = vrot.slane %v4336_v9, 2 }
 0x18f   : > { %2160 = vrot.lane.b32.xlu1 %v2149_v0, %s3005_s6  ;;  %2158 = vrot.lane.b32.xlu0 %v2148_v22, %s3005_s6  ;;  %v2240_v0 = vrot.slane %v4318_v62, 1  ;;  %v1199_v22 = vadd.f32 %v4045_v13, %v1162_v39  ;;  %v1262_v13 = vadd.f32 %v4055_v61, %v1225_v38  ;;  %v2237_v39 = vrot.slane %v2227_v30, 1 }
 0x190   : > { %v1263_v62 = vadd.f32 %v4053_v46, %v1226_v50  ;;  %v1485_v36 = vrot.slane %v4344_v60, 2  ;;  %v1227_v61 = vadd.f32 %v4255_v12, %v1198_v41  ;;  %v2242_v14 = vrot.slane %v2230_v25, 1 }
 0x191   : > { %v4346_v26 = vpop.permute.xlu1 %1529  ;;  %v4348_v6 = vpop.permute.xlu0 %1527  ;;  %v2241_v58 = vsel %vm279_vm0, %v2238_v48, %v2240_v0  ;;  %v1228_v46 = vadd.f32 %v4219_v21, %v1199_v22  ;;  %v2244_v3 = vrot.slane %v2231_v1, 1  ;;  %v2265_v30 = vmul.f32 %v4232_v59, %v2263_v16  ;;  %v2941_v22 = vld [vmem:[%s3080_s5 + $0x40] sm:$0xff] }
 0x192   : > { %v2266_v55 = vmul.f32 %v4279_v2, %v2263_v16  ;;  %v1264_v21 = vadd.f32 %v4069_v35, %v1227_v61  ;;  %v2239_v12 = vsel %vm279_vm0, %v2237_v39, %v2238_v48  ;;  %v2268_v35 = vmul.f32 %v4340_v15, %v2263_v16  ;;  %v4923_v48 = vld [vmem:[#allocation13_spill] sm:$0xff]  ;;  %v4926_v61 = vld [vmem:[#allocation16_spill] sm:$0xff] }
 0x193   : > { %2182 = vrot.lane.b32.xlu1 %v2173_v49, %s3006_s8  ;;  %2180 = vrot.lane.b32.xlu0 %v2172_v51, %s3006_s8  ;;  %v1300_v49 = vadd.f32 %v4077_v32, %v1263_v62  ;;  %v1299_v51 = vadd.f32 %v4079_v11, %v1262_v13  ;;  %v1265_v60 = vadd.f32 %v4067_v28, %v1228_v46  ;;  %v2275_v13 = vrot.slane %v2265_v30, 1  ;;  %v4925_v46 = vld [vmem:[#allocation15_spill] sm:$0xff]  ;;  %v4927_v30 = vld [vmem:[#allocation21_spill] sm:$0xff] }
 0x194   : > { %v2264_v32 = vmul.f32 %v4236_v29, %v2263_v16  ;;  %v4388_v11 = vmul.f32 %v2941_v22, %v4301_v54  ;;  %v2267_v28 = vmul.f32 %v4276_v44, %v2263_v16  ;;  %v2277_v39 = vrot.slane %v2266_v55, 1 }
 0x195   : > { %v4369_v63 = vpop.permute.xlu1 %1562  ;;  %v4371_v47 = vpop.permute.xlu0 %1560  ;;  %v1302_v38 = vadd.f32 %v4923_v48, %v1265_v60  ;;  %v1315_v1 = vadd.f32 %v4258_v17, %v1300_v49  ;;  %v1314_v62 = vadd.f32 %v4261_v57, %v1299_v51  ;;  %v4416_v17 = vsel %vm383_vm1, %v1486_v31, %v1488_v37 }
 0x196   : > { %v2274_v22 = vrot.slane %v2264_v32, 1  ;;  %v4419_v57 = vsel %vm383_vm1, %v1485_v36, %v1486_v31  ;;  %v2279_v49 = vrot.slane %v2267_v28, 1  ;;  %v2281_v51 = vrot.slane %v2268_v35, 1  ;;  %v4929_v35 = vld [vmem:[#allocation17_spill] sm:$0xff] }
 0x197   : > { %2186 = vrot.lane.b32.xlu1 %v2175_v8, %s3006_s8  ;;  %2184 = vrot.lane.b32.xlu0 %v2174_v4, %s3006_s8  ;;  %v4392_v8 = vmul.f32 %v4245_v42, %v4301_v54  ;;  %v4924_v4 = vld [vmem:[#allocation14_spill] sm:$0xff]  ;;  %v2245_v42 = vsel %vm279_vm0, %v2242_v14, %v2244_v3  ;;  %v2243_v54 = vsel %vm279_vm0, %v2240_v0, %v2242_v14 }
 0x198   : > { %v1301_v25 = vadd.f32 %v4924_v4, %v1264_v21  ;;  %v1341_v16 = vadd.f32 %v4925_v46, %v1315_v1  ;;  %v1340_v60 = vadd.f32 %v4926_v61, %v1314_v62  ;;  %v2329_v21 = vstv %s4364_s29  ;;  %v4930_v4 = vld [vmem:[#allocation20_spill] sm:$0xff] }
 0x199   : > { %v4394_v41 = vpop.permute.xlu1 %1566  ;;  %v4396_v50 = vpop.permute.xlu0 %1564  ;;  %v1317_v14 = vadd.f32 %v4270_v10, %v1302_v38  ;;  %v2278_v31 = vsel %vm279_vm0, %v2275_v13, %v2277_v39  ;;  %v2331_v36 = vmul.f32 %v4232_v59, %v2329_v21  ;;  %v2332_v28 = vmul.f32 %v4279_v2, %v2329_v21 }
 0x19a   : > { %v1316_v3 = vadd.f32 %v4273_v53, %v1301_v25  ;;  %v1367_v55 = vadd.f32 %v4927_v30, %v1341_v16  ;;  %v2276_v53 = vsel %vm279_vm0, %v2274_v22, %v2275_v13  ;;  %v2330_v38 = vmul.f32 %v4236_v29, %v2329_v21 }
 0x19b   : > { %2248 = vrot.lane.b32.xlu1 %v2241_v58, %s3005_s6  ;;  %2246 = vrot.lane.b32.xlu0 %v2239_v12, %s3005_s6  ;;  %v4928_v12 = vld [vmem:[#allocation18_spill] sm:$0xff]  ;;  %v1343_v48 = vadd.f32 %v4929_v35, %v1317_v14  ;;  %v1490_v25 = vrot.slane %v4388_v11, 2  ;;  %v1492_v1 = vrot.slane %v4392_v8, 2  ;;  %v2333_v46 = vmul.f32 %v4276_v44, %v2329_v21 }
 0x19c   : > { %v1366_v32 = vadd.f32 %v4928_v12, %v1340_v60  ;;  %v1342_v10 = vadd.f32 %v4930_v4, %v1316_v3  ;;  %v1396_v61 = vadd.f32 %v4282_v45, %v1367_v55  ;;  %v2280_v8 = vsel %vm279_vm0, %v2277_v39, %v2279_v49  ;;  %v4931_v4 = vld [vmem:[#allocation19_spill] sm:$0xff] }
 0x19d   : > { %v4421_v58 = vpop.permute.xlu1 %1603  ;;  %v4423_v0 = vpop.permute.xlu0 %1601  ;;  %v1369_v16 = vadd.f32 %v4161_v27, %v1343_v48  ;;  %v2341_v60 = vrot.slane %v2331_v36, 2  ;;  %v2343_v22 = vrot.slane %v2332_v28, 2  ;;  %v2366_v3 = vstv %s4411_s13  ;;  %v4493_v48 = vld [vmem:[%s3080_s5 + $0x58] sm:$0xff] }
 0x19e   : > { %v1368_v13 = vadd.f32 %v4163_v18, %v1342_v10  ;;  %v1395_v11 = vadd.f32 %v4292_v52, %v1366_v32  ;;  %v1433_v14 = vadd.f32 %v4181_v19, %v1396_v61  ;;  %v2340_v18 = vrot.slane %v2330_v38, 2  ;;  %v2944_v61 = vld [vmem:[%s3080_s5 + $0x50] sm:$0xff] }
 0x19f   : > { %2252 = vrot.lane.b32.xlu1 %v2245_v42, %s3005_s6  ;;  %2250 = vrot.lane.b32.xlu0 %v2243_v54, %s3005_s6  ;;  %v2282_v54 = vsel %vm279_vm0, %v2279_v49, %v2281_v51  ;;  %v2334_v51 = vmul.f32 %v4340_v15, %v2329_v21  ;;  %v1493_v45 = vsel %vm383_vm1, %v1490_v25, %v1492_v1  ;;  %v4470_v39 = vstv %s4425_s30 }
 0x1a0   : > { %v1432_v27 = vadd.f32 %v4183_v56, %v1395_v11  ;;  %v1491_v52 = vsel %vm383_vm1, %v1488_v37, %v1490_v25  ;;  %v2345_v21 = vrot.slane %v2333_v46, 2  ;;  %v1398_v19 = vadd.f32 %v4307_v23, %v1369_v16 }
 0x1a1   : > { %v4444_v62 = vpop.permute.xlu1 %1607  ;;  %v4446_v42 = vpop.permute.xlu0 %1605  ;;  %v1397_v56 = vadd.f32 %v4310_v7, %v1368_v13  ;;  %v1470_v49 = vadd.f32 %v4248_v40, %v1433_v14  ;;  %v2344_v9 = vsel %vm383_vm1, %v2341_v60, %v2343_v22  ;;  %v2347_v37 = vrot.slane %v2334_v51, 2 }
 0x1a2   : > { %v1469_v12 = vadd.f32 %v4250_v33, %v1432_v27  ;;  %v2368_v32 = vmul.f32 %v4232_v59, %v2366_v3  ;;  %v1435_v23 = vadd.f32 %v4200_v24, %v1398_v19  ;;  %v2342_v40 = vsel %vm383_vm1, %v2340_v18, %v2341_v60  ;;  %v2945_v18 = vld [vmem:[%s3080_s5 + $0x68] sm:$0xff] }
 0x1a3   : > { %2285 = vrot.lane.b32.xlu1 %v2278_v31, %s3006_s8  ;;  %2283 = vrot.lane.b32.xlu0 %v2276_v53, %s3006_s8  ;;  %v4481_v31 = vmul.f32 %v4279_v2, %v2366_v3  ;;  %v1434_v7 = vadd.f32 %v4202_v5, %v1397_v56  ;;  %v2367_v33 = vmul.f32 %v4236_v29, %v2366_v3  ;;  %v1582_v36 = vstv %s4442_s7  ;;  %v4500_v2 = vld [vmem:[%s3080_s5 + $0x60] sm:$0xff] }
 0x1a4   : > { %v4497_v59 = vmul.f32 %v4493_v48, %v4470_v39  ;;  %v4504_v24 = vmul.f32 %v4500_v2, %v4470_v39  ;;  %v2346_v5 = vsel %vm383_vm1, %v2343_v22, %v2345_v21  ;;  %v1472_v29 = vadd.f32 %v4284_v43, %v1435_v23 }
 0x1a5   : > { %v4465_v30 = vpop.permute.xlu1 %1629  ;;  %v4467_v55 = vpop.permute.xlu0 %1627  ;;  %v1471_v10 = vadd.f32 %v4931_v4, %v1434_v7  ;;  %v1499_v53 = vadd.f32 %v4416_v17, %v1470_v49  ;;  %v1498_v38 = vadd.f32 %v4419_v57, %v1469_v12  ;;  %v2348_v25 = vsel %vm383_vm1, %v2345_v21, %v2347_v37  ;;  %v4569_v4 = vld [vmem:[%s3080_s5 + $0x50] sm:$0xff] }
 0x1a6   : > { %v2378_v1 = vrot.slane %v2368_v32, 2  ;;  %v2370_v46 = vmul.f32 %v4276_v44, %v2366_v3  ;;  %v2377_v13 = vrot.slane %v2367_v33, 2  ;;  %v2371_v17 = vmul.f32 %v4340_v15, %v2366_v3 }
 0x1a7   : > { %2289 = vrot.lane.b32.xlu1 %v2282_v54, %s3006_s8  ;;  %2287 = vrot.lane.b32.xlu0 %v2280_v8, %s3006_s8  ;;  %v2380_v54 = vrot.slane %v4481_v31, 2  ;;  %v1536_v43 = vadd.f32 %v4312_v34, %v1499_v53  ;;  %v1535_v16 = vadd.f32 %v4314_v20, %v1498_v38  ;;  %v1584_v57 = vmul.f32 %v4493_v48, %v1582_v36 }
 0x1a8   : > { %v1583_v11 = vmul.f32 %v2944_v61, %v1582_v36  ;;  %v1656_v8 = vrot.slane %v4497_v59, 1  ;;  %v1645_v44 = vmul.f32 %v2944_v61, %v4470_v39  ;;  %v1501_v34 = vadd.f32 %v1493_v45, %v1472_v29 }
 0x1a9   : > { %v4488_v28 = vpop.permute.xlu1 %1633  ;;  %v4490_v35 = vpop.permute.xlu0 %1631  ;;  %v1500_v20 = vadd.f32 %v1491_v52, %v1471_v10  ;;  %v1573_v51 = vadd.f32 %v4369_v63, %v1536_v43  ;;  %v1572_v14 = vadd.f32 %v4371_v47, %v1535_v16  ;;  %v1658_v27 = vrot.slane %v4504_v24, 1 }
 0x1aa   : > { %v4538_v3 = vmul.f32 %v2945_v18, %v4470_v39  ;;  %v2381_v21 = vsel %vm383_vm1, %v2378_v1, %v2380_v54  ;;  %v2382_v19 = vrot.slane %v2370_v46, 2  ;;  %v1538_v45 = vadd.f32 %v4346_v26, %v1501_v34 }
 0x1ab   : > { %2351 = vrot.lane.b32.xlu1 %v2344_v9, %s3005_s6  ;;  %2349 = vrot.lane.b32.xlu0 %v2342_v40, %s3005_s6  ;;  %v1537_v63 = vadd.f32 %v4348_v6, %v1500_v20  ;;  %v2379_v47 = vsel %vm383_vm1, %v2377_v13, %v2378_v1  ;;  %v2384_v52 = vrot.slane %v2371_v17, 2  ;;  %v1586_v56 = vmul.f32 %v2945_v18, %v1582_v36  ;;  %v2946_v40 = vld [vmem:[%s3080_s5 + $0x70] sm:$0x3] }
 0x1ac   : > { %v1585_v49 = vmul.f32 %v4500_v2, %v1582_v36  ;;  %v1655_v12 = vrot.slane %v1645_v44, 1  ;;  %v1747_v32 = vstv %s4507_s9  ;;  %v1575_v26 = vadd.f32 %v4394_v41, %v1538_v45 }
 0x1ad   : > { %v4526_v60 = vpop.permute.xlu1 %1695  ;;  %v4529_v22 = vpop.permute.xlu0 %1693  ;;  %v1574_v6 = vadd.f32 %v4396_v50, %v1537_v63  ;;  %v1588_v31 = vadd.f32 %v1584_v57, %v1573_v51  ;;  %v1587_v23 = vadd.f32 %v1583_v11, %v1572_v14  ;;  %v1659_v7 = vsel %vm279_vm0, %v1656_v8, %v1658_v27 }
 0x1ae   : > { %v1649_v33 = vmul.f32 %v2946_v40, %v4470_v39  ;;  %v1660_v36 = vrot.slane %v4538_v3, 1  ;;  %v2383_v59 = vsel %vm383_vm1, %v2380_v54, %v2382_v19  ;;  %v2385_v50 = vsel %vm383_vm1, %v2382_v19, %v2384_v52 }
 0x1af   : > { %2355 = vrot.lane.b32.xlu1 %v2348_v25, %s3005_s6  ;;  %2353 = vrot.lane.b32.xlu0 %v2346_v5, %s3005_s6  ;;  %v1614_v41 = vadd.f32 %v4421_v58, %v1588_v31  ;;  %v1613_v24 = vadd.f32 %v4423_v0, %v1587_v23  ;;  %v4565_v5 = vld [vmem:[%s3080_s5 + $0x58] sm:$0xff]  ;;  %v2418_v29 = vstv %s4521_s10  ;;  %v1657_v39 = vsel %vm279_vm0, %v1655_v12, %v1656_v8 }
 0x1b0   : > { %v1749_v38 = vmul.f32 %v4493_v48, %v1747_v32  ;;  %v1750_v58 = vmul.f32 %v4500_v2, %v1747_v32  ;;  %v1748_v0 = vmul.f32 %v2944_v61, %v1747_v32  ;;  %v1590_v25 = vadd.f32 %v1586_v56, %v1575_v26 }
 0x1b1   : > { %v4545_v9 = vpop.permute.xlu1 %1699  ;;  %v4547_v37 = vpop.permute.xlu0 %1697  ;;  %v1589_v1 = vadd.f32 %v1585_v49, %v1574_v6  ;;  %v1640_v54 = vadd.f32 %v4465_v30, %v1614_v41  ;;  %v1639_v46 = vadd.f32 %v4467_v55, %v1613_v24  ;;  %v1662_v43 = vrot.slane %v1649_v33, 1  ;;  %v4586_v30 = vld [vmem:[%s3080_s5 + $0x68] sm:$0xff]  ;;  %v4589_v55 = vld [vmem:[%s3080_s5 + $0x60] sm:$0xff] }
 0x1b2   : > { %v2420_v16 = vmul.f32 %v4565_v5, %v2418_v29  ;;  %v2419_v48 = vmul.f32 %v4569_v4, %v2418_v29  ;;  %v1751_v13 = vmul.f32 %v2945_v18, %v1747_v32  ;;  %v1616_v2 = vadd.f32 %v4444_v62, %v1590_v25 }
 0x1b3   : > { %2388 = vrot.lane.b32.xlu1 %v2381_v21, %s3006_s8  ;;  %2386 = vrot.lane.b32.xlu0 %v2379_v47, %s3006_s8  ;;  %v1615_v17 = vadd.f32 %v4446_v42, %v1589_v1  ;;  %v1661_v57 = vsel %vm279_vm0, %v1658_v27, %v1660_v36  ;;  %v1752_v61 = vmul.f32 %v2946_v40, %v1747_v32  ;;  %v1759_v44 = vrot.slane %v1749_v38, 2 }
 0x1b4   : > { %v1761_v34 = vrot.slane %v1750_v58, 2  ;;  %v1758_v20 = vrot.slane %v1748_v0, 2  ;;  %v2444_v51 = vstv %s4550_s11  ;;  %v1642_v14 = vadd.f32 %v4488_v28, %v1616_v2 }
 0x1b5   : > { %v1733_v10 = vpop.permute.xlu1 %1732  ;;  %v1731_v53 = vpop.permute.xlu0 %1730  ;;  %v1641_v62 = vadd.f32 %v4490_v35, %v1615_v17  ;;  %v1669_v18 = vadd.f32 %v1659_v7, %v1640_v54  ;;  %v1668_v42 = vadd.f32 %v1657_v39, %v1639_v46  ;;  %v1663_v27 = vsel %vm279_vm0, %v1660_v36, %v1662_v43 }
 0x1b6   : > { %v2422_v3 = vmul.f32 %v4586_v30, %v2418_v29  ;;  %v2421_v21 = vmul.f32 %v4589_v55, %v2418_v29  ;;  %v1763_v19 = vrot.slane %v1751_v13, 2  ;;  %v1765_v28 = vrot.slane %v1752_v61, 2 }
 0x1b7   : > { %2392 = vrot.lane.b32.xlu1 %v2385_v50, %s3006_s8  ;;  %2390 = vrot.lane.b32.xlu0 %v2383_v59, %s3006_s8  ;;  %v1706_v45 = vadd.f32 %v4526_v60, %v1669_v18  ;;  %v1705_v63 = vadd.f32 %v4529_v22, %v1668_v42  ;;  %v2499_v47 = vstv %s4571_s14  ;;  %v1762_v35 = vsel %vm383_vm1, %v1759_v44, %v1761_v34  ;;  %v4619_v59 = vld [vmem:[%s3080_s5 + $0x70] sm:$0x3] }
 0x1b8   : > { %v1760_v56 = vsel %vm383_vm1, %v1758_v20, %v1759_v44  ;;  %v2446_v12 = vmul.f32 %v4565_v5, %v2444_v51  ;;  %v2445_v32 = vmul.f32 %v4569_v4, %v2444_v51  ;;  %v1671_v60 = vadd.f32 %v1663_v27, %v1642_v14  ;;  %4932 = vst [vmem:[#allocation22_spill] sm:$0xff] %v4619_v59 }
 0x1b9   : > { %v1737_v11 = vpop.permute.xlu1 %1736  ;;  %v1735_v8 = vpop.permute.xlu0 %1734  ;;  %v1670_v26 = vadd.f32 %v1661_v57, %v1641_v62  ;;  %v1743_v22 = vadd.f32 %v1733_v10, %v1706_v45  ;;  %v1742_v6 = vadd.f32 %v1731_v53, %v1705_v63  ;;  %v2501_v31 = vmul.f32 %v4565_v5, %v2499_v47  ;;  %v4652_v63 = vld [vmem:[%s3080_s5] sm:$0xff] }
 0x1ba   : > { %v2502_v23 = vmul.f32 %v4589_v55, %v2499_v47  ;;  %v2500_v7 = vmul.f32 %v4569_v4, %v2499_v47  ;;  %v1708_v40 = vadd.f32 %v4545_v9, %v1671_v60  ;;  %v1766_v36 = vsel %vm383_vm1, %v1763_v19, %v1765_v28 }
 0x1bb   : > { %2429 = vrot.lane.b32.xlu1 %v2420_v16, %s3005_s6  ;;  %2427 = vrot.lane.b32.xlu0 %v2419_v48, %s3005_s6  ;;  %v1707_v33 = vadd.f32 %v4547_v37, %v1670_v26  ;;  %v1764_v24 = vsel %vm383_vm1, %v1761_v34, %v1763_v19  ;;  %v2448_v29 = vmul.f32 %v4586_v30, %v2444_v51  ;;  %v2511_v58 = vrot.slane %v2501_v31, 1 }
 0x1bc   : > { %v2447_v39 = vmul.f32 %v4589_v55, %v2444_v51  ;;  %v2503_v10 = vmul.f32 %v4586_v30, %v2499_v47  ;;  %v1745_v53 = vadd.f32 %v1737_v11, %v1708_v40  ;;  %v1772_v9 = vadd.f32 %v1762_v35, %v1743_v22  ;;  %v4675_v40 = vld [vmem:[%s3080_s5 + $0x10] sm:$0xff] }
 0x1bd   : > { %v1799_v52 = vpop.permute.xlu1 %1798  ;;  %v1797_v49 = vpop.permute.xlu0 %1796  ;;  %v1744_v38 = vadd.f32 %v1735_v8, %v1707_v33  ;;  %v1771_v37 = vadd.f32 %v1760_v56, %v1742_v6  ;;  %v2513_v0 = vrot.slane %v2502_v23, 1  ;;  %v2510_v25 = vrot.slane %v2500_v7, 1  ;;  %v4671_v23 = vld [vmem:[%s3080_s5 + $0x18] sm:$0xff] }
 0x1be   : > { %v2504_v1 = vmul.f32 %v4619_v59, %v2499_v47  ;;  %v1809_v54 = vadd.f32 %v1799_v52, %v1772_v9  ;;  %v2536_v43 = vstv %s4602_s15  ;;  %v1862_v13 = vstv %s4608_s16 }
 0x1bf   : > { %2433 = vrot.lane.b32.xlu1 %v2422_v3, %s3005_s6  ;;  %2431 = vrot.lane.b32.xlu0 %v2421_v21, %s3005_s6  ;;  %v1808_v46 = vadd.f32 %v1797_v49, %v1771_v37  ;;  %v2515_v2 = vrot.slane %v2503_v10, 1  ;;  %v1774_v17 = vadd.f32 %v1766_v36, %v1745_v53  ;;  %v1773_v57 = vadd.f32 %v1764_v24, %v1744_v38  ;;  %v4648_v3 = vld [vmem:[%s3080_s5 + $0x8] sm:$0xff] }
 0x1c0   : > { %v2514_v8 = vsel %vm279_vm0, %v2511_v58, %v2513_v0  ;;  %v2512_v44 = vsel %vm279_vm0, %v2510_v25, %v2511_v58  ;;  %v2517_v34 = vrot.slane %v2504_v1, 1  ;;  %v2538_v20 = vmul.f32 %v4565_v5, %v2536_v43 }
 0x1c1   : > { %v1803_v41 = vpop.permute.xlu1 %1802  ;;  %v1801_v50 = vpop.permute.xlu0 %1800  ;;  %v2539_v62 = vmul.f32 %v4589_v55, %v2536_v43  ;;  %v2537_v18 = vmul.f32 %v4569_v4, %v2536_v43  ;;  %v1864_v21 = vmul.f32 %v4648_v3, %v1862_v13  ;;  %v1863_v28 = vmul.f32 %v4652_v63, %v1862_v13 }
 0x1c2   : > { %v1811_v51 = vadd.f32 %v1803_v41, %v1774_v17  ;;  %v1810_v14 = vadd.f32 %v1801_v50, %v1773_v57  ;;  %v2516_v47 = vsel %vm279_vm0, %v2513_v0, %v2515_v2  ;;  %v2518_v35 = vsel %vm279_vm0, %v2515_v2, %v2517_v34 }
 0x1c3   : > { %2455 = vrot.lane.b32.xlu1 %v2446_v12, %s3006_s8  ;;  %2453 = vrot.lane.b32.xlu0 %v2445_v32, %s3006_s8  ;;  %v2540_v52 = vmul.f32 %v4586_v30, %v2536_v43  ;;  %v2541_v56 = vmul.f32 %v4619_v59, %v2536_v43  ;;  %v2602_v49 = vstv %s4628_s17  ;;  %v2548_v12 = vrot.slane %v2538_v20, 1 }
 0x1c4   : > { %v2550_v32 = vrot.slane %v2539_v62, 1  ;;  %v2547_v60 = vrot.slane %v2537_v18, 1  ;;  %v1924_v26 = vstv %s4631_s18  ;;  %v1855_v22 = vstv %s4633_s19  ;;  %v4697_v62 = vld [vmem:[%s3080_s5 + $0x20] sm:$0x3] }
 0x1c5   : > { %v1836_v16 = vpop.permute.xlu1 %1835  ;;  %v1834_v48 = vpop.permute.xlu0 %1833  ;;  %v1866_v7 = vmul.f32 %v4671_v23, %v1862_v13  ;;  %v1865_v33 = vmul.f32 %v4675_v40, %v1862_v13  ;;  %v2604_v36 = vmul.f32 %v4565_v5, %v2602_v49  ;;  %v2605_v41 = vmul.f32 %v4589_v55, %v2602_v49 }
 0x1c6   : > { %v1846_v61 = vadd.f32 %v1836_v16, %v1809_v54  ;;  %v1845_v11 = vadd.f32 %v1834_v48, %v1808_v46  ;;  %v2552_v24 = vrot.slane %v2540_v52, 1  ;;  %v2554_v50 = vrot.slane %v2541_v56, 1 }
 0x1c7   : > { %2459 = vrot.lane.b32.xlu1 %v2448_v29, %s3006_s8  ;;  %2457 = vrot.lane.b32.xlu0 %v2447_v39, %s3006_s8  ;;  %v2603_v29 = vmul.f32 %v4569_v4, %v2602_v49  ;;  %v1926_v39 = vmul.f32 %v4648_v3, %v1924_v26  ;;  %v1868_v10 = vadd.f32 %v1864_v21, %v1855_v22  ;;  %v2614_v46 = vrot.slane %v2604_v36, 2 }
 0x1c8   : > { %2843 = vst.msk [vmem:[%s3941_s4 + $0x28] sm:$0xff] %vm1023_vm2, %v1846_v61  ;;  %2842 = vst.msk [vmem:[%s3941_s4 + $0x20] sm:$0xff] %vm1023_vm2, %v1845_v11  ;;  %v1867_v53 = vadd.f32 %v1863_v28, %v1855_v22  ;;  %v2551_v38 = vsel %vm279_vm0, %v2548_v12, %v2550_v32  ;;  %v2549_v9 = vsel %vm279_vm0, %v2547_v60, %v2548_v12  ;;  %v2616_v43 = vrot.slane %v2605_v41, 2 }
 0x1c9   : > { %v1840_v42 = vpop.permute.xlu1 %1839  ;;  %v1838_v27 = vpop.permute.xlu0 %1837  ;;  %v1870_v37 = vadd.f32 %v1866_v7, %v1855_v22  ;;  %v1927_v25 = vmul.f32 %v4675_v40, %v1924_v26  ;;  %v1925_v1 = vmul.f32 %v4652_v63, %v1924_v26  ;;  %v1869_v54 = vadd.f32 %v1865_v33, %v1855_v22 }
 0x1ca   : > { %v1848_v19 = vadd.f32 %v1840_v42, %v1811_v51  ;;  %v1847_v45 = vadd.f32 %v1838_v27, %v1810_v14  ;;  %v2606_v16 = vmul.f32 %v4586_v30, %v2602_v49  ;;  %v2555_v48 = vsel %vm279_vm0, %v2552_v24, %v2554_v50 }
 0x1cb   : > { %2521 = vrot.lane.b32.xlu1 %v2514_v8, %s3005_s6  ;;  %2519 = vrot.lane.b32.xlu0 %v2512_v44, %s3005_s6  ;;  %v2553_v13 = vsel %vm279_vm0, %v2550_v32, %v2552_v24  ;;  %v2613_v2 = vrot.slane %v2603_v29, 2  ;;  %v1936_v17 = vrot.slane %v1926_v39, 1  ;;  %v2607_v11 = vmul.f32 %v4619_v59, %v2602_v49 }
 0x1cc   : > { %2845 = vst.msk [vmem:[%s3941_s4 + $0x38] sm:$0xff] %vm1023_vm2, %v1848_v19  ;;  %2844 = vst.msk [vmem:[%s3941_s4 + $0x30] sm:$0xff] %vm1023_vm2, %v1847_v45  ;;  %v2639_v8 = vstv %s4667_s20  ;;  %v1938_v20 = vrot.slane %v1927_v25, 1  ;;  %v1935_v51 = vrot.slane %v1925_v1, 1  ;;  %v1928_v14 = vmul.f32 %v4671_v23, %v1924_v26 }
 0x1cd   : > { %v1884_v6 = vpop.permute.xlu1 %1883  ;;  %v1882_v31 = vpop.permute.xlu0 %1881  ;;  %v1929_v18 = vmul.f32 %v4697_v62, %v1924_v26  ;;  %v2617_v21 = vsel %vm383_vm1, %v2614_v46, %v2616_v43  ;;  %v2618_v19 = vrot.slane %v2606_v16, 2  ;;  %v2641_v45 = vmul.f32 %v4565_v5, %v2639_v8 }
 0x1ce   : > { %v1894_v57 = vadd.f32 %v1884_v6, %v1868_v10  ;;  %v1893_v61 = vadd.f32 %v1882_v31, %v1867_v53  ;;  %v2642_v28 = vmul.f32 %v4589_v55, %v2639_v8  ;;  %v2615_v56 = vsel %vm383_vm1, %v2613_v2, %v2614_v46 }
 0x1cf   : > { %2525 = vrot.lane.b32.xlu1 %v2518_v35, %s3005_s6  ;;  %2523 = vrot.lane.b32.xlu0 %v2516_v47, %s3005_s6  ;;  %v2640_v47 = vmul.f32 %v4569_v4, %v2639_v8  ;;  %v2620_v49 = vrot.slane %v2607_v11, 2  ;;  %v1939_v60 = vsel %vm279_vm0, %v1936_v17, %v1938_v20  ;;  %v1937_v26 = vsel %vm279_vm0, %v1935_v51, %v1936_v17 }
 0x1d0   : > { %v1940_v22 = vrot.slane %v1928_v14, 1  ;;  %v1942_v6 = vrot.slane %v1929_v18, 1  ;;  %v2619_v33 = vsel %vm383_vm1, %v2616_v43, %v2618_v19  ;;  %v2651_v36 = vrot.slane %v2641_v45, 2 }
 0x1d1   : > { %v1888_v58 = vpop.permute.xlu1 %1887  ;;  %v1886_v0 = vpop.permute.xlu0 %1885  ;;  %v2653_v41 = vrot.slane %v2642_v28, 2  ;;  %v2650_v24 = vrot.slane %v2640_v47, 2  ;;  %v2643_v50 = vmul.f32 %v4586_v30, %v2639_v8  ;;  %v2621_v10 = vsel %vm383_vm1, %v2618_v19, %v2620_v49 }
 0x1d2   : > { %v1896_v35 = vadd.f32 %v1888_v58, %v1870_v37  ;;  %v1895_v52 = vadd.f32 %v1886_v0, %v1869_v54  ;;  %v2644_v53 = vmul.f32 %v4619_v59, %v2639_v8  ;;  %v1943_v37 = vsel %vm279_vm0, %v1940_v22, %v1942_v6 }
 0x1d3   : > { %2558 = vrot.lane.b32.xlu1 %v2551_v38, %s3006_s8  ;;  %2556 = vrot.lane.b32.xlu0 %v2549_v9, %s3006_s8  ;;  %v1941_v58 = vsel %vm279_vm0, %v1938_v20, %v1940_v22  ;;  %v2027_v0 = vstv %s4700_s21  ;;  %v2654_v54 = vsel %vm383_vm1, %v2651_v36, %v2653_v41  ;;  %v2652_v46 = vsel %vm383_vm1, %v2650_v24, %v2651_v36 }
 0x1d4   : > { %v2655_v43 = vrot.slane %v2643_v50, 2  ;;  %v2029_v2 = vmul.f32 %v4648_v3, %v2027_v0  ;;  %v2028_v11 = vmul.f32 %v4652_v63, %v2027_v0 }
 0x1d5   : > { %v1910_v44 = vpop.permute.xlu1 %1909  ;;  %v1908_v34 = vpop.permute.xlu0 %1907 }
 0x1d6   : > { %v1920_v42 = vadd.f32 %v1910_v44, %v1894_v57  ;;  %v1919_v27 = vadd.f32 %v1908_v34, %v1893_v61  ;;  %v2030_v61 = vmul.f32 %v4675_v40, %v2027_v0  ;;  %v2656_v20 = vsel %vm383_vm1, %v2653_v41, %v2655_v43 }
 0x1d7   : > { %2562 = vrot.lane.b32.xlu1 %v2555_v48, %s3006_s8  ;;  %2560 = vrot.lane.b32.xlu0 %v2553_v13, %s3006_s8  ;;  %v2657_v13 = vrot.slane %v2644_v53, 2  ;;  %v2039_v51 = vrot.slane %v2029_v2, 2  ;;  %v2032_v40 = vmul.f32 %v4697_v62, %v2027_v0 }
 0x1d8   : > { %v1949_v29 = vadd.f32 %v1939_v60, %v1920_v42  ;;  %v1948_v39 = vadd.f32 %v1937_v26, %v1919_v27  ;;  %v2041_v3 = vrot.slane %v2030_v61, 2  ;;  %v2038_v42 = vrot.slane %v2028_v11, 2 }
 0x1d9   : > { %v1914_v12 = vpop.permute.xlu1 %1913  ;;  %v1912_v32 = vpop.permute.xlu0 %1911  ;;  %v2658_v34 = vsel %vm383_vm1, %v2655_v43, %v2657_v13  ;;  %v2031_v27 = vmul.f32 %v4671_v23, %v2027_v0 }
 0x1da   : > { %v1922_v31 = vadd.f32 %v1914_v12, %v1896_v35  ;;  %v1921_v7 = vadd.f32 %v1912_v32, %v1895_v52  ;;  %v2042_v28 = vsel %vm383_vm1, %v2039_v51, %v2041_v3  ;;  %v2040_v47 = vsel %vm383_vm1, %v2038_v42, %v2039_v51 }
 0x1db   : > { %2624 = vrot.lane.b32.xlu1 %v2617_v21, %s3005_s6  ;;  %2622 = vrot.lane.b32.xlu0 %v2615_v56, %s3005_s6  ;;  %v2043_v35 = vrot.slane %v2031_v27, 2  ;;  %v2045_v52 = vrot.slane %v2032_v40, 2  ;;  %v2953_v27 = vld [vmem:[%s3080_s5 + $0x28] sm:$0xff] }
 0x1dc   : > { %v1951_v16 = vadd.f32 %v1943_v37, %v1922_v31  ;;  %v1950_v48 = vadd.f32 %v1941_v58, %v1921_v7 }
 0x1dd   : > { %v1976_v38 = vpop.permute.xlu1 %1975  ;;  %v1974_v9 = vpop.permute.xlu0 %1973  ;;  %v2046_v60 = vsel %vm383_vm1, %v2043_v35, %v2045_v52  ;;  %v2044_v26 = vsel %vm383_vm1, %v2041_v3, %v2043_v35  ;;  %v2952_v3 = vld [vmem:[%s3080_s5 + $0x30] sm:$0xff] }
 0x1de   : > { %v1986_v25 = vadd.f32 %v1976_v38, %v1949_v29  ;;  %v1985_v1 = vadd.f32 %v1974_v9, %v1948_v39 }
 0x1df   : > { %2628 = vrot.lane.b32.xlu1 %v2621_v10, %s3005_s6  ;;  %2626 = vrot.lane.b32.xlu0 %v2619_v33, %s3005_s6  ;;  %s2861_s6 = sld [smem:[#allocation2 + $0x3f]] }
 0x1e1   : > { %v1980_v17 = vpop.permute.xlu1 %1979  ;;  %v1978_v57 = vpop.permute.xlu0 %1977 }
 0x1e2   : > { %v1988_v8 = vadd.f32 %v1980_v17, %v1951_v16  ;;  %v1987_v44 = vadd.f32 %v1978_v57, %v1950_v48 }
 0x1e3   : > { %2661 = vrot.lane.b32.xlu1 %v2654_v54, %s3006_s8  ;;  %2659 = vrot.lane.b32.xlu0 %v2652_v46, %s3006_s8 }
 0x1e5   : > { %v2013_v14 = vpop.permute.xlu1 %2012  ;;  %v2011_v18 = vpop.permute.xlu0 %2010 }
 0x1e6   : > { %v2023_v63 = vadd.f32 %v2013_v14, %v1986_v25  ;;  %v2022_v21 = vadd.f32 %v2011_v18, %v1985_v1 }
 0x1e7   : > { %2665 = vrot.lane.b32.xlu1 %v2658_v34, %s3006_s8  ;;  %2663 = vrot.lane.b32.xlu0 %v2656_v20, %s3006_s8  ;;  %s2864_s8 = sld [smem:[#allocation2 + $0x42]] }
 0x1e8   : > { %v2052_v12 = vadd.f32 %v2042_v28, %v2023_v63  ;;  %v2051_v23 = vadd.f32 %v2040_v47, %v2022_v21  ;;  %v2954_v21 = vld [vmem:[%s3080_s5 + $0x38] sm:$0xff]  ;;  %v2955_v28 = vld [vmem:[%s3080_s5 + $0x40] sm:$0xff] }
 0x1e9   : > { %v2017_v19 = vpop.permute.xlu1 %2016  ;;  %v2015_v45 = vpop.permute.xlu0 %2014 }
 0x1ea   : > { %v2025_v56 = vadd.f32 %v2017_v19, %v1988_v8  ;;  %v2024_v49 = vadd.f32 %v2015_v45, %v1987_v44  ;;  %v2135_v44 = vstv %s2861_s6 }
 0x1eb   : > { %v2137_v42 = vmul.f32 %v2952_v3, %v2135_v44  ;;  %v2136_v40 = vmul.f32 %v2953_v27, %v2135_v44  ;;  %v2139_v47 = vmul.f32 %v2955_v28, %v2135_v44  ;;  %v2138_v35 = vmul.f32 %v2954_v21, %v2135_v44 }
 0x1ec   : > { %v2054_v31 = vadd.f32 %v2046_v60, %v2025_v56  ;;  %v2053_v7 = vadd.f32 %v2044_v26, %v2024_v49  ;;  %v2300_v49 = vstv %s2867_s22 }
 0x1ed   : > { %v2079_v32 = vpop.permute.xlu1 %2078  ;;  %v2077_v62 = vpop.permute.xlu0 %2076  ;;  %v2197_v34 = vstv %s2864_s8 }
 0x1ee   : > { %v2089_v22 = vadd.f32 %v2079_v32, %v2052_v12  ;;  %v2088_v6 = vadd.f32 %v2077_v62, %v2051_v23  ;;  %v2199_v63 = vmul.f32 %v2952_v3, %v2197_v34  ;;  %v2200_v19 = vmul.f32 %v2954_v21, %v2197_v34 }
 0x1ef   : > { %v2198_v45 = vmul.f32 %v2953_v27, %v2197_v34  ;;  %v2201_v52 = vmul.f32 %v2955_v28, %v2197_v34  ;;  %v2202_v56 = vmul.f32 %v4340_v15, %v2197_v34 }
 0x1f1   : > { %v2083_v33 = vpop.permute.xlu1 %2082  ;;  %v2081_v36 = vpop.permute.xlu0 %2080 }
 0x1f2   : > { %v2091_v41 = vadd.f32 %v2083_v33, %v2054_v31  ;;  %v2090_v24 = vadd.f32 %v2081_v36, %v2053_v7  ;;  %v2208_v31 = vrot.slane %v2198_v45, 1  ;;  %v2213_v36 = vrot.slane %v2201_v52, 1 }
 0x1f5   : > { %v2116_v50 = vpop.permute.xlu1 %2115  ;;  %v2114_v29 = vpop.permute.xlu0 %2113 }
 0x1f6   : > { %v2126_v14 = vadd.f32 %v2116_v50, %v2089_v22  ;;  %v2125_v18 = vadd.f32 %v2114_v29, %v2088_v6  ;;  %v2209_v22 = vrot.slane %v2199_v63, 1  ;;  %v2211_v6 = vrot.slane %v2200_v19, 1 }
 0x1f7   : > { %v2215_v50 = vrot.slane %v2202_v56, 1  ;;  %v2302_v29 = vmul.f32 %v2952_v3, %v2300_v49  ;;  %v2304_v19 = vmul.f32 %v2955_v28, %v2300_v49 }
 0x1f8   : > { %v2141_v60 = vadd.f32 %v2137_v42, %v2126_v14  ;;  %v2140_v26 = vadd.f32 %v2136_v40, %v2125_v18  ;;  %v2214_v18 = vsel %vm279_vm0, %v2211_v6, %v2213_v36 }
 0x1f9   : > { %v2120_v39 = vpop.permute.xlu1 %2119  ;;  %v2118_v10 = vpop.permute.xlu0 %2117  ;;  %v2216_v14 = vsel %vm279_vm0, %v2213_v36, %v2215_v50  ;;  %v2312_v3 = vrot.slane %v2302_v29, 2  ;;  %v2316_v28 = vrot.slane %v2304_v19, 2  ;;  %v2470_v36 = vstv %s2878_s24 }
 0x1fa   : > { %v2128_v32 = vadd.f32 %v2120_v39, %v2091_v41  ;;  %v2127_v62 = vadd.f32 %v2118_v10, %v2090_v24  ;;  %v2212_v41 = vsel %vm279_vm0, %v2209_v22, %v2211_v6  ;;  %v2210_v24 = vsel %vm279_vm0, %v2208_v31, %v2209_v22 }
 0x1fb   : > { %v2303_v39 = vmul.f32 %v2954_v21, %v2300_v49  ;;  %v2301_v10 = vmul.f32 %v2953_v27, %v2300_v49 }
 0x1fc   : > { %v2143_v34 = vadd.f32 %v2139_v47, %v2128_v32 }
 0x1fd   : > { %v2157_v53 = vpop.permute.xlu1 %2156  ;;  %v2155_v38 = vpop.permute.xlu0 %2154  ;;  %v2314_v21 = vrot.slane %v2303_v39, 2  ;;  %v2472_v39 = vmul.f32 %v4565_v5, %v2470_v36 }
 0x1fe   : > { %v2167_v7 = vadd.f32 %v2157_v53, %v2141_v60  ;;  %v2166_v33 = vadd.f32 %v2155_v38, %v2140_v26 }
 0x201   : > { %v4739_v9 = vpop.permute.xlu1 %2160  ;;  %v4741_v37 = vpop.permute.xlu0 %2158 }
 0x202   : > { %v2169_v53 = vadd.f32 %v4739_v9, %v2143_v34  ;;  %v2311_v9 = vrot.slane %v2301_v10, 2  ;;  %v2473_v10 = vmul.f32 %v4589_v55, %v2470_v36 }
 0x205   : > { %v2183_v58 = vpop.permute.xlu1 %2182  ;;  %v2181_v0 = vpop.permute.xlu0 %2180 }
 0x206   : > { %v2193_v59 = vadd.f32 %v2183_v58, %v2167_v7  ;;  %v2317_v7 = vsel %vm383_vm1, %v2314_v21, %v2316_v28 }
 0x208   : > { %v2222_v27 = vadd.f32 %v2212_v41, %v2193_v59  ;;  %v2315_v59 = vsel %vm383_vm1, %v2312_v3, %v2314_v21 }
 0x209   : > { %v4743_v25 = vpop.permute.xlu1 %2186  ;;  %v4745_v1 = vpop.permute.xlu0 %2184 }
 0x20d   : > { %v4747_v54 = vpop.permute.xlu1 %2248  ;;  %v4749_v46 = vpop.permute.xlu0 %2246 }
 0x20e   : > { %v2259_v47 = vadd.f32 %v4747_v54, %v2222_v27 }
 0x211   : > { %v4751_v43 = vpop.permute.xlu1 %2252  ;;  %v4753_v16 = vpop.permute.xlu0 %2250 }
 0x215   : > { %v4755_v48 = vpop.permute.xlu1 %2285  ;;  %v4757_v13 = vpop.permute.xlu0 %2283 }
 0x219   : > { %v4759_v2 = vpop.permute.xlu1 %2289  ;;  %v4761_v17 = vpop.permute.xlu0 %2287 }
 0x21d   : > { %v4763_v57 = vpop.permute.xlu1 %2351  ;;  %v4765_v61 = vpop.permute.xlu0 %2349 }
 0x221   : > { %v4767_v11 = vpop.permute.xlu1 %2355  ;;  %v4769_v8 = vpop.permute.xlu0 %2353 }
 0x225   : > { %v4771_v20 = vpop.permute.xlu1 %2388  ;;  %v4773_v51 = vpop.permute.xlu0 %2386 }
 0x229   : > { %v4780_v12 = vpop.permute.xlu1 %2392  ;;  %v4782_v23 = vpop.permute.xlu0 %2390 }
 0x22a   : > { %4933 = vst [vmem:[#allocation23_spill] sm:$0xff] %v4780_v12  ;;  %4934 = vst [vmem:[#allocation8_spill] sm:$0xff] %v4782_v23  ;;  %v2142_v12 = vadd.f32 %v2138_v35, %v2127_v62  ;;  %v2192_v23 = vadd.f32 %v2181_v0, %v2166_v33  ;;  %v2195_v0 = vadd.f32 %v4743_v25, %v2169_v53 }
 0x22b   : > { %v2296_v25 = vadd.f32 %v4755_v48, %v2259_v47 }
 0x22c   : > { %v2168_v38 = vadd.f32 %v4741_v37, %v2142_v12  ;;  %v2221_v63 = vadd.f32 %v2210_v24, %v2192_v23  ;;  %v2956_v37 = vld [vmem:[%s3080_s5 + $0x48] sm:$0x3]  ;;  %v2224_v12 = vadd.f32 %v2216_v14, %v2195_v0  ;;  %v2313_v23 = vsel %vm383_vm1, %v2311_v9, %v2312_v3  ;;  %s2881_s5 = sld [smem:[#allocation2 + $0x4e]]  ;;  %v4935_v3 = vld [vmem:[#allocation22_spill] sm:$0xff] }
 0x22d   : > { %v4784_v44 = vpop.permute.xlu1 %2429  ;;  %v4786_v15 = vpop.permute.xlu0 %2427  ;;  %v2305_v45 = vmul.f32 %v2956_v37, %v2300_v49  ;;  %v2325_v6 = vadd.f32 %v2315_v59, %v2296_v25 }
 0x22e   : > { %v2194_v40 = vadd.f32 %v4745_v1, %v2168_v38  ;;  %v2258_v35 = vadd.f32 %v4749_v46, %v2221_v63  ;;  %v2261_v49 = vadd.f32 %v4751_v43, %v2224_v12  ;;  %v2408_v46 = vstv %s2875_s23 }
 0x22f   : > { %v2318_v62 = vrot.slane %v2305_v45, 2  ;;  %v2362_v33 = vadd.f32 %v4763_v57, %v2325_v6  ;;  %v2409_v50 = vmul.f32 %v4569_v4, %v2408_v46  ;;  %v2471_v57 = vmul.f32 %v4569_v4, %v2470_v36 }
 0x230   : > { %v2223_v32 = vadd.f32 %v2214_v18, %v2194_v40  ;;  %v2295_v1 = vadd.f32 %v4757_v13, %v2258_v35  ;;  %v2298_v22 = vadd.f32 %v4759_v2, %v2261_v49  ;;  %v2412_v38 = vmul.f32 %v4586_v30, %v2408_v46 }
 0x231   : > { %v4794_v42 = vpop.permute.xlu1 %2433  ;;  %v4796_v58 = vpop.permute.xlu0 %2431  ;;  %v2319_v31 = vsel %vm383_vm1, %v2316_v28, %v2318_v62  ;;  %v2411_v14 = vmul.f32 %v4589_v55, %v2408_v46  ;;  %v2474_v18 = vmul.f32 %v4586_v30, %v2470_v36  ;;  %v4936_v27 = vld [vmem:[#allocation23_spill] sm:$0xff]  ;;  %v4937_v21 = vld [vmem:[#allocation8_spill] sm:$0xff]  ;;  %v2484_v45 = vrot.slane %v2473_v10, 1 }
 0x232   : > { %v2260_v54 = vadd.f32 %v4753_v16, %v2223_v32  ;;  %v2324_v13 = vadd.f32 %v2313_v23, %v2295_v1  ;;  %v2410_v16 = vmul.f32 %v4565_v5, %v2408_v46  ;;  %v2327_v2 = vadd.f32 %v2319_v31, %v2298_v22 }
 0x233   : > { %v2573_v40 = vstv %s2881_s5  ;;  %v2486_v12 = vrot.slane %v2474_v18, 1 }
 0x234   : > { %v2297_v48 = vadd.f32 %v4761_v17, %v2260_v54  ;;  %v2361_v43 = vadd.f32 %v4765_v61, %v2324_v13  ;;  %v2399_v17 = vadd.f32 %v4771_v20, %v2362_v33  ;;  %v2364_v61 = vadd.f32 %v4767_v11, %v2327_v2 }
 0x235   : > { %v2456_v52 = vpop.permute.xlu1 %2455  ;;  %v2454_v56 = vpop.permute.xlu0 %2453  ;;  %v2475_v20 = vmul.f32 %v4935_v3, %v2470_v36  ;;  %v2482_v11 = vrot.slane %v2472_v39, 1  ;;  %v2575_v59 = vmul.f32 %v4565_v5, %v2573_v40  ;;  %v2576_v22 = vmul.f32 %v4589_v55, %v2573_v40 }
 0x236   : > { %v2326_v41 = vadd.f32 %v2317_v7, %v2297_v48  ;;  %v2398_v24 = vadd.f32 %v4773_v51, %v2361_v43  ;;  %v2401_v63 = vadd.f32 %v4936_v27, %v2364_v61  ;;  %v2414_v19 = vadd.f32 %v2410_v16, %v2399_v17 }
 0x237   : > { %v2488_v32 = vrot.slane %v2475_v20, 1  ;;  %v2485_v54 = vsel %vm279_vm0, %v2482_v11, %v2484_v45  ;;  %v2487_v5 = vsel %vm279_vm0, %v2484_v45, %v2486_v12  ;;  %v2587_v36 = vrot.slane %v2576_v22, 2 }
 0x238   : > { %v2363_v53 = vadd.f32 %v4769_v8, %v2326_v41  ;;  %v2413_v37 = vadd.f32 %v2409_v50, %v2398_v24  ;;  %v2481_v8 = vrot.slane %v2471_v57, 1  ;;  %v2440_v47 = vadd.f32 %v4784_v44, %v2414_v19 }
 0x239   : > { %v2460_v60 = vpop.permute.xlu1 %2459  ;;  %v2458_v26 = vpop.permute.xlu0 %2457  ;;  %v2416_v23 = vadd.f32 %v2412_v38, %v2401_v63  ;;  %v2574_v44 = vmul.f32 %v4569_v4, %v2573_v40  ;;  %v2489_v6 = vsel %vm279_vm0, %v2486_v12, %v2488_v32  ;;  %v2577_v55 = vmul.f32 %v4586_v30, %v2573_v40 }
 0x23a   : > { %v2400_v9 = vadd.f32 %v4937_v21, %v2363_v53  ;;  %v2439_v35 = vadd.f32 %v4786_v15, %v2413_v37  ;;  %v2466_v62 = vadd.f32 %v2456_v52, %v2440_v47  ;;  %v2483_v46 = vsel %vm279_vm0, %v2481_v8, %v2482_v11 }
 0x23b   : > { %v2442_v15 = vadd.f32 %v4794_v42, %v2416_v23  ;;  %v2585_v52 = vrot.slane %v2575_v59, 2  ;;  %v2584_v16 = vrot.slane %v2574_v44, 2  ;;  %v2578_v4 = vmul.f32 %v4935_v3, %v2573_v40 }
 0x23c   : > { %v2415_v28 = vadd.f32 %v2411_v14, %v2400_v9  ;;  %v2465_v49 = vadd.f32 %v2454_v56, %v2439_v35  ;;  %v2495_v33 = vadd.f32 %v2485_v54, %v2466_v62 }
 0x23d   : > { %v2522_v29 = vpop.permute.xlu1 %2521  ;;  %v2520_v34 = vpop.permute.xlu0 %2519  ;;  %v2468_v56 = vadd.f32 %v2460_v60, %v2442_v15  ;;  %v2588_v10 = vsel %vm383_vm1, %v2585_v52, %v2587_v36  ;;  %v2586_v60 = vsel %vm383_vm1, %v2584_v16, %v2585_v52  ;;  %v2591_v57 = vrot.slane %v2578_v4, 2 }
 0x23e   : > { %v2441_v48 = vadd.f32 %v4796_v58, %v2415_v28  ;;  %v2494_v43 = vadd.f32 %v2483_v46, %v2465_v49  ;;  %v2532_v42 = vadd.f32 %v2522_v29, %v2495_v33 }
 0x23f   : > { %v2497_v41 = vadd.f32 %v2489_v6, %v2468_v56 }
 0x240   : > { %v2467_v7 = vadd.f32 %v2458_v26, %v2441_v48  ;;  %v2531_v50 = vadd.f32 %v2520_v34, %v2494_v43  ;;  %v2589_v26 = vrot.slane %v2577_v55, 2 }
 0x241   : > { %v2526_v0 = vpop.permute.xlu1 %2525  ;;  %v2524_v51 = vpop.permute.xlu0 %2523 }
 0x242   : > { %v2496_v17 = vadd.f32 %v2487_v5, %v2467_v7  ;;  %v2534_v61 = vadd.f32 %v2526_v0, %v2497_v41  ;;  %v2592_v3 = vsel %vm383_vm1, %v2589_v26, %v2591_v57  ;;  %v2590_v20 = vsel %vm383_vm1, %v2587_v36, %v2589_v26 }
 0x244   : > { %v2533_v53 = vadd.f32 %v2524_v51, %v2496_v17 }
 0x245   : > { %v2559_v25 = vpop.permute.xlu1 %2558  ;;  %v2557_v1 = vpop.permute.xlu0 %2556 }
 0x246   : > { %v2569_v24 = vadd.f32 %v2559_v25, %v2532_v42  ;;  %v2568_v39 = vadd.f32 %v2557_v1, %v2531_v50 }
 0x248   : > { %v2598_v34 = vadd.f32 %v2588_v10, %v2569_v24  ;;  %v2597_v18 = vadd.f32 %v2586_v60, %v2568_v39 }
 0x249   : > { %v2563_v13 = vpop.permute.xlu1 %2562  ;;  %v2561_v31 = vpop.permute.xlu0 %2560 }
 0x24a   : > { %v2571_v14 = vadd.f32 %v2563_v13, %v2534_v61  ;;  %v2570_v29 = vadd.f32 %v2561_v31, %v2533_v53 }
 0x24c   : > { %v2600_v0 = vadd.f32 %v2592_v3, %v2571_v14  ;;  %v2599_v51 = vadd.f32 %v2590_v20, %v2570_v29 }
 0x24d   : > { %v2625_v58 = vpop.permute.xlu1 %2624  ;;  %v2623_v2 = vpop.permute.xlu0 %2622 }
 0x24e   : > { %v2635_v40 = vadd.f32 %v2625_v58, %v2598_v34  ;;  %v2634_v27 = vadd.f32 %v2623_v2, %v2597_v18 }
 0x251   : > { %v2629_v38 = vpop.permute.xlu1 %2628  ;;  %v2627_v30 = vpop.permute.xlu0 %2626 }
 0x252   : > { %v2637_v37 = vadd.f32 %v2629_v38, %v2600_v0  ;;  %v2636_v11 = vadd.f32 %v2627_v30, %v2599_v51 }
 0x255   : > { %v2662_v63 = vpop.permute.xlu1 %2661  ;;  %v2660_v21 = vpop.permute.xlu0 %2659 }
 0x256   : > { %v2672_v9 = vadd.f32 %v2662_v63, %v2635_v40  ;;  %v2671_v19 = vadd.f32 %v2660_v21, %v2634_v27 }
 0x258   : > { %2885 = vst.msk [vmem:[%s3941_s4 + $0x48] sm:$0xff] %vm1023_vm2, %v2672_v9  ;;  %2884 = vst.msk [vmem:[%s3941_s4 + $0x40] sm:$0xff] %vm1023_vm2, %v2671_v19 }
 0x259   : > { %v2666_v45 = vpop.permute.xlu1 %2665  ;;  %v2664_v8 = vpop.permute.xlu0 %2663 }
 0x25a   : > { %v2674_v47 = vadd.f32 %v2666_v45, %v2637_v37  ;;  %v2673_v35 = vadd.f32 %v2664_v8, %v2636_v11 }
 0x25c   : > { %2887 = vst.msk [vmem:[%s3941_s4 + $0x58] sm:$0xff] %vm1023_vm2, %v2674_v47  ;;  %2886 = vst.msk [vmem:[%s3941_s4 + $0x50] sm:$0xff] %vm1023_vm2, %v2673_v35 }
 0x25d PF: > { %s15_s12 = sadd.s32 1, %s3001_s12  }
 0x25e   : > { %p12_p5 = scmp.ge.s32.totalorder %s15_s12, 4  }
 0x260   :  { %14 = sbr.rel (!%p12_p5) target bundleno = 2 (0x2), region = 75 }
 0x267   :  { %2701 = vsyncpa [#allocation3], 1 }
 0x268   :  { %2703 = vsyncpa [#allocation3 + $0x1], 1 }
 0x269   :  { %2704 = vsyncpa [#allocation5], 1 }

</bundles_post_ra>
